<compile_context>
chip_gen: v6e
topology: v6e:2x2x1
jax: 0.10.0
libtpu: 0.0.40
codegen_flags: <defaults>
</compile_context>

<pallas_src>
import functools

import jax
import jax.numpy as jnp
from jax.experimental import pallas as pl
from jax.experimental.pallas import tpu as pltpu

# Logical (PyTorch) dimensions.
D_IN = 4020
D_H = 150
D_OUT = 1

# Padded, TPU-friendly dimensions (multiples of 128 on lane axes).
D_IN_PAD = 4096
D_H_PAD = 256
D_OUT_PAD = 128


def ffnn_kernel(x_ref, w0_ref, b0_ref, w1_ref, b1_ref, w2_ref, b2_ref, o_ref):
    # Whole 3-layer MLP hot path in one kernel: bf16 MXU matmuls with f32
    # accumulation, VPU ReLUs. Dropout(0.2) is identity at inference time.
    x = x_ref[...]  # (tile_m, 4096) bf16
    h0 = jnp.dot(x, w0_ref[...], preferred_element_type=jnp.float32) + b0_ref[...]
    h0 = jnp.maximum(h0, 0.0).astype(jnp.bfloat16)
    h1 = jnp.dot(h0, w1_ref[...], preferred_element_type=jnp.float32) + b1_ref[...]
    h1 = jnp.maximum(h1, 0.0).astype(jnp.bfloat16)
    h2 = jnp.dot(h1, w2_ref[...], preferred_element_type=jnp.float32) + b2_ref[...]
    o_ref[...] = jnp.maximum(h2, 0.0).astype(o_ref.dtype)  # (tile_m, 128), col 0 is real


def _pad_to(a, shape):
    return jnp.pad(a, [(0, t - s) for s, t in zip(a.shape, shape)])


def prepare_params(params):
    """Pad + cast PyTorch-layout weights once (hoisted out of the hot path)."""
    w0, b0, w1, b1, w2, b2 = params
    w0_p = _pad_to(w0, (D_IN_PAD, D_H_PAD)).astype(jnp.bfloat16)
    b0_p = _pad_to(b0.reshape(1, -1), (1, D_H_PAD)).astype(jnp.float32)
    w1_p = _pad_to(w1, (D_H_PAD, D_H_PAD)).astype(jnp.bfloat16)
    b1_p = _pad_to(b1.reshape(1, -1), (1, D_H_PAD)).astype(jnp.float32)
    w2_p = _pad_to(w2, (D_H_PAD, D_OUT_PAD)).astype(jnp.bfloat16)
    b2_p = _pad_to(b2.reshape(1, -1), (1, D_OUT_PAD)).astype(jnp.float32)
    return (w0_p, b0_p, w1_p, b1_p, w2_p, b2_p)


@functools.partial(jax.jit, static_argnames=("tile_m",))
def ffnn_antecedent_forward(x, prepared_params, *, tile_m=256):
    """x: [N, 4020] float -> [N, 1] float32 (any N; padded internally)."""
    assert tile_m % 16 == 0, "tile_m must be sublane-aligned for bf16 tiles"
    w0_p, b0_p, w1_p, b1_p, w2_p, b2_p = prepared_params

    n = x.shape[0]
    num_tiles = pl.cdiv(n, tile_m)
    n_pad = num_tiles * tile_m
    grid = (num_tiles,)

    # Zero-pad batch to the tile boundary and features to 4096; bf16 for MXU.
    x_p = _pad_to(x, (n_pad, D_IN_PAD)).astype(jnp.bfloat16)

    flops = 2 * n_pad * (D_IN_PAD * D_H_PAD + D_H_PAD * D_H_PAD + D_H_PAD * D_OUT_PAD)
    bytes_accessed = (
        x_p.size * 2
        + (w0_p.size + w1_p.size + w2_p.size) * 2
        + (b0_p.size + b1_p.size + b2_p.size) * 4
        + n_pad * D_OUT_PAD * 4
    )

    out = pl.pallas_call(
        ffnn_kernel,
        out_shape=jax.ShapeDtypeStruct((n_pad, D_OUT_PAD), jnp.float32),
        grid_spec=pltpu.PrefetchScalarGridSpec(
            num_scalar_prefetch=0,
            grid=grid,
            in_specs=[
                pl.BlockSpec((tile_m, D_IN_PAD), lambda i: (i, 0)),   # x tile (streams)
                pl.BlockSpec((D_IN_PAD, D_H_PAD), lambda i: (0, 0)),  # W0 (resident)
                pl.BlockSpec((1, D_H_PAD), lambda i: (0, 0)),         # b0
                pl.BlockSpec((D_H_PAD, D_H_PAD), lambda i: (0, 0)),   # W1
                pl.BlockSpec((1, D_H_PAD), lambda i: (0, 0)),         # b1
                pl.BlockSpec((D_H_PAD, D_OUT_PAD), lambda i: (0, 0)), # W2 (padded to 128 cols)
                pl.BlockSpec((1, D_OUT_PAD), lambda i: (0, 0)),       # b2
            ],
            out_specs=pl.BlockSpec((tile_m, D_OUT_PAD), lambda i: (i, 0)),
        ),
        compiler_params=pltpu.CompilerParams(
            dimension_semantics=("parallel",),        # batch tiles independent -> megacore
            vmem_limit_bytes=48 * 1024 * 1024,        # headroom above scoped defaults
        ),
        cost_estimate=pl.CostEstimate(
            flops=flops, transcendentals=0, bytes_accessed=bytes_accessed
        ),
    )(x_p, w0_p, b0_p, w1_p, b1_p, w2_p, b2_p)

    # Drop batch padding and the zero-padded output lanes.
    return out[:n, :D_OUT]


def init_params(key):
    """Deterministic init mimicking PyTorch nn.Linear default (U(-1/sqrt(fan_in), +))."""
    ks = jax.random.split(key, 6)

    def lin(kw, kb, fan_in, fan_out):
        bound = 1.0 / jnp.sqrt(float(fan_in))
        w = jax.random.uniform(kw, (fan_in, fan_out), jnp.float32, -bound, bound)
        b = jax.random.uniform(kb, (1, fan_out), jnp.float32, -bound, bound)
        return w, b

    w0, b0 = lin(ks[0], ks[1], D_IN, D_H)
    w1, b1 = lin(ks[2], ks[3], D_H, D_H)
    w2, b2 = lin(ks[4], ks[5], D_H, D_OUT)
    return (w0, b0, w1, b1, w2, b2)


def reference_forward(x, params):
    """Pure-JAX reference with the same bf16-input / f32-accumulate math."""
    w0, b0, w1, b1, w2, b2 = params
    xb = x.astype(jnp.bfloat16)
    w0b, w1b, w2b = (w.astype(jnp.bfloat16) for w in (w0, w1, w2))
    h = jnp.maximum(jnp.dot(xb, w0b, preferred_element_type=jnp.float32) + b0, 0.0)
    h = jnp.maximum(
        jnp.dot(h.astype(jnp.bfloat16), w1b, preferred_element_type=jnp.float32) + b1, 0.0)
    h = jnp.maximum(
        jnp.dot(h.astype(jnp.bfloat16), w2b, preferred_element_type=jnp.float32) + b2, 0.0)
    return h


if __name__ == "__main__":
    key = jax.random.PRNGKey(0)
    k_x, k_p = jax.random.split(key)

    # Small, non-tile-aligned batch of antecedent-pair feature vectors
    # (exercises cdiv padding and a >1 grid so both v7x TCs get work).
    N = 300
    x = jax.random.normal(k_x, (N, D_IN), dtype=jnp.float32)
    params = init_params(k_p)
    prepared = prepare_params(params)

    out = ffnn_antecedent_forward(x, prepared, tile_m=256)
    out = jax.block_until_ready(out)

    ref = reference_forward(x, params)
    assert out.shape == (N, D_OUT)
    assert jnp.allclose(out, ref, atol=1e-2, rtol=1e-2), "mismatch vs reference"

    print("KERNEL_OK")
</pallas_src>

<mosaic_0001>
module attributes {stable_mosaic.version = 11 : i64} {
  func.func @ffnn_kernel(%arg0: i32, %arg1: memref<256x4096xbf16, #tpu.memory_space<vmem>>, %arg2: memref<4096x256xbf16, #tpu.memory_space<vmem>>, %arg3: memref<1x256xf32, #tpu.memory_space<vmem>>, %arg4: memref<256x256xbf16, #tpu.memory_space<vmem>>, %arg5: memref<1x256xf32, #tpu.memory_space<vmem>>, %arg6: memref<256x128xbf16, #tpu.memory_space<vmem>>, %arg7: memref<1x128xf32, #tpu.memory_space<vmem>>, %arg8: memref<256x128xf32, #tpu.memory_space<vmem>>) attributes {dimension_semantics = [#tpu.dimension_semantics<parallel>], iteration_bounds = array<i64: 2>, scalar_prefetch = 0 : i64, scratch_operands = 0 : i64, tpu.core_type = #tpu.core_type<tc>, window_params = [{transform_indices = @transform_0, window_bounds = array<i64: 256, 4096>}, {pipeline_mode = #tpu.pipeline_mode<synchronous>, transform_indices = @transform_1, window_bounds = array<i64: 4096, 256>}, {pipeline_mode = #tpu.pipeline_mode<synchronous>, transform_indices = @transform_2, window_bounds = array<i64: 1, 256>}, {pipeline_mode = #tpu.pipeline_mode<synchronous>, transform_indices = @transform_3, window_bounds = array<i64: 256, 256>}, {pipeline_mode = #tpu.pipeline_mode<synchronous>, transform_indices = @transform_4, window_bounds = array<i64: 1, 256>}, {pipeline_mode = #tpu.pipeline_mode<synchronous>, transform_indices = @transform_5, window_bounds = array<i64: 256, 128>}, {pipeline_mode = #tpu.pipeline_mode<synchronous>, transform_indices = @transform_6, window_bounds = array<i64: 1, 128>}, {transform_indices = @transform_7, window_bounds = array<i64: 256, 128>}]} {
    %c0 = arith.constant 0 : index
    %c0_0 = arith.constant 0 : index
    %0 = vector.load %arg1[%c0, %c0_0] : memref<256x4096xbf16, #tpu.memory_space<vmem>>, vector<256x4096xbf16>
    %c0_1 = arith.constant 0 : index
    %c0_2 = arith.constant 0 : index
    %1 = vector.load %arg2[%c0_1, %c0_2] : memref<4096x256xbf16, #tpu.memory_space<vmem>>, vector<4096x256xbf16>
    %cst = arith.constant dense<0.000000e+00> : vector<256x256xf32>
    %2 = tpu.matmul %0, %1, %cst {dimension_numbers = #tpu.dot_dimension_numbers<[1], [0], [0], [1], [0, 0, 1, 1], [], []>} : vector<256x4096xbf16>, vector<4096x256xbf16>, vector<256x256xf32> -> vector<256x256xf32>
    %c0_3 = arith.constant 0 : index
    %c0_4 = arith.constant 0 : index
    %3 = vector.load %arg3[%c0_3, %c0_4] : memref<1x256xf32, #tpu.memory_space<vmem>>, vector<1x256xf32>
    %4 = vector.broadcast %3 : vector<1x256xf32> to vector<256x256xf32>
    %5 = arith.addf %2, %4 : vector<256x256xf32>
    %cst_5 = arith.constant 0.000000e+00 : f32
    %6 = vector.broadcast %cst_5 : f32 to vector<256x256xf32>
    %7 = arith.maximumf %5, %6 : vector<256x256xf32>
    %8 = arith.truncf %7 : vector<256x256xf32> to vector<256x256xbf16>
    %c0_6 = arith.constant 0 : index
    %c0_7 = arith.constant 0 : index
    %9 = vector.load %arg4[%c0_6, %c0_7] : memref<256x256xbf16, #tpu.memory_space<vmem>>, vector<256x256xbf16>
    %cst_8 = arith.constant dense<0.000000e+00> : vector<256x256xf32>
    %10 = tpu.matmul %8, %9, %cst_8 {dimension_numbers = #tpu.dot_dimension_numbers<[1], [0], [0], [1], [0, 0, 1, 1], [], []>} : vector<256x256xbf16>, vector<256x256xbf16>, vector<256x256xf32> -> vector<256x256xf32>
    %c0_9 = arith.constant 0 : index
    %c0_10 = arith.constant 0 : index
    %11 = vector.load %arg5[%c0_9, %c0_10] : memref<1x256xf32, #tpu.memory_space<vmem>>, vector<1x256xf32>
    %12 = vector.broadcast %11 : vector<1x256xf32> to vector<256x256xf32>
    %13 = arith.addf %10, %12 : vector<256x256xf32>
    %cst_11 = arith.constant 0.000000e+00 : f32
    %14 = vector.broadcast %cst_11 : f32 to vector<256x256xf32>
    %15 = arith.maximumf %13, %14 : vector<256x256xf32>
    %16 = arith.truncf %15 : vector<256x256xf32> to vector<256x256xbf16>
    %c0_12 = arith.constant 0 : index
    %c0_13 = arith.constant 0 : index
    %17 = vector.load %arg6[%c0_12, %c0_13] : memref<256x128xbf16, #tpu.memory_space<vmem>>, vector<256x128xbf16>
    %cst_14 = arith.constant dense<0.000000e+00> : vector<256x128xf32>
    %18 = tpu.matmul %16, %17, %cst_14 {dimension_numbers = #tpu.dot_dimension_numbers<[1], [0], [0], [1], [0, 0, 1, 1], [], []>} : vector<256x256xbf16>, vector<256x128xbf16>, vector<256x128xf32> -> vector<256x128xf32>
    %c0_15 = arith.constant 0 : index
    %c0_16 = arith.constant 0 : index
    %19 = vector.load %arg7[%c0_15, %c0_16] : memref<1x128xf32, #tpu.memory_space<vmem>>, vector<1x128xf32>
    %20 = vector.broadcast %19 : vector<1x128xf32> to vector<256x128xf32>
    %21 = arith.addf %18, %20 : vector<256x128xf32>
    %cst_17 = arith.constant 0.000000e+00 : f32
    %22 = vector.broadcast %cst_17 : f32 to vector<256x128xf32>
    %23 = arith.maximumf %21, %22 : vector<256x128xf32>
    %c0_18 = arith.constant 0 : index
    %c0_19 = arith.constant 0 : index
    %24 = vector.load %arg8[%c0_18, %c0_19] : memref<256x128xf32, #tpu.memory_space<vmem>>, vector<256x128xf32>
    tpu.vector_store %arg8[%c0_18, %c0_19], %23 {strides = array<i32>} : memref<256x128xf32, #tpu.memory_space<vmem>>, vector<256x128xf32>,
    return
  }
  func.func @transform_0(%arg0: i32) -> (i32, i32) {
    %c0_i32 = arith.constant 0 : i32
    %c0_i32_0 = arith.constant 0 : i32
    return %arg0, %c0_i32 : i32, i32
  }
  func.func @transform_1(%arg0: i32) -> (i32, i32) {
    %c0_i32 = arith.constant 0 : i32
    %c0_i32_0 = arith.constant 0 : i32
    %c0_i32_1 = arith.constant 0 : i32
    return %c0_i32, %c0_i32_0 : i32, i32
  }
  func.func @transform_2(%arg0: i32) -> (i32, i32) {
    %c0_i32 = arith.constant 0 : i32
    %c0_i32_0 = arith.constant 0 : i32
    %c0_i32_1 = arith.constant 0 : i32
    return %c0_i32, %c0_i32_0 : i32, i32
  }
  func.func @transform_3(%arg0: i32) -> (i32, i32) {
    %c0_i32 = arith.constant 0 : i32
    %c0_i32_0 = arith.constant 0 : i32
    %c0_i32_1 = arith.constant 0 : i32
    return %c0_i32, %c0_i32_0 : i32, i32
  }
  func.func @transform_4(%arg0: i32) -> (i32, i32) {
    %c0_i32 = arith.constant 0 : i32
    %c0_i32_0 = arith.constant 0 : i32
    %c0_i32_1 = arith.constant 0 : i32
    return %c0_i32, %c0_i32_0 : i32, i32
  }
  func.func @transform_5(%arg0: i32) -> (i32, i32) {
    %c0_i32 = arith.constant 0 : i32
    %c0_i32_0 = arith.constant 0 : i32
    %c0_i32_1 = arith.constant 0 : i32
    return %c0_i32, %c0_i32_0 : i32, i32
  }
  func.func @transform_6(%arg0: i32) -> (i32, i32) {
    %c0_i32 = arith.constant 0 : i32
    %c0_i32_0 = arith.constant 0 : i32
    %c0_i32_1 = arith.constant 0 : i32
    return %c0_i32, %c0_i32_0 : i32, i32
  }
  func.func @transform_7(%arg0: i32) -> (i32, i32) {
    %c0_i32 = arith.constant 0 : i32
    %c0_i32_0 = arith.constant 0 : i32
    return %arg0, %c0_i32 : i32, i32
  }
}

</mosaic_0001>

<bundles_post_ra>
// kernel: ffnn_antecedent_forward.1
= control target key start
LH: loop header
LB: loop body
LE: loop exit
PB: predicated region body
PF: predicated region fallthrough
CT: control target
= control target key end

     0   :  { %s12621_s24 = smov 0   ;;  %s17139_s0 = inlined_call_operand.vmem [shape: bf16[512,4096], index: 0, kind: input, shape index: {}]   ;;  %s17140_s1 = inlined_call_operand.vmem [shape: bf16[4096,256], index: 1, kind: input, shape index: {}]   ;;  %s17141_s2 = inlined_call_operand.vmem [shape: f32[1,256], index: 2, kind: input, shape index: {}]   ;;  %s17142_s3 = inlined_call_operand.vmem [shape: bf16[256,256], index: 3, kind: input, shape index: {}]   ;;  %s17143_s4 = inlined_call_operand.vmem [shape: f32[1,256], index: 4, kind: input, shape index: {}]   ;;  %s17144_s5 = inlined_call_operand.vmem [shape: bf16[256,128], index: 5, kind: input, shape index: {}]   ;;  %s17145_s6 = inlined_call_operand.vmem [shape: f32[1,128], index: 6, kind: input, shape index: {}]   ;;  %s17146_s7 = inlined_call_operand.vmem [shape: f32[512,128], index: 7, kind: output, shape index: {}]  }
   0x1 LB: > { %s10535_s25 = sadd.s32 4294967295, %s12579_s24   ;;  %p10539_p0 = scmp.ge.s32.totalorder %s12579_s24, 1  ;;  %s12579_s24 = sphi %s12621_s24, %s17_s24  }
   0x2   : > { %p239_p1 = scmp.lt.s32.totalorder %s12579_s24, 3 }
   0x4   : > { %p240_p2 = pnand %p10539_p0, %p239_p1 }
   0x6   : > { %243 = sbr.rel (%p240_p2) target bundleno = 1712 (0x6b0), region = 48 }
   0xb   : > { %v11741_v0 = vld [vmem:[%s17140_s1 + $0x74] ss:$8 sps:$4 sm:$0xff]   ;;  %v11745_v2 = vld [vmem:[%s17140_s1 + $0x70] ss:$8 sps:$4 sm:$0xff]   ;;  %v11747_v4 = vld [vmem:[%s17140_s1 + $0x64] ss:$8 sps:$4 sm:$0xff]  }
   0xc   : > { %v11743_v1 = vld [vmem:[%s17140_s1 + $0x174] ss:$8 sps:$4 sm:$0xff]   ;;  %6442 = vmatprep.subr.bf16.mxu0 %v11741_v0  ;;  %v11746_v3 = vld [vmem:[%s17140_s1 + $0x170] ss:$8 sps:$4 sm:$0xff]   ;;  %v11749_v5 = vld [vmem:[%s17140_s1 + $0x164] ss:$8 sps:$4 sm:$0xff]  }
   0xd   : > { %6635 = vmatprep.subr.bf16.mxu1 %v11743_v1  ;;  %6443 = vmatpush1.bf16.msra.mxu0 %v11745_v2  ;;  %v11751_v6 = vld [vmem:[%s17140_s1 + $0x60] ss:$8 sps:$4 sm:$0xff]   ;;  %v11753_v8 = vld [vmem:[%s17140_s1 + $0x54] ss:$8 sps:$4 sm:$0xff]   ;;  %v11757_v10 = vld [vmem:[%s17140_s1 + $0x50] ss:$8 sps:$4 sm:$0xff]  }
   0xe   : > { %6636 = vmatpush1.bf16.msra.mxu1 %v11746_v3  ;;  %6444 = vmatprep.subr.bf16.mxu0 %v11747_v4  ;;  %v11752_v7 = vld [vmem:[%s17140_s1 + $0x160] ss:$8 sps:$4 sm:$0xff]   ;;  %v11755_v9 = vld [vmem:[%s17140_s1 + $0x154] ss:$8 sps:$4 sm:$0xff]   ;;  %v11758_v11 = vld [vmem:[%s17140_s1 + $0x150] ss:$8 sps:$4 sm:$0xff]  }
   0xf   : > { %6637 = vmatprep.subr.bf16.mxu1 %v11749_v5  ;;  %v11759_v12 = vld [vmem:[%s17140_s1 + $0x44] ss:$8 sps:$4 sm:$0xff]   ;;  %v11763_v14 = vld [vmem:[%s17140_s1 + $0x40] ss:$8 sps:$4 sm:$0xff]   ;;  %v11765_v16 = vld [vmem:[%s17140_s1 + $0x34] ss:$8 sps:$4 sm:$0xff]  }
  0x10   : > { %v11761_v13 = vld [vmem:[%s17140_s1 + $0x144] ss:$8 sps:$4 sm:$0xff]   ;;  %v11764_v15 = vld [vmem:[%s17140_s1 + $0x140] ss:$8 sps:$4 sm:$0xff]   ;;  %v11767_v17 = vld [vmem:[%s17140_s1 + $0x134] ss:$8 sps:$4 sm:$0xff]  }
  0x11   : > { %6445 = vmatpush1.bf16.msra.mxu0 %v11751_v6  ;;  %v11769_v18 = vld [vmem:[%s17140_s1 + $0x30] ss:$8 sps:$4 sm:$0xff]   ;;  %v11771_v20 = vld [vmem:[%s17140_s1 + $0x24] ss:$8 sps:$4 sm:$0xff]   ;;  %v11775_v22 = vld [vmem:[%s17140_s1 + $0x20] ss:$8 sps:$4 sm:$0xff]  }
  0x12   : > { %6638 = vmatpush1.bf16.msra.mxu1 %v11752_v7  ;;  %6446 = vmatprep.subr.bf16.mxu0 %v11753_v8  ;;  %v11770_v19 = vld [vmem:[%s17140_s1 + $0x130] ss:$8 sps:$4 sm:$0xff]   ;;  %v11773_v21 = vld [vmem:[%s17140_s1 + $0x124] ss:$8 sps:$4 sm:$0xff]   ;;  %v11776_v23 = vld [vmem:[%s17140_s1 + $0x120] ss:$8 sps:$4 sm:$0xff]  }
  0x13   : > { %6639 = vmatprep.subr.bf16.mxu1 %v11755_v9  ;;  %v11777_v24 = vld [vmem:[%s17140_s1 + $0x14] ss:$8 sps:$4 sm:$0xff]   ;;  %v11781_v26 = vld [vmem:[%s17140_s1 + $0x10] ss:$8 sps:$4 sm:$0xff]   ;;  %v11783_v28 = vld [vmem:[%s17140_s1 + $0x4] ss:$8 sps:$4 sm:$0xff]  }
  0x14   : > { %v11779_v25 = vld [vmem:[%s17140_s1 + $0x114] ss:$8 sps:$4 sm:$0xff]   ;;  %v11782_v27 = vld [vmem:[%s17140_s1 + $0x110] ss:$8 sps:$4 sm:$0xff]   ;;  %v11785_v29 = vld [vmem:[%s17140_s1 + $0x104] ss:$8 sps:$4 sm:$0xff]  }
  0x15   : > { %6447 = vmatpush1.bf16.msra.mxu0 %v11757_v10  ;;  %s10540_s21 = sshll.u32 %s10535_s25, 5  ;;  %v11787_v30 = vld [vmem:[%s17140_s1] ss:$8 sps:$4 sm:$0xff]   ;;  %v11789_v32 = vld [vmem:[%s17140_s1 + $0xf4] ss:$8 sps:$4 sm:$0xff]  }
  0x16   : > { %6640 = vmatpush1.bf16.msra.mxu1 %v11758_v11  ;;  %6448 = vmatprep.subr.bf16.mxu0 %v11759_v12  ;;  %v11788_v31 = vld [vmem:[%s17140_s1 + $0x100] ss:$8 sps:$4 sm:$0xff]   ;;  %p273_p3 = scmp.lt.s32.totalorder %s10540_s21, 63  ;;  %v11791_v33 = vld [vmem:[%s17140_s1 + $0x1f4] ss:$8 sps:$4 sm:$0xff]  }
  0x17   : > { %6641 = vmatprep.subr.bf16.mxu1 %v11761_v13  ;;  %v11793_v34 = vld [vmem:[%s17140_s1 + $0xf0] ss:$8 sps:$4 sm:$0xff]   ;;  %v11795_v36 = vld [vmem:[%s17140_s1 + $0xe4] ss:$8 sps:$4 sm:$0xff]   ;;  %v11799_v38 = vld [vmem:[%s17140_s1 + $0xe0] ss:$8 sps:$4 sm:$0xff]  }
  0x18   : > { %v11794_v35 = vld [vmem:[%s17140_s1 + $0x1f0] ss:$8 sps:$4 sm:$0xff]   ;;  %s17508_s21 = smov (!%p273_p3, %s10540_s21), 63  ;;  %v11797_v37 = vld [vmem:[%s17140_s1 + $0x1e4] ss:$8 sps:$4 sm:$0xff]  }
  0x19   : > { %6449 = vmatpush1.bf16.msra.mxu0 %v11763_v14  ;;  %v11800_v39 = vld [vmem:[%s17140_s1 + $0x1e0] ss:$8 sps:$4 sm:$0xff]   ;;  %v11801_v40 = vld [vmem:[%s17140_s1 + $0xd4] ss:$8 sps:$4 sm:$0xff]   ;;  %s11620_s23 = sshll.u32 %s17508_s21, 7  ;;  %s10544_s30 = sshll.u32 %s17508_s21, 3 }
  0x1a   : > { %6642 = vmatpush1.bf16.msra.mxu1 %v11764_v15  ;;  %6450 = vmatprep.subr.bf16.mxu0 %v11765_v16  ;;  %v11803_v41 = vld [vmem:[%s17140_s1 + $0x1d4] ss:$8 sps:$4 sm:$0xff]   ;;  %v11805_v42 = vld [vmem:[%s17140_s1 + $0xd0] ss:$8 sps:$4 sm:$0xff]   ;;  %s12769_s10 = scalar_lea.vmem %s17139_s0, %s11620_s23  ;;  %v11807_v44 = vld [vmem:[%s17140_s1 + $0xc4] ss:$8 sps:$4 sm:$0xff]   ;;  %s17071_s9 = scalar_lea.vmem %s17146_s7, %s10544_s30 }
  0x1b   : > { %6643 = vmatprep.subr.bf16.mxu1 %v11767_v17  ;;  %v11806_v43 = vld [vmem:[%s17140_s1 + $0x1d0] ss:$8 sps:$4 sm:$0xff]   ;;  %v11809_v45 = vld [vmem:[%s17140_s1 + $0x1c4] ss:$8 sps:$4 sm:$0xff]   ;;  %v11811_v46 = vld [vmem:[%s17140_s1 + $0xc0] ss:$8 sps:$4 sm:$0xff]  }
  0x1c   : > { %v11812_v47 = vld [vmem:[%s17140_s1 + $0x1c0] ss:$8 sps:$4 sm:$0xff]   ;;  %v11813_v52 = vld [vmem:[%s17140_s1 + $0xb4] ss:$8 sps:$4 sm:$0xff]   ;;  %v11817_v56 = vld [vmem:[%s17140_s1 + $0xb0] ss:$8 sps:$4 sm:$0xff]  }
  0x1d   : > { %6451 = vmatpush1.bf16.msra.mxu0 %v11769_v18  ;;  %v12784_v48 = vld [vmem:[%s12769_s10] sm:$0xff]  ;;  %v12790_v50 = vld [vmem:[%s12769_s10 + $0x8] sm:$0xff]  ;;  %v11815_v54 = vld [vmem:[%s17140_s1 + $0x1b4] ss:$8 sps:$4 sm:$0xff]  }
  0x1e   : > { %6644 = vmatpush1.bf16.msra.mxu1 %v11770_v19  ;;  %6452 = vmatprep.subr.bf16.mxu0 %v11771_v20  ;;  %v12787_v49 = vld [vmem:[%s12769_s10 + $0x80] sm:$0xff]  ;;  %v303_v51 = vld [vmem:[%s12769_s10 + $0x88] sm:$0xff]  ;;  %v11818_v57 = vld [vmem:[%s17140_s1 + $0x1b0] ss:$8 sps:$4 sm:$0xff]  }
  0x1f   : > { %6645 = vmatprep.subr.bf16.mxu1 %v11773_v21  ;;  %v10546_v53 = vcombine.high %v12784_v48, %v12787_v49  ;;  %v10548_v55 = vcombine.high %v12790_v50, %v303_v51  ;;  %v11819_v58 = vld [vmem:[%s17140_s1 + $0xa4] ss:$8 sps:$4 sm:$0xff]   ;;  %v11823_v60 = vld [vmem:[%s17140_s1 + $0xa0] ss:$8 sps:$4 sm:$0xff]   ;;  %v11825_v62 = vld [vmem:[%s17140_s1 + $0x94] ss:$8 sps:$4 sm:$0xff]   ;;  %v10545_v12 = vcombine.low %v12784_v48, %v12787_v49  ;;  %v10547_v13 = vcombine.low %v12790_v50, %v303_v51 }
  0x20   : > { %v11821_v59 = vld [vmem:[%s17140_s1 + $0x1a4] ss:$8 sps:$4 sm:$0xff]   ;;  %v11824_v61 = vld [vmem:[%s17140_s1 + $0x1a0] ss:$8 sps:$4 sm:$0xff]   ;;  %v11827_v63 = vld [vmem:[%s17140_s1 + $0x194] ss:$8 sps:$4 sm:$0xff]  }
  0x21   : > { %6453 = vmatpush1.bf16.msra.mxu0 %v11775_v22  ;;  %6474 = vmatprep.mubr.bf16.mxu0 %v10546_v53  ;;  %v11829_v0 = vld [vmem:[%s17140_s1 + $0x90] ss:$8 sps:$4 sm:$0xff]   ;;  %v11831_v2 = vld [vmem:[%s17140_s1 + $0x84] ss:$8 sps:$4 sm:$0xff]   ;;  %v11835_v4 = vld [vmem:[%s17140_s1 + $0x80] ss:$8 sps:$4 sm:$0xff]  }
  0x22   : > { %6646 = vmatpush1.bf16.msra.mxu1 %v11776_v23  ;;  %6454 = vmatprep.subr.bf16.mxu0 %v11777_v24  ;;  %v11830_v1 = vld [vmem:[%s17140_s1 + $0x190] ss:$8 sps:$4 sm:$0xff]   ;;  %v11833_v3 = vld [vmem:[%s17140_s1 + $0x184] ss:$8 sps:$4 sm:$0xff]   ;;  %v11836_v5 = vld [vmem:[%s17140_s1 + $0x180] ss:$8 sps:$4 sm:$0xff]  }
  0x23   : > { %6647 = vmatprep.subr.bf16.mxu1 %v11779_v25  ;;  %6667 = vmatprep.mubr.bf16.mxu1 %v10548_v55  ;;  %v11839_v6 = vld [vmem:[%s17140_s1 + $0x274] ss:$8 sps:$4 sm:$0xff]   ;;  %v318_v8 = vld [vmem:[%s12769_s10 + $0x100] sm:$0xff]  ;;  %v319_v10 = vld [vmem:[%s12769_s10 + $0x108] sm:$0xff] }
  0x24   : > { %v11842_v7 = vld [vmem:[%s17140_s1 + $0x374] ss:$8 sps:$4 sm:$0xff]   ;;  %v334_v9 = vld [vmem:[%s12769_s10 + $0x180] sm:$0xff]  ;;  %v335_v11 = vld [vmem:[%s12769_s10 + $0x188] sm:$0xff] }
  0x25   : > { %6455 = vmatpush1.bf16.msra.mxu0 %v11781_v26  ;;  %v11837_v14 = vld [vmem:[%s17140_s1 + $0x270] ss:$8 sps:$4 sm:$0xff]   ;;  %v10578_v16 = vcombine.high %v318_v8, %v334_v9  ;;  %v10580_v17 = vcombine.high %v319_v10, %v335_v11  ;;  %v11843_v18 = vld [vmem:[%s17140_s1 + $0x260] ss:$8 sps:$4 sm:$0xff]   ;;  %v11845_v19 = vld [vmem:[%s17140_s1 + $0x264] ss:$8 sps:$4 sm:$0xff]  }
  0x26   : > { %6648 = vmatpush1.bf16.msra.mxu1 %v11782_v27  ;;  %6456 = vmatprep.subr.bf16.mxu0 %v11783_v28  ;;  %v11840_v15 = vld [vmem:[%s17140_s1 + $0x370] ss:$8 sps:$4 sm:$0xff]   ;;  %v11846_v20 = vld [vmem:[%s17140_s1 + $0x360] ss:$8 sps:$4 sm:$0xff]   ;;  %v11848_v21 = vld [vmem:[%s17140_s1 + $0x364] ss:$8 sps:$4 sm:$0xff]   ;;  %v10577_v28 = vcombine.low %v318_v8, %v334_v9 }
  0x27   : > { %6649 = vmatprep.subr.bf16.mxu1 %v11785_v29  ;;  %v350_v22 = vld [vmem:[%s12769_s10 + $0x200] sm:$0xff]  ;;  %v351_v24 = vld [vmem:[%s12769_s10 + $0x208] sm:$0xff]  ;;  %v11851_v26 = vld [vmem:[%s17140_s1 + $0x254] ss:$8 sps:$4 sm:$0xff]   ;;  %v10579_v29 = vcombine.low %v319_v10, %v335_v11 }
  0x28   : > { %v366_v23 = vld [vmem:[%s12769_s10 + $0x280] sm:$0xff]  ;;  %v367_v25 = vld [vmem:[%s12769_s10 + $0x288] sm:$0xff]  ;;  %v11854_v27 = vld [vmem:[%s17140_s1 + $0x354] ss:$8 sps:$4 sm:$0xff]  }
  0x29   : > { %6457 = vmatpush1.bf16.msra.mxu0 %v11787_v30  ;;  %v10610_v30 = vcombine.high %v350_v22, %v366_v23  ;;  %v11861_v48 = vld [vmem:[%s17140_s1 + $0x230] ss:$8 sps:$4 sm:$0xff]   ;;  %v11869_v50 = vld [vmem:[%s17140_s1 + $0x224] ss:$8 sps:$4 sm:$0xff]   ;;  %v11879_v8 = vld [vmem:[%s17140_s1 + $0x200] ss:$8 sps:$4 sm:$0xff]  }
  0x2a   : > { %6650 = vmatpush1.bf16.msra.mxu1 %v11788_v31  ;;  %6458 = vmatprep.subr.bf16.mxu0 %v11789_v32  ;;  %v10612_v31 = vcombine.high %v351_v24, %v367_v25  ;;  %v11849_v32 = vld [vmem:[%s17140_s1 + $0x250] ss:$8 sps:$4 sm:$0xff]   ;;  %v11872_v51 = vld [vmem:[%s17140_s1 + $0x324] ss:$8 sps:$4 sm:$0xff]   ;;  %v11882_v9 = vld [vmem:[%s17140_s1 + $0x300] ss:$8 sps:$4 sm:$0xff]  }
  0x2b   : > { %6651 = vmatprep.subr.bf16.mxu1 %v11791_v33  ;;  %v11852_v33 = vld [vmem:[%s17140_s1 + $0x350] ss:$8 sps:$4 sm:$0xff]   ;;  %v430_v53 = vld [vmem:[%s12769_s10 + $0x480] sm:$0xff]  ;;  %v431_v55 = vld [vmem:[%s12769_s10 + $0x488] sm:$0xff] }
  0x2c   : > { %v11864_v49 = vld [vmem:[%s17140_s1 + $0x330] ss:$8 sps:$4 sm:$0xff]   ;;  %v11887_v10 = vld [vmem:[%s17140_s1 + $0x2f4] ss:$8 sps:$4 sm:$0xff]  }
  0x2d   : > { %6459 = vmatpush2.bf16.msra.mxu0 %v11793_v34  ;;  %v11857_v34 = vld [vmem:[%s17140_s1 + $0x244] ss:$8 sps:$4 sm:$0xff]   ;;  %v11890_v11 = vld [vmem:[%s17140_s1 + $0x3f4] ss:$8 sps:$4 sm:$0xff]  }
  0x2e   : > { %6652 = vmatpush2.bf16.msra.mxu1 %v11794_v35  ;;  %6460 = vmatprep.subr.bf16.mxu0 %v11795_v36  ;;  %v11860_v35 = vld [vmem:[%s17140_s1 + $0x344] ss:$8 sps:$4 sm:$0xff]  }
  0x2f   : > { %6653 = vmatprep.subr.bf16.mxu1 %v11797_v37  ;;  %v382_v36 = vld [vmem:[%s12769_s10 + $0x300] sm:$0xff] }
  0x30   : > { %v398_v37 = vld [vmem:[%s12769_s10 + $0x380] sm:$0xff] }
  0x31   : > { %6461 = vmatpush2.bf16.msra.mxu0 %v11799_v38  ;;  %v383_v38 = vld [vmem:[%s12769_s10 + $0x308] sm:$0xff] }
  0x32   : > { %6654 = vmatpush2.bf16.msra.mxu1 %v11800_v39  ;;  %6462 = vmatprep.subr.bf16.mxu0 %v11801_v40  ;;  %v399_v39 = vld [vmem:[%s12769_s10 + $0x388] sm:$0xff] }
  0x33   : > { %6655 = vmatprep.subr.bf16.mxu1 %v11803_v41  ;;  %v11855_v40 = vld [vmem:[%s17140_s1 + $0x240] ss:$8 sps:$4 sm:$0xff]  }
  0x34   : > { %v11858_v41 = vld [vmem:[%s17140_s1 + $0x340] ss:$8 sps:$4 sm:$0xff]  }
  0x35   : > { %6463 = vmatpush2.bf16.msra.mxu0 %v11805_v42  ;;  %v11863_v42 = vld [vmem:[%s17140_s1 + $0x234] ss:$8 sps:$4 sm:$0xff]  }
  0x36   : > { %6656 = vmatpush2.bf16.msra.mxu1 %v11806_v43  ;;  %6464 = vmatprep.subr.bf16.mxu0 %v11807_v44  ;;  %v11866_v43 = vld [vmem:[%s17140_s1 + $0x334] ss:$8 sps:$4 sm:$0xff]   ;;  %v10609_v44 = vcombine.low %v350_v22, %v366_v23  ;;  %v479_v22 = vld [vmem:[%s12769_s10 + $0x608] sm:$0xff] }
  0x37   : > { %6657 = vmatprep.subr.bf16.mxu1 %v11809_v45  ;;  %v10611_v45 = vcombine.low %v351_v24, %v367_v25  ;;  %v495_v23 = vld [vmem:[%s12769_s10 + $0x688] sm:$0xff] }
  0x38   : > { %v11891_v24 = vld [vmem:[%s17140_s1 + $0x2e0] ss:$8 sps:$4 sm:$0xff]  }
  0x39   : > { %6465 = vmatpush2.bf16.msra.mxu0 %v11811_v46  ;;  %v10642_v46 = vcombine.high %v382_v36, %v398_v37  ;;  %v11894_v25 = vld [vmem:[%s17140_s1 + $0x3e0] ss:$8 sps:$4 sm:$0xff]  }
  0x3a   : > { %6658 = vmatpush2.bf16.msra.mxu1 %v11812_v47  ;;  %6466 = vmatprep.subr.bf16.mxu0 %v11813_v52  ;;  %v10644_v47 = vcombine.high %v383_v38, %v399_v39  ;;  %v414_v52 = vld [vmem:[%s12769_s10 + $0x400] sm:$0xff] }
  0x3b   : > { %6659 = vmatprep.subr.bf16.mxu1 %v11815_v54  ;;  %v415_v54 = vld [vmem:[%s12769_s10 + $0x408] sm:$0xff] }
  0x3d   : > { %6467 = vmatpush2.bf16.msra.mxu0 %v11817_v56  ;;  %v11867_v56 = vld [vmem:[%s17140_s1 + $0x220] ss:$8 sps:$4 sm:$0xff]  }
  0x3e   : > { %6660 = vmatpush2.bf16.msra.mxu1 %v11818_v57  ;;  %6468 = vmatprep.subr.bf16.mxu0 %v11819_v58  ;;  %v11870_v57 = vld [vmem:[%s17140_s1 + $0x320] ss:$8 sps:$4 sm:$0xff]   ;;  %v11875_v58 = vld [vmem:[%s17140_s1 + $0x214] ss:$8 sps:$4 sm:$0xff]  }
  0x3f   : > { %6661 = vmatprep.subr.bf16.mxu1 %v11821_v59  ;;  %v11878_v59 = vld [vmem:[%s17140_s1 + $0x314] ss:$8 sps:$4 sm:$0xff]  }
  0x41   : > { %6469 = vmatpush2.bf16.msra.mxu0 %v11823_v60  ;;  %v10641_v60 = vcombine.low %v382_v36, %v398_v37  ;;  %v510_v36 = vld [vmem:[%s12769_s10 + $0x700] sm:$0xff] }
  0x42   : > { %6662 = vmatpush2.bf16.msra.mxu1 %v11824_v61  ;;  %6470 = vmatprep.subr.bf16.mxu0 %v11825_v62  ;;  %v10643_v61 = vcombine.low %v383_v38, %v399_v39  ;;  %v10674_v62 = vcombine.high %v414_v52, %v430_v53  ;;  %v526_v37 = vld [vmem:[%s12769_s10 + $0x780] sm:$0xff]  ;;  %v511_v38 = vld [vmem:[%s12769_s10 + $0x708] sm:$0xff] }
  0x43   : > { %6663 = vmatprep.subr.bf16.mxu1 %v11827_v63  ;;  %v10676_v63 = vcombine.high %v415_v54, %v431_v55  ;;  %v527_v39 = vld [vmem:[%s12769_s10 + $0x788] sm:$0xff] }
  0x45   : > { %6471 = vmatpush2.bf16.msra.mxu0 %v11829_v0  ;;  %v11873_v0 = vld [vmem:[%s17140_s1 + $0x210] ss:$8 sps:$4 sm:$0xff]  }
  0x46   : > { %6664 = vmatpush2.bf16.msra.mxu1 %v11830_v1  ;;  %6472 = vmatprep.subr.bf16.mxu0 %v11831_v2  ;;  %v11876_v1 = vld [vmem:[%s17140_s1 + $0x310] ss:$8 sps:$4 sm:$0xff]   ;;  %v11881_v2 = vld [vmem:[%s17140_s1 + $0x204] ss:$8 sps:$4 sm:$0xff]  }
  0x47   : > { %6665 = vmatprep.subr.bf16.mxu1 %v11833_v3  ;;  %v11884_v3 = vld [vmem:[%s17140_s1 + $0x304] ss:$8 sps:$4 sm:$0xff]  }
  0x49   : > { %6473 = vmatpush2.bf16.msra.mxu0 %v11835_v4  ;;  %v446_v4 = vld [vmem:[%s12769_s10 + $0x500] sm:$0xff] }
  0x4a   : > { %6666 = vmatpush2.bf16.msra.mxu1 %v11836_v5  ;;  %6828 = vmatprep.subr.bf16.mxu0 %v11839_v6  ;;  %v462_v5 = vld [vmem:[%s12769_s10 + $0x580] sm:$0xff]  ;;  %v447_v6 = vld [vmem:[%s12769_s10 + $0x508] sm:$0xff] }
  0x4b   : > { %7021 = vmatprep.subr.bf16.mxu1 %v11842_v7  ;;  %v463_v7 = vld [vmem:[%s12769_s10 + $0x588] sm:$0xff] }
  0x4c   : > { %6475 = vmatmul.mubr.bf16.vlgmr.msra.gmra.mxu0 %v10545_v12  ;;  %v10673_v12 = vcombine.low %v414_v52, %v430_v53  ;;  %v542_v52 = vld [vmem:[%s12769_s10 + $0x800] sm:$0xff] }
  0x4d   : > { %6668 = vmatmul.mubr.bf16.vlgmr.msra.gmra.mxu1 %v10547_v13  ;;  %6829 = vmatpush1.bf16.msra.mxu0 %v11837_v14  ;;  %v10675_v13 = vcombine.low %v415_v54, %v431_v55  ;;  %v10706_v14 = vcombine.high %v446_v4, %v462_v5  ;;  %v558_v53 = vld [vmem:[%s12769_s10 + $0x880] sm:$0xff]  ;;  %v543_v54 = vld [vmem:[%s12769_s10 + $0x808] sm:$0xff] }
  0x4e   : > { %7022 = vmatpush1.bf16.msra.mxu1 %v11840_v15  ;;  %6484 = vmatprep.mubr.bf16.mxu0 %v10578_v16  ;;  %v10708_v15 = vcombine.high %v447_v6, %v463_v7  ;;  %v11885_v16 = vld [vmem:[%s17140_s1 + $0x2f0] ss:$8 sps:$4 sm:$0xff]   ;;  %v559_v55 = vld [vmem:[%s12769_s10 + $0x888] sm:$0xff] }
  0x4f   : > { %6677 = vmatprep.mubr.bf16.mxu1 %v10580_v17  ;;  %6830 = vmatprep.subr.bf16.mxu0 %v11845_v19  ;;  %v11888_v17 = vld [vmem:[%s17140_s1 + $0x3f0] ss:$8 sps:$4 sm:$0xff]   ;;  %v11896_v19 = vld [vmem:[%s17140_s1 + $0x3e4] ss:$8 sps:$4 sm:$0xff]  }
  0x50   : > { %7023 = vmatprep.subr.bf16.mxu1 %v11848_v21  ;;  %v494_v21 = vld [vmem:[%s12769_s10 + $0x680] sm:$0xff] }
  0x51   : > { %6831 = vmatpush1.bf16.msra.mxu0 %v11843_v18  ;;  %v11893_v18 = vld [vmem:[%s17140_s1 + $0x2e4] ss:$8 sps:$4 sm:$0xff]  }
  0x52   : > { %7024 = vmatpush1.bf16.msra.mxu1 %v11846_v20  ;;  %6832 = vmatprep.subr.bf16.mxu0 %v11851_v26  ;;  %v478_v20 = vld [vmem:[%s12769_s10 + $0x600] sm:$0xff]  ;;  %v11899_v26 = vld [vmem:[%s17140_s1 + $0x2d4] ss:$8 sps:$4 sm:$0xff]  }
  0x53   : > { %7025 = vmatprep.subr.bf16.mxu1 %v11854_v27  ;;  %v11902_v27 = vld [vmem:[%s17140_s1 + $0x3d4] ss:$8 sps:$4 sm:$0xff]  }
  0x54   : > { %6485 = vmatmul.mubr.bf16.gmra.mxu0 %v10577_v28  ;;  %v10705_v28 = vcombine.low %v446_v4, %v462_v5  ;;  %v574_v4 = vld [vmem:[%s12769_s10 + $0x900] sm:$0xff] }
  0x55   : > { %6678 = vmatmul.mubr.bf16.gmra.mxu1 %v10579_v29  ;;  %6494 = vmatprep.mubr.bf16.mxu0 %v10610_v30  ;;  %v10707_v29 = vcombine.low %v447_v6, %v463_v7  ;;  %v10738_v30 = vcombine.high %v478_v20, %v494_v21  ;;  %v590_v5 = vld [vmem:[%s12769_s10 + $0x980] sm:$0xff]  ;;  %v575_v6 = vld [vmem:[%s12769_s10 + $0x908] sm:$0xff] }
  0x56   : > { %6687 = vmatprep.mubr.bf16.mxu1 %v10612_v31  ;;  %6833 = vmatpush1.bf16.msra.mxu0 %v11849_v32  ;;  %v10740_v31 = vcombine.high %v479_v22, %v495_v23  ;;  %v11897_v32 = vld [vmem:[%s17140_s1 + $0x2d0] ss:$8 sps:$4 sm:$0xff]   ;;  %v591_v7 = vld [vmem:[%s12769_s10 + $0x988] sm:$0xff] }
  0x57   : > { %7026 = vmatpush1.bf16.msra.mxu1 %v11852_v33  ;;  %6834 = vmatprep.subr.bf16.mxu0 %v11857_v34  ;;  %v11900_v33 = vld [vmem:[%s17140_s1 + $0x3d0] ss:$8 sps:$4 sm:$0xff]   ;;  %v11905_v34 = vld [vmem:[%s17140_s1 + $0x2c4] ss:$8 sps:$4 sm:$0xff]  }
  0x58   : > { %7027 = vmatprep.subr.bf16.mxu1 %v11860_v35  ;;  %v11908_v35 = vld [vmem:[%s17140_s1 + $0x3c4] ss:$8 sps:$4 sm:$0xff]  }
  0x5a   : > { %6835 = vmatpush1.bf16.msra.mxu0 %v11855_v40  ;;  %v11903_v40 = vld [vmem:[%s17140_s1 + $0x2c0] ss:$8 sps:$4 sm:$0xff]  }
  0x5b   : > { %7028 = vmatpush1.bf16.msra.mxu1 %v11858_v41  ;;  %6836 = vmatprep.subr.bf16.mxu0 %v11863_v42  ;;  %v11906_v41 = vld [vmem:[%s17140_s1 + $0x3c0] ss:$8 sps:$4 sm:$0xff]   ;;  %v11911_v42 = vld [vmem:[%s17140_s1 + $0x2b4] ss:$8 sps:$4 sm:$0xff]  }
  0x5c   : > { %7029 = vmatprep.subr.bf16.mxu1 %v11866_v43  ;;  %6495 = vmatmul.mubr.bf16.gmra.mxu0 %v10609_v44  ;;  %v11914_v43 = vld [vmem:[%s17140_s1 + $0x3b4] ss:$8 sps:$4 sm:$0xff]   ;;  %v10737_v44 = vcombine.low %v478_v20, %v494_v21  ;;  %v10833_v20 = vcombine.low %v574_v4, %v590_v5  ;;  %v10835_v21 = vcombine.low %v575_v6, %v591_v7 }
  0x5d   : > { %6688 = vmatmul.mubr.bf16.gmra.mxu1 %v10611_v45  ;;  %6504 = vmatprep.mubr.bf16.mxu0 %v10642_v46  ;;  %v10739_v45 = vcombine.low %v479_v22, %v495_v23  ;;  %v10770_v46 = vcombine.high %v510_v36, %v526_v37 }
  0x5e   : > { %6697 = vmatprep.mubr.bf16.mxu1 %v10644_v47  ;;  %6837 = vmatpush1.bf16.msra.mxu0 %v11861_v48  ;;  %v10772_v47 = vcombine.high %v511_v38, %v527_v39  ;;  %v11909_v48 = vld [vmem:[%s17140_s1 + $0x2b0] ss:$8 sps:$4 sm:$0xff]  }
  0x5f   : > { %7030 = vmatpush1.bf16.msra.mxu1 %v11864_v49  ;;  %6838 = vmatprep.subr.bf16.mxu0 %v11869_v50  ;;  %v11912_v49 = vld [vmem:[%s17140_s1 + $0x3b0] ss:$8 sps:$4 sm:$0xff]   ;;  %v11917_v50 = vld [vmem:[%s17140_s1 + $0x2a4] ss:$8 sps:$4 sm:$0xff]  }
  0x60   : > { %7031 = vmatprep.subr.bf16.mxu1 %v11872_v51  ;;  %v11920_v51 = vld [vmem:[%s17140_s1 + $0x3a4] ss:$8 sps:$4 sm:$0xff]  }
  0x62   : > { %6839 = vmatpush1.bf16.msra.mxu0 %v11867_v56  ;;  %v11915_v56 = vld [vmem:[%s17140_s1 + $0x2a0] ss:$8 sps:$4 sm:$0xff]  }
  0x63   : > { %7032 = vmatpush1.bf16.msra.mxu1 %v11870_v57  ;;  %6840 = vmatprep.subr.bf16.mxu0 %v11875_v58  ;;  %v11918_v57 = vld [vmem:[%s17140_s1 + $0x3a0] ss:$8 sps:$4 sm:$0xff]   ;;  %v11923_v58 = vld [vmem:[%s17140_s1 + $0x294] ss:$8 sps:$4 sm:$0xff]  }
  0x64   : > { %7033 = vmatprep.subr.bf16.mxu1 %v11878_v59  ;;  %6505 = vmatmul.mubr.bf16.gmra.mxu0 %v10641_v60  ;;  %v11926_v59 = vld [vmem:[%s17140_s1 + $0x394] ss:$8 sps:$4 sm:$0xff]   ;;  %v10769_v60 = vcombine.low %v510_v36, %v526_v37 }
  0x65   : > { %6698 = vmatmul.mubr.bf16.gmra.mxu1 %v10643_v61  ;;  %6514 = vmatprep.mubr.bf16.mxu0 %v10674_v62  ;;  %v10771_v61 = vcombine.low %v511_v38, %v527_v39  ;;  %v10802_v62 = vcombine.high %v542_v52, %v558_v53 }
  0x66   : > { %6707 = vmatprep.mubr.bf16.mxu1 %v10676_v63  ;;  %6841 = vmatpush1.bf16.msra.mxu0 %v11873_v0  ;;  %v10804_v63 = vcombine.high %v543_v54, %v559_v55  ;;  %v11921_v0 = vld [vmem:[%s17140_s1 + $0x290] ss:$8 sps:$4 sm:$0xff]  }
  0x67   : > { %7034 = vmatpush1.bf16.msra.mxu1 %v11876_v1  ;;  %6842 = vmatprep.subr.bf16.mxu0 %v11881_v2  ;;  %v11924_v1 = vld [vmem:[%s17140_s1 + $0x390] ss:$8 sps:$4 sm:$0xff]   ;;  %v11929_v2 = vld [vmem:[%s17140_s1 + $0x284] ss:$8 sps:$4 sm:$0xff]  }
  0x68   : > { %7035 = vmatprep.subr.bf16.mxu1 %v11884_v3  ;;  %v11932_v3 = vld [vmem:[%s17140_s1 + $0x384] ss:$8 sps:$4 sm:$0xff]  }
  0x6a   : > { %6843 = vmatpush1.bf16.msra.mxu0 %v11879_v8  ;;  %v11927_v8 = vld [vmem:[%s17140_s1 + $0x280] ss:$8 sps:$4 sm:$0xff]  }
  0x6b   : > { %7036 = vmatpush1.bf16.msra.mxu1 %v11882_v9  ;;  %6844 = vmatprep.subr.bf16.mxu0 %v11887_v10  ;;  %v11930_v9 = vld [vmem:[%s17140_s1 + $0x380] ss:$8 sps:$4 sm:$0xff]   ;;  %v11935_v10 = vld [vmem:[%s17140_s1 + $0x474] ss:$8 sps:$4 sm:$0xff]  }
  0x6c   : > { %7037 = vmatprep.subr.bf16.mxu1 %v11890_v11  ;;  %6515 = vmatmul.mubr.bf16.gmra.mxu0 %v10673_v12  ;;  %v11938_v11 = vld [vmem:[%s17140_s1 + $0x574] ss:$8 sps:$4 sm:$0xff]   ;;  %v10801_v12 = vcombine.low %v542_v52, %v558_v53 }
  0x6d   : > { %6708 = vmatmul.mubr.bf16.gmra.mxu1 %v10675_v13  ;;  %6524 = vmatprep.mubr.bf16.mxu0 %v10706_v14  ;;  %v10803_v13 = vcombine.low %v543_v54, %v559_v55  ;;  %v10834_v14 = vcombine.high %v574_v4, %v590_v5 }
  0x6e   : > { %6717 = vmatprep.mubr.bf16.mxu1 %v10708_v15  ;;  %6845 = vmatpush2.bf16.msra.mxu0 %v11885_v16  ;;  %v10836_v15 = vcombine.high %v575_v6, %v591_v7  ;;  %v606_v16 = vld [vmem:[%s12769_s10 + $0xa00] sm:$0xff] }
  0x6f   : > { %7038 = vmatpush2.bf16.msra.mxu1 %v11888_v17  ;;  %6846 = vmatprep.subr.bf16.mxu0 %v11893_v18  ;;  %v622_v17 = vld [vmem:[%s12769_s10 + $0xa80] sm:$0xff]  ;;  %v607_v18 = vld [vmem:[%s12769_s10 + $0xa08] sm:$0xff] }
  0x70   : > { %7039 = vmatprep.subr.bf16.mxu1 %v11896_v19  ;;  %v623_v19 = vld [vmem:[%s12769_s10 + $0xa88] sm:$0xff]  ;;  %v10866_v22 = vcombine.high %v606_v16, %v622_v17 }
  0x71   : > { %v10868_v23 = vcombine.high %v607_v18, %v623_v19 }
  0x72   : > { %6847 = vmatpush2.bf16.msra.mxu0 %v11891_v24  ;;  %v638_v24 = vld [vmem:[%s12769_s10 + $0xb00] sm:$0xff] }
  0x73   : > { %7040 = vmatpush2.bf16.msra.mxu1 %v11894_v25  ;;  %6848 = vmatprep.subr.bf16.mxu0 %v11899_v26  ;;  %v654_v25 = vld [vmem:[%s12769_s10 + $0xb80] sm:$0xff]  ;;  %v639_v26 = vld [vmem:[%s12769_s10 + $0xb08] sm:$0xff] }
  0x74   : > { %7041 = vmatprep.subr.bf16.mxu1 %v11902_v27  ;;  %6525 = vmatmul.mubr.bf16.gmra.mxu0 %v10705_v28  ;;  %v655_v27 = vld [vmem:[%s12769_s10 + $0xb88] sm:$0xff]  ;;  %v10865_v28 = vcombine.low %v606_v16, %v622_v17  ;;  %v10897_v36 = vcombine.low %v638_v24, %v654_v25 }
  0x75   : > { %6718 = vmatmul.mubr.bf16.gmra.mxu1 %v10707_v29  ;;  %6534 = vmatprep.mubr.bf16.mxu0 %v10738_v30  ;;  %v10867_v29 = vcombine.low %v607_v18, %v623_v19  ;;  %v10898_v30 = vcombine.high %v638_v24, %v654_v25  ;;  %v10899_v37 = vcombine.low %v639_v26, %v655_v27  ;;  %v11941_v16 = vld [vmem:[%s17140_s1 + $0x464] ss:$8 sps:$4 sm:$0xff]   ;;  %v353_v24 = vld [vmem:[%s12769_s10 + $0x218] sm:$0xff] }
  0x76   : > { %6727 = vmatprep.mubr.bf16.mxu1 %v10740_v31  ;;  %6849 = vmatpush2.bf16.msra.mxu0 %v11897_v32  ;;  %v10900_v31 = vcombine.high %v639_v26, %v655_v27  ;;  %v670_v32 = vld [vmem:[%s12769_s10 + $0xc00] sm:$0xff]  ;;  %v369_v25 = vld [vmem:[%s12769_s10 + $0x298] sm:$0xff] }
  0x77   : > { %7042 = vmatpush2.bf16.msra.mxu1 %v11900_v33  ;;  %6850 = vmatprep.subr.bf16.mxu0 %v11905_v34  ;;  %v686_v33 = vld [vmem:[%s12769_s10 + $0xc80] sm:$0xff]  ;;  %v671_v34 = vld [vmem:[%s12769_s10 + $0xc08] sm:$0xff]  ;;  %v11947_v26 = vld [vmem:[%s17140_s1 + $0x454] ss:$8 sps:$4 sm:$0xff]  }
  0x78   : > { %7043 = vmatprep.subr.bf16.mxu1 %v11908_v35  ;;  %v687_v35 = vld [vmem:[%s12769_s10 + $0xc88] sm:$0xff]  ;;  %v10930_v38 = vcombine.high %v670_v32, %v686_v33  ;;  %v11950_v27 = vld [vmem:[%s17140_s1 + $0x554] ss:$8 sps:$4 sm:$0xff]  }
  0x79   : > { %v10932_v39 = vcombine.high %v671_v34, %v687_v35  ;;  %v11944_v17 = vld [vmem:[%s17140_s1 + $0x564] ss:$8 sps:$4 sm:$0xff]  }
  0x7a   : > { %6851 = vmatpush2.bf16.msra.mxu0 %v11903_v40  ;;  %v702_v40 = vld [vmem:[%s12769_s10 + $0xd00] sm:$0xff] }
  0x7b   : > { %7044 = vmatpush2.bf16.msra.mxu1 %v11906_v41  ;;  %6852 = vmatprep.subr.bf16.mxu0 %v11911_v42  ;;  %v718_v41 = vld [vmem:[%s12769_s10 + $0xd80] sm:$0xff]  ;;  %v703_v42 = vld [vmem:[%s12769_s10 + $0xd08] sm:$0xff] }
  0x7c   : > { %7045 = vmatprep.subr.bf16.mxu1 %v11914_v43  ;;  %6535 = vmatmul.mubr.bf16.gmra.mxu0 %v10737_v44  ;;  %v719_v43 = vld [vmem:[%s12769_s10 + $0xd88] sm:$0xff]  ;;  %v10929_v44 = vcombine.low %v670_v32, %v686_v33  ;;  %v10961_v52 = vcombine.low %v702_v40, %v718_v41  ;;  %v10616_v32 = vcombine.high %v353_v24, %v369_v25  ;;  %v11948_v33 = vld [vmem:[%s17140_s1 + $0x550] ss:$8 sps:$4 sm:$0xff]  }
  0x7d   : > { %6728 = vmatmul.mubr.bf16.gmra.mxu1 %v10739_v45  ;;  %6544 = vmatprep.mubr.bf16.mxu0 %v10770_v46  ;;  %v10931_v45 = vcombine.low %v671_v34, %v687_v35  ;;  %v10962_v46 = vcombine.high %v702_v40, %v718_v41  ;;  %v10963_v53 = vcombine.low %v703_v42, %v719_v43  ;;  %v11953_v34 = vld [vmem:[%s17140_s1 + $0x444] ss:$8 sps:$4 sm:$0xff]   ;;  %v11951_v40 = vld [vmem:[%s17140_s1 + $0x440] ss:$8 sps:$4 sm:$0xff]  }
  0x7e   : > { %6737 = vmatprep.mubr.bf16.mxu1 %v10772_v47  ;;  %6853 = vmatpush2.bf16.msra.mxu0 %v11909_v48  ;;  %v10964_v47 = vcombine.high %v703_v42, %v719_v43  ;;  %v734_v48 = vld [vmem:[%s12769_s10 + $0xe00] sm:$0xff]  ;;  %v11959_v42 = vld [vmem:[%s17140_s1 + $0x434] ss:$8 sps:$4 sm:$0xff]  }
  0x7f   : > { %7046 = vmatpush2.bf16.msra.mxu1 %v11912_v49  ;;  %6854 = vmatprep.subr.bf16.mxu0 %v11917_v50  ;;  %v750_v49 = vld [vmem:[%s12769_s10 + $0xe80] sm:$0xff]  ;;  %v735_v50 = vld [vmem:[%s12769_s10 + $0xe08] sm:$0xff]  ;;  %v11962_v43 = vld [vmem:[%s17140_s1 + $0x534] ss:$8 sps:$4 sm:$0xff]  }
  0x80   : > { %7047 = vmatprep.subr.bf16.mxu1 %v11920_v51  ;;  %v751_v51 = vld [vmem:[%s12769_s10 + $0xe88] sm:$0xff]  ;;  %v10994_v54 = vcombine.high %v734_v48, %v750_v49 }
  0x81   : > { %v10996_v55 = vcombine.high %v735_v50, %v751_v51  ;;  %v11956_v35 = vld [vmem:[%s17140_s1 + $0x544] ss:$8 sps:$4 sm:$0xff]   ;;  %v11954_v41 = vld [vmem:[%s17140_s1 + $0x540] ss:$8 sps:$4 sm:$0xff]  }
  0x82   : > { %6855 = vmatpush2.bf16.msra.mxu0 %v11915_v56  ;;  %v766_v56 = vld [vmem:[%s12769_s10 + $0xf00] sm:$0xff] }
  0x83   : > { %7048 = vmatpush2.bf16.msra.mxu1 %v11918_v57  ;;  %6856 = vmatprep.subr.bf16.mxu0 %v11923_v58  ;;  %v782_v57 = vld [vmem:[%s12769_s10 + $0xf80] sm:$0xff]  ;;  %v767_v58 = vld [vmem:[%s12769_s10 + $0xf08] sm:$0xff] }
  0x84   : > { %7049 = vmatprep.subr.bf16.mxu1 %v11926_v59  ;;  %6545 = vmatmul.mubr.bf16.gmra.mxu0 %v10769_v60  ;;  %v783_v59 = vld [vmem:[%s12769_s10 + $0xf88] sm:$0xff]  ;;  %v10993_v60 = vcombine.low %v734_v48, %v750_v49  ;;  %v11025_v4 = vcombine.low %v766_v56, %v782_v57  ;;  %v11960_v49 = vld [vmem:[%s17140_s1 + $0x530] ss:$8 sps:$4 sm:$0xff]  }
  0x85   : > { %6738 = vmatmul.mubr.bf16.gmra.mxu1 %v10771_v61  ;;  %6554 = vmatprep.mubr.bf16.mxu0 %v10802_v62  ;;  %v10995_v61 = vcombine.low %v735_v50, %v751_v51  ;;  %v11026_v62 = vcombine.high %v766_v56, %v782_v57  ;;  %v11027_v5 = vcombine.low %v767_v58, %v783_v59  ;;  %v11965_v50 = vld [vmem:[%s17140_s1 + $0x424] ss:$8 sps:$4 sm:$0xff]   ;;  %v11963_v56 = vld [vmem:[%s17140_s1 + $0x420] ss:$8 sps:$4 sm:$0xff]  }
  0x86   : > { %6747 = vmatprep.mubr.bf16.mxu1 %v10804_v63  ;;  %6857 = vmatpush2.bf16.msra.mxu0 %v11921_v0  ;;  %v11028_v63 = vcombine.high %v767_v58, %v783_v59  ;;  %v288_v0 = vld [vmem:[%s12769_s10 + $0x10] sm:$0xff]  ;;  %v11968_v51 = vld [vmem:[%s17140_s1 + $0x524] ss:$8 sps:$4 sm:$0xff]   ;;  %v11966_v57 = vld [vmem:[%s17140_s1 + $0x520] ss:$8 sps:$4 sm:$0xff]  }
  0x87   : > { %7050 = vmatpush2.bf16.msra.mxu1 %v11924_v1  ;;  %6858 = vmatprep.subr.bf16.mxu0 %v11929_v2  ;;  %v304_v1 = vld [vmem:[%s12769_s10 + $0x90] sm:$0xff]  ;;  %v289_v2 = vld [vmem:[%s12769_s10 + $0x18] sm:$0xff] }
  0x88   : > { %7051 = vmatprep.subr.bf16.mxu1 %v11932_v3  ;;  %v305_v3 = vld [vmem:[%s12769_s10 + $0x98] sm:$0xff]  ;;  %v10550_v6 = vcombine.high %v288_v0, %v304_v1 }
  0x89   : > { %v10552_v7 = vcombine.high %v289_v2, %v305_v3  ;;  %v11971_v58 = vld [vmem:[%s17140_s1 + $0x414] ss:$8 sps:$4 sm:$0xff]  }
  0x8a   : > { %6859 = vmatpush2.bf16.msra.mxu0 %v11927_v8  ;;  %v320_v8 = vld [vmem:[%s12769_s10 + $0x110] sm:$0xff] }
  0x8b   : > { %7052 = vmatpush2.bf16.msra.mxu1 %v11930_v9  ;;  %7214 = vmatprep.subr.bf16.mxu0 %v11935_v10  ;;  %v336_v9 = vld [vmem:[%s12769_s10 + $0x190] sm:$0xff]  ;;  %v321_v10 = vld [vmem:[%s12769_s10 + $0x118] sm:$0xff] }
  0x8c   : > { %7407 = vmatprep.subr.bf16.mxu1 %v11938_v11  ;;  %6555 = vmatmul.mubr.bf16.gmra.mxu0 %v10801_v12  ;;  %v337_v11 = vld [vmem:[%s12769_s10 + $0x198] sm:$0xff]  ;;  %v10549_v12 = vcombine.low %v288_v0, %v304_v1  ;;  %v10582_v18 = vcombine.high %v320_v8, %v336_v9 }
  0x8d   : > { %6748 = vmatmul.mubr.bf16.gmra.mxu1 %v10803_v13  ;;  %6564 = vmatprep.mubr.bf16.mxu0 %v10834_v14  ;;  %v10551_v13 = vcombine.low %v289_v2, %v305_v3  ;;  %v11933_v14 = vld [vmem:[%s17140_s1 + $0x470] ss:$8 sps:$4 sm:$0xff]   ;;  %v10584_v19 = vcombine.high %v321_v10, %v337_v11  ;;  %v11974_v59 = vld [vmem:[%s17140_s1 + $0x514] ss:$8 sps:$4 sm:$0xff]   ;;  %v11977_v2 = vld [vmem:[%s17140_s1 + $0x404] ss:$8 sps:$4 sm:$0xff]  }
  0x8e   : > { %6757 = vmatprep.mubr.bf16.mxu1 %v10836_v15  ;;  %v11936_v15 = vld [vmem:[%s17140_s1 + $0x570] ss:$8 sps:$4 sm:$0xff]   ;;  %v11980_v3 = vld [vmem:[%s17140_s1 + $0x504] ss:$8 sps:$4 sm:$0xff]  }
  0x8f   : > { %v11972_v1 = vld [vmem:[%s17140_s1 + $0x510] ss:$8 sps:$4 sm:$0xff]  }
  0x94   : > { %6565 = vmatmul.mubr.bf16.gmra.mxu0 %v10833_v20  ;;  %v11939_v20 = vld [vmem:[%s17140_s1 + $0x460] ss:$8 sps:$4 sm:$0xff]  }
  0x95   : > { %6758 = vmatmul.mubr.bf16.gmra.mxu1 %v10835_v21  ;;  %6574 = vmatprep.mubr.bf16.mxu0 %v10866_v22  ;;  %v11942_v21 = vld [vmem:[%s17140_s1 + $0x560] ss:$8 sps:$4 sm:$0xff]   ;;  %v352_v22 = vld [vmem:[%s12769_s10 + $0x210] sm:$0xff] }
  0x96   : > { %6767 = vmatprep.mubr.bf16.mxu1 %v10868_v23  ;;  %v368_v23 = vld [vmem:[%s12769_s10 + $0x290] sm:$0xff] }
  0x9c   : > { %6575 = vmatmul.mubr.bf16.gmra.mxu0 %v10865_v28  ;;  %v10581_v28 = vcombine.low %v320_v8, %v336_v9  ;;  %v11975_v8 = vld [vmem:[%s17140_s1 + $0x400] ss:$8 sps:$4 sm:$0xff]  }
  0x9d   : > { %6768 = vmatmul.mubr.bf16.gmra.mxu1 %v10867_v29  ;;  %6584 = vmatprep.mubr.bf16.mxu0 %v10898_v30  ;;  %v10583_v29 = vcombine.low %v321_v10, %v337_v11  ;;  %v11945_v30 = vld [vmem:[%s17140_s1 + $0x450] ss:$8 sps:$4 sm:$0xff]   ;;  %v11978_v9 = vld [vmem:[%s17140_s1 + $0x500] ss:$8 sps:$4 sm:$0xff]   ;;  %v11983_v10 = vld [vmem:[%s17140_s1 + $0x4f4] ss:$8 sps:$4 sm:$0xff]  }
  0x9e   : > { %6777 = vmatprep.mubr.bf16.mxu1 %v10900_v31  ;;  %v10614_v31 = vcombine.high %v352_v22, %v368_v23  ;;  %v11986_v11 = vld [vmem:[%s17140_s1 + $0x5f4] ss:$8 sps:$4 sm:$0xff]  }
  0xa4   : > { %6585 = vmatmul.mubr.bf16.gmra.mxu0 %v10897_v36  ;;  %v384_v36 = vld [vmem:[%s12769_s10 + $0x310] sm:$0xff] }
  0xa5   : > { %6778 = vmatmul.mubr.bf16.gmra.mxu1 %v10899_v37  ;;  %6594 = vmatprep.mubr.bf16.mxu0 %v10930_v38  ;;  %v400_v37 = vld [vmem:[%s12769_s10 + $0x390] sm:$0xff]  ;;  %v385_v38 = vld [vmem:[%s12769_s10 + $0x318] sm:$0xff] }
  0xa6   : > { %6787 = vmatprep.mubr.bf16.mxu1 %v10932_v39  ;;  %v401_v39 = vld [vmem:[%s12769_s10 + $0x398] sm:$0xff] }
  0xa7   : > { %v10648_v48 = vcombine.high %v385_v38, %v401_v39 }
  0xac   : > { %6595 = vmatmul.mubr.bf16.gmra.mxu0 %v10929_v44  ;;  %v10613_v44 = vcombine.low %v352_v22, %v368_v23  ;;  %v481_v22 = vld [vmem:[%s12769_s10 + $0x618] sm:$0xff] }
  0xad   : > { %6788 = vmatmul.mubr.bf16.gmra.mxu1 %v10931_v45  ;;  %6604 = vmatprep.mubr.bf16.mxu0 %v10962_v46  ;;  %v10615_v45 = vcombine.low %v353_v24, %v369_v25  ;;  %v11957_v46 = vld [vmem:[%s17140_s1 + $0x430] ss:$8 sps:$4 sm:$0xff]   ;;  %v11987_v24 = vld [vmem:[%s17140_s1 + $0x4e0] ss:$8 sps:$4 sm:$0xff]  }
  0xae   : > { %6797 = vmatprep.mubr.bf16.mxu1 %v10964_v47  ;;  %v10646_v47 = vcombine.high %v384_v36, %v400_v37  ;;  %v497_v23 = vld [vmem:[%s12769_s10 + $0x698] sm:$0xff]  ;;  %v11990_v25 = vld [vmem:[%s17140_s1 + $0x5e0] ss:$8 sps:$4 sm:$0xff]  }
  0xb4   : > { %6605 = vmatmul.mubr.bf16.gmra.mxu0 %v10961_v52  ;;  %v416_v52 = vld [vmem:[%s12769_s10 + $0x410] sm:$0xff] }
  0xb5   : > { %6798 = vmatmul.mubr.bf16.gmra.mxu1 %v10963_v53  ;;  %6614 = vmatprep.mubr.bf16.mxu0 %v10994_v54  ;;  %v432_v53 = vld [vmem:[%s12769_s10 + $0x490] sm:$0xff]  ;;  %v417_v54 = vld [vmem:[%s12769_s10 + $0x418] sm:$0xff] }
  0xb6   : > { %6807 = vmatprep.mubr.bf16.mxu1 %v10996_v55  ;;  %v433_v55 = vld [vmem:[%s12769_s10 + $0x498] sm:$0xff] }
  0xb7   : > { %v10680_v0 = vcombine.high %v417_v54, %v433_v55 }
  0xbc   : > { %6615 = vmatmul.mubr.bf16.gmra.mxu0 %v10993_v60  ;;  %v10645_v60 = vcombine.low %v384_v36, %v400_v37  ;;  %v512_v36 = vld [vmem:[%s12769_s10 + $0x710] sm:$0xff] }
  0xbd   : > { %6808 = vmatmul.mubr.bf16.gmra.mxu1 %v10995_v61  ;;  %6624 = vmatprep.mubr.bf16.mxu0 %v11026_v62  ;;  %v10647_v61 = vcombine.low %v385_v38, %v401_v39  ;;  %v11969_v62 = vld [vmem:[%s17140_s1 + $0x410] ss:$8 sps:$4 sm:$0xff]  }
  0xbe   : > { %6817 = vmatprep.mubr.bf16.mxu1 %v11028_v63  ;;  %v10678_v63 = vcombine.high %v416_v52, %v432_v53  ;;  %v528_v37 = vld [vmem:[%s12769_s10 + $0x790] sm:$0xff]  ;;  %v513_v38 = vld [vmem:[%s12769_s10 + $0x718] sm:$0xff] }
  0xbf   : > { %v529_v39 = vld [vmem:[%s12769_s10 + $0x798] sm:$0xff] }
  0xc4   : > { %6625 = vmatmul.mubr.bf16.gmra.mxu0 %v11025_v4  ;;  %v448_v4 = vld [vmem:[%s12769_s10 + $0x510] sm:$0xff] }
  0xc5   : > { %6818 = vmatmul.mubr.bf16.gmra.mxu1 %v11027_v5  ;;  %6860 = vmatprep.mubr.bf16.mxu0 %v10550_v6  ;;  %v464_v5 = vld [vmem:[%s12769_s10 + $0x590] sm:$0xff]  ;;  %v449_v6 = vld [vmem:[%s12769_s10 + $0x518] sm:$0xff] }
  0xc6   : > { %7053 = vmatprep.mubr.bf16.mxu1 %v10552_v7  ;;  %v465_v7 = vld [vmem:[%s12769_s10 + $0x598] sm:$0xff] }
  0xcc   : > { %6861 = vmatmul.mubr.bf16.vlgmr.msra.gmra.mxu0 %v10549_v12  ;;  %v10677_v12 = vcombine.low %v416_v52, %v432_v53  ;;  %v544_v52 = vld [vmem:[%s12769_s10 + $0x810] sm:$0xff] }
  0xcd   : > { %7054 = vmatmul.mubr.bf16.vlgmr.msra.gmra.mxu1 %v10551_v13  ;;  %7215 = vmatpush1.bf16.msra.mxu0 %v11933_v14  ;;  %v10679_v13 = vcombine.low %v417_v54, %v433_v55  ;;  %v11981_v14 = vld [vmem:[%s17140_s1 + $0x4f0] ss:$8 sps:$4 sm:$0xff]  }
  0xce   : > { %7408 = vmatpush1.bf16.msra.mxu1 %v11936_v15  ;;  %6870 = vmatprep.mubr.bf16.mxu0 %v10582_v18  ;;  %v10710_v15 = vcombine.high %v448_v4, %v464_v5  ;;  %v11989_v18 = vld [vmem:[%s17140_s1 + $0x4e4] ss:$8 sps:$4 sm:$0xff]   ;;  %v560_v53 = vld [vmem:[%s12769_s10 + $0x890] sm:$0xff]  ;;  %v545_v54 = vld [vmem:[%s12769_s10 + $0x818] sm:$0xff] }
  0xcf   : > { %7063 = vmatprep.mubr.bf16.mxu1 %v10584_v19  ;;  %7216 = vmatprep.subr.bf16.mxu0 %v11941_v16  ;;  %v10712_v16 = vcombine.high %v449_v6, %v465_v7  ;;  %v11992_v19 = vld [vmem:[%s17140_s1 + $0x5e4] ss:$8 sps:$4 sm:$0xff]   ;;  %v561_v55 = vld [vmem:[%s12769_s10 + $0x898] sm:$0xff] }
  0xd0   : > { %7409 = vmatprep.subr.bf16.mxu1 %v11944_v17  ;;  %v11984_v17 = vld [vmem:[%s17140_s1 + $0x5f0] ss:$8 sps:$4 sm:$0xff]  }
  0xd1   : > { %7217 = vmatpush1.bf16.msra.mxu0 %v11939_v20  ;;  %v480_v20 = vld [vmem:[%s12769_s10 + $0x610] sm:$0xff] }
  0xd2   : > { %7410 = vmatpush1.bf16.msra.mxu1 %v11942_v21  ;;  %7218 = vmatprep.subr.bf16.mxu0 %v11947_v26  ;;  %v496_v21 = vld [vmem:[%s12769_s10 + $0x690] sm:$0xff] }
  0xd3   : > { %7411 = vmatprep.subr.bf16.mxu1 %v11950_v27  ;;  %v11995_v26 = vld [vmem:[%s17140_s1 + $0x4d4] ss:$8 sps:$4 sm:$0xff]  }
  0xd4   : > { %6871 = vmatmul.mubr.bf16.gmra.mxu0 %v10581_v28  ;;  %v11998_v27 = vld [vmem:[%s17140_s1 + $0x5d4] ss:$8 sps:$4 sm:$0xff]   ;;  %v10709_v28 = vcombine.low %v448_v4, %v464_v5  ;;  %v12025_v4 = vld [vmem:[%s17140_s1 + $0x484] ss:$8 sps:$4 sm:$0xff]  }
  0xd5   : > { %7064 = vmatmul.mubr.bf16.gmra.mxu1 %v10583_v29  ;;  %6880 = vmatprep.mubr.bf16.mxu0 %v10614_v31  ;;  %v10711_v29 = vcombine.low %v449_v6, %v465_v7  ;;  %v10742_v31 = vcombine.high %v480_v20, %v496_v21  ;;  %v12028_v5 = vld [vmem:[%s17140_s1 + $0x584] ss:$8 sps:$4 sm:$0xff]   ;;  %v1310_v6 = vld [vmem:[%s17141_s2] sm:$0x3]  ;;  %v576_v7 = vld [vmem:[%s12769_s10 + $0x910] sm:$0xff] }
  0xd6   : > { %7073 = vmatprep.mubr.bf16.mxu1 %v10616_v32  ;;  %7219 = vmatpush1.bf16.msra.mxu0 %v11945_v30  ;;  %v11993_v30 = vld [vmem:[%s17140_s1 + $0x4d0] ss:$8 sps:$4 sm:$0xff]   ;;  %v10744_v32 = vcombine.high %v481_v22, %v497_v23 }
  0xd7   : > { %7412 = vmatpush1.bf16.msra.mxu1 %v11948_v33  ;;  %7220 = vmatprep.subr.bf16.mxu0 %v11953_v34  ;;  %v11996_v33 = vld [vmem:[%s17140_s1 + $0x5d0] ss:$8 sps:$4 sm:$0xff]   ;;  %v12001_v34 = vld [vmem:[%s17140_s1 + $0x4c4] ss:$8 sps:$4 sm:$0xff]  }
  0xd8   : > { %7413 = vmatprep.subr.bf16.mxu1 %v11956_v35  ;;  %v12004_v35 = vld [vmem:[%s17140_s1 + $0x5c4] ss:$8 sps:$4 sm:$0xff]  }
  0xda   : > { %7221 = vmatpush1.bf16.msra.mxu0 %v11951_v40  ;;  %v11999_v40 = vld [vmem:[%s17140_s1 + $0x4c0] ss:$8 sps:$4 sm:$0xff]  }
  0xdb   : > { %7414 = vmatpush1.bf16.msra.mxu1 %v11954_v41  ;;  %7222 = vmatprep.subr.bf16.mxu0 %v11959_v42  ;;  %v12002_v41 = vld [vmem:[%s17140_s1 + $0x5c0] ss:$8 sps:$4 sm:$0xff]   ;;  %v12007_v42 = vld [vmem:[%s17140_s1 + $0x4b4] ss:$8 sps:$4 sm:$0xff]  }
  0xdc   : > { %7415 = vmatprep.subr.bf16.mxu1 %v11962_v43  ;;  %6881 = vmatmul.mubr.bf16.gmra.mxu0 %v10613_v44  ;;  %v12010_v43 = vld [vmem:[%s17140_s1 + $0x5b4] ss:$8 sps:$4 sm:$0xff]   ;;  %v10741_v44 = vcombine.low %v480_v20, %v496_v21 }
  0xdd   : > { %7074 = vmatmul.mubr.bf16.gmra.mxu1 %v10615_v45  ;;  %6890 = vmatprep.mubr.bf16.mxu0 %v10646_v47  ;;  %v10743_v45 = vcombine.low %v481_v22, %v497_v23  ;;  %v10774_v47 = vcombine.high %v512_v36, %v528_v37 }
  0xde   : > { %7083 = vmatprep.mubr.bf16.mxu1 %v10648_v48  ;;  %7223 = vmatpush1.bf16.msra.mxu0 %v11957_v46  ;;  %v12005_v46 = vld [vmem:[%s17140_s1 + $0x4b0] ss:$8 sps:$4 sm:$0xff]   ;;  %v10776_v48 = vcombine.high %v513_v38, %v529_v39 }
  0xdf   : > { %7416 = vmatpush1.bf16.msra.mxu1 %v11960_v49  ;;  %7224 = vmatprep.subr.bf16.mxu0 %v11965_v50  ;;  %v12008_v49 = vld [vmem:[%s17140_s1 + $0x5b0] ss:$8 sps:$4 sm:$0xff]   ;;  %v12013_v50 = vld [vmem:[%s17140_s1 + $0x4a4] ss:$8 sps:$4 sm:$0xff]  }
  0xe0   : > { %7417 = vmatprep.subr.bf16.mxu1 %v11968_v51  ;;  %v12016_v51 = vld [vmem:[%s17140_s1 + $0x5a4] ss:$8 sps:$4 sm:$0xff]  }
  0xe2   : > { %7225 = vmatpush1.bf16.msra.mxu0 %v11963_v56  ;;  %v1312_v56 = vlaneseq }
  0xe3   : > { %7418 = vmatpush1.bf16.msra.mxu1 %v11966_v57  ;;  %7226 = vmatprep.subr.bf16.mxu0 %v11971_v58  ;;  %v12011_v57 = vld [vmem:[%s17140_s1 + $0x4a0] ss:$8 sps:$4 sm:$0xff]  }
  0xe4   : > { %7419 = vmatprep.subr.bf16.mxu1 %v11974_v59  ;;  %6891 = vmatmul.mubr.bf16.gmra.mxu0 %v10645_v60  ;;  %v12014_v58 = vld [vmem:[%s17140_s1 + $0x5a0] ss:$8 sps:$4 sm:$0xff]   ;;  %v12019_v59 = vld [vmem:[%s17140_s1 + $0x494] ss:$8 sps:$4 sm:$0xff]  }
  0xe5   : > { %7084 = vmatmul.mubr.bf16.gmra.mxu1 %v10647_v61  ;;  %6900 = vmatprep.mubr.bf16.mxu0 %v10678_v63  ;;  %v12022_v60 = vld [vmem:[%s17140_s1 + $0x594] ss:$8 sps:$4 sm:$0xff]   ;;  %v10773_v61 = vcombine.low %v512_v36, %v528_v37  ;;  %v13309_v63 = vshrl.u32 %v1312_v56, 7 }
  0xe6   : > { %7093 = vmatprep.mubr.bf16.mxu1 %v10680_v0  ;;  %7227 = vmatpush1.bf16.msra.mxu0 %v11969_v62  ;;  %v10775_v62 = vcombine.low %v513_v38, %v529_v39  ;;  %v12017_v0 = vld [vmem:[%s17140_s1 + $0x490] ss:$8 sps:$4 sm:$0xff]  }
  0xe7   : > { %7420 = vmatpush1.bf16.msra.mxu1 %v11972_v1  ;;  %7228 = vmatprep.subr.bf16.mxu0 %v11977_v2  ;;  %17151 = vst [vmem:[#allocation2_spill] sm:$0xff] %v13309_v63  ;;  %v10806_v1 = vcombine.high %v544_v52, %v560_v53  ;;  %v10808_v2 = vcombine.high %v545_v54, %v561_v55 }
  0xe8   : > { %7421 = vmatprep.subr.bf16.mxu1 %v11980_v3  ;;  %v12020_v3 = vld [vmem:[%s17140_s1 + $0x590] ss:$8 sps:$4 sm:$0xff]  }
  0xea   : > { %7229 = vmatpush1.bf16.msra.mxu0 %v11975_v8  ;;  %v592_v8 = vld [vmem:[%s12769_s10 + $0x990] sm:$0xff] }
  0xeb   : > { %7422 = vmatpush1.bf16.msra.mxu1 %v11978_v9  ;;  %7230 = vmatprep.subr.bf16.mxu0 %v11983_v10  ;;  %v577_v9 = vld [vmem:[%s12769_s10 + $0x918] sm:$0xff]  ;;  %v10838_v20 = vcombine.high %v576_v7, %v592_v8  ;;  %v10837_v36 = vcombine.low %v576_v7, %v592_v8 }
  0xec   : > { %7423 = vmatprep.subr.bf16.mxu1 %v11986_v11  ;;  %6901 = vmatmul.mubr.bf16.gmra.mxu0 %v10677_v12  ;;  %v593_v10 = vld [vmem:[%s12769_s10 + $0x998] sm:$0xff]  ;;  %v12023_v11 = vld [vmem:[%s17140_s1 + $0x480] ss:$8 sps:$4 sm:$0xff]  }
  0xed   : > { %7094 = vmatmul.mubr.bf16.gmra.mxu1 %v10679_v13  ;;  %6910 = vmatprep.mubr.bf16.mxu0 %v10710_v15  ;;  %v12026_v12 = vld [vmem:[%s17140_s1 + $0x580] ss:$8 sps:$4 sm:$0xff]   ;;  %v17147_v13 = vsub.s32 0, %v13309_v63  ;;  %v12031_v15 = vld [vmem:[%s17140_s1 + $0x674] ss:$8 sps:$4 sm:$0xff]   ;;  %v10840_v21 = vcombine.high %v577_v9, %v593_v10  ;;  %v10839_v37 = vcombine.low %v577_v9, %v593_v10 }
  0xee   : > { %7103 = vmatprep.mubr.bf16.mxu1 %v10712_v16  ;;  %7231 = vmatpush2.bf16.msra.mxu0 %v11981_v14  ;;  %v17148_v14 = vsub.s32 1, %v13309_v63  ;;  %v12034_v16 = vld [vmem:[%s17140_s1 + $0x774] ss:$8 sps:$4 sm:$0xff]  }
  0xef   : > { %7424 = vmatpush2.bf16.msra.mxu1 %v11984_v17  ;;  %7232 = vmatprep.subr.bf16.mxu0 %v11989_v18  ;;  %v10805_v17 = vcombine.low %v544_v52, %v560_v53  ;;  %v10807_v18 = vcombine.low %v545_v54, %v561_v55  ;;  %v672_v9 = vld [vmem:[%s12769_s10 + $0xc10] sm:$0xff] }
  0xf0   : > { %7425 = vmatprep.subr.bf16.mxu1 %v11992_v19  ;;  %v13346_v19 = vrot.slane %v1310_v6, %v17147_v13  ;;  %v13350_v22 = vrot.slane %v1310_v6, %v17148_v14  ;;  %v688_v10 = vld [vmem:[%s12769_s10 + $0xc90] sm:$0xff] }
  0xf1   : > { %v12055_v63 = vld [vmem:[%s17140_s1 + $0x634] ss:$8 sps:$4 sm:$0xff]  }
  0xf2   : > { %7233 = vmatpush2.bf16.msra.mxu0 %v11987_v24 }
  0xf3   : > { %7426 = vmatpush2.bf16.msra.mxu1 %v11990_v25  ;;  %7234 = vmatprep.subr.bf16.mxu0 %v11995_v26  ;;  %v608_v25 = vld [vmem:[%s12769_s10 + $0xa10] sm:$0xff] }
  0xf4   : > { %7427 = vmatprep.subr.bf16.mxu1 %v11998_v27  ;;  %6911 = vmatmul.mubr.bf16.gmra.mxu0 %v10709_v28  ;;  %v624_v26 = vld [vmem:[%s12769_s10 + $0xa90] sm:$0xff]  ;;  %v609_v27 = vld [vmem:[%s12769_s10 + $0xa18] sm:$0xff] }
  0xf5   : > { %7104 = vmatmul.mubr.bf16.gmra.mxu1 %v10711_v29  ;;  %6920 = vmatprep.mubr.bf16.mxu0 %v10742_v31  ;;  %v625_v28 = vld [vmem:[%s12769_s10 + $0xa98] sm:$0xff] }
  0xf6   : > { %7113 = vmatprep.mubr.bf16.mxu1 %v10744_v32  ;;  %7235 = vmatpush2.bf16.msra.mxu0 %v11993_v30 }
  0xf7   : > { %7428 = vmatpush2.bf16.msra.mxu1 %v11996_v33  ;;  %7236 = vmatprep.subr.bf16.mxu0 %v12001_v34 }
  0xf8   : > { %7429 = vmatprep.subr.bf16.mxu1 %v12004_v35 }
  0xfa   : > { %7237 = vmatpush2.bf16.msra.mxu0 %v11999_v40  ;;  %v10870_v40 = vcombine.high %v608_v25, %v624_v26 }
  0xfb   : > { %7430 = vmatpush2.bf16.msra.mxu1 %v12002_v41  ;;  %7238 = vmatprep.subr.bf16.mxu0 %v12007_v42  ;;  %v10872_v41 = vcombine.high %v609_v27, %v625_v28 }
  0xfc   : > { %7431 = vmatprep.subr.bf16.mxu1 %v12010_v43  ;;  %6921 = vmatmul.mubr.bf16.gmra.mxu0 %v10741_v44 }
  0xfd   : > { %7114 = vmatmul.mubr.bf16.gmra.mxu1 %v10743_v45  ;;  %6930 = vmatprep.mubr.bf16.mxu0 %v10774_v47 }
  0xfe   : > { %7123 = vmatprep.mubr.bf16.mxu1 %v10776_v48  ;;  %7239 = vmatpush2.bf16.msra.mxu0 %v12005_v46  ;;  %v640_v48 = vld [vmem:[%s12769_s10 + $0xb10] sm:$0xff] }
  0xff   : > { %7432 = vmatpush2.bf16.msra.mxu1 %v12008_v49  ;;  %7240 = vmatprep.subr.bf16.mxu0 %v12013_v50  ;;  %v656_v49 = vld [vmem:[%s12769_s10 + $0xb90] sm:$0xff]  ;;  %v641_v50 = vld [vmem:[%s12769_s10 + $0xb18] sm:$0xff] }
 0x100   : > { %7433 = vmatprep.subr.bf16.mxu1 %v12016_v51  ;;  %v657_v51 = vld [vmem:[%s12769_s10 + $0xb98] sm:$0xff] }
 0x102   : > { %7241 = vmatpush2.bf16.msra.mxu0 %v12011_v57 }
 0x103   : > { %7434 = vmatpush2.bf16.msra.mxu1 %v12014_v58  ;;  %7242 = vmatprep.subr.bf16.mxu0 %v12019_v59 }
 0x104   : > { %7435 = vmatprep.subr.bf16.mxu1 %v12022_v60  ;;  %6931 = vmatmul.mubr.bf16.gmra.mxu0 %v10773_v61  ;;  %v10869_v60 = vcombine.low %v608_v25, %v624_v26  ;;  %v10871_v61 = vcombine.low %v609_v27, %v625_v28  ;;  %v10901_v25 = vcombine.low %v640_v48, %v656_v49 }
 0x105   : > { %7124 = vmatmul.mubr.bf16.gmra.mxu1 %v10775_v62  ;;  %6940 = vmatprep.mubr.bf16.mxu0 %v10806_v1  ;;  %v10902_v1 = vcombine.high %v640_v48, %v656_v49  ;;  %v10903_v26 = vcombine.low %v641_v50, %v657_v51 }
 0x106   : > { %7133 = vmatprep.mubr.bf16.mxu1 %v10808_v2  ;;  %7243 = vmatpush2.bf16.msra.mxu0 %v12017_v0  ;;  %v10904_v2 = vcombine.high %v641_v50, %v657_v51 }
 0x107   : > { %7436 = vmatpush2.bf16.msra.mxu1 %v12020_v3  ;;  %7244 = vmatprep.subr.bf16.mxu0 %v12025_v4 }
 0x108   : > { %7437 = vmatprep.subr.bf16.mxu1 %v12028_v5 }
 0x10a   : > { %7245 = vmatpush2.bf16.msra.mxu0 %v12023_v11  ;;  %v673_v11 = vld [vmem:[%s12769_s10 + $0xc18] sm:$0xff] }
 0x10b   : > { %7438 = vmatpush2.bf16.msra.mxu1 %v12026_v12  ;;  %7600 = vmatprep.subr.bf16.mxu0 %v12031_v15  ;;  %v689_v12 = vld [vmem:[%s12769_s10 + $0xc98] sm:$0xff] }
 0x10c   : > { %7793 = vmatprep.subr.bf16.mxu1 %v12034_v16  ;;  %v6476_v23 = vpop.f32.mrf.mxu0  ;;  %6941 = vmatmul.mubr.bf16.gmra.mxu0 %v10805_v17 }
 0x10d   : > { %v6669_v24 = vpop.f32.mrf.mxu1  ;;  %7134 = vmatmul.mubr.bf16.gmra.mxu1 %v10807_v18  ;;  %v6477_v29 = vadd.f32 %v6476_v23, %v13346_v19  ;;  %6950 = vmatprep.mubr.bf16.mxu0 %v10838_v20 }
 0x10e   : > { %7143 = vmatprep.mubr.bf16.mxu1 %v10840_v21  ;;  %v6478_v30 = vpop.f32.mrf.mxu0 }
 0x10f   : > { %v6671_v31 = vpop.f32.mrf.mxu1  ;;  %v13357_v32 = vadd.f32 %v6669_v24, %v6477_v29  ;;  %v6479_v33 = vadd.f32 %v6478_v30, %v13350_v22  ;;  %v10934_v29 = vcombine.high %v672_v9, %v688_v10  ;;  %v10936_v30 = vcombine.high %v673_v11, %v689_v12 }
 0x110   : > { %v6480_v34 = vpop.f32.mrf.mxu0 }
 0x111   : > { %v6673_v35 = vpop.f32.mrf.mxu1  ;;  %v13360_v38 = vadd.f32 %v6671_v31, %v6479_v33  ;;  %v6481_v39 = vadd.f32 %v6480_v34, %v13346_v19 }
 0x112   : > { %v6482_v42 = vpop.f32.mrf.mxu0 }
 0x113   : > { %v6675_v43 = vpop.f32.mrf.mxu1  ;;  %v13363_v44 = vadd.f32 %v6673_v35, %v6481_v39  ;;  %v6483_v45 = vadd.f32 %v6482_v42, %v13350_v22  ;;  %v704_v39 = vld [vmem:[%s12769_s10 + $0xd10] sm:$0xff]  ;;  %v721_v42 = vld [vmem:[%s12769_s10 + $0xd98] sm:$0xff] }
 0x114   : > { %v6486_v46 = vpop.f32.mrf.mxu0  ;;  %6951 = vmatmul.mubr.bf16.gmra.mxu0 %v10837_v36 }
 0x115   : > { %v6679_v47 = vpop.f32.mrf.mxu1  ;;  %7144 = vmatmul.mubr.bf16.gmra.mxu1 %v10839_v37  ;;  %v13370_v52 = vadd.f32 %v6675_v43, %v6483_v45  ;;  %v6487_v53 = vadd.f32 %v6486_v46, %v13346_v19  ;;  %6960 = vmatprep.mubr.bf16.mxu0 %v10870_v40  ;;  %v720_v40 = vld [vmem:[%s12769_s10 + $0xd90] sm:$0xff] }
 0x116   : > { %7153 = vmatprep.mubr.bf16.mxu1 %v10872_v41  ;;  %v6488_v54 = vpop.f32.mrf.mxu0  ;;  %v705_v41 = vld [vmem:[%s12769_s10 + $0xd18] sm:$0xff] }
 0x117   : > { %v6681_v55 = vpop.f32.mrf.mxu1  ;;  %v13373_v56 = vadd.f32 %v6679_v47, %v6487_v53  ;;  %v6489_v57 = vadd.f32 %v6488_v54, %v13350_v22  ;;  %v10933_v53 = vcombine.low %v672_v9, %v688_v10  ;;  %v10935_v54 = vcombine.low %v673_v11, %v689_v12 }
 0x118   : > { %v6490_v58 = vpop.f32.mrf.mxu0 }
 0x119   : > { %v6683_v59 = vpop.f32.mrf.mxu1  ;;  %v13376_v62 = vadd.f32 %v6681_v55, %v6489_v57  ;;  %v6491_v0 = vadd.f32 %v6490_v58, %v13346_v19  ;;  %v10966_v58 = vcombine.high %v704_v39, %v720_v40 }
 0x11a   : > { %v6492_v3 = vpop.f32.mrf.mxu0 }
 0x11b   : > { %v6685_v4 = vpop.f32.mrf.mxu1  ;;  %v13379_v5 = vadd.f32 %v6683_v59, %v6491_v0  ;;  %v6493_v6 = vadd.f32 %v6492_v3, %v13350_v22  ;;  %v10968_v59 = vcombine.high %v705_v41, %v721_v42 }
 0x11c   : > { %v6496_v7 = vpop.f32.mrf.mxu0  ;;  %6961 = vmatmul.mubr.bf16.gmra.mxu0 %v10869_v60 }
 0x11d   : > { %v6689_v8 = vpop.f32.mrf.mxu1  ;;  %7154 = vmatmul.mubr.bf16.gmra.mxu1 %v10871_v61  ;;  %v13386_v15 = vadd.f32 %v6685_v4, %v6493_v6  ;;  %v6497_v16 = vadd.f32 %v6496_v7, %v13346_v19  ;;  %6970 = vmatprep.mubr.bf16.mxu0 %v10902_v1  ;;  %v736_v4 = vld [vmem:[%s12769_s10 + $0xe10] sm:$0xff]  ;;  %v737_v7 = vld [vmem:[%s12769_s10 + $0xe18] sm:$0xff] }
 0x11e   : > { %7163 = vmatprep.mubr.bf16.mxu1 %v10904_v2  ;;  %v6498_v17 = vpop.f32.mrf.mxu0  ;;  %v752_v6 = vld [vmem:[%s12769_s10 + $0xe90] sm:$0xff] }
 0x11f   : > { %v6691_v18 = vpop.f32.mrf.mxu1  ;;  %v13389_v20 = vadd.f32 %v6689_v8, %v6497_v16  ;;  %v6499_v21 = vadd.f32 %v6498_v17, %v13350_v22  ;;  %v753_v8 = vld [vmem:[%s12769_s10 + $0xe98] sm:$0xff] }
 0x120   : > { %v6500_v23 = vpop.f32.mrf.mxu0 }
 0x121   : > { %v6693_v24 = vpop.f32.mrf.mxu1  ;;  %v13392_v27 = vadd.f32 %v6691_v18, %v6499_v21  ;;  %v6501_v28 = vadd.f32 %v6500_v23, %v13346_v19  ;;  %v10965_v23 = vcombine.low %v704_v39, %v720_v40  ;;  %v768_v39 = vld [vmem:[%s12769_s10 + $0xf10] sm:$0xff] }
 0x122   : > { %v6502_v31 = vpop.f32.mrf.mxu0  ;;  %v784_v40 = vld [vmem:[%s12769_s10 + $0xf90] sm:$0xff] }
 0x123   : > { %v6695_v33 = vpop.f32.mrf.mxu1  ;;  %v13395_v34 = vadd.f32 %v6693_v24, %v6501_v28  ;;  %v6503_v35 = vadd.f32 %v6502_v31, %v13350_v22  ;;  %v10967_v24 = vcombine.low %v705_v41, %v721_v42  ;;  %v10998_v28 = vcombine.high %v736_v4, %v752_v6  ;;  %v769_v41 = vld [vmem:[%s12769_s10 + $0xf18] sm:$0xff] }
 0x124   : > { %v6506_v36 = vpop.f32.mrf.mxu0  ;;  %6971 = vmatmul.mubr.bf16.gmra.mxu0 %v10901_v25  ;;  %v785_v42 = vld [vmem:[%s12769_s10 + $0xf98] sm:$0xff] }
 0x125   : > { %v6699_v37 = vpop.f32.mrf.mxu1  ;;  %7164 = vmatmul.mubr.bf16.gmra.mxu1 %v10903_v26  ;;  %v13402_v43 = vadd.f32 %v6695_v33, %v6503_v35  ;;  %v6507_v45 = vadd.f32 %v6506_v36, %v13346_v19  ;;  %6980 = vmatprep.mubr.bf16.mxu0 %v10934_v29  ;;  %v11000_v29 = vcombine.high %v737_v7, %v753_v8 }
 0x126   : > { %7173 = vmatprep.mubr.bf16.mxu1 %v10936_v30  ;;  %v6508_v46 = vpop.f32.mrf.mxu0 }
 0x127   : > { %v6701_v47 = vpop.f32.mrf.mxu1  ;;  %v13405_v48 = vadd.f32 %v6699_v37, %v6507_v45  ;;  %v6509_v49 = vadd.f32 %v6508_v46, %v13350_v22 }
 0x128   : > { %v6510_v50 = vpop.f32.mrf.mxu0 }
 0x129   : > { %v6703_v51 = vpop.f32.mrf.mxu1  ;;  %v13408_v55 = vadd.f32 %v6701_v47, %v6509_v49  ;;  %v6511_v57 = vadd.f32 %v6510_v50, %v13346_v19 }
 0x12a   : > { %v6512_v60 = vpop.f32.mrf.mxu0 }
 0x12b   : > { %v6705_v61 = vpop.f32.mrf.mxu1  ;;  %v13411_v0 = vadd.f32 %v6703_v51, %v6511_v57  ;;  %v6513_v1 = vadd.f32 %v6512_v60, %v13350_v22  ;;  %v10997_v57 = vcombine.low %v736_v4, %v752_v6  ;;  %v290_v4 = vld [vmem:[%s12769_s10 + $0x20] sm:$0xff] }
 0x12c   : > { %v6516_v2 = vpop.f32.mrf.mxu0  ;;  %6981 = vmatmul.mubr.bf16.gmra.mxu0 %v10933_v53  ;;  %v306_v6 = vld [vmem:[%s12769_s10 + $0xa0] sm:$0xff] }
 0x12d   : > { %v6709_v3 = vpop.f32.mrf.mxu1  ;;  %7174 = vmatmul.mubr.bf16.gmra.mxu1 %v10935_v54  ;;  %v13418_v9 = vadd.f32 %v6705_v61, %v6513_v1  ;;  %v6517_v10 = vadd.f32 %v6516_v2, %v13346_v19  ;;  %6990 = vmatprep.mubr.bf16.mxu0 %v10966_v58  ;;  %v10999_v58 = vcombine.low %v737_v7, %v753_v8  ;;  %v291_v7 = vld [vmem:[%s12769_s10 + $0x28] sm:$0xff] }
 0x12e   : > { %7183 = vmatprep.mubr.bf16.mxu1 %v10968_v59  ;;  %v6518_v11 = vpop.f32.mrf.mxu0  ;;  %v11030_v61 = vcombine.high %v768_v39, %v784_v40  ;;  %v11032_v1 = vcombine.high %v769_v41, %v785_v42  ;;  %v307_v8 = vld [vmem:[%s12769_s10 + $0xa8] sm:$0xff] }
 0x12f   : > { %v6711_v12 = vpop.f32.mrf.mxu1  ;;  %v13421_v16 = vadd.f32 %v6709_v3, %v6517_v10  ;;  %v6519_v17 = vadd.f32 %v6518_v11, %v13350_v22 }
 0x130   : > { %v6520_v18 = vpop.f32.mrf.mxu0 }
 0x131   : > { %v6713_v21 = vpop.f32.mrf.mxu1  ;;  %v13424_v25 = vadd.f32 %v6711_v12, %v6519_v17  ;;  %v6521_v26 = vadd.f32 %v6520_v18, %v13346_v19 }
 0x132   : > { %v6522_v30 = vpop.f32.mrf.mxu0 }
 0x133   : > { %v6715_v31 = vpop.f32.mrf.mxu1  ;;  %v13427_v33 = vadd.f32 %v6713_v21, %v6521_v26  ;;  %v6523_v35 = vadd.f32 %v6522_v30, %v13350_v22 }
 0x134   : > { %v6526_v36 = vpop.f32.mrf.mxu0  ;;  %6991 = vmatmul.mubr.bf16.gmra.mxu0 %v10965_v23 }
 0x135   : > { %v6719_v37 = vpop.f32.mrf.mxu1  ;;  %7184 = vmatmul.mubr.bf16.gmra.mxu1 %v10967_v24  ;;  %v13434_v45 = vadd.f32 %v6715_v31, %v6523_v35  ;;  %v6527_v46 = vadd.f32 %v6526_v36, %v13346_v19  ;;  %7000 = vmatprep.mubr.bf16.mxu0 %v10998_v28  ;;  %v11029_v31 = vcombine.low %v768_v39, %v784_v40 }
 0x136   : > { %7193 = vmatprep.mubr.bf16.mxu1 %v11000_v29  ;;  %v6528_v47 = vpop.f32.mrf.mxu0  ;;  %v11031_v35 = vcombine.low %v769_v41, %v785_v42 }
 0x137   : > { %v6721_v49 = vpop.f32.mrf.mxu1  ;;  %v13437_v50 = vadd.f32 %v6719_v37, %v6527_v46  ;;  %v6529_v51 = vadd.f32 %v6528_v47, %v13350_v22  ;;  %v10554_v46 = vcombine.high %v290_v4, %v306_v6  ;;  %v10556_v47 = vcombine.high %v291_v7, %v307_v8 }
 0x138   : > { %v6530_v53 = vpop.f32.mrf.mxu0 }
 0x139   : > { %v6723_v54 = vpop.f32.mrf.mxu1  ;;  %v13440_v59 = vadd.f32 %v6721_v49, %v6529_v51  ;;  %v6531_v60 = vadd.f32 %v6530_v53, %v13346_v19 }
 0x13a   : > { %v6532_v2 = vpop.f32.mrf.mxu0 }
 0x13b   : > { %v6725_v3 = vpop.f32.mrf.mxu1  ;;  %v13443_v10 = vadd.f32 %v6723_v54, %v6531_v60  ;;  %v6533_v11 = vadd.f32 %v6532_v2, %v13350_v22  ;;  %v13466_v60 = vld [vmem:[%s12769_s10 + $0x120] sm:$0xff] }
 0x13c   : > { %v6536_v12 = vpop.f32.mrf.mxu0  ;;  %7001 = vmatmul.mubr.bf16.gmra.mxu0 %v10997_v57 }
 0x13d   : > { %v6729_v17 = vpop.f32.mrf.mxu1  ;;  %7194 = vmatmul.mubr.bf16.gmra.mxu1 %v10999_v58  ;;  %v13450_v18 = vadd.f32 %v6725_v3, %v6533_v11  ;;  %v6537_v21 = vadd.f32 %v6536_v12, %v13346_v19  ;;  %7010 = vmatprep.mubr.bf16.mxu0 %v11030_v61  ;;  %v13469_v61 = vld [vmem:[%s12769_s10 + $0x1a0] sm:$0xff]  ;;  %v13475_v3 = vld [vmem:[%s12769_s10 + $0x128] sm:$0xff] }
 0x13e   : > { %7203 = vmatprep.mubr.bf16.mxu1 %v11032_v1  ;;  %v6538_v23 = vpop.f32.mrf.mxu0  ;;  %v13478_v11 = vld [vmem:[%s12769_s10 + $0x1a8] sm:$0xff] }
 0x13f   : > { %v6731_v24 = vpop.f32.mrf.mxu1  ;;  %v13453_v26 = vadd.f32 %v6729_v17, %v6537_v21  ;;  %v6539_v28 = vadd.f32 %v6538_v23, %v13350_v22  ;;  %v10553_v21 = vcombine.low %v290_v4, %v306_v6  ;;  %v10555_v23 = vcombine.low %v291_v7, %v307_v8  ;;  %v12040_v4 = vld [vmem:[%s17140_s1 + $0x764] ss:$8 sps:$4 sm:$0xff]  }
 0x140   : > { %v6540_v29 = vpop.f32.mrf.mxu0  ;;  %v10586_v8 = vcombine.high %v13466_v60, %v13469_v61 }
 0x141   : > { %v6733_v30 = vpop.f32.mrf.mxu1  ;;  %v13456_v36 = vadd.f32 %v6731_v24, %v6539_v28  ;;  %v6541_v37 = vadd.f32 %v6540_v29, %v13346_v19  ;;  %v12029_v24 = vld [vmem:[%s17140_s1 + $0x670] ss:$8 sps:$4 sm:$0xff]  }
 0x142   : > { %v6542_v49 = vpop.f32.mrf.mxu0  ;;  %v12032_v28 = vld [vmem:[%s17140_s1 + $0x770] ss:$8 sps:$4 sm:$0xff]  }
 0x143   : > { %v6735_v51 = vpop.f32.mrf.mxu1  ;;  %v13459_v53 = vadd.f32 %v6733_v30, %v6541_v37  ;;  %v6543_v54 = vadd.f32 %v6542_v49, %v13350_v22  ;;  %v12038_v49 = vld [vmem:[%s17140_s1 + $0x760] ss:$8 sps:$4 sm:$0xff]  }
 0x144   : > { %v6546_v57 = vpop.f32.mrf.mxu0  ;;  %7011 = vmatmul.mubr.bf16.gmra.mxu0 %v11029_v31  ;;  %v12037_v31 = vld [vmem:[%s17140_s1 + $0x664] ss:$8 sps:$4 sm:$0xff]  }
 0x145   : > { %v6739_v58 = vpop.f32.mrf.mxu1  ;;  %7204 = vmatmul.mubr.bf16.gmra.mxu1 %v11031_v35  ;;  %v13462_v39 = vadd.f32 %v6735_v51, %v6543_v54  ;;  %v6547_v40 = vadd.f32 %v6546_v57, %v13346_v19  ;;  %7246 = vmatprep.mubr.bf16.mxu0 %v10554_v46  ;;  %v10588_v35 = vcombine.high %v13475_v3, %v13478_v11  ;;  %v13509_v51 = vld [vmem:[%s12769_s10 + $0x220] sm:$0xff] }
 0x146   : > { %7439 = vmatprep.mubr.bf16.mxu1 %v10556_v47  ;;  %v6548_v41 = vpop.f32.mrf.mxu0  ;;  %v12035_v47 = vld [vmem:[%s17140_s1 + $0x660] ss:$8 sps:$4 sm:$0xff]  }
 0x147   : > { %v6741_v42 = vpop.f32.mrf.mxu1  ;;  %v13471_v1 = vadd.f32 %v6739_v58, %v6547_v40  ;;  %v6549_v2 = vadd.f32 %v6548_v41, %v13350_v22  ;;  %v13512_v54 = vld [vmem:[%s12769_s10 + $0x2a0] sm:$0xff]  ;;  %v13515_v40 = vld [vmem:[%s12769_s10 + $0x228] sm:$0xff] }
 0x148   : > { %v6550_v12 = vpop.f32.mrf.mxu0  ;;  %v13518_v41 = vld [vmem:[%s12769_s10 + $0x2a8] sm:$0xff] }
 0x149   : > { %v6743_v17 = vpop.f32.mrf.mxu1  ;;  %v13486_v29 = vadd.f32 %v6741_v42, %v6549_v2  ;;  %v6551_v30 = vadd.f32 %v6550_v12, %v13346_v19  ;;  %v12043_v42 = vld [vmem:[%s17140_s1 + $0x654] ss:$8 sps:$4 sm:$0xff]  }
 0x14a   : > { %v6552_v6 = vpop.f32.mrf.mxu0  ;;  %v12046_v2 = vld [vmem:[%s17140_s1 + $0x754] ss:$8 sps:$4 sm:$0xff]  }
 0x14b   : > { %v6745_v7 = vpop.f32.mrf.mxu1  ;;  %v13499_v37 = vadd.f32 %v6743_v17, %v6551_v30  ;;  %v6553_v46 = vadd.f32 %v6552_v6, %v13350_v22 }
 0x14c   : > { %v6556_v57 = vpop.f32.mrf.mxu0  ;;  %7247 = vmatmul.mubr.bf16.vlgmr.msra.gmra.mxu0 %v10553_v21 }
 0x14d   : > { %v6749_v58 = vpop.f32.mrf.mxu1  ;;  %7440 = vmatmul.mubr.bf16.vlgmr.msra.gmra.mxu1 %v10555_v23  ;;  %v13526_v12 = vadd.f32 %v6745_v7, %v6553_v46  ;;  %v6557_v17 = vadd.f32 %v6556_v57, %v13346_v19  ;;  %7601 = vmatpush1.bf16.msra.mxu0 %v12029_v24  ;;  %v10585_v7 = vcombine.low %v13466_v60, %v13469_v61  ;;  %v12044_v61 = vld [vmem:[%s17140_s1 + $0x750] ss:$8 sps:$4 sm:$0xff]  }
 0x14e   : > { %7794 = vmatpush1.bf16.msra.mxu1 %v12032_v28  ;;  %v6558_v21 = vpop.f32.mrf.mxu0  ;;  %7256 = vmatprep.mubr.bf16.mxu0 %v10586_v8  ;;  %v10587_v46 = vcombine.low %v13475_v3, %v13478_v11  ;;  %v10618_v24 = vcombine.high %v13509_v51, %v13512_v54  ;;  %v12041_v28 = vld [vmem:[%s17140_s1 + $0x650] ss:$8 sps:$4 sm:$0xff]   ;;  %v10620_v60 = vcombine.high %v13515_v40, %v13518_v41  ;;  %v12049_v3 = vld [vmem:[%s17140_s1 + $0x644] ss:$8 sps:$4 sm:$0xff]  }
 0x14f   : > { %v6751_v23 = vpop.f32.mrf.mxu1  ;;  %7449 = vmatprep.mubr.bf16.mxu1 %v10588_v35  ;;  %v13529_v30 = vadd.f32 %v6749_v58, %v6557_v17  ;;  %v6559_v6 = vadd.f32 %v6558_v21, %v13350_v22  ;;  %7602 = vmatprep.subr.bf16.mxu0 %v12037_v31  ;;  %v13559_v58 = vld [vmem:[%s12769_s10 + $0x320] sm:$0xff]  ;;  %v13565_v21 = vld [vmem:[%s12769_s10 + $0x328] sm:$0xff] }
 0x150   : > { %7795 = vmatprep.subr.bf16.mxu1 %v12040_v4  ;;  %v6560_v13 = vpop.f32.mrf.mxu0  ;;  %v13562_v17 = vld [vmem:[%s12769_s10 + $0x3a0] sm:$0xff] }
 0x151   : > { %v6753_v14 = vpop.f32.mrf.mxu1  ;;  %v13541_v8 = vadd.f32 %v6751_v23, %v6559_v6  ;;  %v6561_v31 = vadd.f32 %v6560_v13, %v13346_v19  ;;  %7603 = vmatpush1.bf16.msra.mxu0 %v12035_v47  ;;  %v12052_v13 = vld [vmem:[%s17140_s1 + $0x744] ss:$8 sps:$4 sm:$0xff]  }
 0x152   : > { %7796 = vmatpush1.bf16.msra.mxu1 %v12038_v49  ;;  %v6562_v11 = vpop.f32.mrf.mxu0  ;;  %7604 = vmatprep.subr.bf16.mxu0 %v12043_v42  ;;  %v13568_v23 = vld [vmem:[%s12769_s10 + $0x3a8] sm:$0xff] }
 0x153   : > { %v6755_v4 = vpop.f32.mrf.mxu1  ;;  %7797 = vmatprep.subr.bf16.mxu1 %v12046_v2  ;;  %v13555_v35 = vadd.f32 %v6753_v14, %v6561_v31  ;;  %v6563_v47 = vadd.f32 %v6562_v11, %v13350_v22  ;;  %v12047_v42 = vld [vmem:[%s17140_s1 + $0x640] ss:$8 sps:$4 sm:$0xff]  }
 0x154   : > { %v6566_v49 = vpop.f32.mrf.mxu0  ;;  %7257 = vmatmul.mubr.bf16.gmra.mxu0 %v10585_v7  ;;  %v12050_v14 = vld [vmem:[%s17140_s1 + $0x740] ss:$8 sps:$4 sm:$0xff]  }
 0x155   : > { %17152 = vst [vmem:[#allocation3_spill] sm:$0xff] %v13555_v35  ;;  %v6759_v57 = vpop.f32.mrf.mxu1  ;;  %7450 = vmatmul.mubr.bf16.gmra.mxu1 %v10587_v46  ;;  %v13576_v2 = vadd.f32 %v6755_v4, %v6563_v47  ;;  %v6567_v6 = vadd.f32 %v6566_v49, %v13346_v19  ;;  %7266 = vmatprep.mubr.bf16.mxu0 %v10618_v24  ;;  %v12058_v4 = vld [vmem:[%s17140_s1 + $0x734] ss:$8 sps:$4 sm:$0xff]   ;;  %v13624_v35 = vld [vmem:[%s12769_s10 + $0x4a8] sm:$0xff] }
 0x156   : > { %7459 = vmatprep.mubr.bf16.mxu1 %v10620_v60  ;;  %v6568_v7 = vpop.f32.mrf.mxu0  ;;  %7605 = vmatpush1.bf16.msra.mxu0 %v12041_v28  ;;  %v10617_v28 = vcombine.low %v13509_v51, %v13512_v54  ;;  %v10650_v49 = vcombine.high %v13559_v58, %v13562_v17  ;;  %v12056_v51 = vld [vmem:[%s17140_s1 + $0x730] ss:$8 sps:$4 sm:$0xff]   ;;  %v12061_v54 = vld [vmem:[%s17140_s1 + $0x624] ss:$8 sps:$4 sm:$0xff]  }
 0x157   : > { %17153 = vst [vmem:[#allocation4_spill] sm:$0xff] %v13576_v2  ;;  %v6761_v46 = vpop.f32.mrf.mxu1  ;;  %7798 = vmatpush1.bf16.msra.mxu1 %v12044_v61  ;;  %v13579_v31 = vadd.f32 %v6759_v57, %v6567_v6  ;;  %v6569_v11 = vadd.f32 %v6568_v7, %v13350_v22  ;;  %7606 = vmatprep.subr.bf16.mxu0 %v12049_v3  ;;  %v12053_v3 = vld [vmem:[%s17140_s1 + $0x630] ss:$8 sps:$4 sm:$0xff]   ;;  %v13621_v2 = vld [vmem:[%s12769_s10 + $0x428] sm:$0xff] }
 0x158   : > { %7799 = vmatprep.subr.bf16.mxu1 %v12052_v13  ;;  %v6570_v24 = vpop.f32.mrf.mxu0  ;;  %v10619_v61 = vcombine.low %v13515_v40, %v13518_v41  ;;  %v10652_v57 = vcombine.high %v13565_v21, %v13568_v23  ;;  %v12064_v40 = vld [vmem:[%s17140_s1 + $0x724] ss:$8 sps:$4 sm:$0xff]  }
 0x159   : > { %17154 = vst [vmem:[#allocation5_spill] sm:$0xff] %v13579_v31  ;;  %v6763_v60 = vpop.f32.mrf.mxu1  ;;  %v13595_v13 = vadd.f32 %v6761_v46, %v6569_v11  ;;  %v6571_v47 = vadd.f32 %v6570_v24, %v13346_v19  ;;  %v13618_v31 = vld [vmem:[%s12769_s10 + $0x4a0] sm:$0xff] }
 0x15a   : > { %v6572_v41 = vpop.f32.mrf.mxu0  ;;  %7607 = vmatpush1.bf16.msra.mxu0 %v12047_v42  ;;  %v12059_v42 = vld [vmem:[%s17140_s1 + $0x620] ss:$8 sps:$4 sm:$0xff]  }
 0x15b   : > { %17155 = vst [vmem:[#allocation6_spill] sm:$0xff] %v13595_v13  ;;  %v6765_v6 = vpop.f32.mrf.mxu1  ;;  %7800 = vmatpush1.bf16.msra.mxu1 %v12050_v14  ;;  %v13611_v7 = vadd.f32 %v6763_v60, %v6571_v47  ;;  %v6573_v46 = vadd.f32 %v6572_v41, %v13350_v22  ;;  %7608 = vmatprep.subr.bf16.mxu0 %v12055_v63  ;;  %v13615_v13 = vld [vmem:[%s12769_s10 + $0x420] sm:$0xff]  ;;  %v12067_v41 = vld [vmem:[%s17140_s1 + $0x614] ss:$8 sps:$4 sm:$0xff]  }
 0x15c   : > { %7801 = vmatprep.subr.bf16.mxu1 %v12058_v4  ;;  %v6576_v11 = vpop.f32.mrf.mxu0  ;;  %7267 = vmatmul.mubr.bf16.gmra.mxu0 %v10617_v28  ;;  %v12062_v63 = vld [vmem:[%s17140_s1 + $0x720] ss:$8 sps:$4 sm:$0xff]  }
 0x15d   : > { %17156 = vst [vmem:[#allocation7_spill] sm:$0xff] %v13611_v7  ;;  %v6769_v24 = vpop.f32.mrf.mxu1  ;;  %7460 = vmatmul.mubr.bf16.gmra.mxu1 %v10619_v61  ;;  %v13632_v14 = vadd.f32 %v6765_v6, %v6573_v46  ;;  %v6577_v4 = vadd.f32 %v6576_v11, %v13346_v19  ;;  %7276 = vmatprep.mubr.bf16.mxu0 %v10650_v49  ;;  %v12070_v6 = vld [vmem:[%s17140_s1 + $0x714] ss:$8 sps:$4 sm:$0xff]   ;;  %v13680_v7 = vld [vmem:[%s12769_s10 + $0x5a8] sm:$0xff] }
 0x15e   : > { %7469 = vmatprep.mubr.bf16.mxu1 %v10652_v57  ;;  %v6578_v60 = vpop.f32.mrf.mxu0  ;;  %7609 = vmatpush1.bf16.msra.mxu0 %v12053_v3  ;;  %v10649_v3 = vcombine.low %v13559_v58, %v13562_v17  ;;  %v10682_v11 = vcombine.high %v13615_v13, %v13618_v31  ;;  %v12068_v58 = vld [vmem:[%s17140_s1 + $0x710] ss:$8 sps:$4 sm:$0xff]   ;;  %v12073_v17 = vld [vmem:[%s17140_s1 + $0x604] ss:$8 sps:$4 sm:$0xff]  }
 0x15f   : > { %17157 = vst [vmem:[#allocation8_spill] sm:$0xff] %v13632_v14  ;;  %v6771_v28 = vpop.f32.mrf.mxu1  ;;  %7802 = vmatpush1.bf16.msra.mxu1 %v12056_v51  ;;  %v13635_v61 = vadd.f32 %v6769_v24, %v6577_v4  ;;  %v6579_v47 = vadd.f32 %v6578_v60, %v13350_v22  ;;  %7610 = vmatprep.subr.bf16.mxu0 %v12061_v54  ;;  %v12065_v54 = vld [vmem:[%s17140_s1 + $0x610] ss:$8 sps:$4 sm:$0xff]   ;;  %v13677_v14 = vld [vmem:[%s12769_s10 + $0x528] sm:$0xff] }
 0x160   : > { %7803 = vmatprep.subr.bf16.mxu1 %v12064_v40  ;;  %v6580_v49 = vpop.f32.mrf.mxu0  ;;  %v10651_v51 = vcombine.low %v13565_v21, %v13568_v23  ;;  %v10684_v24 = vcombine.high %v13621_v2, %v13624_v35  ;;  %v12076_v21 = vld [vmem:[%s17140_s1 + $0x704] ss:$8 sps:$4 sm:$0xff]  }
 0x161   : > { %17158 = vst [vmem:[#allocation9_spill] sm:$0xff] %v13635_v61  ;;  %v6773_v57 = vpop.f32.mrf.mxu1  ;;  %v13651_v40 = vadd.f32 %v6771_v28, %v6579_v47  ;;  %v6581_v46 = vadd.f32 %v6580_v49, %v13346_v19  ;;  %v13674_v61 = vld [vmem:[%s12769_s10 + $0x5a0] sm:$0xff] }
 0x162   : > { %v6582_v23 = vpop.f32.mrf.mxu0  ;;  %7611 = vmatpush1.bf16.msra.mxu0 %v12059_v42  ;;  %v12071_v42 = vld [vmem:[%s17140_s1 + $0x600] ss:$8 sps:$4 sm:$0xff]  }
 0x163   : > { %17159 = vst [vmem:[#allocation10_spill] sm:$0xff] %v13651_v40  ;;  %v6775_v4 = vpop.f32.mrf.mxu1  ;;  %7804 = vmatpush1.bf16.msra.mxu1 %v12062_v63  ;;  %v13667_v60 = vadd.f32 %v6773_v57, %v6581_v46  ;;  %v6583_v28 = vadd.f32 %v6582_v23, %v13350_v22  ;;  %7612 = vmatprep.subr.bf16.mxu0 %v12067_v41  ;;  %v13671_v40 = vld [vmem:[%s12769_s10 + $0x520] sm:$0xff]  ;;  %v12079_v23 = vld [vmem:[%s17140_s1 + $0x6f4] ss:$8 sps:$4 sm:$0xff]  }
 0x164   : > { %7805 = vmatprep.subr.bf16.mxu1 %v12070_v6  ;;  %v6586_v47 = vpop.f32.mrf.mxu0  ;;  %7277 = vmatmul.mubr.bf16.gmra.mxu0 %v10649_v3  ;;  %v12074_v63 = vld [vmem:[%s17140_s1 + $0x700] ss:$8 sps:$4 sm:$0xff]  }
 0x165   : > { %v6779_v49 = vpop.f32.mrf.mxu1  ;;  %7470 = vmatmul.mubr.bf16.gmra.mxu1 %v10651_v51  ;;  %v13688_v41 = vadd.f32 %v6775_v4, %v6583_v28  ;;  %v6587_v6 = vadd.f32 %v6586_v47, %v13346_v19  ;;  %7286 = vmatprep.mubr.bf16.mxu0 %v10682_v11  ;;  %v12082_v4 = vld [vmem:[%s17140_s1 + $0x7f4] ss:$8 sps:$4 sm:$0xff]   ;;  %v10716_v47 = vcombine.high %v13677_v14, %v13680_v7 }
 0x166   : > { %7479 = vmatprep.mubr.bf16.mxu1 %v10684_v24  ;;  %v6588_v57 = vpop.f32.mrf.mxu0  ;;  %7613 = vmatpush1.bf16.msra.mxu0 %v12065_v54  ;;  %v10681_v54 = vcombine.low %v13615_v13, %v13618_v31  ;;  %v12085_v13 = vld [vmem:[%s17140_s1 + $0x6e4] ss:$8 sps:$4 sm:$0xff]  }
 0x167   : > { %v6781_v3 = vpop.f32.mrf.mxu1  ;;  %7806 = vmatpush1.bf16.msra.mxu1 %v12068_v58  ;;  %v13691_v51 = vadd.f32 %v6779_v49, %v6587_v6  ;;  %v6589_v46 = vadd.f32 %v6588_v57, %v13350_v22  ;;  %7614 = vmatprep.subr.bf16.mxu0 %v12073_v17  ;;  %v10683_v58 = vcombine.low %v13621_v2, %v13624_v35  ;;  %v12077_v49 = vld [vmem:[%s17140_s1 + $0x6f0] ss:$8 sps:$4 sm:$0xff]  }
 0x168   : > { %7807 = vmatprep.subr.bf16.mxu1 %v12076_v21  ;;  %v6590_v11 = vpop.f32.mrf.mxu0  ;;  %v10714_v21 = vcombine.high %v13671_v40, %v13674_v61  ;;  %v12080_v35 = vld [vmem:[%s17140_s1 + $0x7f0] ss:$8 sps:$4 sm:$0xff]  }
 0x169   : > { %v6783_v24 = vpop.f32.mrf.mxu1  ;;  %v13704_v28 = vadd.f32 %v6781_v3, %v6589_v46  ;;  %v6591_v17 = vadd.f32 %v6590_v11, %v13346_v19 }
 0x16a   : > { %v6592_v6 = vpop.f32.mrf.mxu0  ;;  %7615 = vmatpush1.bf16.msra.mxu0 %v12071_v42  ;;  %v12088_v42 = vld [vmem:[%s17140_s1 + $0x7e4] ss:$8 sps:$4 sm:$0xff]  }
 0x16b   : > { %17160 = vst [vmem:[#allocation11_spill] sm:$0xff] %v13704_v28  ;;  %v6785_v57 = vpop.f32.mrf.mxu1  ;;  %7808 = vmatpush1.bf16.msra.mxu1 %v12074_v63  ;;  %v13717_v2 = vadd.f32 %v6783_v24, %v6591_v17  ;;  %v6593_v31 = vadd.f32 %v6592_v6, %v13350_v22  ;;  %7616 = vmatprep.subr.bf16.mxu0 %v12079_v23  ;;  %v13730_v23 = vld [vmem:[%s12769_s10 + $0x620] sm:$0xff]  ;;  %v13736_v24 = vld [vmem:[%s12769_s10 + $0x628] sm:$0xff] }
 0x16c   : > { %7809 = vmatprep.subr.bf16.mxu1 %v12082_v4  ;;  %v6596_v63 = vpop.f32.mrf.mxu0  ;;  %7287 = vmatmul.mubr.bf16.gmra.mxu0 %v10681_v54  ;;  %v13733_v4 = vld [vmem:[%s12769_s10 + $0x6a0] sm:$0xff] }
 0x16d   : > { %17161 = vst [vmem:[#allocation12_spill] sm:$0xff] %v13717_v2  ;;  %v6789_v3 = vpop.f32.mrf.mxu1  ;;  %7480 = vmatmul.mubr.bf16.gmra.mxu1 %v10683_v58  ;;  %v13726_v46 = vadd.f32 %v6785_v57, %v6593_v31  ;;  %v6597_v11 = vadd.f32 %v6596_v63, %v13346_v19  ;;  %7296 = vmatprep.mubr.bf16.mxu0 %v10714_v21  ;;  %v13739_v2 = vld [vmem:[%s12769_s10 + $0x6a8] sm:$0xff]  ;;  %v12091_v57 = vld [vmem:[%s17140_s1 + $0x6d4] ss:$8 sps:$4 sm:$0xff]  }
 0x16e   : > { %7489 = vmatprep.mubr.bf16.mxu1 %v10716_v47  ;;  %v6598_v17 = vpop.f32.mrf.mxu0  ;;  %7617 = vmatpush2.bf16.msra.mxu0 %v12077_v49  ;;  %v12083_v54 = vld [vmem:[%s17140_s1 + $0x6e0] ss:$8 sps:$4 sm:$0xff]   ;;  %v12094_v49 = vld [vmem:[%s17140_s1 + $0x7d4] ss:$8 sps:$4 sm:$0xff]   ;;  %v10713_v63 = vcombine.low %v13671_v40, %v13674_v61  ;;  %v12089_v61 = vld [vmem:[%s17140_s1 + $0x6d0] ss:$8 sps:$4 sm:$0xff]  }
 0x16f   : > { %17162 = vst [vmem:[#allocation13_spill] sm:$0xff] %v13726_v46  ;;  %v6791_v6 = vpop.f32.mrf.mxu1  ;;  %7810 = vmatpush2.bf16.msra.mxu1 %v12080_v35  ;;  %v12086_v58 = vld [vmem:[%s17140_s1 + $0x7e0] ss:$8 sps:$4 sm:$0xff]   ;;  %v13747_v21 = vadd.f32 %v6789_v3, %v6597_v11  ;;  %v6599_v47 = vadd.f32 %v6598_v17, %v13350_v22  ;;  %7618 = vmatprep.subr.bf16.mxu0 %v12085_v13 }
 0x170   : > { %7811 = vmatprep.subr.bf16.mxu1 %v12088_v42  ;;  %v6600_v35 = vpop.f32.mrf.mxu0  ;;  %v10715_v3 = vcombine.low %v13677_v14, %v13680_v7  ;;  %v10746_v42 = vcombine.high %v13730_v23, %v13733_v4  ;;  %v10748_v17 = vcombine.high %v13736_v24, %v13739_v2  ;;  %v12092_v7 = vld [vmem:[%s17140_s1 + $0x7d0] ss:$8 sps:$4 sm:$0xff]   ;;  %v12119_v28 = vld [vmem:[%s17140_s1 + $0x680] ss:$8 sps:$4 sm:$0xff]  }
 0x171   : > { %17163 = vst [vmem:[#allocation14_spill] sm:$0xff] %v13747_v21  ;;  %v6793_v31 = vpop.f32.mrf.mxu1  ;;  %v13760_v11 = vadd.f32 %v6791_v6, %v6599_v47  ;;  %v6601_v13 = vadd.f32 %v6600_v35, %v13346_v19  ;;  %v12097_v6 = vld [vmem:[%s17140_s1 + $0x6c4] ss:$8 sps:$4 sm:$0xff]  }
 0x172   : > { %v6602_v21 = vpop.f32.mrf.mxu0  ;;  %7619 = vmatpush2.bf16.msra.mxu0 %v12083_v54  ;;  %v12100_v54 = vld [vmem:[%s17140_s1 + $0x7c4] ss:$8 sps:$4 sm:$0xff]  }
 0x173   : > { %17164 = vst [vmem:[#allocation15_spill] sm:$0xff] %v13760_v11  ;;  %v6795_v46 = vpop.f32.mrf.mxu1  ;;  %7812 = vmatpush2.bf16.msra.mxu1 %v12086_v58  ;;  %v13773_v14 = vadd.f32 %v6793_v31, %v6601_v13  ;;  %v6603_v40 = vadd.f32 %v6602_v21, %v13350_v22  ;;  %7620 = vmatprep.subr.bf16.mxu0 %v12091_v57  ;;  %v13786_v21 = vld [vmem:[%s12769_s10 + $0x720] sm:$0xff]  ;;  %v13795_v11 = vld [vmem:[%s12769_s10 + $0x7a8] sm:$0xff] }
 0x174   : > { %7813 = vmatprep.subr.bf16.mxu1 %v12094_v49  ;;  %v6606_v58 = vpop.f32.mrf.mxu0  ;;  %7297 = vmatmul.mubr.bf16.gmra.mxu0 %v10713_v63  ;;  %v13789_v57 = vld [vmem:[%s12769_s10 + $0x7a0] sm:$0xff]  ;;  %v13792_v49 = vld [vmem:[%s12769_s10 + $0x728] sm:$0xff] }
 0x175   : > { %17165 = vst [vmem:[#allocation16_spill] sm:$0xff] %v13773_v14  ;;  %v6799_v47 = vpop.f32.mrf.mxu1  ;;  %7490 = vmatmul.mubr.bf16.gmra.mxu1 %v10715_v3  ;;  %v13782_v35 = vadd.f32 %v6795_v46, %v6603_v40  ;;  %v6607_v31 = vadd.f32 %v6606_v58, %v13346_v19  ;;  %7306 = vmatprep.mubr.bf16.mxu0 %v10746_v42  ;;  %v12095_v46 = vld [vmem:[%s17140_s1 + $0x6c0] ss:$8 sps:$4 sm:$0xff]  }
 0x176   : > { %7499 = vmatprep.mubr.bf16.mxu1 %v10748_v17  ;;  %v6608_v13 = vpop.f32.mrf.mxu0  ;;  %7621 = vmatpush2.bf16.msra.mxu0 %v12089_v61  ;;  %v12098_v63 = vld [vmem:[%s17140_s1 + $0x7c0] ss:$8 sps:$4 sm:$0xff]   ;;  %v12103_v17 = vld [vmem:[%s17140_s1 + $0x6b4] ss:$8 sps:$4 sm:$0xff]   ;;  %v10745_v58 = vcombine.low %v13730_v23, %v13733_v4  ;;  %v12101_v23 = vld [vmem:[%s17140_s1 + $0x6b0] ss:$8 sps:$4 sm:$0xff]  }
 0x177   : > { %17166 = vst [vmem:[#allocation17_spill] sm:$0xff] %v13782_v35  ;;  %v6801_v14 = vpop.f32.mrf.mxu1  ;;  %7814 = vmatpush2.bf16.msra.mxu1 %v12092_v7  ;;  %v13803_v3 = vadd.f32 %v6799_v47, %v6607_v31  ;;  %v6609_v42 = vadd.f32 %v6608_v13, %v13350_v22  ;;  %7622 = vmatprep.subr.bf16.mxu0 %v12097_v6  ;;  %v12106_v61 = vld [vmem:[%s17140_s1 + $0x7b4] ss:$8 sps:$4 sm:$0xff]  }
 0x178   : > { %7815 = vmatprep.subr.bf16.mxu1 %v12100_v54  ;;  %v6610_v7 = vpop.f32.mrf.mxu0  ;;  %v10747_v47 = vcombine.low %v13736_v24, %v13739_v2  ;;  %v10778_v54 = vcombine.high %v13786_v21, %v13789_v57  ;;  %v10780_v13 = vcombine.high %v13792_v49, %v13795_v11  ;;  %v12104_v2 = vld [vmem:[%s17140_s1 + $0x7b0] ss:$8 sps:$4 sm:$0xff]  }
 0x179   : > { %17167 = vst [vmem:[#allocation18_spill] sm:$0xff] %v13803_v3  ;;  %v6803_v40 = vpop.f32.mrf.mxu1  ;;  %v13816_v31 = vadd.f32 %v6801_v14, %v6609_v42  ;;  %v6611_v6 = vadd.f32 %v6610_v7, %v13346_v19  ;;  %v12109_v14 = vld [vmem:[%s17140_s1 + $0x6a4] ss:$8 sps:$4 sm:$0xff]  }
 0x17a   : > { %v6612_v3 = vpop.f32.mrf.mxu0  ;;  %7623 = vmatpush2.bf16.msra.mxu0 %v12095_v46  ;;  %v12112_v46 = vld [vmem:[%s17140_s1 + $0x7a4] ss:$8 sps:$4 sm:$0xff]  }
 0x17b   : > { %17168 = vst [vmem:[#allocation19_spill] sm:$0xff] %v13816_v31  ;;  %v6805_v35 = vpop.f32.mrf.mxu1  ;;  %7816 = vmatpush2.bf16.msra.mxu1 %v12098_v63  ;;  %v13829_v4 = vadd.f32 %v6803_v40, %v6611_v6  ;;  %v6613_v24 = vadd.f32 %v6612_v3, %v13350_v22  ;;  %7624 = vmatprep.subr.bf16.mxu0 %v12103_v17  ;;  %v13842_v3 = vld [vmem:[%s12769_s10 + $0x820] sm:$0xff]  ;;  %v13851_v31 = vld [vmem:[%s12769_s10 + $0x8a8] sm:$0xff] }
 0x17c   : > { %7817 = vmatprep.subr.bf16.mxu1 %v12106_v61  ;;  %v6616_v63 = vpop.f32.mrf.mxu0  ;;  %7307 = vmatmul.mubr.bf16.gmra.mxu0 %v10745_v58  ;;  %v13845_v17 = vld [vmem:[%s12769_s10 + $0x8a0] sm:$0xff]  ;;  %v13848_v61 = vld [vmem:[%s12769_s10 + $0x828] sm:$0xff] }
 0x17d   : > { %17169 = vst [vmem:[#allocation20_spill] sm:$0xff] %v13829_v4  ;;  %v6809_v42 = vpop.f32.mrf.mxu1  ;;  %7500 = vmatmul.mubr.bf16.gmra.mxu1 %v10747_v47  ;;  %v13838_v7 = vadd.f32 %v6805_v35, %v6613_v24  ;;  %v6617_v40 = vadd.f32 %v6616_v63, %v13346_v19  ;;  %7316 = vmatprep.mubr.bf16.mxu0 %v10778_v54  ;;  %v12107_v35 = vld [vmem:[%s17140_s1 + $0x6a0] ss:$8 sps:$4 sm:$0xff]  }
 0x17e   : > { %7509 = vmatprep.mubr.bf16.mxu1 %v10780_v13  ;;  %v6618_v6 = vpop.f32.mrf.mxu0  ;;  %7625 = vmatpush2.bf16.msra.mxu0 %v12101_v23  ;;  %v12110_v58 = vld [vmem:[%s17140_s1 + $0x7a0] ss:$8 sps:$4 sm:$0xff]   ;;  %v12115_v13 = vld [vmem:[%s17140_s1 + $0x694] ss:$8 sps:$4 sm:$0xff]   ;;  %v10777_v63 = vcombine.low %v13786_v21, %v13789_v57  ;;  %v12113_v21 = vld [vmem:[%s17140_s1 + $0x690] ss:$8 sps:$4 sm:$0xff]  }
 0x17f   : > { %17170 = vst [vmem:[#allocation21_spill] sm:$0xff] %v13838_v7  ;;  %v6811_v4 = vpop.f32.mrf.mxu1  ;;  %7818 = vmatpush2.bf16.msra.mxu1 %v12104_v2  ;;  %v13859_v47 = vadd.f32 %v6809_v42, %v6617_v40  ;;  %v6619_v54 = vadd.f32 %v6618_v6, %v13350_v22  ;;  %7626 = vmatprep.subr.bf16.mxu0 %v12109_v14  ;;  %v12118_v23 = vld [vmem:[%s17140_s1 + $0x794] ss:$8 sps:$4 sm:$0xff]  }
 0x180   : > { %7819 = vmatprep.subr.bf16.mxu1 %v12112_v46  ;;  %v6620_v2 = vpop.f32.mrf.mxu0  ;;  %v10779_v42 = vcombine.low %v13792_v49, %v13795_v11  ;;  %v10810_v46 = vcombine.high %v13842_v3, %v13845_v17  ;;  %v10812_v6 = vcombine.high %v13848_v61, %v13851_v31  ;;  %v12116_v11 = vld [vmem:[%s17140_s1 + $0x790] ss:$8 sps:$4 sm:$0xff]  }
 0x181   : > { %17171 = vst [vmem:[#allocation22_spill] sm:$0xff] %v13859_v47  ;;  %v6813_v24 = vpop.f32.mrf.mxu1  ;;  %v13872_v40 = vadd.f32 %v6811_v4, %v6619_v54  ;;  %v6621_v14 = vadd.f32 %v6620_v2, %v13346_v19  ;;  %v12121_v4 = vld [vmem:[%s17140_s1 + $0x684] ss:$8 sps:$4 sm:$0xff]  }
 0x182   : > { %v6622_v47 = vpop.f32.mrf.mxu0  ;;  %7627 = vmatpush2.bf16.msra.mxu0 %v12107_v35  ;;  %v12124_v35 = vld [vmem:[%s17140_s1 + $0x784] ss:$8 sps:$4 sm:$0xff]  }
 0x183   : > { %17172 = vst [vmem:[#allocation23_spill] sm:$0xff] %v13872_v40  ;;  %v6815_v7 = vpop.f32.mrf.mxu1  ;;  %7820 = vmatpush2.bf16.msra.mxu1 %v12110_v58  ;;  %v13885_v57 = vadd.f32 %v6813_v24, %v6621_v14  ;;  %v6623_v49 = vadd.f32 %v6622_v47, %v13350_v22  ;;  %7628 = vmatprep.subr.bf16.mxu0 %v12115_v13  ;;  %v578_v47 = vld [vmem:[%s12769_s10 + $0x920] sm:$0xff]  ;;  %v595_v40 = vld [vmem:[%s12769_s10 + $0x9a8] sm:$0xff] }
 0x184   : > { %7821 = vmatprep.subr.bf16.mxu1 %v12118_v23  ;;  %v6626_v58 = vpop.f32.mrf.mxu0  ;;  %7317 = vmatmul.mubr.bf16.gmra.mxu0 %v10777_v63  ;;  %v594_v13 = vld [vmem:[%s12769_s10 + $0x9a0] sm:$0xff]  ;;  %v579_v23 = vld [vmem:[%s12769_s10 + $0x928] sm:$0xff] }
 0x185   : > { %17173 = vst [vmem:[#allocation24_spill] sm:$0xff] %v13885_v57  ;;  %v6819_v54 = vpop.f32.mrf.mxu1  ;;  %7510 = vmatmul.mubr.bf16.gmra.mxu1 %v10779_v42  ;;  %v13894_v2 = vadd.f32 %v6815_v7, %v6623_v49  ;;  %v6627_v24 = vadd.f32 %v6626_v58, %v13346_v19  ;;  %7326 = vmatprep.mubr.bf16.mxu0 %v10810_v46  ;;  %v12122_v7 = vld [vmem:[%s17140_s1 + $0x780] ss:$8 sps:$4 sm:$0xff]   ;;  %v12127_v46 = vld [vmem:[%s17140_s1 + $0x874] ss:$8 sps:$4 sm:$0xff]  }
 0x186   : > { %7519 = vmatprep.mubr.bf16.mxu1 %v10812_v6  ;;  %v6628_v14 = vpop.f32.mrf.mxu0  ;;  %7629 = vmatpush2.bf16.msra.mxu0 %v12113_v21  ;;  %v12130_v6 = vld [vmem:[%s17140_s1 + $0x974] ss:$8 sps:$4 sm:$0xff]   ;;  %v10809_v49 = vcombine.low %v13842_v3, %v13845_v17  ;;  %v10811_v58 = vcombine.low %v13848_v61, %v13851_v31 }
 0x187   : > { %17174 = vst [vmem:[#allocation25_spill] sm:$0xff] %v13894_v2  ;;  %v6821_v57 = vpop.f32.mrf.mxu1  ;;  %7822 = vmatpush2.bf16.msra.mxu1 %v12116_v11  ;;  %v13907_v63 = vadd.f32 %v6819_v54, %v6627_v24  ;;  %v6629_v42 = vadd.f32 %v6628_v14, %v13350_v22  ;;  %7630 = vmatprep.subr.bf16.mxu0 %v12121_v4 }
 0x188   : > { %7823 = vmatprep.subr.bf16.mxu1 %v12124_v35  ;;  %v6630_v21 = vpop.f32.mrf.mxu0  ;;  %v10842_v35 = vcombine.high %v578_v47, %v594_v13  ;;  %v10844_v24 = vcombine.high %v579_v23, %v595_v40 }
 0x189   : > { %17175 = vst [vmem:[#allocation26_spill] sm:$0xff] %v13907_v63  ;;  %v6823_v11 = vpop.f32.mrf.mxu1  ;;  %v13920_v54 = vadd.f32 %v6821_v57, %v6629_v42  ;;  %v6631_v4 = vadd.f32 %v6630_v21, %v13346_v19  ;;  %v626_v42 = vld [vmem:[%s12769_s10 + $0xaa0] sm:$0xff]  ;;  %v611_v21 = vld [vmem:[%s12769_s10 + $0xa28] sm:$0xff] }
 0x18a   : > { %v6632_v14 = vpop.f32.mrf.mxu0  ;;  %7631 = vmatpush2.bf16.msra.mxu0 %v12119_v28  ;;  %v610_v28 = vld [vmem:[%s12769_s10 + $0xa20] sm:$0xff] }
 0x18b   : > { %v6825_v63 = vpop.f32.mrf.mxu1  ;;  %7824 = vmatpush2.bf16.msra.mxu1 %v12122_v7  ;;  %v13923_v2 = vadd.f32 %v6823_v11, %v6631_v4  ;;  %v6633_v3 = vadd.f32 %v6632_v14, %v13350_v22  ;;  %7986 = vmatprep.subr.bf16.mxu0 %v12127_v46  ;;  %v627_v11 = vld [vmem:[%s12769_s10 + $0xaa8] sm:$0xff] }
 0x18c   : > { %8179 = vmatprep.subr.bf16.mxu1 %v12130_v6  ;;  %v6862_v31 = vpop.f32.mrf.mxu0  ;;  %7327 = vmatmul.mubr.bf16.gmra.mxu0 %v10809_v49  ;;  %v10841_v49 = vcombine.low %v578_v47, %v594_v13 }
 0x18d   : > { %v7055_v17 = vpop.f32.mrf.mxu1  ;;  %7520 = vmatmul.mubr.bf16.gmra.mxu1 %v10811_v58  ;;  %v13926_v19 = vadd.f32 %v6825_v63, %v6633_v3  ;;  %v6863_v61 = vadd.f32 %v6862_v31, %v13357_v32  ;;  %7336 = vmatprep.mubr.bf16.mxu0 %v10842_v35  ;;  %v10843_v58 = vcombine.low %v579_v23, %v595_v40 }
 0x18e   : > { %7529 = vmatprep.mubr.bf16.mxu1 %v10844_v24  ;;  %v6864_v57 = vpop.f32.mrf.mxu0  ;;  %v10874_v35 = vcombine.high %v610_v28, %v626_v42  ;;  %v10876_v24 = vcombine.high %v611_v21, %v627_v11 }
 0x18f   : > { %v7057_v7 = vpop.f32.mrf.mxu1  ;;  %v13933_v22 = vadd.f32 %v7055_v17, %v6863_v61  ;;  %v6865_v46 = vadd.f32 %v6864_v57, %v13360_v38  ;;  %v658_v57 = vld [vmem:[%s12769_s10 + $0xba0] sm:$0xff] }
 0x190   : > { %v6866_v6 = vpop.f32.mrf.mxu0 }
 0x191   : > { %v7059_v4 = vpop.f32.mrf.mxu1  ;;  %v13936_v63 = vadd.f32 %v7057_v7, %v6865_v46  ;;  %v6867_v32 = vadd.f32 %v6866_v6, %v13363_v44  ;;  %v642_v44 = vld [vmem:[%s12769_s10 + $0xb20] sm:$0xff]  ;;  %v643_v7 = vld [vmem:[%s12769_s10 + $0xb28] sm:$0xff] }
 0x192   : > { %v6868_v14 = vpop.f32.mrf.mxu0  ;;  %v659_v46 = vld [vmem:[%s12769_s10 + $0xba8] sm:$0xff] }
 0x193   : > { %v7061_v3 = vpop.f32.mrf.mxu1  ;;  %v13939_v31 = vadd.f32 %v7059_v4, %v6867_v32  ;;  %v6869_v38 = vadd.f32 %v6868_v14, %v13370_v52 }
 0x194   : > { %v6872_v17 = vpop.f32.mrf.mxu0  ;;  %7337 = vmatmul.mubr.bf16.gmra.mxu0 %v10841_v49  ;;  %v10873_v49 = vcombine.low %v610_v28, %v626_v42 }
 0x195   : > { %v7065_v61 = vpop.f32.mrf.mxu1  ;;  %7530 = vmatmul.mubr.bf16.gmra.mxu1 %v10843_v58  ;;  %v13942_v40 = vadd.f32 %v7061_v3, %v6869_v38  ;;  %v6873_v47 = vadd.f32 %v6872_v17, %v13373_v56  ;;  %7346 = vmatprep.mubr.bf16.mxu0 %v10874_v35  ;;  %v10875_v58 = vcombine.low %v611_v21, %v627_v11 }
 0x196   : > { %7539 = vmatprep.mubr.bf16.mxu1 %v10876_v24  ;;  %v6874_v13 = vpop.f32.mrf.mxu0  ;;  %v10906_v35 = vcombine.high %v642_v44, %v658_v57  ;;  %v10908_v24 = vcombine.high %v643_v7, %v659_v46 }
 0x197   : > { %v7067_v23 = vpop.f32.mrf.mxu1  ;;  %v13949_v6 = vadd.f32 %v7065_v61, %v6873_v47  ;;  %v6875_v52 = vadd.f32 %v6874_v13, %v13376_v62  ;;  %v690_v13 = vld [vmem:[%s12769_s10 + $0xca0] sm:$0xff] }
 0x198   : > { %v6876_v4 = vpop.f32.mrf.mxu0 }
 0x199   : > { %v7069_v32 = vpop.f32.mrf.mxu1  ;;  %v13952_v14 = vadd.f32 %v7067_v23, %v6875_v52  ;;  %v6877_v56 = vadd.f32 %v6876_v4, %v13379_v5  ;;  %v674_v5 = vld [vmem:[%s12769_s10 + $0xc20] sm:$0xff]  ;;  %v675_v23 = vld [vmem:[%s12769_s10 + $0xc28] sm:$0xff] }
 0x19a   : > { %v6878_v3 = vpop.f32.mrf.mxu0  ;;  %v691_v52 = vld [vmem:[%s12769_s10 + $0xca8] sm:$0xff] }
 0x19b   : > { %v7071_v38 = vpop.f32.mrf.mxu1  ;;  %v13955_v17 = vadd.f32 %v7069_v32, %v6877_v56  ;;  %v6879_v62 = vadd.f32 %v6878_v3, %v13386_v15 }
 0x19c   : > { %v6882_v61 = vpop.f32.mrf.mxu0  ;;  %7347 = vmatmul.mubr.bf16.gmra.mxu0 %v10873_v49  ;;  %v10905_v49 = vcombine.low %v642_v44, %v658_v57 }
 0x19d   : > { %v7075_v47 = vpop.f32.mrf.mxu1  ;;  %7540 = vmatmul.mubr.bf16.gmra.mxu1 %v10875_v58  ;;  %v13958_v28 = vadd.f32 %v7071_v38, %v6879_v62  ;;  %v6883_v42 = vadd.f32 %v6882_v61, %v13389_v20  ;;  %7356 = vmatprep.mubr.bf16.mxu0 %v10906_v35  ;;  %v10907_v58 = vcombine.low %v643_v7, %v659_v46 }
 0x19e   : > { %7549 = vmatprep.mubr.bf16.mxu1 %v10908_v24  ;;  %v6884_v21 = vpop.f32.mrf.mxu0  ;;  %v10938_v35 = vcombine.high %v674_v5, %v690_v13  ;;  %v10940_v24 = vcombine.high %v675_v23, %v691_v52 }
 0x19f   : > { %v7077_v11 = vpop.f32.mrf.mxu1  ;;  %v13965_v4 = vadd.f32 %v7075_v47, %v6883_v42  ;;  %v6885_v15 = vadd.f32 %v6884_v21, %v13392_v27  ;;  %v722_v21 = vld [vmem:[%s12769_s10 + $0xda0] sm:$0xff] }
 0x1a0   : > { %v6886_v32 = vpop.f32.mrf.mxu0 }
 0x1a1   : > { %v7079_v56 = vpop.f32.mrf.mxu1  ;;  %v13968_v3 = vadd.f32 %v7077_v11, %v6885_v15  ;;  %v6887_v20 = vadd.f32 %v6886_v32, %v13395_v34  ;;  %v706_v34 = vld [vmem:[%s12769_s10 + $0xd20] sm:$0xff]  ;;  %v707_v11 = vld [vmem:[%s12769_s10 + $0xd28] sm:$0xff] }
 0x1a2   : > { %v6888_v38 = vpop.f32.mrf.mxu0  ;;  %v723_v15 = vld [vmem:[%s12769_s10 + $0xda8] sm:$0xff] }
 0x1a3   : > { %v7081_v62 = vpop.f32.mrf.mxu1  ;;  %v13971_v61 = vadd.f32 %v7079_v56, %v6887_v20  ;;  %v6889_v27 = vadd.f32 %v6888_v38, %v13402_v43 }
 0x1a4   : > { %v6892_v47 = vpop.f32.mrf.mxu0  ;;  %7357 = vmatmul.mubr.bf16.gmra.mxu0 %v10905_v49  ;;  %v10937_v49 = vcombine.low %v674_v5, %v690_v13 }
 0x1a5   : > { %v7085_v42 = vpop.f32.mrf.mxu1  ;;  %7550 = vmatmul.mubr.bf16.gmra.mxu1 %v10907_v58  ;;  %v13974_v44 = vadd.f32 %v7081_v62, %v6889_v27  ;;  %v6893_v57 = vadd.f32 %v6892_v47, %v13405_v48  ;;  %7366 = vmatprep.mubr.bf16.mxu0 %v10938_v35  ;;  %v10939_v58 = vcombine.low %v675_v23, %v691_v52 }
 0x1a6   : > { %7559 = vmatprep.mubr.bf16.mxu1 %v10940_v24  ;;  %v6894_v7 = vpop.f32.mrf.mxu0  ;;  %v10970_v35 = vcombine.high %v706_v34, %v722_v21  ;;  %v10972_v24 = vcombine.high %v707_v11, %v723_v15 }
 0x1a7   : > { %v7087_v46 = vpop.f32.mrf.mxu1  ;;  %v13981_v32 = vadd.f32 %v7085_v42, %v6893_v57  ;;  %v6895_v43 = vadd.f32 %v6894_v7, %v13408_v55  ;;  %v754_v7 = vld [vmem:[%s12769_s10 + $0xea0] sm:$0xff] }
 0x1a8   : > { %v6896_v56 = vpop.f32.mrf.mxu0 }
 0x1a9   : > { %v7089_v20 = vpop.f32.mrf.mxu1  ;;  %v13984_v38 = vadd.f32 %v7087_v46, %v6895_v43  ;;  %v6897_v48 = vadd.f32 %v6896_v56, %v13411_v0  ;;  %v738_v0 = vld [vmem:[%s12769_s10 + $0xe20] sm:$0xff]  ;;  %v739_v46 = vld [vmem:[%s12769_s10 + $0xe28] sm:$0xff] }
 0x1aa   : > { %v6898_v62 = vpop.f32.mrf.mxu0  ;;  %v755_v43 = vld [vmem:[%s12769_s10 + $0xea8] sm:$0xff] }
 0x1ab   : > { %v7091_v27 = vpop.f32.mrf.mxu1  ;;  %v13987_v47 = vadd.f32 %v7089_v20, %v6897_v48  ;;  %v6899_v55 = vadd.f32 %v6898_v62, %v13418_v9 }
 0x1ac   : > { %v6902_v42 = vpop.f32.mrf.mxu0  ;;  %7367 = vmatmul.mubr.bf16.gmra.mxu0 %v10937_v49  ;;  %v10969_v49 = vcombine.low %v706_v34, %v722_v21 }
 0x1ad   : > { %v7095_v57 = vpop.f32.mrf.mxu1  ;;  %7560 = vmatmul.mubr.bf16.gmra.mxu1 %v10939_v58  ;;  %v13990_v5 = vadd.f32 %v7091_v27, %v6899_v55  ;;  %v6903_v13 = vadd.f32 %v6902_v42, %v13421_v16  ;;  %7376 = vmatprep.mubr.bf16.mxu0 %v10970_v35  ;;  %v10971_v58 = vcombine.low %v707_v11, %v723_v15 }
 0x1ae   : > { %7569 = vmatprep.mubr.bf16.mxu1 %v10972_v24  ;;  %v6904_v23 = vpop.f32.mrf.mxu0  ;;  %v11002_v35 = vcombine.high %v738_v0, %v754_v7  ;;  %v11004_v24 = vcombine.high %v739_v46, %v755_v43 }
 0x1af   : > { %v7097_v52 = vpop.f32.mrf.mxu1  ;;  %v13997_v56 = vadd.f32 %v7095_v57, %v6903_v13  ;;  %v6905_v9 = vadd.f32 %v6904_v23, %v13424_v25  ;;  %v786_v23 = vld [vmem:[%s12769_s10 + $0xfa0] sm:$0xff] }
 0x1b0   : > { %v6906_v20 = vpop.f32.mrf.mxu0 }
 0x1b1   : > { %v7099_v48 = vpop.f32.mrf.mxu1  ;;  %v14000_v62 = vadd.f32 %v7097_v52, %v6905_v9  ;;  %v6907_v16 = vadd.f32 %v6906_v20, %v13427_v33  ;;  %v770_v33 = vld [vmem:[%s12769_s10 + $0xf20] sm:$0xff]  ;;  %v771_v52 = vld [vmem:[%s12769_s10 + $0xf28] sm:$0xff] }
 0x1b2   : > { %v6908_v27 = vpop.f32.mrf.mxu0  ;;  %v787_v9 = vld [vmem:[%s12769_s10 + $0xfa8] sm:$0xff] }
 0x1b3   : > { %v7101_v55 = vpop.f32.mrf.mxu1  ;;  %v14003_v42 = vadd.f32 %v7099_v48, %v6907_v16  ;;  %v6909_v25 = vadd.f32 %v6908_v27, %v13434_v45 }
 0x1b4   : > { %v6912_v57 = vpop.f32.mrf.mxu0  ;;  %7377 = vmatmul.mubr.bf16.gmra.mxu0 %v10969_v49  ;;  %v11001_v49 = vcombine.low %v738_v0, %v754_v7 }
 0x1b5   : > { %v7105_v13 = vpop.f32.mrf.mxu1  ;;  %7570 = vmatmul.mubr.bf16.gmra.mxu1 %v10971_v58  ;;  %v14006_v34 = vadd.f32 %v7101_v55, %v6909_v25  ;;  %v6913_v21 = vadd.f32 %v6912_v57, %v13437_v50  ;;  %7386 = vmatprep.mubr.bf16.mxu0 %v11002_v35  ;;  %v11003_v58 = vcombine.low %v739_v46, %v755_v43 }
 0x1b6   : > { %7579 = vmatprep.mubr.bf16.mxu1 %v11004_v24  ;;  %v6914_v11 = vpop.f32.mrf.mxu0  ;;  %v11034_v35 = vcombine.high %v770_v33, %v786_v23  ;;  %v11036_v24 = vcombine.high %v771_v52, %v787_v9 }
 0x1b7   : > { %v7107_v15 = vpop.f32.mrf.mxu1  ;;  %v14013_v20 = vadd.f32 %v7105_v13, %v6913_v21  ;;  %v6915_v45 = vadd.f32 %v6914_v11, %v13440_v59  ;;  %v308_v11 = vld [vmem:[%s12769_s10 + $0xb0] sm:$0xff] }
 0x1b8   : > { %v6916_v48 = vpop.f32.mrf.mxu0 }
 0x1b9   : > { %v7109_v16 = vpop.f32.mrf.mxu1  ;;  %v14016_v27 = vadd.f32 %v7107_v15, %v6915_v45  ;;  %v6917_v50 = vadd.f32 %v6916_v48, %v13443_v10  ;;  %v292_v10 = vld [vmem:[%s12769_s10 + $0x30] sm:$0xff]  ;;  %v293_v15 = vld [vmem:[%s12769_s10 + $0x38] sm:$0xff] }
 0x1ba   : > { %v6918_v55 = vpop.f32.mrf.mxu0  ;;  %v309_v45 = vld [vmem:[%s12769_s10 + $0xb8] sm:$0xff] }
 0x1bb   : > { %v7111_v25 = vpop.f32.mrf.mxu1  ;;  %v14019_v57 = vadd.f32 %v7109_v16, %v6917_v50  ;;  %v6919_v59 = vadd.f32 %v6918_v55, %v13450_v18 }
 0x1bc   : > { %v6922_v13 = vpop.f32.mrf.mxu0  ;;  %7387 = vmatmul.mubr.bf16.gmra.mxu0 %v11001_v49  ;;  %v11033_v49 = vcombine.low %v770_v33, %v786_v23 }
 0x1bd   : > { %v7115_v21 = vpop.f32.mrf.mxu1  ;;  %7580 = vmatmul.mubr.bf16.gmra.mxu1 %v11003_v58  ;;  %v14022_v0 = vadd.f32 %v7111_v25, %v6919_v59  ;;  %v6923_v7 = vadd.f32 %v6922_v13, %v13453_v26  ;;  %7396 = vmatprep.mubr.bf16.mxu0 %v11034_v35  ;;  %v11035_v58 = vcombine.low %v771_v52, %v787_v9  ;;  %v14042_v9 = vld [vmem:[%s12769_s10 + $0x130] sm:$0xff] }
 0x1be   : > { %7589 = vmatprep.mubr.bf16.mxu1 %v11036_v24  ;;  %v6924_v46 = vpop.f32.mrf.mxu0  ;;  %v10558_v35 = vcombine.high %v292_v10, %v308_v11  ;;  %v10560_v24 = vcombine.high %v293_v15, %v309_v45 }
 0x1bf   : > { %v7117_v43 = vpop.f32.mrf.mxu1  ;;  %v14029_v48 = vadd.f32 %v7115_v21, %v6923_v7  ;;  %v6925_v18 = vadd.f32 %v6924_v46, %v13456_v36 }
 0x1c0   : > { %v6926_v16 = vpop.f32.mrf.mxu0 }
 0x1c1   : > { %v7119_v50 = vpop.f32.mrf.mxu1  ;;  %v14032_v55 = vadd.f32 %v7117_v43, %v6925_v18  ;;  %v6927_v26 = vadd.f32 %v6926_v16, %v13459_v53  ;;  %v14051_v18 = vld [vmem:[%s12769_s10 + $0x138] sm:$0xff] }
 0x1c2   : > { %v6928_v25 = vpop.f32.mrf.mxu0  ;;  %v14054_v16 = vld [vmem:[%s12769_s10 + $0x1b8] sm:$0xff] }
 0x1c3   : > { %v7121_v59 = vpop.f32.mrf.mxu1  ;;  %v14035_v13 = vadd.f32 %v7119_v50, %v6927_v26  ;;  %v6929_v21 = vadd.f32 %v6928_v25, %v13462_v39  ;;  %v14048_v39 = vld [vmem:[%s12769_s10 + $0x1b0] sm:$0xff] }
 0x1c4   : > { %v6932_v36 = vpop.f32.mrf.mxu0  ;;  %7397 = vmatmul.mubr.bf16.gmra.mxu0 %v11033_v49 }
 0x1c5   : > { %v7125_v7 = vpop.f32.mrf.mxu1  ;;  %7590 = vmatmul.mubr.bf16.gmra.mxu1 %v11035_v58  ;;  %v14038_v33 = vadd.f32 %v7121_v59, %v6929_v21  ;;  %v6933_v53 = vadd.f32 %v6932_v36, %v13471_v1  ;;  %7632 = vmatprep.mubr.bf16.mxu0 %v10558_v35  ;;  %v10557_v58 = vcombine.low %v292_v10, %v308_v11 }
 0x1c6   : > { %7825 = vmatprep.mubr.bf16.mxu1 %v10560_v24  ;;  %v6934_v23 = vpop.f32.mrf.mxu0  ;;  %v10559_v1 = vcombine.low %v293_v15, %v309_v45  ;;  %v12125_v24 = vld [vmem:[%s17140_s1 + $0x870] ss:$8 sps:$4 sm:$0xff]   ;;  %v10590_v21 = vcombine.high %v14042_v9, %v14048_v39  ;;  %v10592_v10 = vcombine.high %v14051_v18, %v14054_v16  ;;  %v12133_v15 = vld [vmem:[%s17140_s1 + $0x864] ss:$8 sps:$4 sm:$0xff]  }
 0x1c7   : > { %v7127_v52 = vpop.f32.mrf.mxu1  ;;  %v14044_v46 = vadd.f32 %v7125_v7, %v6933_v53  ;;  %v6935_v43 = vadd.f32 %v6934_v23, %v13486_v29  ;;  %v12128_v29 = vld [vmem:[%s17140_s1 + $0x970] ss:$8 sps:$4 sm:$0xff]   ;;  %v12136_v45 = vld [vmem:[%s17140_s1 + $0x964] ss:$8 sps:$4 sm:$0xff]   ;;  %v12131_v53 = vld [vmem:[%s17140_s1 + $0x860] ss:$8 sps:$4 sm:$0xff]  }
 0x1c8   : > { %v6936_v50 = vpop.f32.mrf.mxu0  ;;  %v14082_v23 = vld [vmem:[%s12769_s10 + $0x230] sm:$0xff] }
 0x1c9   : > { %v7129_v49 = vpop.f32.mrf.mxu1  ;;  %v14056_v26 = vadd.f32 %v7127_v52, %v6935_v43  ;;  %v6937_v35 = vadd.f32 %v6936_v50, %v13499_v37  ;;  %v12134_v43 = vld [vmem:[%s17140_s1 + $0x960] ss:$8 sps:$4 sm:$0xff]   ;;  %v14091_v50 = vld [vmem:[%s12769_s10 + $0x2b0] sm:$0xff] }
 0x1ca   : > { %v6938_v25 = vpop.f32.mrf.mxu0 }
 0x1cb   : > { %v7131_v59 = vpop.f32.mrf.mxu1  ;;  %v14069_v11 = vadd.f32 %v7129_v49, %v6937_v35  ;;  %v6939_v37 = vadd.f32 %v6938_v25, %v13526_v12  ;;  %v14094_v49 = vld [vmem:[%s12769_s10 + $0x238] sm:$0xff] }
 0x1cc   : > { %v6942_v36 = vpop.f32.mrf.mxu0  ;;  %7633 = vmatmul.mubr.bf16.vlgmr.msra.gmra.mxu0 %v10557_v58  ;;  %v14097_v35 = vld [vmem:[%s12769_s10 + $0x2b8] sm:$0xff] }
 0x1cd   : > { %17176 = vst [vmem:[#allocation27_spill] sm:$0xff] %v14069_v11  ;;  %v7135_v7 = vpop.f32.mrf.mxu1  ;;  %7826 = vmatmul.mubr.bf16.vlgmr.msra.gmra.mxu1 %v10559_v1  ;;  %v14084_v12 = vadd.f32 %v7131_v59, %v6939_v37  ;;  %v6943_v52 = vadd.f32 %v6942_v36, %v13529_v30  ;;  %7987 = vmatpush1.bf16.msra.mxu0 %v12125_v24  ;;  %v12139_v30 = vld [vmem:[%s17140_s1 + $0x854] ss:$8 sps:$4 sm:$0xff]   ;;  %v17178_v11 = vld [vmem:[#allocation3_spill] sm:$0xff] }
 0x1ce   : > { %8180 = vmatpush1.bf16.msra.mxu1 %v12128_v29  ;;  %v6944_v58 = vpop.f32.mrf.mxu0  ;;  %7642 = vmatprep.mubr.bf16.mxu0 %v10590_v21  ;;  %v12142_v24 = vld [vmem:[%s17140_s1 + $0x954] ss:$8 sps:$4 sm:$0xff]   ;;  %v10589_v21 = vcombine.low %v14042_v9, %v14048_v39  ;;  %v10622_v36 = vcombine.high %v14082_v23, %v14091_v50  ;;  %v12137_v9 = vld [vmem:[%s17140_s1 + $0x850] ss:$8 sps:$4 sm:$0xff]  }
 0x1cf   : > { %17177 = vst [vmem:[#allocation28_spill] sm:$0xff] %v14084_v12  ;;  %v7137_v1 = vpop.f32.mrf.mxu1  ;;  %7835 = vmatprep.mubr.bf16.mxu1 %v10592_v10  ;;  %v14105_v29 = vadd.f32 %v7135_v7, %v6943_v52  ;;  %v6945_v25 = vadd.f32 %v6944_v58, %v13541_v8  ;;  %7988 = vmatprep.subr.bf16.mxu0 %v12133_v15  ;;  %v12140_v39 = vld [vmem:[%s17140_s1 + $0x950] ss:$8 sps:$4 sm:$0xff]   ;;  %v12148_v52 = vld [vmem:[%s17140_s1 + $0x944] ss:$8 sps:$4 sm:$0xff]  }
 0x1d0   : > { %8181 = vmatprep.subr.bf16.mxu1 %v12136_v45  ;;  %v6946_v59 = vpop.f32.mrf.mxu0  ;;  %v10591_v10 = vcombine.low %v14051_v18, %v14054_v16  ;;  %v10624_v8 = vcombine.high %v14094_v49, %v14097_v35  ;;  %v17179_v16 = vld [vmem:[#allocation4_spill] sm:$0xff] }
 0x1d1   : > { %v7139_v37 = vpop.f32.mrf.mxu1  ;;  %v14114_v12 = vadd.f32 %v7137_v1, %v6945_v25  ;;  %v6947_v7 = vadd.f32 %v6946_v59, %v17178_v11  ;;  %7989 = vmatpush1.bf16.msra.mxu0 %v12131_v53  ;;  %v12145_v53 = vld [vmem:[%s17140_s1 + $0x844] ss:$8 sps:$4 sm:$0xff]   ;;  %v14138_v25 = vld [vmem:[%s12769_s10 + $0x330] sm:$0xff] }
 0x1d2   : > { %8182 = vmatpush1.bf16.msra.mxu1 %v12134_v43  ;;  %v6948_v15 = vpop.f32.mrf.mxu0  ;;  %7990 = vmatprep.subr.bf16.mxu0 %v12139_v30  ;;  %v17181_v30 = vld [vmem:[#allocation5_spill] sm:$0xff]  ;;  %v14141_v59 = vld [vmem:[%s12769_s10 + $0x3b0] sm:$0xff] }
 0x1d3   : > { %v7141_v45 = vpop.f32.mrf.mxu1  ;;  %8183 = vmatprep.subr.bf16.mxu1 %v12142_v24  ;;  %v14125_v18 = vadd.f32 %v7139_v37, %v6947_v7  ;;  %v6949_v11 = vadd.f32 %v6948_v15, %v17179_v16  ;;  %v14144_v37 = vld [vmem:[%s12769_s10 + $0x338] sm:$0xff] }
 0x1d4   : > { %v6952_v43 = vpop.f32.mrf.mxu0  ;;  %7643 = vmatmul.mubr.bf16.gmra.mxu0 %v10589_v21  ;;  %v14147_v16 = vld [vmem:[%s12769_s10 + $0x3b8] sm:$0xff]  ;;  %v12143_v21 = vld [vmem:[%s17140_s1 + $0x840] ss:$8 sps:$4 sm:$0xff]  }
 0x1d5   : > { %v7145_v58 = vpop.f32.mrf.mxu1  ;;  %7836 = vmatmul.mubr.bf16.gmra.mxu1 %v10591_v10  ;;  %v14134_v1 = vadd.f32 %v7141_v45, %v6949_v11  ;;  %v6953_v24 = vadd.f32 %v6952_v43, %v17181_v30  ;;  %7652 = vmatprep.mubr.bf16.mxu0 %v10622_v36  ;;  %v12146_v10 = vld [vmem:[%s17140_s1 + $0x940] ss:$8 sps:$4 sm:$0xff]   ;;  %v10621_v30 = vcombine.low %v14082_v23, %v14091_v50  ;;  %v12149_v23 = vld [vmem:[%s17140_s1 + $0x830] ss:$8 sps:$4 sm:$0xff]  }
 0x1d6   : > { %7845 = vmatprep.mubr.bf16.mxu1 %v10624_v8  ;;  %v6954_v7 = vpop.f32.mrf.mxu0  ;;  %7991 = vmatpush1.bf16.msra.mxu0 %v12137_v9  ;;  %v17183_v8 = vld [vmem:[#allocation6_spill] sm:$0xff]  ;;  %v12151_v9 = vld [vmem:[%s17140_s1 + $0x834] ss:$8 sps:$4 sm:$0xff]   ;;  %v12152_v50 = vld [vmem:[%s17140_s1 + $0x930] ss:$8 sps:$4 sm:$0xff]  }
 0x1d7   : > { %17180 = vst [vmem:[#allocation3_spill] sm:$0xff] %v14134_v1  ;;  %v7147_v15 = vpop.f32.mrf.mxu1  ;;  %8184 = vmatpush1.bf16.msra.mxu1 %v12140_v39  ;;  %v14155_v36 = vadd.f32 %v7145_v58, %v6953_v24  ;;  %v6955_v45 = vadd.f32 %v6954_v7, %v17183_v8  ;;  %7992 = vmatprep.subr.bf16.mxu0 %v12145_v53  ;;  %v12154_v39 = vld [vmem:[%s17140_s1 + $0x934] ss:$8 sps:$4 sm:$0xff]   ;;  %v17185_v53 = vld [vmem:[#allocation7_spill] sm:$0xff] }
 0x1d8   : > { %8185 = vmatprep.subr.bf16.mxu1 %v12148_v52  ;;  %v6956_v11 = vpop.f32.mrf.mxu0  ;;  %v10623_v58 = vcombine.low %v14094_v49, %v14097_v35  ;;  %v10654_v7 = vcombine.high %v14138_v25, %v14141_v59  ;;  %v10656_v8 = vcombine.high %v14144_v37, %v14147_v16  ;;  %v17187_v35 = vld [vmem:[#allocation8_spill] sm:$0xff] }
 0x1d9   : > { %17182 = vst [vmem:[#allocation4_spill] sm:$0xff] %v14155_v36  ;;  %v7149_v43 = vpop.f32.mrf.mxu1  ;;  %v14168_v24 = vadd.f32 %v7147_v15, %v6955_v45  ;;  %v6957_v52 = vadd.f32 %v6956_v11, %v17185_v53  ;;  %v17188_v53 = vld [vmem:[#allocation9_spill] sm:$0xff] }
 0x1da   : > { %v6958_v36 = vpop.f32.mrf.mxu0  ;;  %7993 = vmatpush1.bf16.msra.mxu0 %v12143_v21  ;;  %v12157_v21 = vld [vmem:[%s17140_s1 + $0x824] ss:$8 sps:$4 sm:$0xff]  }
 0x1db   : > { %17184 = vst [vmem:[#allocation5_spill] sm:$0xff] %v14168_v24  ;;  %v7151_v1 = vpop.f32.mrf.mxu1  ;;  %8186 = vmatpush1.bf16.msra.mxu1 %v12146_v10  ;;  %v14181_v49 = vadd.f32 %v7149_v43, %v6957_v52  ;;  %v6959_v15 = vadd.f32 %v6958_v36, %v17187_v35  ;;  %7994 = vmatprep.subr.bf16.mxu0 %v12151_v9  ;;  %v12160_v10 = vld [vmem:[%s17140_s1 + $0x924] ss:$8 sps:$4 sm:$0xff]   ;;  %v14194_v36 = vld [vmem:[%s12769_s10 + $0x430] sm:$0xff]  ;;  %v14203_v24 = vld [vmem:[%s12769_s10 + $0x4b8] sm:$0xff] }
 0x1dc   : > { %8187 = vmatprep.subr.bf16.mxu1 %v12154_v39  ;;  %v6962_v45 = vpop.f32.mrf.mxu0  ;;  %7653 = vmatmul.mubr.bf16.gmra.mxu0 %v10621_v30  ;;  %v14197_v9 = vld [vmem:[%s12769_s10 + $0x4b0] sm:$0xff]  ;;  %v14200_v39 = vld [vmem:[%s12769_s10 + $0x438] sm:$0xff]  ;;  %v12158_v30 = vld [vmem:[%s17140_s1 + $0x920] ss:$8 sps:$4 sm:$0xff]  }
 0x1dd   : > { %17186 = vst [vmem:[#allocation6_spill] sm:$0xff] %v14181_v49  ;;  %v7155_v11 = vpop.f32.mrf.mxu1  ;;  %7846 = vmatmul.mubr.bf16.gmra.mxu1 %v10623_v58  ;;  %v14190_v43 = vadd.f32 %v7151_v1, %v6959_v15  ;;  %v6963_v52 = vadd.f32 %v6962_v45, %v17188_v53  ;;  %7662 = vmatprep.mubr.bf16.mxu0 %v10654_v7  ;;  %v12155_v1 = vld [vmem:[%s17140_s1 + $0x820] ss:$8 sps:$4 sm:$0xff]   ;;  %v12163_v15 = vld [vmem:[%s17140_s1 + $0x814] ss:$8 sps:$4 sm:$0xff]  }
 0x1de   : > { %7855 = vmatprep.mubr.bf16.mxu1 %v10656_v8  ;;  %v6964_v35 = vpop.f32.mrf.mxu0  ;;  %7995 = vmatpush1.bf16.msra.mxu0 %v12149_v23  ;;  %v17190_v7 = vld [vmem:[#allocation10_spill] sm:$0xff]  ;;  %v12166_v23 = vld [vmem:[%s17140_s1 + $0x914] ss:$8 sps:$4 sm:$0xff]   ;;  %v10653_v53 = vcombine.low %v14138_v25, %v14141_v59  ;;  %v12161_v25 = vld [vmem:[%s17140_s1 + $0x810] ss:$8 sps:$4 sm:$0xff]  }
 0x1df   : > { %v7157_v49 = vpop.f32.mrf.mxu1  ;;  %8188 = vmatpush1.bf16.msra.mxu1 %v12152_v50  ;;  %v14211_v58 = vadd.f32 %v7155_v11, %v6963_v52  ;;  %v6965_v8 = vadd.f32 %v6964_v35, %v17190_v7  ;;  %7996 = vmatprep.subr.bf16.mxu0 %v12157_v21  ;;  %v10655_v11 = vcombine.low %v14144_v37, %v14147_v16  ;;  %v12164_v59 = vld [vmem:[%s17140_s1 + $0x910] ss:$8 sps:$4 sm:$0xff]   ;;  %v12169_v16 = vld [vmem:[%s17140_s1 + $0x804] ss:$8 sps:$4 sm:$0xff]  }
 0x1e0   : > { %8189 = vmatprep.subr.bf16.mxu1 %v12160_v10  ;;  %v6966_v50 = vpop.f32.mrf.mxu0  ;;  %v10686_v10 = vcombine.high %v14194_v36, %v14197_v9  ;;  %v10688_v35 = vcombine.high %v14200_v39, %v14203_v24 }
 0x1e1   : > { %17189 = vst [vmem:[#allocation7_spill] sm:$0xff] %v14211_v58  ;;  %v7159_v45 = vpop.f32.mrf.mxu1  ;;  %v14224_v52 = vadd.f32 %v7157_v49, %v6965_v8  ;;  %v6967_v21 = vadd.f32 %v6966_v50, %v13667_v60  ;;  %v12172_v49 = vld [vmem:[%s17140_s1 + $0x904] ss:$8 sps:$4 sm:$0xff]  }
 0x1e2   : > { %v6968_v7 = vpop.f32.mrf.mxu0  ;;  %7997 = vmatpush1.bf16.msra.mxu0 %v12155_v1 }
 0x1e3   : > { %v7161_v58 = vpop.f32.mrf.mxu1  ;;  %8190 = vmatpush1.bf16.msra.mxu1 %v12158_v30  ;;  %v14237_v60 = vadd.f32 %v7159_v45, %v6967_v21  ;;  %v6969_v37 = vadd.f32 %v6968_v7, %v13688_v41  ;;  %7998 = vmatprep.subr.bf16.mxu0 %v12163_v15  ;;  %v14250_v41 = vld [vmem:[%s12769_s10 + $0x530] sm:$0xff]  ;;  %v14259_v7 = vld [vmem:[%s12769_s10 + $0x5b8] sm:$0xff] }
 0x1e4   : > { %8191 = vmatprep.subr.bf16.mxu1 %v12166_v23  ;;  %v6972_v1 = vpop.f32.mrf.mxu0  ;;  %7663 = vmatmul.mubr.bf16.gmra.mxu0 %v10653_v53  ;;  %v14253_v15 = vld [vmem:[%s12769_s10 + $0x5b0] sm:$0xff]  ;;  %v14256_v23 = vld [vmem:[%s12769_s10 + $0x538] sm:$0xff] }
 0x1e5   : > { %17191 = vst [vmem:[#allocation8_spill] sm:$0xff] %v14237_v60  ;;  %v7165_v30 = vpop.f32.mrf.mxu1  ;;  %7856 = vmatmul.mubr.bf16.gmra.mxu1 %v10655_v11  ;;  %v14246_v8 = vadd.f32 %v7161_v58, %v6969_v37  ;;  %v6973_v50 = vadd.f32 %v6972_v1, %v13691_v51  ;;  %7672 = vmatprep.mubr.bf16.mxu0 %v10686_v10  ;;  %v12167_v58 = vld [vmem:[%s17140_s1 + $0x800] ss:$8 sps:$4 sm:$0xff]  }
 0x1e6   : > { %7865 = vmatprep.mubr.bf16.mxu1 %v10688_v35  ;;  %v6974_v45 = vpop.f32.mrf.mxu0  ;;  %7999 = vmatpush1.bf16.msra.mxu0 %v12161_v25  ;;  %v12170_v51 = vld [vmem:[%s17140_s1 + $0x900] ss:$8 sps:$4 sm:$0xff]   ;;  %v12175_v35 = vld [vmem:[%s17140_s1 + $0x8f4] ss:$8 sps:$4 sm:$0xff]   ;;  %v10685_v1 = vcombine.low %v14194_v36, %v14197_v9  ;;  %v12173_v36 = vld [vmem:[%s17140_s1 + $0x8f0] ss:$8 sps:$4 sm:$0xff]  }
 0x1e7   : > { %17192 = vst [vmem:[#allocation9_spill] sm:$0xff] %v14246_v8  ;;  %v7167_v21 = vpop.f32.mrf.mxu1  ;;  %8192 = vmatpush1.bf16.msra.mxu1 %v12164_v59  ;;  %v14267_v53 = vadd.f32 %v7165_v30, %v6973_v50  ;;  %v17194_v11 = vld [vmem:[#allocation11_spill] sm:$0xff]  ;;  %8000 = vmatprep.subr.bf16.mxu0 %v12169_v16  ;;  %v12178_v25 = vld [vmem:[%s17140_s1 + $0x9f4] ss:$8 sps:$4 sm:$0xff]   ;;  %v10687_v30 = vcombine.low %v14200_v39, %v14203_v24  ;;  %v12176_v24 = vld [vmem:[%s17140_s1 + $0x9f0] ss:$8 sps:$4 sm:$0xff]  }
 0x1e8   : > { %v6975_v10 = vadd.f32 %v6974_v45, %v17194_v11  ;;  %8193 = vmatprep.subr.bf16.mxu1 %v12172_v49  ;;  %v6976_v59 = vpop.f32.mrf.mxu0  ;;  %v17196_v16 = vld [vmem:[#allocation12_spill] sm:$0xff]  ;;  %v10718_v45 = vcombine.high %v14250_v41, %v14253_v15  ;;  %v10720_v11 = vcombine.high %v14256_v23, %v14259_v7  ;;  %v17198_v39 = vld [vmem:[#allocation13_spill] sm:$0xff]  ;;  %v12215_v60 = vld [vmem:[%s17140_s1 + $0x880] ss:$8 sps:$4 sm:$0xff]  }
 0x1e9   : > { %17193 = vst [vmem:[#allocation10_spill] sm:$0xff] %v14267_v53  ;;  %v7169_v37 = vpop.f32.mrf.mxu1  ;;  %v6977_v49 = vadd.f32 %v6976_v59, %v17196_v16  ;;  %v17200_v16 = vld [vmem:[#allocation14_spill] sm:$0xff] }
 0x1ea   : > { %v14280_v50 = vadd.f32 %v7167_v21, %v6975_v10  ;;  %v6978_v53 = vpop.f32.mrf.mxu0  ;;  %8001 = vmatpush1.bf16.msra.mxu0 %v12167_v58  ;;  %v12181_v58 = vld [vmem:[%s17140_s1 + $0x8e4] ss:$8 sps:$4 sm:$0xff]  }
 0x1eb   : > { %v7171_v8 = vpop.f32.mrf.mxu1  ;;  %8194 = vmatpush1.bf16.msra.mxu1 %v12170_v51  ;;  %v14293_v9 = vadd.f32 %v7169_v37, %v6977_v49  ;;  %v6979_v21 = vadd.f32 %v6978_v53, %v17198_v39  ;;  %8002 = vmatprep.subr.bf16.mxu0 %v12175_v35  ;;  %v12184_v51 = vld [vmem:[%s17140_s1 + $0x9e4] ss:$8 sps:$4 sm:$0xff]   ;;  %v14306_v53 = vld [vmem:[%s12769_s10 + $0x630] sm:$0xff] }
 0x1ec   : > { %17195 = vst [vmem:[#allocation11_spill] sm:$0xff] %v14280_v50  ;;  %8195 = vmatprep.subr.bf16.mxu1 %v12178_v25  ;;  %v6982_v10 = vpop.f32.mrf.mxu0  ;;  %7673 = vmatmul.mubr.bf16.gmra.mxu0 %v10685_v1  ;;  %v14309_v35 = vld [vmem:[%s12769_s10 + $0x6b0] sm:$0xff]  ;;  %v14312_v25 = vld [vmem:[%s12769_s10 + $0x638] sm:$0xff]  ;;  %v12182_v1 = vld [vmem:[%s17140_s1 + $0x9e0] ss:$8 sps:$4 sm:$0xff]  }
 0x1ed   : > { %17197 = vst [vmem:[#allocation12_spill] sm:$0xff] %v14293_v9  ;;  %v7175_v59 = vpop.f32.mrf.mxu1  ;;  %7866 = vmatmul.mubr.bf16.gmra.mxu1 %v10687_v30  ;;  %v14302_v37 = vadd.f32 %v7171_v8, %v6979_v21  ;;  %v6983_v49 = vadd.f32 %v6982_v10, %v17200_v16  ;;  %7682 = vmatprep.mubr.bf16.mxu0 %v10718_v45  ;;  %v14315_v50 = vld [vmem:[%s12769_s10 + $0x6b8] sm:$0xff]  ;;  %v12179_v8 = vld [vmem:[%s17140_s1 + $0x8e0] ss:$8 sps:$4 sm:$0xff]  }
 0x1ee   : > { %7875 = vmatprep.mubr.bf16.mxu1 %v10720_v11  ;;  %v6984_v39 = vpop.f32.mrf.mxu0  ;;  %8003 = vmatpush2.bf16.msra.mxu0 %v12173_v36  ;;  %v17202_v45 = vld [vmem:[#allocation15_spill] sm:$0xff]  ;;  %v12187_v21 = vld [vmem:[%s17140_s1 + $0x8d4] ss:$8 sps:$4 sm:$0xff]   ;;  %v10717_v16 = vcombine.low %v14250_v41, %v14253_v15  ;;  %v12185_v41 = vld [vmem:[%s17140_s1 + $0x8d0] ss:$8 sps:$4 sm:$0xff]  }
 0x1ef   : > { %17199 = vst [vmem:[#allocation13_spill] sm:$0xff] %v14302_v37  ;;  %v7177_v9 = vpop.f32.mrf.mxu1  ;;  %8196 = vmatpush2.bf16.msra.mxu1 %v12176_v24  ;;  %v14323_v30 = vadd.f32 %v7175_v59, %v6983_v49  ;;  %v6985_v11 = vadd.f32 %v6984_v39, %v17202_v45  ;;  %8004 = vmatprep.subr.bf16.mxu0 %v12181_v58  ;;  %v12190_v36 = vld [vmem:[%s17140_s1 + $0x9d4] ss:$8 sps:$4 sm:$0xff]   ;;  %v12188_v15 = vld [vmem:[%s17140_s1 + $0x9d0] ss:$8 sps:$4 sm:$0xff]  }
 0x1f0   : > { %8197 = vmatprep.subr.bf16.mxu1 %v12184_v51  ;;  %v6986_v24 = vpop.f32.mrf.mxu0  ;;  %v10719_v59 = vcombine.low %v14256_v23, %v14259_v7  ;;  %v17204_v58 = vld [vmem:[#allocation16_spill] sm:$0xff]  ;;  %v10750_v39 = vcombine.high %v14306_v53, %v14309_v35  ;;  %v10752_v45 = vcombine.high %v14312_v25, %v14315_v50  ;;  %v17206_v7 = vld [vmem:[#allocation17_spill] sm:$0xff] }
 0x1f1   : > { %17201 = vst [vmem:[#allocation14_spill] sm:$0xff] %v14323_v30  ;;  %v7179_v10 = vpop.f32.mrf.mxu1  ;;  %v14336_v49 = vadd.f32 %v7177_v9, %v6985_v11  ;;  %v6987_v51 = vadd.f32 %v6986_v24, %v17204_v58  ;;  %v17208_v58 = vld [vmem:[#allocation18_spill] sm:$0xff] }
 0x1f2   : > { %v6988_v30 = vpop.f32.mrf.mxu0  ;;  %8005 = vmatpush2.bf16.msra.mxu0 %v12179_v8  ;;  %v12193_v8 = vld [vmem:[%s17140_s1 + $0x8c4] ss:$8 sps:$4 sm:$0xff]  }
 0x1f3   : > { %17203 = vst [vmem:[#allocation15_spill] sm:$0xff] %v14336_v49  ;;  %v7181_v37 = vpop.f32.mrf.mxu1  ;;  %8198 = vmatpush2.bf16.msra.mxu1 %v12182_v1  ;;  %v14349_v23 = vadd.f32 %v7179_v10, %v6987_v51  ;;  %v6989_v9 = vadd.f32 %v6988_v30, %v17206_v7  ;;  %8006 = vmatprep.subr.bf16.mxu0 %v12187_v21  ;;  %v12196_v1 = vld [vmem:[%s17140_s1 + $0x9c4] ss:$8 sps:$4 sm:$0xff]   ;;  %v14362_v30 = vld [vmem:[%s12769_s10 + $0x730] sm:$0xff]  ;;  %v14371_v49 = vld [vmem:[%s12769_s10 + $0x7b8] sm:$0xff] }
 0x1f4   : > { %8199 = vmatprep.subr.bf16.mxu1 %v12190_v36  ;;  %v6992_v11 = vpop.f32.mrf.mxu0  ;;  %7683 = vmatmul.mubr.bf16.gmra.mxu0 %v10717_v16  ;;  %v14365_v21 = vld [vmem:[%s12769_s10 + $0x7b0] sm:$0xff]  ;;  %v14368_v36 = vld [vmem:[%s12769_s10 + $0x738] sm:$0xff]  ;;  %v12194_v16 = vld [vmem:[%s17140_s1 + $0x9c0] ss:$8 sps:$4 sm:$0xff]  }
 0x1f5   : > { %17205 = vst [vmem:[#allocation16_spill] sm:$0xff] %v14349_v23  ;;  %v7185_v24 = vpop.f32.mrf.mxu1  ;;  %7876 = vmatmul.mubr.bf16.gmra.mxu1 %v10719_v59  ;;  %v14358_v10 = vadd.f32 %v7181_v37, %v6989_v9  ;;  %v6993_v51 = vadd.f32 %v6992_v11, %v17208_v58  ;;  %7692 = vmatprep.mubr.bf16.mxu0 %v10750_v39  ;;  %v12191_v37 = vld [vmem:[%s17140_s1 + $0x8c0] ss:$8 sps:$4 sm:$0xff]   ;;  %v12199_v9 = vld [vmem:[%s17140_s1 + $0x8b4] ss:$8 sps:$4 sm:$0xff]  }
 0x1f6   : > { %7885 = vmatprep.mubr.bf16.mxu1 %v10752_v45  ;;  %v6994_v7 = vpop.f32.mrf.mxu0  ;;  %8007 = vmatpush2.bf16.msra.mxu0 %v12185_v41  ;;  %v17210_v39 = vld [vmem:[#allocation19_spill] sm:$0xff]  ;;  %v12202_v41 = vld [vmem:[%s17140_s1 + $0x9b4] ss:$8 sps:$4 sm:$0xff]   ;;  %v10749_v58 = vcombine.low %v14306_v53, %v14309_v35  ;;  %v12197_v53 = vld [vmem:[%s17140_s1 + $0x8b0] ss:$8 sps:$4 sm:$0xff]  }
 0x1f7   : > { %17207 = vst [vmem:[#allocation17_spill] sm:$0xff] %v14358_v10  ;;  %v7187_v23 = vpop.f32.mrf.mxu1  ;;  %8200 = vmatpush2.bf16.msra.mxu1 %v12188_v15  ;;  %v14379_v59 = vadd.f32 %v7185_v24, %v6993_v51  ;;  %v6995_v45 = vadd.f32 %v6994_v7, %v17210_v39  ;;  %8008 = vmatprep.subr.bf16.mxu0 %v12193_v8  ;;  %v17212_v8 = vld [vmem:[#allocation20_spill] sm:$0xff] }
 0x1f8   : > { %8201 = vmatprep.subr.bf16.mxu1 %v12196_v1  ;;  %v6996_v15 = vpop.f32.mrf.mxu0  ;;  %v10751_v24 = vcombine.low %v14312_v25, %v14315_v50  ;;  %v10782_v7 = vcombine.high %v14362_v30, %v14365_v21  ;;  %v10784_v39 = vcombine.high %v14368_v36, %v14371_v49  ;;  %v12200_v50 = vld [vmem:[%s17140_s1 + $0x9b0] ss:$8 sps:$4 sm:$0xff]  }
 0x1f9   : > { %17209 = vst [vmem:[#allocation18_spill] sm:$0xff] %v14379_v59  ;;  %v7189_v11 = vpop.f32.mrf.mxu1  ;;  %v14392_v51 = vadd.f32 %v7187_v23, %v6995_v45  ;;  %v6997_v1 = vadd.f32 %v6996_v15, %v17212_v8  ;;  %v17214_v25 = vld [vmem:[#allocation21_spill] sm:$0xff]  ;;  %v17216_v8 = vld [vmem:[#allocation22_spill] sm:$0xff] }
 0x1fa   : > { %v6998_v59 = vpop.f32.mrf.mxu0  ;;  %8009 = vmatpush2.bf16.msra.mxu0 %v12191_v37  ;;  %v12205_v37 = vld [vmem:[%s17140_s1 + $0x8a4] ss:$8 sps:$4 sm:$0xff]  }
 0x1fb   : > { %17211 = vst [vmem:[#allocation19_spill] sm:$0xff] %v14392_v51  ;;  %v7191_v10 = vpop.f32.mrf.mxu1  ;;  %8202 = vmatpush2.bf16.msra.mxu1 %v12194_v16  ;;  %v14405_v35 = vadd.f32 %v7189_v11, %v6997_v1  ;;  %v6999_v23 = vadd.f32 %v6998_v59, %v17214_v25  ;;  %8010 = vmatprep.subr.bf16.mxu0 %v12199_v9  ;;  %v12208_v16 = vld [vmem:[%s17140_s1 + $0x9a4] ss:$8 sps:$4 sm:$0xff]   ;;  %v14418_v59 = vld [vmem:[%s12769_s10 + $0x830] sm:$0xff]  ;;  %v14427_v51 = vld [vmem:[%s12769_s10 + $0x8b8] sm:$0xff] }
 0x1fc   : > { %8203 = vmatprep.subr.bf16.mxu1 %v12202_v41  ;;  %v7002_v45 = vpop.f32.mrf.mxu0  ;;  %7693 = vmatmul.mubr.bf16.gmra.mxu0 %v10749_v58  ;;  %v14421_v9 = vld [vmem:[%s12769_s10 + $0x8b0] sm:$0xff]  ;;  %v14424_v41 = vld [vmem:[%s12769_s10 + $0x838] sm:$0xff]  ;;  %v12206_v58 = vld [vmem:[%s17140_s1 + $0x9a0] ss:$8 sps:$4 sm:$0xff]  }
 0x1fd   : > { %17213 = vst [vmem:[#allocation20_spill] sm:$0xff] %v14405_v35  ;;  %v7195_v15 = vpop.f32.mrf.mxu1  ;;  %7886 = vmatmul.mubr.bf16.gmra.mxu1 %v10751_v24  ;;  %v14414_v11 = vadd.f32 %v7191_v10, %v6999_v23  ;;  %v7003_v1 = vadd.f32 %v7002_v45, %v17216_v8  ;;  %7702 = vmatprep.mubr.bf16.mxu0 %v10782_v7  ;;  %v12203_v10 = vld [vmem:[%s17140_s1 + $0x8a0] ss:$8 sps:$4 sm:$0xff]   ;;  %v12211_v23 = vld [vmem:[%s17140_s1 + $0x894] ss:$8 sps:$4 sm:$0xff]  }
 0x1fe   : > { %7895 = vmatprep.mubr.bf16.mxu1 %v10784_v39  ;;  %v7004_v25 = vpop.f32.mrf.mxu0  ;;  %8011 = vmatpush2.bf16.msra.mxu0 %v12197_v53  ;;  %v17218_v7 = vld [vmem:[#allocation23_spill] sm:$0xff]  ;;  %v12214_v53 = vld [vmem:[%s17140_s1 + $0x994] ss:$8 sps:$4 sm:$0xff]   ;;  %v10781_v8 = vcombine.low %v14362_v30, %v14365_v21  ;;  %v12209_v30 = vld [vmem:[%s17140_s1 + $0x890] ss:$8 sps:$4 sm:$0xff]  }
 0x1ff   : > { %17215 = vst [vmem:[#allocation21_spill] sm:$0xff] %v14414_v11  ;;  %v7197_v35 = vpop.f32.mrf.mxu1  ;;  %8204 = vmatpush2.bf16.msra.mxu1 %v12200_v50  ;;  %v14435_v24 = vadd.f32 %v7195_v15, %v7003_v1  ;;  %v7005_v39 = vadd.f32 %v7004_v25, %v17218_v7  ;;  %8012 = vmatprep.subr.bf16.mxu0 %v12205_v37  ;;  %v17220_v37 = vld [vmem:[#allocation24_spill] sm:$0xff] }
 0x200   : > { %8205 = vmatprep.subr.bf16.mxu1 %v12208_v16  ;;  %v7006_v50 = vpop.f32.mrf.mxu0  ;;  %v10783_v15 = vcombine.low %v14368_v36, %v14371_v49  ;;  %v10814_v25 = vcombine.high %v14418_v59, %v14421_v9  ;;  %v10816_v7 = vcombine.high %v14424_v41, %v14427_v51  ;;  %v12212_v49 = vld [vmem:[%s17140_s1 + $0x990] ss:$8 sps:$4 sm:$0xff]  }
 0x201   : > { %17217 = vst [vmem:[#allocation22_spill] sm:$0xff] %v14435_v24  ;;  %v7199_v45 = vpop.f32.mrf.mxu1  ;;  %v14448_v1 = vadd.f32 %v7197_v35, %v7005_v39  ;;  %v7007_v16 = vadd.f32 %v7006_v50, %v17220_v37  ;;  %v17222_v36 = vld [vmem:[#allocation25_spill] sm:$0xff]  ;;  %v17223_v37 = vld [vmem:[#allocation26_spill] sm:$0xff] }
 0x202   : > { %v7008_v24 = vpop.f32.mrf.mxu0  ;;  %8013 = vmatpush2.bf16.msra.mxu0 %v12203_v10  ;;  %v12217_v10 = vld [vmem:[%s17140_s1 + $0x884] ss:$8 sps:$4 sm:$0xff]  }
 0x203   : > { %17219 = vst [vmem:[#allocation23_spill] sm:$0xff] %v14448_v1  ;;  %v7201_v11 = vpop.f32.mrf.mxu1  ;;  %8206 = vmatpush2.bf16.msra.mxu1 %v12206_v58  ;;  %v14461_v21 = vadd.f32 %v7199_v45, %v7007_v16  ;;  %v7009_v35 = vadd.f32 %v7008_v24, %v17222_v36  ;;  %8014 = vmatprep.subr.bf16.mxu0 %v12211_v23  ;;  %v12220_v58 = vld [vmem:[%s17140_s1 + $0x984] ss:$8 sps:$4 sm:$0xff]   ;;  %v580_v24 = vld [vmem:[%s12769_s10 + $0x930] sm:$0xff]  ;;  %v597_v1 = vld [vmem:[%s12769_s10 + $0x9b8] sm:$0xff] }
 0x204   : > { %8207 = vmatprep.subr.bf16.mxu1 %v12214_v53  ;;  %v7012_v39 = vpop.f32.mrf.mxu0  ;;  %7703 = vmatmul.mubr.bf16.gmra.mxu0 %v10781_v8  ;;  %v596_v23 = vld [vmem:[%s12769_s10 + $0x9b0] sm:$0xff]  ;;  %v581_v53 = vld [vmem:[%s12769_s10 + $0x938] sm:$0xff] }
 0x205   : > { %17221 = vst [vmem:[#allocation24_spill] sm:$0xff] %v14461_v21  ;;  %v7205_v50 = vpop.f32.mrf.mxu1  ;;  %7896 = vmatmul.mubr.bf16.gmra.mxu1 %v10783_v15  ;;  %v14470_v45 = vadd.f32 %v7201_v11, %v7009_v35  ;;  %v7013_v16 = vadd.f32 %v7012_v39, %v17223_v37  ;;  %7712 = vmatprep.mubr.bf16.mxu0 %v10814_v25  ;;  %v12218_v11 = vld [vmem:[%s17140_s1 + $0x980] ss:$8 sps:$4 sm:$0xff]   ;;  %v12223_v25 = vld [vmem:[%s17140_s1 + $0xa74] ss:$8 sps:$4 sm:$0xff]  }
 0x206   : > { %7905 = vmatprep.mubr.bf16.mxu1 %v10816_v7  ;;  %v7014_v36 = vpop.f32.mrf.mxu0  ;;  %8015 = vmatpush2.bf16.msra.mxu0 %v12209_v30  ;;  %v12226_v7 = vld [vmem:[%s17140_s1 + $0xb74] ss:$8 sps:$4 sm:$0xff]   ;;  %v10813_v35 = vcombine.low %v14418_v59, %v14421_v9  ;;  %v10815_v39 = vcombine.low %v14424_v41, %v14427_v51 }
 0x207   : > { %v7207_v21 = vpop.f32.mrf.mxu1  ;;  %8208 = vmatpush2.bf16.msra.mxu1 %v12212_v49  ;;  %v14483_v8 = vadd.f32 %v7205_v50, %v7013_v16  ;;  %v7015_v15 = vadd.f32 %v7014_v36, %v13920_v54  ;;  %8016 = vmatprep.subr.bf16.mxu0 %v12217_v10  ;;  %v10846_v10 = vcombine.high %v580_v24, %v596_v23 }
 0x208   : > { %8209 = vmatprep.subr.bf16.mxu1 %v12220_v58  ;;  %v7016_v30 = vpop.f32.mrf.mxu0  ;;  %v10848_v58 = vcombine.high %v581_v53, %v597_v1 }
 0x209   : > { %v7209_v49 = vpop.f32.mrf.mxu1  ;;  %v14496_v50 = vadd.f32 %v7207_v21, %v7015_v15  ;;  %v7017_v54 = vadd.f32 %v7016_v30, %v13923_v2  ;;  %v628_v15 = vld [vmem:[%s12769_s10 + $0xab0] sm:$0xff]  ;;  %v613_v30 = vld [vmem:[%s12769_s10 + $0xa38] sm:$0xff] }
 0x20a   : > { %v7018_v37 = vpop.f32.mrf.mxu0  ;;  %8017 = vmatpush2.bf16.msra.mxu0 %v12215_v60  ;;  %v612_v60 = vld [vmem:[%s12769_s10 + $0xa30] sm:$0xff] }
 0x20b   : > { %v7211_v16 = vpop.f32.mrf.mxu1  ;;  %8210 = vmatpush2.bf16.msra.mxu1 %v12218_v11  ;;  %v14499_v36 = vadd.f32 %v7209_v49, %v7017_v54  ;;  %v7019_v59 = vadd.f32 %v7018_v37, %v13926_v19  ;;  %8372 = vmatprep.subr.bf16.mxu0 %v12223_v25  ;;  %v629_v49 = vld [vmem:[%s12769_s10 + $0xab8] sm:$0xff] }
 0x20c   : > { %8565 = vmatprep.subr.bf16.mxu1 %v12226_v7  ;;  %v7248_v51 = vpop.f32.mrf.mxu0  ;;  %7713 = vmatmul.mubr.bf16.gmra.mxu0 %v10813_v35  ;;  %v10845_v35 = vcombine.low %v580_v24, %v596_v23 }
 0x20d   : > { %v7441_v9 = vpop.f32.mrf.mxu1  ;;  %7906 = vmatmul.mubr.bf16.gmra.mxu1 %v10815_v39  ;;  %v14502_v2 = vadd.f32 %v7211_v16, %v7019_v59  ;;  %v7249_v41 = vadd.f32 %v7248_v51, %v13933_v22  ;;  %7722 = vmatprep.mubr.bf16.mxu0 %v10846_v10  ;;  %v10847_v39 = vcombine.low %v581_v53, %v597_v1 }
 0x20e   : > { %7915 = vmatprep.mubr.bf16.mxu1 %v10848_v58  ;;  %v7250_v21 = vpop.f32.mrf.mxu0  ;;  %v10878_v10 = vcombine.high %v612_v60, %v628_v15  ;;  %v10880_v58 = vcombine.high %v613_v30, %v629_v49 }
 0x20f   : > { %v7443_v11 = vpop.f32.mrf.mxu1  ;;  %v14509_v19 = vadd.f32 %v7441_v9, %v7249_v41  ;;  %v7251_v25 = vadd.f32 %v7250_v21, %v13936_v63  ;;  %v660_v21 = vld [vmem:[%s12769_s10 + $0xbb0] sm:$0xff] }
 0x210   : > { %v7252_v7 = vpop.f32.mrf.mxu0 }
 0x211   : > { %v7445_v54 = vpop.f32.mrf.mxu1  ;;  %v14512_v37 = vadd.f32 %v7443_v11, %v7251_v25  ;;  %v7253_v22 = vadd.f32 %v7252_v7, %v13939_v31  ;;  %v644_v31 = vld [vmem:[%s12769_s10 + $0xb30] sm:$0xff]  ;;  %v645_v11 = vld [vmem:[%s12769_s10 + $0xb38] sm:$0xff] }
 0x212   : > { %v7254_v16 = vpop.f32.mrf.mxu0  ;;  %v661_v25 = vld [vmem:[%s12769_s10 + $0xbb8] sm:$0xff] }
 0x213   : > { %v7447_v59 = vpop.f32.mrf.mxu1  ;;  %v14515_v51 = vadd.f32 %v7445_v54, %v7253_v22  ;;  %v7255_v63 = vadd.f32 %v7254_v16, %v13942_v40 }
 0x214   : > { %v7258_v9 = vpop.f32.mrf.mxu0  ;;  %7723 = vmatmul.mubr.bf16.gmra.mxu0 %v10845_v35  ;;  %v10877_v35 = vcombine.low %v612_v60, %v628_v15 }
 0x215   : > { %v7451_v41 = vpop.f32.mrf.mxu1  ;;  %7916 = vmatmul.mubr.bf16.gmra.mxu1 %v10847_v39  ;;  %v14518_v1 = vadd.f32 %v7447_v59, %v7255_v63  ;;  %v7259_v24 = vadd.f32 %v7258_v9, %v13949_v6  ;;  %7732 = vmatprep.mubr.bf16.mxu0 %v10878_v10  ;;  %v10879_v39 = vcombine.low %v613_v30, %v629_v49 }
 0x216   : > { %7925 = vmatprep.mubr.bf16.mxu1 %v10880_v58  ;;  %v7260_v23 = vpop.f32.mrf.mxu0  ;;  %v10910_v10 = vcombine.high %v644_v31, %v660_v21  ;;  %v10912_v58 = vcombine.high %v645_v11, %v661_v25 }
 0x217   : > { %v7453_v53 = vpop.f32.mrf.mxu1  ;;  %v14525_v7 = vadd.f32 %v7451_v41, %v7259_v24  ;;  %v7261_v40 = vadd.f32 %v7260_v23, %v13952_v14  ;;  %v692_v23 = vld [vmem:[%s12769_s10 + $0xcb0] sm:$0xff] }
 0x218   : > { %v7262_v54 = vpop.f32.mrf.mxu0 }
 0x219   : > { %v7455_v22 = vpop.f32.mrf.mxu1  ;;  %v14528_v16 = vadd.f32 %v7453_v53, %v7261_v40  ;;  %v7263_v6 = vadd.f32 %v7262_v54, %v13955_v17  ;;  %v676_v17 = vld [vmem:[%s12769_s10 + $0xc30] sm:$0xff]  ;;  %v677_v53 = vld [vmem:[%s12769_s10 + $0xc38] sm:$0xff] }
 0x21a   : > { %v7264_v59 = vpop.f32.mrf.mxu0  ;;  %v693_v40 = vld [vmem:[%s12769_s10 + $0xcb8] sm:$0xff] }
 0x21b   : > { %v7457_v63 = vpop.f32.mrf.mxu1  ;;  %v14531_v9 = vadd.f32 %v7455_v22, %v7263_v6  ;;  %v7265_v14 = vadd.f32 %v7264_v59, %v13958_v28 }
 0x21c   : > { %v7268_v41 = vpop.f32.mrf.mxu0  ;;  %7733 = vmatmul.mubr.bf16.gmra.mxu0 %v10877_v35  ;;  %v10909_v35 = vcombine.low %v644_v31, %v660_v21 }
 0x21d   : > { %v7461_v24 = vpop.f32.mrf.mxu1  ;;  %7926 = vmatmul.mubr.bf16.gmra.mxu1 %v10879_v39  ;;  %v14534_v60 = vadd.f32 %v7457_v63, %v7265_v14  ;;  %v7269_v15 = vadd.f32 %v7268_v41, %v13965_v4  ;;  %7742 = vmatprep.mubr.bf16.mxu0 %v10910_v10  ;;  %v10911_v39 = vcombine.low %v645_v11, %v661_v25 }
 0x21e   : > { %7935 = vmatprep.mubr.bf16.mxu1 %v10912_v58  ;;  %v7270_v30 = vpop.f32.mrf.mxu0  ;;  %v10942_v10 = vcombine.high %v676_v17, %v692_v23  ;;  %v10944_v58 = vcombine.high %v677_v53, %v693_v40 }
 0x21f   : > { %v7463_v49 = vpop.f32.mrf.mxu1  ;;  %v14541_v54 = vadd.f32 %v7461_v24, %v7269_v15  ;;  %v7271_v28 = vadd.f32 %v7270_v30, %v13968_v3  ;;  %v724_v30 = vld [vmem:[%s12769_s10 + $0xdb0] sm:$0xff] }
 0x220   : > { %v7272_v22 = vpop.f32.mrf.mxu0 }
 0x221   : > { %v7465_v6 = vpop.f32.mrf.mxu1  ;;  %v14544_v59 = vadd.f32 %v7463_v49, %v7271_v28  ;;  %v7273_v4 = vadd.f32 %v7272_v22, %v13971_v61  ;;  %v708_v61 = vld [vmem:[%s12769_s10 + $0xd30] sm:$0xff]  ;;  %v709_v49 = vld [vmem:[%s12769_s10 + $0xd38] sm:$0xff] }
 0x222   : > { %v7274_v63 = vpop.f32.mrf.mxu0  ;;  %v725_v28 = vld [vmem:[%s12769_s10 + $0xdb8] sm:$0xff] }
 0x223   : > { %v7467_v14 = vpop.f32.mrf.mxu1  ;;  %v14547_v41 = vadd.f32 %v7465_v6, %v7273_v4  ;;  %v7275_v3 = vadd.f32 %v7274_v63, %v13974_v44 }
 0x224   : > { %v7278_v24 = vpop.f32.mrf.mxu0  ;;  %7743 = vmatmul.mubr.bf16.gmra.mxu0 %v10909_v35  ;;  %v10941_v35 = vcombine.low %v676_v17, %v692_v23 }
 0x225   : > { %v7471_v15 = vpop.f32.mrf.mxu1  ;;  %7936 = vmatmul.mubr.bf16.gmra.mxu1 %v10911_v39  ;;  %v14550_v31 = vadd.f32 %v7467_v14, %v7275_v3  ;;  %v7279_v21 = vadd.f32 %v7278_v24, %v13981_v32  ;;  %7752 = vmatprep.mubr.bf16.mxu0 %v10942_v10  ;;  %v10943_v39 = vcombine.low %v677_v53, %v693_v40 }
 0x226   : > { %7945 = vmatprep.mubr.bf16.mxu1 %v10944_v58  ;;  %v7280_v11 = vpop.f32.mrf.mxu0  ;;  %v10974_v10 = vcombine.high %v708_v61, %v724_v30  ;;  %v10976_v58 = vcombine.high %v709_v49, %v725_v28 }
 0x227   : > { %v7473_v25 = vpop.f32.mrf.mxu1  ;;  %v14557_v22 = vadd.f32 %v7471_v15, %v7279_v21  ;;  %v7281_v44 = vadd.f32 %v7280_v11, %v13984_v38  ;;  %v756_v11 = vld [vmem:[%s12769_s10 + $0xeb0] sm:$0xff] }
 0x228   : > { %v7282_v6 = vpop.f32.mrf.mxu0 }
 0x229   : > { %v7475_v4 = vpop.f32.mrf.mxu1  ;;  %v14560_v63 = vadd.f32 %v7473_v25, %v7281_v44  ;;  %v7283_v32 = vadd.f32 %v7282_v6, %v13987_v47  ;;  %v740_v47 = vld [vmem:[%s12769_s10 + $0xe30] sm:$0xff]  ;;  %v741_v25 = vld [vmem:[%s12769_s10 + $0xe38] sm:$0xff] }
 0x22a   : > { %v7284_v14 = vpop.f32.mrf.mxu0  ;;  %v757_v44 = vld [vmem:[%s12769_s10 + $0xeb8] sm:$0xff] }
 0x22b   : > { %v7477_v3 = vpop.f32.mrf.mxu1  ;;  %v14563_v24 = vadd.f32 %v7475_v4, %v7283_v32  ;;  %v7285_v38 = vadd.f32 %v7284_v14, %v13990_v5 }
 0x22c   : > { %v7288_v15 = vpop.f32.mrf.mxu0  ;;  %7753 = vmatmul.mubr.bf16.gmra.mxu0 %v10941_v35  ;;  %v10973_v35 = vcombine.low %v708_v61, %v724_v30 }
 0x22d   : > { %v7481_v21 = vpop.f32.mrf.mxu1  ;;  %7946 = vmatmul.mubr.bf16.gmra.mxu1 %v10943_v39  ;;  %v14566_v17 = vadd.f32 %v7477_v3, %v7285_v38  ;;  %v7289_v23 = vadd.f32 %v7288_v15, %v13997_v56  ;;  %7762 = vmatprep.mubr.bf16.mxu0 %v10974_v10  ;;  %v10975_v39 = vcombine.low %v709_v49, %v725_v28 }
 0x22e   : > { %7955 = vmatprep.mubr.bf16.mxu1 %v10976_v58  ;;  %v7290_v53 = vpop.f32.mrf.mxu0  ;;  %v11006_v10 = vcombine.high %v740_v47, %v756_v11  ;;  %v11008_v58 = vcombine.high %v741_v25, %v757_v44 }
 0x22f   : > { %v7483_v40 = vpop.f32.mrf.mxu1  ;;  %v14573_v6 = vadd.f32 %v7481_v21, %v7289_v23  ;;  %v7291_v5 = vadd.f32 %v7290_v53, %v14000_v62  ;;  %v788_v53 = vld [vmem:[%s12769_s10 + $0xfb0] sm:$0xff] }
 0x230   : > { %v7292_v4 = vpop.f32.mrf.mxu0 }
 0x231   : > { %v7485_v32 = vpop.f32.mrf.mxu1  ;;  %v14576_v14 = vadd.f32 %v7483_v40, %v7291_v5  ;;  %v7293_v56 = vadd.f32 %v7292_v4, %v14003_v42  ;;  %v772_v42 = vld [vmem:[%s12769_s10 + $0xf30] sm:$0xff]  ;;  %v773_v40 = vld [vmem:[%s12769_s10 + $0xf38] sm:$0xff] }
 0x232   : > { %v7294_v3 = vpop.f32.mrf.mxu0  ;;  %v789_v5 = vld [vmem:[%s12769_s10 + $0xfb8] sm:$0xff] }
 0x233   : > { %v7487_v38 = vpop.f32.mrf.mxu1  ;;  %v14579_v15 = vadd.f32 %v7485_v32, %v7293_v56  ;;  %v7295_v62 = vadd.f32 %v7294_v3, %v14006_v34 }
 0x234   : > { %v7298_v21 = vpop.f32.mrf.mxu0  ;;  %7763 = vmatmul.mubr.bf16.gmra.mxu0 %v10973_v35  ;;  %v11005_v35 = vcombine.low %v740_v47, %v756_v11 }
 0x235   : > { %v7491_v23 = vpop.f32.mrf.mxu1  ;;  %7956 = vmatmul.mubr.bf16.gmra.mxu1 %v10975_v39  ;;  %v14582_v61 = vadd.f32 %v7487_v38, %v7295_v62  ;;  %v7299_v30 = vadd.f32 %v7298_v21, %v14013_v20  ;;  %7772 = vmatprep.mubr.bf16.mxu0 %v11006_v10  ;;  %v11007_v39 = vcombine.low %v741_v25, %v757_v44 }
 0x236   : > { %7965 = vmatprep.mubr.bf16.mxu1 %v11008_v58  ;;  %v7300_v49 = vpop.f32.mrf.mxu0  ;;  %v11038_v10 = vcombine.high %v772_v42, %v788_v53  ;;  %v11040_v58 = vcombine.high %v773_v40, %v789_v5 }
 0x237   : > { %v7493_v28 = vpop.f32.mrf.mxu1  ;;  %v14589_v4 = vadd.f32 %v7491_v23, %v7299_v30  ;;  %v7301_v34 = vadd.f32 %v7300_v49, %v14016_v27  ;;  %v310_v49 = vld [vmem:[%s12769_s10 + $0xc0] sm:$0xff] }
 0x238   : > { %v7302_v32 = vpop.f32.mrf.mxu0 }
 0x239   : > { %v7495_v56 = vpop.f32.mrf.mxu1  ;;  %v14592_v3 = vadd.f32 %v7493_v28, %v7301_v34  ;;  %v7303_v20 = vadd.f32 %v7302_v32, %v14019_v57  ;;  %v294_v57 = vld [vmem:[%s12769_s10 + $0x40] sm:$0xff]  ;;  %v295_v28 = vld [vmem:[%s12769_s10 + $0x48] sm:$0xff] }
 0x23a   : > { %v7304_v38 = vpop.f32.mrf.mxu0  ;;  %v311_v34 = vld [vmem:[%s12769_s10 + $0xc8] sm:$0xff] }
 0x23b   : > { %v7497_v62 = vpop.f32.mrf.mxu1  ;;  %v14595_v21 = vadd.f32 %v7495_v56, %v7303_v20  ;;  %v7305_v27 = vadd.f32 %v7304_v38, %v14022_v0 }
 0x23c   : > { %v7308_v23 = vpop.f32.mrf.mxu0  ;;  %7773 = vmatmul.mubr.bf16.gmra.mxu0 %v11005_v35  ;;  %v11037_v35 = vcombine.low %v772_v42, %v788_v53 }
 0x23d   : > { %v7501_v30 = vpop.f32.mrf.mxu1  ;;  %7966 = vmatmul.mubr.bf16.gmra.mxu1 %v11007_v39  ;;  %v14598_v47 = vadd.f32 %v7497_v62, %v7305_v27  ;;  %v7309_v11 = vadd.f32 %v7308_v23, %v14029_v48  ;;  %7782 = vmatprep.mubr.bf16.mxu0 %v11038_v10  ;;  %v11039_v39 = vcombine.low %v773_v40, %v789_v5  ;;  %v14618_v5 = vld [vmem:[%s12769_s10 + $0x140] sm:$0xff] }
 0x23e   : > { %7975 = vmatprep.mubr.bf16.mxu1 %v11040_v58  ;;  %v7310_v25 = vpop.f32.mrf.mxu0  ;;  %v10562_v10 = vcombine.high %v294_v57, %v310_v49  ;;  %v10564_v58 = vcombine.high %v295_v28, %v311_v34 }
 0x23f   : > { %v7503_v44 = vpop.f32.mrf.mxu1  ;;  %v14605_v32 = vadd.f32 %v7501_v30, %v7309_v11  ;;  %v7311_v0 = vadd.f32 %v7310_v25, %v14032_v55 }
 0x240   : > { %v7312_v56 = vpop.f32.mrf.mxu0 }
 0x241   : > { %v7505_v20 = vpop.f32.mrf.mxu1  ;;  %v14608_v38 = vadd.f32 %v7503_v44, %v7311_v0  ;;  %v7313_v48 = vadd.f32 %v7312_v56, %v14035_v13  ;;  %v14627_v0 = vld [vmem:[%s12769_s10 + $0x148] sm:$0xff] }
 0x242   : > { %v7314_v62 = vpop.f32.mrf.mxu0  ;;  %v14630_v56 = vld [vmem:[%s12769_s10 + $0x1c8] sm:$0xff] }
 0x243   : > { %v7507_v27 = vpop.f32.mrf.mxu1  ;;  %v14611_v23 = vadd.f32 %v7505_v20, %v7313_v48  ;;  %v7315_v30 = vadd.f32 %v7314_v62, %v14038_v33  ;;  %v14624_v33 = vld [vmem:[%s12769_s10 + $0x1c0] sm:$0xff]  ;;  %v12221_v62 = vld [vmem:[%s17140_s1 + $0xa70] ss:$8 sps:$4 sm:$0xff]  }
 0x244   : > { %v7318_v55 = vpop.f32.mrf.mxu0  ;;  %7783 = vmatmul.mubr.bf16.gmra.mxu0 %v11037_v35 }
 0x245   : > { %v7511_v11 = vpop.f32.mrf.mxu1  ;;  %7976 = vmatmul.mubr.bf16.gmra.mxu1 %v11039_v39  ;;  %v14614_v42 = vadd.f32 %v7507_v27, %v7315_v30  ;;  %v7319_v13 = vadd.f32 %v7318_v55, %v14044_v46  ;;  %8018 = vmatprep.mubr.bf16.mxu0 %v10562_v10  ;;  %v10561_v39 = vcombine.low %v294_v57, %v310_v49  ;;  %v17225_v10 = vld [vmem:[#allocation27_spill] sm:$0xff] }
 0x246   : > { %8211 = vmatprep.mubr.bf16.mxu1 %v10564_v58  ;;  %v7320_v53 = vpop.f32.mrf.mxu0  ;;  %v10563_v46 = vcombine.low %v295_v28, %v311_v34  ;;  %v10594_v55 = vcombine.high %v14618_v5, %v14624_v33  ;;  %v10596_v57 = vcombine.high %v14627_v0, %v14630_v56  ;;  %v17227_v28 = vld [vmem:[#allocation28_spill] sm:$0xff] }
 0x247   : > { %v7513_v40 = vpop.f32.mrf.mxu1  ;;  %v14620_v25 = vadd.f32 %v7511_v11, %v7319_v13  ;;  %v7321_v44 = vadd.f32 %v7320_v53, %v14056_v26  ;;  %v12224_v26 = vld [vmem:[%s17140_s1 + $0xb70] ss:$8 sps:$4 sm:$0xff]   ;;  %v12229_v11 = vld [vmem:[%s17140_s1 + $0xa64] ss:$8 sps:$4 sm:$0xff]  }
 0x248   : > { %v7322_v20 = vpop.f32.mrf.mxu0  ;;  %v12232_v13 = vld [vmem:[%s17140_s1 + $0xb64] ss:$8 sps:$4 sm:$0xff]  }
 0x249   : > { %v7515_v35 = vpop.f32.mrf.mxu1  ;;  %v14632_v48 = vadd.f32 %v7513_v40, %v7321_v44  ;;  %v7323_v58 = vadd.f32 %v7322_v20, %v17225_v10  ;;  %v12227_v44 = vld [vmem:[%s17140_s1 + $0xa60] ss:$8 sps:$4 sm:$0xff]  }
 0x24a   : > { %v7324_v27 = vpop.f32.mrf.mxu0  ;;  %v14658_v20 = vld [vmem:[%s12769_s10 + $0x240] sm:$0xff] }
 0x24b   : > { %17224 = vst [vmem:[#allocation25_spill] sm:$0xff] %v14632_v48  ;;  %v7517_v30 = vpop.f32.mrf.mxu1  ;;  %v14645_v49 = vadd.f32 %v7515_v35, %v7323_v58  ;;  %v7325_v34 = vadd.f32 %v7324_v27, %v17227_v28  ;;  %v12230_v58 = vld [vmem:[%s17140_s1 + $0xb60] ss:$8 sps:$4 sm:$0xff]  }
 0x24c   : > { %v7328_v53 = vpop.f32.mrf.mxu0  ;;  %8019 = vmatmul.mubr.bf16.vlgmr.msra.gmra.mxu0 %v10561_v39  ;;  %v14667_v27 = vld [vmem:[%s12769_s10 + $0x2c0] sm:$0xff]  ;;  %v14670_v39 = vld [vmem:[%s12769_s10 + $0x248] sm:$0xff] }
 0x24d   : > { %17226 = vst [vmem:[#allocation26_spill] sm:$0xff] %v14645_v49  ;;  %v7521_v40 = vpop.f32.mrf.mxu1  ;;  %8212 = vmatmul.mubr.bf16.vlgmr.msra.gmra.mxu1 %v10563_v46  ;;  %v14660_v35 = vadd.f32 %v7517_v30, %v7325_v34  ;;  %v7329_v10 = vadd.f32 %v7328_v53, %v14105_v29  ;;  %8373 = vmatpush1.bf16.msra.mxu0 %v12221_v62  ;;  %v14673_v49 = vld [vmem:[%s12769_s10 + $0x2c8] sm:$0xff]  ;;  %v12235_v29 = vld [vmem:[%s17140_s1 + $0xa54] ss:$8 sps:$4 sm:$0xff]  }
 0x24e   : > { %8566 = vmatpush1.bf16.msra.mxu1 %v12224_v26  ;;  %v7330_v46 = vpop.f32.mrf.mxu0  ;;  %8028 = vmatprep.mubr.bf16.mxu0 %v10594_v55  ;;  %v12238_v62 = vld [vmem:[%s17140_s1 + $0xb54] ss:$8 sps:$4 sm:$0xff]   ;;  %v10593_v55 = vcombine.low %v14618_v5, %v14624_v33  ;;  %v12233_v5 = vld [vmem:[%s17140_s1 + $0xa50] ss:$8 sps:$4 sm:$0xff]  }
 0x24f   : > { %17228 = vst [vmem:[#allocation27_spill] sm:$0xff] %v14660_v35  ;;  %v7523_v28 = vpop.f32.mrf.mxu1  ;;  %8221 = vmatprep.mubr.bf16.mxu1 %v10596_v57  ;;  %v14681_v26 = vadd.f32 %v7521_v40, %v7329_v10  ;;  %v7331_v30 = vadd.f32 %v7330_v46, %v14114_v12  ;;  %8374 = vmatprep.subr.bf16.mxu0 %v12229_v11  ;;  %v12236_v33 = vld [vmem:[%s17140_s1 + $0xb50] ss:$8 sps:$4 sm:$0xff]   ;;  %v12244_v10 = vld [vmem:[%s17140_s1 + $0xb44] ss:$8 sps:$4 sm:$0xff]  }
 0x250   : > { %8567 = vmatprep.subr.bf16.mxu1 %v12232_v13  ;;  %v7332_v34 = vpop.f32.mrf.mxu0  ;;  %v10595_v57 = vcombine.low %v14627_v0, %v14630_v56  ;;  %v10626_v35 = vcombine.high %v14658_v20, %v14667_v27  ;;  %v10628_v12 = vcombine.high %v14670_v39, %v14673_v49  ;;  %v17229_v0 = vld [vmem:[#allocation3_spill] sm:$0xff] }
 0x251   : > { %v7525_v53 = vpop.f32.mrf.mxu1  ;;  %v14690_v48 = vadd.f32 %v7523_v28, %v7331_v30  ;;  %v7333_v40 = vadd.f32 %v7332_v34, %v14125_v18  ;;  %8375 = vmatpush1.bf16.msra.mxu0 %v12227_v44  ;;  %v12241_v44 = vld [vmem:[%s17140_s1 + $0xa44] ss:$8 sps:$4 sm:$0xff]  }
 0x252   : > { %8568 = vmatpush1.bf16.msra.mxu1 %v12230_v58  ;;  %v7334_v11 = vpop.f32.mrf.mxu0  ;;  %8376 = vmatprep.subr.bf16.mxu0 %v12235_v29  ;;  %v17231_v29 = vld [vmem:[#allocation4_spill] sm:$0xff]  ;;  %v14714_v30 = vld [vmem:[%s12769_s10 + $0x340] sm:$0xff] }
 0x253   : > { %v7527_v13 = vpop.f32.mrf.mxu1  ;;  %8569 = vmatprep.subr.bf16.mxu1 %v12238_v62  ;;  %v14701_v18 = vadd.f32 %v7525_v53, %v7333_v40  ;;  %v7335_v56 = vadd.f32 %v7334_v11, %v17229_v0  ;;  %v14717_v34 = vld [vmem:[%s12769_s10 + $0x3c0] sm:$0xff]  ;;  %v14720_v53 = vld [vmem:[%s12769_s10 + $0x348] sm:$0xff] }
 0x254   : > { %v7338_v58 = vpop.f32.mrf.mxu0  ;;  %8029 = vmatmul.mubr.bf16.gmra.mxu0 %v10593_v55  ;;  %v14723_v0 = vld [vmem:[%s12769_s10 + $0x3c8] sm:$0xff] }
 0x255   : > { %v7531_v46 = vpop.f32.mrf.mxu1  ;;  %8222 = vmatmul.mubr.bf16.gmra.mxu1 %v10595_v57  ;;  %v14710_v28 = vadd.f32 %v7527_v13, %v7335_v56  ;;  %v7339_v62 = vadd.f32 %v7338_v58, %v17231_v29  ;;  %8038 = vmatprep.mubr.bf16.mxu0 %v10626_v35  ;;  %v12239_v55 = vld [vmem:[%s17140_s1 + $0xa40] ss:$8 sps:$4 sm:$0xff]   ;;  %v10625_v29 = vcombine.low %v14658_v20, %v14667_v27  ;;  %v12245_v20 = vld [vmem:[%s17140_s1 + $0xa30] ss:$8 sps:$4 sm:$0xff]  }
 0x256   : > { %8231 = vmatprep.mubr.bf16.mxu1 %v10628_v12  ;;  %v7340_v40 = vpop.f32.mrf.mxu0  ;;  %8377 = vmatpush1.bf16.msra.mxu0 %v12233_v5  ;;  %v12242_v35 = vld [vmem:[%s17140_s1 + $0xb40] ss:$8 sps:$4 sm:$0xff]   ;;  %v17233_v12 = vld [vmem:[#allocation5_spill] sm:$0xff] }
 0x257   : > { %17230 = vst [vmem:[#allocation28_spill] sm:$0xff] %v14710_v28  ;;  %v7533_v11 = vpop.f32.mrf.mxu1  ;;  %8570 = vmatpush1.bf16.msra.mxu1 %v12236_v33  ;;  %v14731_v57 = vadd.f32 %v7531_v46, %v7339_v62  ;;  %v7341_v13 = vadd.f32 %v7340_v40, %v17233_v12  ;;  %8378 = vmatprep.subr.bf16.mxu0 %v12241_v44  ;;  %v12247_v5 = vld [vmem:[%s17140_s1 + $0xa34] ss:$8 sps:$4 sm:$0xff]   ;;  %v17234_v44 = vld [vmem:[#allocation6_spill] sm:$0xff] }
 0x258   : > { %8571 = vmatprep.subr.bf16.mxu1 %v12244_v10  ;;  %v12250_v33 = vld [vmem:[%s17140_s1 + $0xb34] ss:$8 sps:$4 sm:$0xff]   ;;  %v7342_v56 = vpop.f32.mrf.mxu0  ;;  %v10627_v46 = vcombine.low %v14670_v39, %v14673_v49  ;;  %v10658_v40 = vcombine.high %v14714_v30, %v14717_v34  ;;  %v10660_v12 = vcombine.high %v14720_v53, %v14723_v0  ;;  %v12248_v49 = vld [vmem:[%s17140_s1 + $0xb30] ss:$8 sps:$4 sm:$0xff]  }
 0x259   : > { %17232 = vst [vmem:[#allocation3_spill] sm:$0xff] %v14731_v57  ;;  %v7535_v58 = vpop.f32.mrf.mxu1  ;;  %v14744_v62 = vadd.f32 %v7533_v11, %v7341_v13  ;;  %v7343_v10 = vadd.f32 %v7342_v56, %v17234_v44  ;;  %v12253_v11 = vld [vmem:[%s17140_s1 + $0xa24] ss:$8 sps:$4 sm:$0xff]  }
 0x25a   : > { %v7344_v57 = vpop.f32.mrf.mxu0  ;;  %8379 = vmatpush1.bf16.msra.mxu0 %v12239_v55  ;;  %v12256_v55 = vld [vmem:[%s17140_s1 + $0xb24] ss:$8 sps:$4 sm:$0xff]  }
 0x25b   : > { %v7537_v28 = vpop.f32.mrf.mxu1  ;;  %8572 = vmatpush1.bf16.msra.mxu1 %v12242_v35  ;;  %v14757_v27 = vadd.f32 %v7535_v58, %v7343_v10  ;;  %v7345_v39 = vadd.f32 %v7344_v57, %v14190_v43  ;;  %8380 = vmatprep.subr.bf16.mxu0 %v12247_v5  ;;  %v17236_v58 = vld [vmem:[#allocation7_spill] sm:$0xff]  ;;  %v14770_v43 = vld [vmem:[%s12769_s10 + $0x440] sm:$0xff] }
 0x25c   : > { %8573 = vmatprep.subr.bf16.mxu1 %v12250_v33  ;;  %v7348_v35 = vpop.f32.mrf.mxu0  ;;  %8039 = vmatmul.mubr.bf16.gmra.mxu0 %v10625_v29  ;;  %v14773_v57 = vld [vmem:[%s12769_s10 + $0x4c0] sm:$0xff]  ;;  %v14776_v5 = vld [vmem:[%s12769_s10 + $0x448] sm:$0xff] }
 0x25d   : > { %17235 = vst [vmem:[#allocation4_spill] sm:$0xff] %v14757_v27  ;;  %v7541_v13 = vpop.f32.mrf.mxu1  ;;  %8232 = vmatmul.mubr.bf16.gmra.mxu1 %v10627_v46  ;;  %v14766_v56 = vadd.f32 %v7537_v28, %v7345_v39  ;;  %v7349_v44 = vadd.f32 %v7348_v35, %v17236_v58  ;;  %8048 = vmatprep.mubr.bf16.mxu0 %v10658_v40  ;;  %v14779_v27 = vld [vmem:[%s12769_s10 + $0x4c8] sm:$0xff] }
 0x25e   : > { %8241 = vmatprep.mubr.bf16.mxu1 %v10660_v12  ;;  %v7350_v33 = vpop.f32.mrf.mxu0  ;;  %8381 = vmatpush1.bf16.msra.mxu0 %v12245_v20  ;;  %v12251_v28 = vld [vmem:[%s17140_s1 + $0xa20] ss:$8 sps:$4 sm:$0xff]   ;;  %v12259_v12 = vld [vmem:[%s17140_s1 + $0xa14] ss:$8 sps:$4 sm:$0xff]   ;;  %v10657_v35 = vcombine.low %v14714_v30, %v14717_v34  ;;  %v12257_v30 = vld [vmem:[%s17140_s1 + $0xa10] ss:$8 sps:$4 sm:$0xff]  }
 0x25f   : > { %v7543_v10 = vpop.f32.mrf.mxu1  ;;  %8574 = vmatpush1.bf16.msra.mxu1 %v12248_v49  ;;  %v12254_v29 = vld [vmem:[%s17140_s1 + $0xb20] ss:$8 sps:$4 sm:$0xff]   ;;  %v14787_v46 = vadd.f32 %v7541_v13, %v7349_v44  ;;  %v7351_v40 = vadd.f32 %v7350_v33, %v14224_v52  ;;  %8382 = vmatprep.subr.bf16.mxu0 %v12253_v11  ;;  %v12262_v20 = vld [vmem:[%s17140_s1 + $0xb14] ss:$8 sps:$4 sm:$0xff]   ;;  %v10659_v13 = vcombine.low %v14720_v53, %v14723_v0  ;;  %v12260_v34 = vld [vmem:[%s17140_s1 + $0xb10] ss:$8 sps:$4 sm:$0xff]  }
 0x260   : > { %8575 = vmatprep.subr.bf16.mxu1 %v12256_v55  ;;  %v7352_v49 = vpop.f32.mrf.mxu0  ;;  %v17239_v52 = vld [vmem:[#allocation8_spill] sm:$0xff]  ;;  %v10690_v55 = vcombine.high %v14770_v43, %v14773_v57  ;;  %v10692_v44 = vcombine.high %v14776_v5, %v14779_v27  ;;  %v17241_v0 = vld [vmem:[#allocation9_spill] sm:$0xff] }
 0x261   : > { %17237 = vst [vmem:[#allocation5_spill] sm:$0xff] %v14787_v46  ;;  %v7545_v39 = vpop.f32.mrf.mxu1  ;;  %v14800_v58 = vadd.f32 %v7543_v10, %v7351_v40  ;;  %v7353_v11 = vadd.f32 %v7352_v49, %v17239_v52  ;;  %v17243_v52 = vld [vmem:[#allocation10_spill] sm:$0xff] }
 0x262   : > { %v7354_v33 = vpop.f32.mrf.mxu0  ;;  %8383 = vmatpush1.bf16.msra.mxu0 %v12251_v28  ;;  %v12265_v28 = vld [vmem:[%s17140_s1 + $0xa04] ss:$8 sps:$4 sm:$0xff]  }
 0x263   : > { %17238 = vst [vmem:[#allocation6_spill] sm:$0xff] %v14800_v58  ;;  %v7547_v46 = vpop.f32.mrf.mxu1  ;;  %8576 = vmatpush1.bf16.msra.mxu1 %v12254_v29  ;;  %v14813_v53 = vadd.f32 %v7545_v39, %v7353_v11  ;;  %v7355_v10 = vadd.f32 %v7354_v33, %v17241_v0  ;;  %8384 = vmatprep.subr.bf16.mxu0 %v12259_v12  ;;  %v12268_v29 = vld [vmem:[%s17140_s1 + $0xb04] ss:$8 sps:$4 sm:$0xff]  }
 0x264   : > { %8577 = vmatprep.subr.bf16.mxu1 %v12262_v20  ;;  %v7358_v40 = vpop.f32.mrf.mxu0  ;;  %8049 = vmatmul.mubr.bf16.gmra.mxu0 %v10657_v35  ;;  %v14826_v12 = vld [vmem:[%s12769_s10 + $0x540] sm:$0xff]  ;;  %v14832_v33 = vld [vmem:[%s12769_s10 + $0x548] sm:$0xff] }
 0x265   : > { %17240 = vst [vmem:[#allocation7_spill] sm:$0xff] %v14813_v53  ;;  %v7551_v49 = vpop.f32.mrf.mxu1  ;;  %8242 = vmatmul.mubr.bf16.gmra.mxu1 %v10659_v13  ;;  %v14822_v39 = vadd.f32 %v7547_v46, %v7355_v10  ;;  %v7359_v11 = vadd.f32 %v7358_v40, %v17243_v52  ;;  %8058 = vmatprep.mubr.bf16.mxu0 %v10690_v55  ;;  %v14829_v20 = vld [vmem:[%s12769_s10 + $0x5c0] sm:$0xff]  ;;  %v14835_v58 = vld [vmem:[%s12769_s10 + $0x5c8] sm:$0xff]  ;;  %v12271_v10 = vld [vmem:[%s17140_s1 + $0xaf4] ss:$8 sps:$4 sm:$0xff]  }
 0x266   : > { %8251 = vmatprep.mubr.bf16.mxu1 %v10692_v44  ;;  %v7360_v0 = vpop.f32.mrf.mxu0  ;;  %8385 = vmatpush1.bf16.msra.mxu0 %v12257_v30  ;;  %v12263_v46 = vld [vmem:[%s17140_s1 + $0xa00] ss:$8 sps:$4 sm:$0xff]   ;;  %v12274_v30 = vld [vmem:[%s17140_s1 + $0xbf4] ss:$8 sps:$4 sm:$0xff]   ;;  %v10689_v52 = vcombine.low %v14770_v43, %v14773_v57  ;;  %v12269_v43 = vld [vmem:[%s17140_s1 + $0xaf0] ss:$8 sps:$4 sm:$0xff]  }
 0x267   : > { %17242 = vst [vmem:[#allocation8_spill] sm:$0xff] %v14822_v39  ;;  %v7553_v53 = vpop.f32.mrf.mxu1  ;;  %8578 = vmatpush1.bf16.msra.mxu1 %v12260_v34  ;;  %v12266_v35 = vld [vmem:[%s17140_s1 + $0xb00] ss:$8 sps:$4 sm:$0xff]   ;;  %v14843_v13 = vadd.f32 %v7551_v49, %v7359_v11  ;;  %8386 = vmatprep.subr.bf16.mxu0 %v12265_v28  ;;  %v10691_v49 = vcombine.low %v14776_v5, %v14779_v27  ;;  %v17247_v28 = vld [vmem:[#allocation12_spill] sm:$0xff]  ;;  %v17249_v5 = vld [vmem:[#allocation13_spill] sm:$0xff] }
 0x268   : > { %v17245_v55 = vld [vmem:[#allocation11_spill] sm:$0xff]  ;;  %8579 = vmatprep.subr.bf16.mxu1 %v12268_v29  ;;  %v7362_v34 = vpop.f32.mrf.mxu0  ;;  %v12272_v27 = vld [vmem:[%s17140_s1 + $0xbf0] ss:$8 sps:$4 sm:$0xff]  }
 0x269   : > { %17244 = vst [vmem:[#allocation9_spill] sm:$0xff] %v14843_v13  ;;  %v7361_v44 = vadd.f32 %v7360_v0, %v17245_v55  ;;  %v7555_v40 = vpop.f32.mrf.mxu1  ;;  %v7363_v29 = vadd.f32 %v7362_v34, %v17247_v28  ;;  %v10722_v0 = vcombine.high %v14826_v12, %v14829_v20  ;;  %v10724_v55 = vcombine.high %v14832_v33, %v14835_v58  ;;  %v17251_v28 = vld [vmem:[#allocation14_spill] sm:$0xff] }
 0x26a   : > { %v7364_v13 = vpop.f32.mrf.mxu0  ;;  %8387 = vmatpush1.bf16.msra.mxu0 %v12263_v46  ;;  %v12277_v46 = vld [vmem:[%s17140_s1 + $0xae4] ss:$8 sps:$4 sm:$0xff]  }
 0x26b   : > { %v14856_v11 = vadd.f32 %v7553_v53, %v7361_v44  ;;  %v7557_v39 = vpop.f32.mrf.mxu1  ;;  %8580 = vmatpush1.bf16.msra.mxu1 %v12266_v35  ;;  %v14869_v57 = vadd.f32 %v7555_v40, %v7363_v29  ;;  %v7365_v53 = vadd.f32 %v7364_v13, %v17249_v5  ;;  %8388 = vmatprep.subr.bf16.mxu0 %v12271_v10  ;;  %v12280_v35 = vld [vmem:[%s17140_s1 + $0xbe4] ss:$8 sps:$4 sm:$0xff]  }
 0x26c   : > { %8581 = vmatprep.subr.bf16.mxu1 %v12274_v30  ;;  %v7368_v44 = vpop.f32.mrf.mxu0  ;;  %8059 = vmatmul.mubr.bf16.gmra.mxu0 %v10689_v52  ;;  %v14882_v13 = vld [vmem:[%s12769_s10 + $0x640] sm:$0xff]  ;;  %v14888_v30 = vld [vmem:[%s12769_s10 + $0x648] sm:$0xff] }
 0x26d   : > { %17246 = vst [vmem:[#allocation10_spill] sm:$0xff] %v14856_v11  ;;  %17248 = vst [vmem:[#allocation11_spill] sm:$0xff] %v14869_v57  ;;  %v7561_v34 = vpop.f32.mrf.mxu1  ;;  %8252 = vmatmul.mubr.bf16.gmra.mxu1 %v10691_v49  ;;  %v14878_v40 = vadd.f32 %v7557_v39, %v7365_v53  ;;  %v7369_v29 = vadd.f32 %v7368_v44, %v17251_v28  ;;  %8068 = vmatprep.mubr.bf16.mxu0 %v10722_v0  ;;  %v14885_v10 = vld [vmem:[%s12769_s10 + $0x6c0] sm:$0xff]  ;;  %v14891_v11 = vld [vmem:[%s12769_s10 + $0x6c8] sm:$0xff] }
 0x26e   : > { %8261 = vmatprep.mubr.bf16.mxu1 %v10724_v55  ;;  %v7370_v5 = vpop.f32.mrf.mxu0  ;;  %8389 = vmatpush2.bf16.msra.mxu0 %v12269_v43  ;;  %v12275_v39 = vld [vmem:[%s17140_s1 + $0xae0] ss:$8 sps:$4 sm:$0xff]   ;;  %v12283_v53 = vld [vmem:[%s17140_s1 + $0xad4] ss:$8 sps:$4 sm:$0xff]   ;;  %v10721_v28 = vcombine.low %v14826_v12, %v14829_v20  ;;  %v12281_v12 = vld [vmem:[%s17140_s1 + $0xad0] ss:$8 sps:$4 sm:$0xff]  }
 0x26f   : > { %17250 = vst [vmem:[#allocation12_spill] sm:$0xff] %v14878_v40  ;;  %v7563_v57 = vpop.f32.mrf.mxu1  ;;  %8582 = vmatpush2.bf16.msra.mxu1 %v12272_v27  ;;  %v12278_v52 = vld [vmem:[%s17140_s1 + $0xbe0] ss:$8 sps:$4 sm:$0xff]   ;;  %v14899_v49 = vadd.f32 %v7561_v34, %v7369_v29  ;;  %8390 = vmatprep.subr.bf16.mxu0 %v12277_v46  ;;  %v12286_v43 = vld [vmem:[%s17140_s1 + $0xbd4] ss:$8 sps:$4 sm:$0xff]   ;;  %v10723_v34 = vcombine.low %v14832_v33, %v14835_v58 }
 0x270   : > { %v17253_v0 = vld [vmem:[#allocation15_spill] sm:$0xff]  ;;  %8583 = vmatprep.subr.bf16.mxu1 %v12280_v35  ;;  %v7372_v27 = vpop.f32.mrf.mxu0  ;;  %v17255_v46 = vld [vmem:[#allocation16_spill] sm:$0xff]  ;;  %v17257_v33 = vld [vmem:[#allocation17_spill] sm:$0xff] }
 0x271   : > { %17252 = vst [vmem:[#allocation13_spill] sm:$0xff] %v14899_v49  ;;  %v7371_v55 = vadd.f32 %v7370_v5, %v17253_v0  ;;  %v7565_v44 = vpop.f32.mrf.mxu1  ;;  %v7373_v35 = vadd.f32 %v7372_v27, %v17255_v46  ;;  %v10754_v5 = vcombine.high %v14882_v13, %v14885_v10  ;;  %v10756_v0 = vcombine.high %v14888_v30, %v14891_v11  ;;  %v12284_v58 = vld [vmem:[%s17140_s1 + $0xbd0] ss:$8 sps:$4 sm:$0xff]   ;;  %v17259_v46 = vld [vmem:[#allocation18_spill] sm:$0xff] }
 0x272   : > { %v7374_v49 = vpop.f32.mrf.mxu0  ;;  %8391 = vmatpush2.bf16.msra.mxu0 %v12275_v39  ;;  %v12289_v39 = vld [vmem:[%s17140_s1 + $0xac4] ss:$8 sps:$4 sm:$0xff]  }
 0x273   : > { %v14912_v29 = vadd.f32 %v7563_v57, %v7371_v55  ;;  %v7567_v40 = vpop.f32.mrf.mxu1  ;;  %8584 = vmatpush2.bf16.msra.mxu1 %v12278_v52  ;;  %v14925_v20 = vadd.f32 %v7565_v44, %v7373_v35  ;;  %v7375_v57 = vadd.f32 %v7374_v49, %v17257_v33  ;;  %8392 = vmatprep.subr.bf16.mxu0 %v12283_v53  ;;  %v12292_v52 = vld [vmem:[%s17140_s1 + $0xbc4] ss:$8 sps:$4 sm:$0xff]  }
 0x274   : > { %8585 = vmatprep.subr.bf16.mxu1 %v12286_v43  ;;  %v7378_v55 = vpop.f32.mrf.mxu0  ;;  %8069 = vmatmul.mubr.bf16.gmra.mxu0 %v10721_v28  ;;  %v14938_v49 = vld [vmem:[%s12769_s10 + $0x740] sm:$0xff]  ;;  %v14944_v43 = vld [vmem:[%s12769_s10 + $0x748] sm:$0xff] }
 0x275   : > { %17254 = vst [vmem:[#allocation14_spill] sm:$0xff] %v14912_v29  ;;  %17256 = vst [vmem:[#allocation15_spill] sm:$0xff] %v14925_v20  ;;  %v7571_v27 = vpop.f32.mrf.mxu1  ;;  %8262 = vmatmul.mubr.bf16.gmra.mxu1 %v10723_v34  ;;  %v14934_v44 = vadd.f32 %v7567_v40, %v7375_v57  ;;  %v7379_v35 = vadd.f32 %v7378_v55, %v17259_v46  ;;  %8078 = vmatprep.mubr.bf16.mxu0 %v10754_v5  ;;  %v14941_v53 = vld [vmem:[%s12769_s10 + $0x7c0] sm:$0xff]  ;;  %v14947_v29 = vld [vmem:[%s12769_s10 + $0x7c8] sm:$0xff] }
 0x276   : > { %8271 = vmatprep.mubr.bf16.mxu1 %v10756_v0  ;;  %v7380_v33 = vpop.f32.mrf.mxu0  ;;  %8393 = vmatpush2.bf16.msra.mxu0 %v12281_v12  ;;  %v12287_v40 = vld [vmem:[%s17140_s1 + $0xac0] ss:$8 sps:$4 sm:$0xff]   ;;  %v12295_v57 = vld [vmem:[%s17140_s1 + $0xab4] ss:$8 sps:$4 sm:$0xff]   ;;  %v10753_v46 = vcombine.low %v14882_v13, %v14885_v10  ;;  %v12293_v13 = vld [vmem:[%s17140_s1 + $0xab0] ss:$8 sps:$4 sm:$0xff]  }
 0x277   : > { %17258 = vst [vmem:[#allocation16_spill] sm:$0xff] %v14934_v44  ;;  %v7573_v20 = vpop.f32.mrf.mxu1  ;;  %8586 = vmatpush2.bf16.msra.mxu1 %v12284_v58  ;;  %v12290_v28 = vld [vmem:[%s17140_s1 + $0xbc0] ss:$8 sps:$4 sm:$0xff]   ;;  %v14955_v34 = vadd.f32 %v7571_v27, %v7379_v35  ;;  %8394 = vmatprep.subr.bf16.mxu0 %v12289_v39  ;;  %v12298_v12 = vld [vmem:[%s17140_s1 + $0xbb4] ss:$8 sps:$4 sm:$0xff]   ;;  %v10755_v27 = vcombine.low %v14888_v30, %v14891_v11 }
 0x278   : > { %v17261_v5 = vld [vmem:[#allocation19_spill] sm:$0xff]  ;;  %8587 = vmatprep.subr.bf16.mxu1 %v12292_v52  ;;  %v7382_v58 = vpop.f32.mrf.mxu0  ;;  %v17263_v39 = vld [vmem:[#allocation20_spill] sm:$0xff]  ;;  %v17265_v30 = vld [vmem:[#allocation21_spill] sm:$0xff] }
 0x279   : > { %17260 = vst [vmem:[#allocation17_spill] sm:$0xff] %v14955_v34  ;;  %v7381_v0 = vadd.f32 %v7380_v33, %v17261_v5  ;;  %v7575_v55 = vpop.f32.mrf.mxu1  ;;  %v7383_v52 = vadd.f32 %v7382_v58, %v17263_v39  ;;  %v10786_v33 = vcombine.high %v14938_v49, %v14941_v53  ;;  %v10788_v5 = vcombine.high %v14944_v43, %v14947_v29  ;;  %v12296_v11 = vld [vmem:[%s17140_s1 + $0xbb0] ss:$8 sps:$4 sm:$0xff]   ;;  %v17267_v39 = vld [vmem:[#allocation22_spill] sm:$0xff] }
 0x27a   : > { %v7384_v34 = vpop.f32.mrf.mxu0  ;;  %8395 = vmatpush2.bf16.msra.mxu0 %v12287_v40  ;;  %v12301_v40 = vld [vmem:[%s17140_s1 + $0xaa4] ss:$8 sps:$4 sm:$0xff]  }
 0x27b   : > { %v14968_v35 = vadd.f32 %v7573_v20, %v7381_v0  ;;  %v7577_v44 = vpop.f32.mrf.mxu1  ;;  %8588 = vmatpush2.bf16.msra.mxu1 %v12290_v28  ;;  %v14981_v10 = vadd.f32 %v7575_v55, %v7383_v52  ;;  %v7385_v20 = vadd.f32 %v7384_v34, %v17265_v30  ;;  %8396 = vmatprep.subr.bf16.mxu0 %v12295_v57  ;;  %v12304_v28 = vld [vmem:[%s17140_s1 + $0xba4] ss:$8 sps:$4 sm:$0xff]  }
 0x27c   : > { %8589 = vmatprep.subr.bf16.mxu1 %v12298_v12  ;;  %v7388_v0 = vpop.f32.mrf.mxu0  ;;  %8079 = vmatmul.mubr.bf16.gmra.mxu0 %v10753_v46  ;;  %v14994_v34 = vld [vmem:[%s12769_s10 + $0x840] sm:$0xff]  ;;  %v15000_v12 = vld [vmem:[%s12769_s10 + $0x848] sm:$0xff] }
 0x27d   : > { %17262 = vst [vmem:[#allocation18_spill] sm:$0xff] %v14968_v35  ;;  %17264 = vst [vmem:[#allocation19_spill] sm:$0xff] %v14981_v10  ;;  %v7581_v58 = vpop.f32.mrf.mxu1  ;;  %8272 = vmatmul.mubr.bf16.gmra.mxu1 %v10755_v27  ;;  %v14990_v55 = vadd.f32 %v7577_v44, %v7385_v20  ;;  %v7389_v52 = vadd.f32 %v7388_v0, %v17267_v39  ;;  %8088 = vmatprep.mubr.bf16.mxu0 %v10786_v33  ;;  %v14997_v57 = vld [vmem:[%s12769_s10 + $0x8c0] sm:$0xff]  ;;  %v15003_v35 = vld [vmem:[%s12769_s10 + $0x8c8] sm:$0xff] }
 0x27e   : > { %8281 = vmatprep.mubr.bf16.mxu1 %v10788_v5  ;;  %v7390_v30 = vpop.f32.mrf.mxu0  ;;  %8397 = vmatpush2.bf16.msra.mxu0 %v12293_v13  ;;  %v12299_v44 = vld [vmem:[%s17140_s1 + $0xaa0] ss:$8 sps:$4 sm:$0xff]   ;;  %v12307_v20 = vld [vmem:[%s17140_s1 + $0xa94] ss:$8 sps:$4 sm:$0xff]   ;;  %v10785_v39 = vcombine.low %v14938_v49, %v14941_v53  ;;  %v12305_v49 = vld [vmem:[%s17140_s1 + $0xa90] ss:$8 sps:$4 sm:$0xff]  }
 0x27f   : > { %17266 = vst [vmem:[#allocation20_spill] sm:$0xff] %v14990_v55  ;;  %v7583_v10 = vpop.f32.mrf.mxu1  ;;  %8590 = vmatpush2.bf16.msra.mxu1 %v12296_v11  ;;  %v12302_v46 = vld [vmem:[%s17140_s1 + $0xba0] ss:$8 sps:$4 sm:$0xff]   ;;  %v15011_v27 = vadd.f32 %v7581_v58, %v7389_v52  ;;  %8398 = vmatprep.subr.bf16.mxu0 %v12301_v40  ;;  %v12310_v13 = vld [vmem:[%s17140_s1 + $0xb94] ss:$8 sps:$4 sm:$0xff]   ;;  %v10787_v58 = vcombine.low %v14944_v43, %v14947_v29 }
 0x280   : > { %v17269_v33 = vld [vmem:[#allocation23_spill] sm:$0xff]  ;;  %8591 = vmatprep.subr.bf16.mxu1 %v12304_v28  ;;  %v7392_v11 = vpop.f32.mrf.mxu0  ;;  %v17270_v40 = vld [vmem:[#allocation24_spill] sm:$0xff] }
 0x281   : > { %17268 = vst [vmem:[#allocation21_spill] sm:$0xff] %v15011_v27  ;;  %v7391_v5 = vadd.f32 %v7390_v30, %v17269_v33  ;;  %v7585_v0 = vpop.f32.mrf.mxu1  ;;  %v7393_v28 = vadd.f32 %v7392_v11, %v17270_v40  ;;  %v10818_v30 = vcombine.high %v14994_v34, %v14997_v57  ;;  %v10820_v33 = vcombine.high %v15000_v12, %v15003_v35  ;;  %v12308_v29 = vld [vmem:[%s17140_s1 + $0xb90] ss:$8 sps:$4 sm:$0xff]  }
 0x282   : > { %v7394_v27 = vpop.f32.mrf.mxu0  ;;  %8399 = vmatpush2.bf16.msra.mxu0 %v12299_v44  ;;  %v12316_v44 = vld [vmem:[%s17140_s1 + $0xb84] ss:$8 sps:$4 sm:$0xff]  }
 0x283   : > { %v15024_v52 = vadd.f32 %v7583_v10, %v7391_v5  ;;  %v7587_v55 = vpop.f32.mrf.mxu1  ;;  %8592 = vmatpush2.bf16.msra.mxu1 %v12302_v46  ;;  %v15037_v53 = vadd.f32 %v7585_v0, %v7393_v28  ;;  %v7395_v43 = vadd.f32 %v7394_v27, %v14470_v45  ;;  %8400 = vmatprep.subr.bf16.mxu0 %v12307_v20  ;;  %v12313_v10 = vld [vmem:[%s17140_s1 + $0xa84] ss:$8 sps:$4 sm:$0xff]  }
 0x284   : > { %8593 = vmatprep.subr.bf16.mxu1 %v12310_v13  ;;  %v7398_v46 = vpop.f32.mrf.mxu0  ;;  %8089 = vmatmul.mubr.bf16.gmra.mxu0 %v10785_v39  ;;  %v582_v45 = vld [vmem:[%s12769_s10 + $0x940] sm:$0xff]  ;;  %v583_v20 = vld [vmem:[%s12769_s10 + $0x948] sm:$0xff] }
 0x285   : > { %17271 = vst [vmem:[#allocation22_spill] sm:$0xff] %v15037_v53  ;;  %v7591_v5 = vpop.f32.mrf.mxu1  ;;  %8282 = vmatmul.mubr.bf16.gmra.mxu1 %v10787_v58  ;;  %v15046_v11 = vadd.f32 %v7587_v55, %v7395_v43  ;;  %v7399_v0 = vadd.f32 %v7398_v46, %v14483_v8  ;;  %8098 = vmatprep.mubr.bf16.mxu0 %v10818_v30  ;;  %v598_v27 = vld [vmem:[%s12769_s10 + $0x9c0] sm:$0xff]  ;;  %v599_v28 = vld [vmem:[%s12769_s10 + $0x9c8] sm:$0xff]  ;;  %v12319_v58 = vld [vmem:[%s17140_s1 + $0xc74] ss:$8 sps:$4 sm:$0xff]  }
 0x286   : > { %8291 = vmatprep.mubr.bf16.mxu1 %v10820_v33  ;;  %v7400_v13 = vpop.f32.mrf.mxu0  ;;  %8401 = vmatpush2.bf16.msra.mxu0 %v12305_v49  ;;  %v12311_v53 = vld [vmem:[%s17140_s1 + $0xa80] ss:$8 sps:$4 sm:$0xff]   ;;  %v12322_v30 = vld [vmem:[%s17140_s1 + $0xd74] ss:$8 sps:$4 sm:$0xff]   ;;  %v10819_v43 = vcombine.low %v15000_v12, %v15003_v35 }
 0x287   : > { %v7593_v40 = vpop.f32.mrf.mxu1  ;;  %8594 = vmatpush2.bf16.msra.mxu1 %v12308_v29  ;;  %v12314_v55 = vld [vmem:[%s17140_s1 + $0xb80] ss:$8 sps:$4 sm:$0xff]   ;;  %v15059_v39 = vadd.f32 %v7591_v5, %v7399_v0  ;;  %v7401_v8 = vadd.f32 %v7400_v13, %v14496_v50  ;;  %8402 = vmatprep.subr.bf16.mxu0 %v12313_v10  ;;  %v10817_v29 = vcombine.low %v14994_v34, %v14997_v57 }
 0x288   : > { %8595 = vmatprep.subr.bf16.mxu1 %v12316_v44  ;;  %v7402_v33 = vpop.f32.mrf.mxu0  ;;  %v10850_v10 = vcombine.high %v582_v45, %v598_v27  ;;  %v10852_v44 = vcombine.high %v583_v20, %v599_v28 }
 0x289   : > { %v7595_v49 = vpop.f32.mrf.mxu1  ;;  %v15072_v46 = vadd.f32 %v7593_v40, %v7401_v8  ;;  %v7403_v50 = vadd.f32 %v7402_v33, %v14499_v36  ;;  %v630_v8 = vld [vmem:[%s12769_s10 + $0xac0] sm:$0xff]  ;;  %v615_v33 = vld [vmem:[%s12769_s10 + $0xa48] sm:$0xff] }
 0x28a   : > { %v7404_v5 = vpop.f32.mrf.mxu0  ;;  %8403 = vmatpush2.bf16.msra.mxu0 %v12311_v53  ;;  %v614_v53 = vld [vmem:[%s12769_s10 + $0xa40] sm:$0xff] }
 0x28b   : > { %v7597_v0 = vpop.f32.mrf.mxu1  ;;  %8596 = vmatpush2.bf16.msra.mxu1 %v12314_v55  ;;  %v15075_v13 = vadd.f32 %v7595_v49, %v7403_v50  ;;  %v7405_v34 = vadd.f32 %v7404_v5, %v14502_v2  ;;  %8758 = vmatprep.subr.bf16.mxu0 %v12319_v58  ;;  %v631_v49 = vld [vmem:[%s12769_s10 + $0xac8] sm:$0xff] }
 0x28c   : > { %8951 = vmatprep.subr.bf16.mxu1 %v12322_v30  ;;  %v7634_v35 = vpop.f32.mrf.mxu0  ;;  %8099 = vmatmul.mubr.bf16.gmra.mxu0 %v10817_v29  ;;  %v10849_v29 = vcombine.low %v582_v45, %v598_v27 }
 0x28d   : > { %v7827_v57 = vpop.f32.mrf.mxu1  ;;  %8292 = vmatmul.mubr.bf16.gmra.mxu1 %v10819_v43  ;;  %v15078_v36 = vadd.f32 %v7597_v0, %v7405_v34  ;;  %v7635_v12 = vadd.f32 %v7634_v35, %v14509_v19  ;;  %8108 = vmatprep.mubr.bf16.mxu0 %v10850_v10  ;;  %v10851_v43 = vcombine.low %v583_v20, %v599_v28 }
 0x28e   : > { %8301 = vmatprep.mubr.bf16.mxu1 %v10852_v44  ;;  %v7636_v40 = vpop.f32.mrf.mxu0  ;;  %v10882_v10 = vcombine.high %v614_v53, %v630_v8  ;;  %v10884_v44 = vcombine.high %v615_v33, %v631_v49 }
 0x28f   : > { %v7829_v55 = vpop.f32.mrf.mxu1  ;;  %v15085_v2 = vadd.f32 %v7827_v57, %v7635_v12  ;;  %v7637_v58 = vadd.f32 %v7636_v40, %v14512_v37  ;;  %v662_v40 = vld [vmem:[%s12769_s10 + $0xbc0] sm:$0xff] }
 0x290   : > { %v7638_v30 = vpop.f32.mrf.mxu0 }
 0x291   : > { %v7831_v50 = vpop.f32.mrf.mxu1  ;;  %v15088_v5 = vadd.f32 %v7829_v55, %v7637_v58  ;;  %v7639_v19 = vadd.f32 %v7638_v30, %v14515_v51  ;;  %v646_v51 = vld [vmem:[%s12769_s10 + $0xb40] sm:$0xff]  ;;  %v647_v55 = vld [vmem:[%s12769_s10 + $0xb48] sm:$0xff] }
 0x292   : > { %v7640_v0 = vpop.f32.mrf.mxu0  ;;  %v663_v58 = vld [vmem:[%s12769_s10 + $0xbc8] sm:$0xff] }
 0x293   : > { %v7833_v34 = vpop.f32.mrf.mxu1  ;;  %v15091_v35 = vadd.f32 %v7831_v50, %v7639_v19  ;;  %v7641_v37 = vadd.f32 %v7640_v0, %v14518_v1 }
 0x294   : > { %v7644_v57 = vpop.f32.mrf.mxu0  ;;  %8109 = vmatmul.mubr.bf16.gmra.mxu0 %v10849_v29  ;;  %v10881_v29 = vcombine.low %v614_v53, %v630_v8 }
 0x295   : > { %v7837_v12 = vpop.f32.mrf.mxu1  ;;  %8302 = vmatmul.mubr.bf16.gmra.mxu1 %v10851_v43  ;;  %v15094_v45 = vadd.f32 %v7833_v34, %v7641_v37  ;;  %v7645_v27 = vadd.f32 %v7644_v57, %v14525_v7  ;;  %8118 = vmatprep.mubr.bf16.mxu0 %v10882_v10  ;;  %v10883_v43 = vcombine.low %v615_v33, %v631_v49 }
 0x296   : > { %8311 = vmatprep.mubr.bf16.mxu1 %v10884_v44  ;;  %v7646_v20 = vpop.f32.mrf.mxu0  ;;  %v10914_v10 = vcombine.high %v646_v51, %v662_v40  ;;  %v10916_v44 = vcombine.high %v647_v55, %v663_v58 }
 0x297   : > { %v7839_v28 = vpop.f32.mrf.mxu1  ;;  %v15101_v30 = vadd.f32 %v7837_v12, %v7645_v27  ;;  %v7647_v1 = vadd.f32 %v7646_v20, %v14528_v16  ;;  %v694_v20 = vld [vmem:[%s12769_s10 + $0xcc0] sm:$0xff] }
 0x298   : > { %v7648_v50 = vpop.f32.mrf.mxu0 }
 0x299   : > { %v7841_v19 = vpop.f32.mrf.mxu1  ;;  %v15104_v0 = vadd.f32 %v7839_v28, %v7647_v1  ;;  %v7649_v7 = vadd.f32 %v7648_v50, %v14531_v9  ;;  %v678_v9 = vld [vmem:[%s12769_s10 + $0xc40] sm:$0xff]  ;;  %v679_v28 = vld [vmem:[%s12769_s10 + $0xc48] sm:$0xff] }
 0x29a   : > { %v7650_v34 = vpop.f32.mrf.mxu0  ;;  %v695_v1 = vld [vmem:[%s12769_s10 + $0xcc8] sm:$0xff] }
 0x29b   : > { %v7843_v37 = vpop.f32.mrf.mxu1  ;;  %v15107_v57 = vadd.f32 %v7841_v19, %v7649_v7  ;;  %v7651_v16 = vadd.f32 %v7650_v34, %v14534_v60 }
 0x29c   : > { %v7654_v12 = vpop.f32.mrf.mxu0  ;;  %8119 = vmatmul.mubr.bf16.gmra.mxu0 %v10881_v29  ;;  %v10913_v29 = vcombine.low %v646_v51, %v662_v40 }
 0x29d   : > { %v7847_v27 = vpop.f32.mrf.mxu1  ;;  %8312 = vmatmul.mubr.bf16.gmra.mxu1 %v10883_v43  ;;  %v15110_v53 = vadd.f32 %v7843_v37, %v7651_v16  ;;  %v7655_v8 = vadd.f32 %v7654_v12, %v14541_v54  ;;  %8128 = vmatprep.mubr.bf16.mxu0 %v10914_v10  ;;  %v10915_v43 = vcombine.low %v647_v55, %v663_v58 }
 0x29e   : > { %8321 = vmatprep.mubr.bf16.mxu1 %v10916_v44  ;;  %v7656_v33 = vpop.f32.mrf.mxu0  ;;  %v10946_v10 = vcombine.high %v678_v9, %v694_v20  ;;  %v10948_v44 = vcombine.high %v679_v28, %v695_v1 }
 0x29f   : > { %v7849_v49 = vpop.f32.mrf.mxu1  ;;  %v15117_v50 = vadd.f32 %v7847_v27, %v7655_v8  ;;  %v7657_v60 = vadd.f32 %v7656_v33, %v14544_v59  ;;  %v726_v33 = vld [vmem:[%s12769_s10 + $0xdc0] sm:$0xff] }
 0x2a0   : > { %v7658_v19 = vpop.f32.mrf.mxu0 }
 0x2a1   : > { %v7851_v7 = vpop.f32.mrf.mxu1  ;;  %v15120_v34 = vadd.f32 %v7849_v49, %v7657_v60  ;;  %v7659_v54 = vadd.f32 %v7658_v19, %v14547_v41  ;;  %v710_v41 = vld [vmem:[%s12769_s10 + $0xd40] sm:$0xff]  ;;  %v711_v49 = vld [vmem:[%s12769_s10 + $0xd48] sm:$0xff] }
 0x2a2   : > { %v7660_v37 = vpop.f32.mrf.mxu0  ;;  %v727_v60 = vld [vmem:[%s12769_s10 + $0xdc8] sm:$0xff] }
 0x2a3   : > { %v7853_v16 = vpop.f32.mrf.mxu1  ;;  %v15123_v12 = vadd.f32 %v7851_v7, %v7659_v54  ;;  %v7661_v59 = vadd.f32 %v7660_v37, %v14550_v31 }
 0x2a4   : > { %v7664_v27 = vpop.f32.mrf.mxu0  ;;  %8129 = vmatmul.mubr.bf16.gmra.mxu0 %v10913_v29  ;;  %v10945_v29 = vcombine.low %v678_v9, %v694_v20 }
 0x2a5   : > { %v7857_v8 = vpop.f32.mrf.mxu1  ;;  %8322 = vmatmul.mubr.bf16.gmra.mxu1 %v10915_v43  ;;  %v15126_v51 = vadd.f32 %v7853_v16, %v7661_v59  ;;  %v7665_v40 = vadd.f32 %v7664_v27, %v14557_v22  ;;  %8138 = vmatprep.mubr.bf16.mxu0 %v10946_v10  ;;  %v10947_v43 = vcombine.low %v679_v28, %v695_v1 }
 0x2a6   : > { %8331 = vmatprep.mubr.bf16.mxu1 %v10948_v44  ;;  %v7666_v55 = vpop.f32.mrf.mxu0  ;;  %v10978_v10 = vcombine.high %v710_v41, %v726_v33  ;;  %v10980_v44 = vcombine.high %v711_v49, %v727_v60 }
 0x2a7   : > { %v7859_v58 = vpop.f32.mrf.mxu1  ;;  %v15133_v19 = vadd.f32 %v7857_v8, %v7665_v40  ;;  %v7667_v31 = vadd.f32 %v7666_v55, %v14560_v63  ;;  %v758_v55 = vld [vmem:[%s12769_s10 + $0xec0] sm:$0xff] }
 0x2a8   : > { %v7668_v7 = vpop.f32.mrf.mxu0 }
 0x2a9   : > { %v7861_v54 = vpop.f32.mrf.mxu1  ;;  %v15136_v37 = vadd.f32 %v7859_v58, %v7667_v31  ;;  %v7669_v22 = vadd.f32 %v7668_v7, %v14563_v24  ;;  %v742_v24 = vld [vmem:[%s12769_s10 + $0xe40] sm:$0xff]  ;;  %v743_v58 = vld [vmem:[%s12769_s10 + $0xe48] sm:$0xff] }
 0x2aa   : > { %v7670_v16 = vpop.f32.mrf.mxu0  ;;  %v759_v31 = vld [vmem:[%s12769_s10 + $0xec8] sm:$0xff] }
 0x2ab   : > { %v7863_v59 = vpop.f32.mrf.mxu1  ;;  %v15139_v27 = vadd.f32 %v7861_v54, %v7669_v22  ;;  %v7671_v63 = vadd.f32 %v7670_v16, %v14566_v17 }
 0x2ac   : > { %v7674_v8 = vpop.f32.mrf.mxu0  ;;  %8139 = vmatmul.mubr.bf16.gmra.mxu0 %v10945_v29  ;;  %v10977_v29 = vcombine.low %v710_v41, %v726_v33 }
 0x2ad   : > { %v7867_v40 = vpop.f32.mrf.mxu1  ;;  %8332 = vmatmul.mubr.bf16.gmra.mxu1 %v10947_v43  ;;  %v15142_v9 = vadd.f32 %v7863_v59, %v7671_v63  ;;  %v7675_v20 = vadd.f32 %v7674_v8, %v14573_v6  ;;  %8148 = vmatprep.mubr.bf16.mxu0 %v10978_v10  ;;  %v10979_v43 = vcombine.low %v711_v49, %v727_v60 }
 0x2ae   : > { %8341 = vmatprep.mubr.bf16.mxu1 %v10980_v44  ;;  %v7676_v28 = vpop.f32.mrf.mxu0  ;;  %v11010_v10 = vcombine.high %v742_v24, %v758_v55  ;;  %v11012_v44 = vcombine.high %v743_v58, %v759_v31 }
 0x2af   : > { %v7869_v1 = vpop.f32.mrf.mxu1  ;;  %v15149_v7 = vadd.f32 %v7867_v40, %v7675_v20  ;;  %v7677_v17 = vadd.f32 %v7676_v28, %v14576_v14  ;;  %v790_v28 = vld [vmem:[%s12769_s10 + $0xfc0] sm:$0xff] }
 0x2b0   : > { %v7678_v54 = vpop.f32.mrf.mxu0 }
 0x2b1   : > { %v7871_v22 = vpop.f32.mrf.mxu1  ;;  %v15152_v16 = vadd.f32 %v7869_v1, %v7677_v17  ;;  %v7679_v6 = vadd.f32 %v7678_v54, %v14579_v15  ;;  %v774_v15 = vld [vmem:[%s12769_s10 + $0xf40] sm:$0xff]  ;;  %v775_v1 = vld [vmem:[%s12769_s10 + $0xf48] sm:$0xff] }
 0x2b2   : > { %v7680_v59 = vpop.f32.mrf.mxu0  ;;  %v791_v17 = vld [vmem:[%s12769_s10 + $0xfc8] sm:$0xff] }
 0x2b3   : > { %v7873_v63 = vpop.f32.mrf.mxu1  ;;  %v15155_v8 = vadd.f32 %v7871_v22, %v7679_v6  ;;  %v7681_v14 = vadd.f32 %v7680_v59, %v14582_v61 }
 0x2b4   : > { %v7684_v40 = vpop.f32.mrf.mxu0  ;;  %8149 = vmatmul.mubr.bf16.gmra.mxu0 %v10977_v29  ;;  %v11009_v29 = vcombine.low %v742_v24, %v758_v55 }
 0x2b5   : > { %v7877_v20 = vpop.f32.mrf.mxu1  ;;  %8342 = vmatmul.mubr.bf16.gmra.mxu1 %v10979_v43  ;;  %v15158_v41 = vadd.f32 %v7873_v63, %v7681_v14  ;;  %v7685_v33 = vadd.f32 %v7684_v40, %v14589_v4  ;;  %8158 = vmatprep.mubr.bf16.mxu0 %v11010_v10  ;;  %v11011_v43 = vcombine.low %v743_v58, %v759_v31 }
 0x2b6   : > { %8351 = vmatprep.mubr.bf16.mxu1 %v11012_v44  ;;  %v7686_v49 = vpop.f32.mrf.mxu0  ;;  %v11042_v10 = vcombine.high %v774_v15, %v790_v28  ;;  %v11044_v44 = vcombine.high %v775_v1, %v791_v17 }
 0x2b7   : > { %v7879_v60 = vpop.f32.mrf.mxu1  ;;  %v15165_v54 = vadd.f32 %v7877_v20, %v7685_v33  ;;  %v7687_v61 = vadd.f32 %v7686_v49, %v14592_v3  ;;  %v312_v49 = vld [vmem:[%s12769_s10 + $0xd0] sm:$0xff] }
 0x2b8   : > { %v7688_v22 = vpop.f32.mrf.mxu0 }
 0x2b9   : > { %v7881_v6 = vpop.f32.mrf.mxu1  ;;  %v15168_v59 = vadd.f32 %v7879_v60, %v7687_v61  ;;  %v7689_v4 = vadd.f32 %v7688_v22, %v14595_v21  ;;  %v296_v21 = vld [vmem:[%s12769_s10 + $0x50] sm:$0xff]  ;;  %v297_v60 = vld [vmem:[%s12769_s10 + $0x58] sm:$0xff] }
 0x2ba   : > { %v7690_v63 = vpop.f32.mrf.mxu0  ;;  %v313_v61 = vld [vmem:[%s12769_s10 + $0xd8] sm:$0xff] }
 0x2bb   : > { %v7883_v14 = vpop.f32.mrf.mxu1  ;;  %v15171_v40 = vadd.f32 %v7881_v6, %v7689_v4  ;;  %v7691_v3 = vadd.f32 %v7690_v63, %v14598_v47 }
 0x2bc   : > { %v7694_v20 = vpop.f32.mrf.mxu0  ;;  %8159 = vmatmul.mubr.bf16.gmra.mxu0 %v11009_v29  ;;  %v11041_v29 = vcombine.low %v774_v15, %v790_v28 }
 0x2bd   : > { %v7887_v33 = vpop.f32.mrf.mxu1  ;;  %8352 = vmatmul.mubr.bf16.gmra.mxu1 %v11011_v43  ;;  %v15174_v24 = vadd.f32 %v7883_v14, %v7691_v3  ;;  %v7695_v55 = vadd.f32 %v7694_v20, %v14605_v32  ;;  %8168 = vmatprep.mubr.bf16.mxu0 %v11042_v10  ;;  %v11043_v43 = vcombine.low %v775_v1, %v791_v17  ;;  %v15194_v17 = vld [vmem:[%s12769_s10 + $0x150] sm:$0xff] }
 0x2be   : > { %8361 = vmatprep.mubr.bf16.mxu1 %v11044_v44  ;;  %v7696_v58 = vpop.f32.mrf.mxu0  ;;  %v10566_v10 = vcombine.high %v296_v21, %v312_v49  ;;  %v10568_v44 = vcombine.high %v297_v60, %v313_v61 }
 0x2bf   : > { %v7889_v31 = vpop.f32.mrf.mxu1  ;;  %v15181_v22 = vadd.f32 %v7887_v33, %v7695_v55  ;;  %v7697_v47 = vadd.f32 %v7696_v58, %v14608_v38 }
 0x2c0   : > { %v7698_v6 = vpop.f32.mrf.mxu0 }
 0x2c1   : > { %v7891_v4 = vpop.f32.mrf.mxu1  ;;  %v15184_v63 = vadd.f32 %v7889_v31, %v7697_v47  ;;  %v7699_v32 = vadd.f32 %v7698_v6, %v14611_v23  ;;  %v17273_v31 = vld [vmem:[#allocation25_spill] sm:$0xff] }
 0x2c2   : > { %v7700_v14 = vpop.f32.mrf.mxu0  ;;  %v15203_v6 = vld [vmem:[%s12769_s10 + $0x158] sm:$0xff] }
 0x2c3   : > { %v7893_v3 = vpop.f32.mrf.mxu1  ;;  %v15187_v20 = vadd.f32 %v7891_v4, %v7699_v32  ;;  %v7701_v33 = vadd.f32 %v7700_v14, %v14614_v42  ;;  %v15200_v42 = vld [vmem:[%s12769_s10 + $0x1d0] sm:$0xff]  ;;  %v15206_v4 = vld [vmem:[%s12769_s10 + $0x1d8] sm:$0xff]  ;;  %v10565_v32 = vcombine.low %v296_v21, %v312_v49 }
 0x2c4   : > { %v7704_v38 = vpop.f32.mrf.mxu0  ;;  %8169 = vmatmul.mubr.bf16.gmra.mxu0 %v11041_v29  ;;  %v10600_v21 = vcombine.high %v15203_v6, %v15206_v4 }
 0x2c5   : > { %v7897_v55 = vpop.f32.mrf.mxu1  ;;  %8362 = vmatmul.mubr.bf16.gmra.mxu1 %v11043_v43  ;;  %v15190_v15 = vadd.f32 %v7893_v3, %v7701_v33  ;;  %v7705_v23 = vadd.f32 %v7704_v38, %v14620_v25  ;;  %8404 = vmatprep.mubr.bf16.mxu0 %v10566_v10  ;;  %v10567_v25 = vcombine.low %v297_v60, %v313_v61  ;;  %v12317_v3 = vld [vmem:[%s17140_s1 + $0xc70] ss:$8 sps:$4 sm:$0xff]   ;;  %v17277_v60 = vld [vmem:[#allocation27_spill] sm:$0xff] }
 0x2c6   : > { %8597 = vmatprep.mubr.bf16.mxu1 %v10568_v44  ;;  %v7706_v28 = vpop.f32.mrf.mxu0  ;;  %v17275_v44 = vld [vmem:[#allocation26_spill] sm:$0xff]  ;;  %v12320_v33 = vld [vmem:[%s17140_s1 + $0xd70] ss:$8 sps:$4 sm:$0xff]  }
 0x2c7   : > { %v7899_v1 = vpop.f32.mrf.mxu1  ;;  %v15196_v58 = vadd.f32 %v7897_v55, %v7705_v23  ;;  %v7707_v47 = vadd.f32 %v7706_v28, %v17273_v31  ;;  %v10598_v23 = vcombine.high %v15194_v17, %v15200_v42  ;;  %v12325_v28 = vld [vmem:[%s17140_s1 + $0xc64] ss:$8 sps:$4 sm:$0xff]  }
 0x2c8   : > { %v7708_v29 = vpop.f32.mrf.mxu0 }
 0x2c9   : > { %17272 = vst [vmem:[#allocation23_spill] sm:$0xff] %v15196_v58  ;;  %v7901_v43 = vpop.f32.mrf.mxu1  ;;  %v15208_v10 = vadd.f32 %v7899_v1, %v7707_v47  ;;  %v7709_v14 = vadd.f32 %v7708_v29, %v17275_v44  ;;  %v12328_v1 = vld [vmem:[%s17140_s1 + $0xd64] ss:$8 sps:$4 sm:$0xff]   ;;  %v12323_v29 = vld [vmem:[%s17140_s1 + $0xc60] ss:$8 sps:$4 sm:$0xff]  }
 0x2ca   : > { %v7710_v38 = vpop.f32.mrf.mxu0 }
 0x2cb   : > { %17274 = vst [vmem:[#allocation24_spill] sm:$0xff] %v15208_v10  ;;  %v7903_v55 = vpop.f32.mrf.mxu1  ;;  %v15221_v49 = vadd.f32 %v7901_v43, %v7709_v14  ;;  %v7711_v61 = vadd.f32 %v7710_v38, %v17277_v60  ;;  %v15234_v43 = vld [vmem:[%s12769_s10 + $0x250] sm:$0xff]  ;;  %v12326_v38 = vld [vmem:[%s17140_s1 + $0xd60] ss:$8 sps:$4 sm:$0xff]   ;;  %v15249_v10 = vld [vmem:[%s12769_s10 + $0x2d8] sm:$0xff] }
 0x2cc   : > { %v7714_v31 = vpop.f32.mrf.mxu0  ;;  %8405 = vmatmul.mubr.bf16.vlgmr.msra.gmra.mxu0 %v10565_v32  ;;  %v15243_v60 = vld [vmem:[%s12769_s10 + $0x2d0] sm:$0xff]  ;;  %v15246_v32 = vld [vmem:[%s12769_s10 + $0x258] sm:$0xff] }
 0x2cd   : > { %17276 = vst [vmem:[#allocation25_spill] sm:$0xff] %v15221_v49  ;;  %v7907_v47 = vpop.f32.mrf.mxu1  ;;  %8598 = vmatmul.mubr.bf16.vlgmr.msra.gmra.mxu1 %v10567_v25  ;;  %v15236_v44 = vadd.f32 %v7903_v55, %v7711_v61  ;;  %v7715_v14 = vadd.f32 %v7714_v31, %v14681_v26  ;;  %8759 = vmatpush1.bf16.msra.mxu0 %v12317_v3  ;;  %v12331_v26 = vld [vmem:[%s17140_s1 + $0xc54] ss:$8 sps:$4 sm:$0xff]  }
 0x2ce   : > { %8952 = vmatpush1.bf16.msra.mxu1 %v12320_v33  ;;  %v7716_v25 = vpop.f32.mrf.mxu0  ;;  %8414 = vmatprep.mubr.bf16.mxu0 %v10598_v23  ;;  %v12334_v3 = vld [vmem:[%s17140_s1 + $0xd54] ss:$8 sps:$4 sm:$0xff]   ;;  %v10597_v23 = vcombine.low %v15194_v17, %v15200_v42  ;;  %v12329_v17 = vld [vmem:[%s17140_s1 + $0xc50] ss:$8 sps:$4 sm:$0xff]  }
 0x2cf   : > { %17278 = vst [vmem:[#allocation26_spill] sm:$0xff] %v15236_v44  ;;  %v7909_v49 = vpop.f32.mrf.mxu1  ;;  %8607 = vmatprep.mubr.bf16.mxu1 %v10600_v21  ;;  %v15257_v33 = vadd.f32 %v7907_v47, %v7715_v14  ;;  %v7717_v55 = vadd.f32 %v7716_v25, %v14690_v48  ;;  %8760 = vmatprep.subr.bf16.mxu0 %v12325_v28  ;;  %v12332_v42 = vld [vmem:[%s17140_s1 + $0xd50] ss:$8 sps:$4 sm:$0xff]  }
 0x2d0   : > { %8953 = vmatprep.subr.bf16.mxu1 %v12328_v1  ;;  %v7718_v61 = vpop.f32.mrf.mxu0  ;;  %v10599_v21 = vcombine.low %v15203_v6, %v15206_v4  ;;  %v10630_v44 = vcombine.high %v15234_v43, %v15243_v60  ;;  %v10632_v48 = vcombine.high %v15246_v32, %v15249_v10  ;;  %v17279_v6 = vld [vmem:[#allocation28_spill] sm:$0xff] }
 0x2d1   : > { %v7911_v31 = vpop.f32.mrf.mxu1  ;;  %v15266_v58 = vadd.f32 %v7909_v49, %v7717_v55  ;;  %v7719_v47 = vadd.f32 %v7718_v61, %v14701_v18  ;;  %8761 = vmatpush1.bf16.msra.mxu0 %v12323_v29  ;;  %v12337_v49 = vld [vmem:[%s17140_s1 + $0xc44] ss:$8 sps:$4 sm:$0xff]   ;;  %v15290_v55 = vld [vmem:[%s12769_s10 + $0x350] sm:$0xff] }
 0x2d2   : > { %8954 = vmatpush1.bf16.msra.mxu1 %v12326_v38  ;;  %v7720_v28 = vpop.f32.mrf.mxu0  ;;  %8762 = vmatprep.subr.bf16.mxu0 %v12331_v26  ;;  %v12340_v29 = vld [vmem:[%s17140_s1 + $0xd44] ss:$8 sps:$4 sm:$0xff]   ;;  %v15293_v61 = vld [vmem:[%s12769_s10 + $0x3d0] sm:$0xff] }
 0x2d3   : > { %v7913_v1 = vpop.f32.mrf.mxu1  ;;  %8955 = vmatprep.subr.bf16.mxu1 %v12334_v3  ;;  %v15277_v18 = vadd.f32 %v7911_v31, %v7719_v47  ;;  %v7721_v4 = vadd.f32 %v7720_v28, %v17279_v6  ;;  %v17280_v26 = vld [vmem:[#allocation3_spill] sm:$0xff]  ;;  %v15296_v31 = vld [vmem:[%s12769_s10 + $0x358] sm:$0xff] }
 0x2d4   : > { %v7724_v14 = vpop.f32.mrf.mxu0  ;;  %8415 = vmatmul.mubr.bf16.gmra.mxu0 %v10597_v23  ;;  %v15299_v6 = vld [vmem:[%s12769_s10 + $0x3d8] sm:$0xff]  ;;  %v12335_v23 = vld [vmem:[%s17140_s1 + $0xc40] ss:$8 sps:$4 sm:$0xff]  }
 0x2d5   : > { %v7917_v38 = vpop.f32.mrf.mxu1  ;;  %8608 = vmatmul.mubr.bf16.gmra.mxu1 %v10599_v21  ;;  %v15286_v25 = vadd.f32 %v7913_v1, %v7721_v4  ;;  %v7725_v3 = vadd.f32 %v7724_v14, %v17280_v26  ;;  %8424 = vmatprep.mubr.bf16.mxu0 %v10630_v44  ;;  %v12338_v44 = vld [vmem:[%s17140_s1 + $0xd40] ss:$8 sps:$4 sm:$0xff]   ;;  %v12343_v1 = vld [vmem:[%s17140_s1 + $0xc34] ss:$8 sps:$4 sm:$0xff]   ;;  %v10629_v14 = vcombine.low %v15234_v43, %v15243_v60  ;;  %v12341_v43 = vld [vmem:[%s17140_s1 + $0xc30] ss:$8 sps:$4 sm:$0xff]  }
 0x2d6   : > { %8617 = vmatprep.mubr.bf16.mxu1 %v10632_v48  ;;  %v7726_v47 = vpop.f32.mrf.mxu0  ;;  %8763 = vmatpush1.bf16.msra.mxu0 %v12329_v17  ;;  %v12346_v17 = vld [vmem:[%s17140_s1 + $0xd34] ss:$8 sps:$4 sm:$0xff]  }
 0x2d7   : > { %v7919_v28 = vpop.f32.mrf.mxu1  ;;  %8956 = vmatpush1.bf16.msra.mxu1 %v12332_v42  ;;  %v15307_v21 = vadd.f32 %v7917_v38, %v7725_v3  ;;  %v7727_v48 = vadd.f32 %v7726_v47, %v14744_v62  ;;  %8764 = vmatprep.subr.bf16.mxu0 %v12337_v49  ;;  %v10631_v38 = vcombine.low %v15246_v32, %v15249_v10  ;;  %v17282_v62 = vld [vmem:[#allocation4_spill] sm:$0xff] }
 0x2d8   : > { %8957 = vmatprep.subr.bf16.mxu1 %v12340_v29  ;;  %v7728_v42 = vpop.f32.mrf.mxu0  ;;  %v10662_v29 = vcombine.high %v15290_v55, %v15293_v61  ;;  %v10664_v3 = vcombine.high %v15296_v31, %v15299_v6  ;;  %v12344_v10 = vld [vmem:[%s17140_s1 + $0xd30] ss:$8 sps:$4 sm:$0xff]  }
 0x2d9   : > { %17281 = vst [vmem:[#allocation27_spill] sm:$0xff] %v15307_v21  ;;  %v7921_v4 = vpop.f32.mrf.mxu1  ;;  %v15320_v26 = vadd.f32 %v7919_v28, %v7727_v48  ;;  %v7729_v49 = vadd.f32 %v7728_v42, %v17282_v62  ;;  %v12349_v28 = vld [vmem:[%s17140_s1 + $0xc24] ss:$8 sps:$4 sm:$0xff]  }
 0x2da   : > { %v7730_v47 = vpop.f32.mrf.mxu0  ;;  %8765 = vmatpush1.bf16.msra.mxu0 %v12335_v23  ;;  %v12352_v23 = vld [vmem:[%s17140_s1 + $0xd24] ss:$8 sps:$4 sm:$0xff]  }
 0x2db   : > { %v7923_v21 = vpop.f32.mrf.mxu1  ;;  %8958 = vmatpush1.bf16.msra.mxu1 %v12338_v44  ;;  %v15333_v60 = vadd.f32 %v7921_v4, %v7729_v49  ;;  %v7731_v32 = vadd.f32 %v7730_v47, %v14766_v56  ;;  %8766 = vmatprep.subr.bf16.mxu0 %v12343_v1  ;;  %v17285_v4 = vld [vmem:[#allocation5_spill] sm:$0xff]  ;;  %v15346_v56 = vld [vmem:[%s12769_s10 + $0x450] sm:$0xff] }
 0x2dc   : > { %8959 = vmatprep.subr.bf16.mxu1 %v12346_v17  ;;  %v7734_v44 = vpop.f32.mrf.mxu0  ;;  %8425 = vmatmul.mubr.bf16.gmra.mxu0 %v10629_v14  ;;  %v15349_v1 = vld [vmem:[%s12769_s10 + $0x4d0] sm:$0xff]  ;;  %v15352_v17 = vld [vmem:[%s12769_s10 + $0x458] sm:$0xff]  ;;  %v12350_v14 = vld [vmem:[%s17140_s1 + $0xd20] ss:$8 sps:$4 sm:$0xff]  }
 0x2dd   : > { %17283 = vst [vmem:[#allocation28_spill] sm:$0xff] %v15333_v60  ;;  %v7927_v48 = vpop.f32.mrf.mxu1  ;;  %8618 = vmatmul.mubr.bf16.gmra.mxu1 %v10631_v38  ;;  %v15342_v42 = vadd.f32 %v7923_v21, %v7731_v32  ;;  %v7735_v62 = vadd.f32 %v7734_v44, %v17285_v4  ;;  %8434 = vmatprep.mubr.bf16.mxu0 %v10662_v29  ;;  %v15355_v60 = vld [vmem:[%s12769_s10 + $0x4d8] sm:$0xff]  ;;  %v12347_v21 = vld [vmem:[%s17140_s1 + $0xc20] ss:$8 sps:$4 sm:$0xff]  }
 0x2de   : > { %8627 = vmatprep.mubr.bf16.mxu1 %v10664_v3  ;;  %v7736_v49 = vpop.f32.mrf.mxu0  ;;  %8767 = vmatpush1.bf16.msra.mxu0 %v12341_v43  ;;  %v17287_v29 = vld [vmem:[#allocation6_spill] sm:$0xff]  ;;  %v12355_v32 = vld [vmem:[%s17140_s1 + $0xc14] ss:$8 sps:$4 sm:$0xff]   ;;  %v10661_v4 = vcombine.low %v15290_v55, %v15293_v61  ;;  %v12353_v55 = vld [vmem:[%s17140_s1 + $0xc10] ss:$8 sps:$4 sm:$0xff]  }
 0x2df   : > { %17284 = vst [vmem:[#allocation3_spill] sm:$0xff] %v15342_v42  ;;  %v7929_v47 = vpop.f32.mrf.mxu1  ;;  %8960 = vmatpush1.bf16.msra.mxu1 %v12344_v10  ;;  %v15363_v38 = vadd.f32 %v7927_v48, %v7735_v62  ;;  %v7737_v3 = vadd.f32 %v7736_v49, %v17287_v29  ;;  %8768 = vmatprep.subr.bf16.mxu0 %v12349_v28  ;;  %v12358_v43 = vld [vmem:[%s17140_s1 + $0xd14] ss:$8 sps:$4 sm:$0xff]   ;;  %v17289_v28 = vld [vmem:[#allocation7_spill] sm:$0xff]  ;;  %v12356_v61 = vld [vmem:[%s17140_s1 + $0xd10] ss:$8 sps:$4 sm:$0xff]  }
 0x2e0   : > { %8961 = vmatprep.subr.bf16.mxu1 %v12352_v23  ;;  %v7738_v10 = vpop.f32.mrf.mxu0  ;;  %v10663_v48 = vcombine.low %v15296_v31, %v15299_v6  ;;  %v10694_v49 = vcombine.high %v15346_v56, %v15349_v1  ;;  %v10696_v29 = vcombine.high %v15352_v17, %v15355_v60  ;;  %v17291_v6 = vld [vmem:[#allocation8_spill] sm:$0xff] }
 0x2e1   : > { %17286 = vst [vmem:[#allocation4_spill] sm:$0xff] %v15363_v38  ;;  %v7931_v44 = vpop.f32.mrf.mxu1  ;;  %v15376_v62 = vadd.f32 %v7929_v47, %v7737_v3  ;;  %v7739_v23 = vadd.f32 %v7738_v10, %v17289_v28  ;;  %v17293_v28 = vld [vmem:[#allocation9_spill] sm:$0xff] }
 0x2e2   : > { %v7740_v38 = vpop.f32.mrf.mxu0  ;;  %8769 = vmatpush1.bf16.msra.mxu0 %v12347_v21  ;;  %v12361_v21 = vld [vmem:[%s17140_s1 + $0xc04] ss:$8 sps:$4 sm:$0xff]  }
 0x2e3   : > { %17288 = vst [vmem:[#allocation5_spill] sm:$0xff] %v15376_v62  ;;  %v7933_v42 = vpop.f32.mrf.mxu1  ;;  %8962 = vmatpush1.bf16.msra.mxu1 %v12350_v14  ;;  %v15389_v31 = vadd.f32 %v7931_v44, %v7739_v23  ;;  %v7741_v47 = vadd.f32 %v7740_v38, %v17291_v6  ;;  %8770 = vmatprep.subr.bf16.mxu0 %v12355_v32  ;;  %v12364_v14 = vld [vmem:[%s17140_s1 + $0xd04] ss:$8 sps:$4 sm:$0xff]   ;;  %v15402_v38 = vld [vmem:[%s12769_s10 + $0x550] sm:$0xff]  ;;  %v15411_v62 = vld [vmem:[%s12769_s10 + $0x5d8] sm:$0xff] }
 0x2e4   : > { %8963 = vmatprep.subr.bf16.mxu1 %v12358_v43  ;;  %v7744_v3 = vpop.f32.mrf.mxu0  ;;  %8435 = vmatmul.mubr.bf16.gmra.mxu0 %v10661_v4  ;;  %v15405_v32 = vld [vmem:[%s12769_s10 + $0x5d0] sm:$0xff]  ;;  %v15408_v43 = vld [vmem:[%s12769_s10 + $0x558] sm:$0xff]  ;;  %v12362_v4 = vld [vmem:[%s17140_s1 + $0xd00] ss:$8 sps:$4 sm:$0xff]  }
 0x2e5   : > { %17290 = vst [vmem:[#allocation6_spill] sm:$0xff] %v15389_v31  ;;  %v7937_v10 = vpop.f32.mrf.mxu1  ;;  %8628 = vmatmul.mubr.bf16.gmra.mxu1 %v10663_v48  ;;  %v15398_v44 = vadd.f32 %v7933_v42, %v7741_v47  ;;  %v7745_v23 = vadd.f32 %v7744_v3, %v17293_v28  ;;  %8444 = vmatprep.mubr.bf16.mxu0 %v10694_v49  ;;  %v12359_v42 = vld [vmem:[%s17140_s1 + $0xc00] ss:$8 sps:$4 sm:$0xff]   ;;  %v12367_v47 = vld [vmem:[%s17140_s1 + $0xcf4] ss:$8 sps:$4 sm:$0xff]  }
 0x2e6   : > { %8637 = vmatprep.mubr.bf16.mxu1 %v10696_v29  ;;  %v7746_v6 = vpop.f32.mrf.mxu0  ;;  %8771 = vmatpush1.bf16.msra.mxu0 %v12353_v55  ;;  %v17295_v49 = vld [vmem:[#allocation10_spill] sm:$0xff]  ;;  %v12370_v55 = vld [vmem:[%s17140_s1 + $0xdf4] ss:$8 sps:$4 sm:$0xff]   ;;  %v10693_v28 = vcombine.low %v15346_v56, %v15349_v1  ;;  %v12365_v56 = vld [vmem:[%s17140_s1 + $0xcf0] ss:$8 sps:$4 sm:$0xff]  }
 0x2e7   : > { %17292 = vst [vmem:[#allocation7_spill] sm:$0xff] %v15398_v44  ;;  %v7939_v31 = vpop.f32.mrf.mxu1  ;;  %8964 = vmatpush1.bf16.msra.mxu1 %v12356_v61  ;;  %v15419_v48 = vadd.f32 %v7937_v10, %v7745_v23  ;;  %v7747_v29 = vadd.f32 %v7746_v6, %v17295_v49  ;;  %8772 = vmatprep.subr.bf16.mxu0 %v12361_v21  ;;  %v17297_v21 = vld [vmem:[#allocation11_spill] sm:$0xff] }
 0x2e8   : > { %8965 = vmatprep.subr.bf16.mxu1 %v12364_v14  ;;  %v7748_v61 = vpop.f32.mrf.mxu0  ;;  %v10695_v10 = vcombine.low %v15352_v17, %v15355_v60  ;;  %v10726_v6 = vcombine.high %v15402_v38, %v15405_v32  ;;  %v10728_v49 = vcombine.high %v15408_v43, %v15411_v62  ;;  %v12368_v60 = vld [vmem:[%s17140_s1 + $0xdf0] ss:$8 sps:$4 sm:$0xff]  }
 0x2e9   : > { %17294 = vst [vmem:[#allocation8_spill] sm:$0xff] %v15419_v48  ;;  %v7941_v3 = vpop.f32.mrf.mxu1  ;;  %v15432_v23 = vadd.f32 %v7939_v31, %v7747_v29  ;;  %v7749_v14 = vadd.f32 %v7748_v61, %v17297_v21  ;;  %v17299_v17 = vld [vmem:[#allocation12_spill] sm:$0xff]  ;;  %v17301_v21 = vld [vmem:[#allocation13_spill] sm:$0xff] }
 0x2ea   : > { %v7750_v48 = vpop.f32.mrf.mxu0  ;;  %8773 = vmatpush1.bf16.msra.mxu0 %v12359_v42  ;;  %v12373_v42 = vld [vmem:[%s17140_s1 + $0xce4] ss:$8 sps:$4 sm:$0xff]  }
 0x2eb   : > { %17296 = vst [vmem:[#allocation9_spill] sm:$0xff] %v15432_v23  ;;  %v7943_v44 = vpop.f32.mrf.mxu1  ;;  %8966 = vmatpush1.bf16.msra.mxu1 %v12362_v4  ;;  %v15445_v1 = vadd.f32 %v7941_v3, %v7749_v14  ;;  %v7751_v31 = vadd.f32 %v7750_v48, %v17299_v17  ;;  %8774 = vmatprep.subr.bf16.mxu0 %v12367_v47  ;;  %v12376_v4 = vld [vmem:[%s17140_s1 + $0xde4] ss:$8 sps:$4 sm:$0xff]   ;;  %v15458_v48 = vld [vmem:[%s12769_s10 + $0x650] sm:$0xff]  ;;  %v15467_v23 = vld [vmem:[%s12769_s10 + $0x6d8] sm:$0xff] }
 0x2ec   : > { %8967 = vmatprep.subr.bf16.mxu1 %v12370_v55  ;;  %v7754_v29 = vpop.f32.mrf.mxu0  ;;  %8445 = vmatmul.mubr.bf16.gmra.mxu0 %v10693_v28  ;;  %v15461_v47 = vld [vmem:[%s12769_s10 + $0x6d0] sm:$0xff]  ;;  %v15464_v55 = vld [vmem:[%s12769_s10 + $0x658] sm:$0xff]  ;;  %v12374_v28 = vld [vmem:[%s17140_s1 + $0xde0] ss:$8 sps:$4 sm:$0xff]  }
 0x2ed   : > { %17298 = vst [vmem:[#allocation10_spill] sm:$0xff] %v15445_v1  ;;  %v7947_v61 = vpop.f32.mrf.mxu1  ;;  %8638 = vmatmul.mubr.bf16.gmra.mxu1 %v10695_v10  ;;  %v15454_v3 = vadd.f32 %v7943_v44, %v7751_v31  ;;  %v7755_v14 = vadd.f32 %v7754_v29, %v17301_v21  ;;  %8454 = vmatprep.mubr.bf16.mxu0 %v10726_v6  ;;  %v12371_v44 = vld [vmem:[%s17140_s1 + $0xce0] ss:$8 sps:$4 sm:$0xff]   ;;  %v12379_v31 = vld [vmem:[%s17140_s1 + $0xcd4] ss:$8 sps:$4 sm:$0xff]  }
 0x2ee   : > { %8647 = vmatprep.mubr.bf16.mxu1 %v10728_v49  ;;  %v7756_v17 = vpop.f32.mrf.mxu0  ;;  %8775 = vmatpush2.bf16.msra.mxu0 %v12365_v56  ;;  %v17303_v6 = vld [vmem:[#allocation14_spill] sm:$0xff]  ;;  %v12382_v56 = vld [vmem:[%s17140_s1 + $0xdd4] ss:$8 sps:$4 sm:$0xff]   ;;  %v10725_v21 = vcombine.low %v15402_v38, %v15405_v32  ;;  %v12377_v38 = vld [vmem:[%s17140_s1 + $0xcd0] ss:$8 sps:$4 sm:$0xff]  }
 0x2ef   : > { %17300 = vst [vmem:[#allocation11_spill] sm:$0xff] %v15454_v3  ;;  %v7949_v1 = vpop.f32.mrf.mxu1  ;;  %8968 = vmatpush2.bf16.msra.mxu1 %v12368_v60  ;;  %v15475_v10 = vadd.f32 %v7947_v61, %v7755_v14  ;;  %v7757_v49 = vadd.f32 %v7756_v17, %v17303_v6  ;;  %8776 = vmatprep.subr.bf16.mxu0 %v12373_v42  ;;  %v17305_v42 = vld [vmem:[#allocation15_spill] sm:$0xff] }
 0x2f0   : > { %8969 = vmatprep.subr.bf16.mxu1 %v12376_v4  ;;  %v7758_v60 = vpop.f32.mrf.mxu0  ;;  %v10727_v61 = vcombine.low %v15408_v43, %v15411_v62  ;;  %v10758_v17 = vcombine.high %v15458_v48, %v15461_v47  ;;  %v10760_v6 = vcombine.high %v15464_v55, %v15467_v23  ;;  %v12380_v62 = vld [vmem:[%s17140_s1 + $0xdd0] ss:$8 sps:$4 sm:$0xff]  }
 0x2f1   : > { %17302 = vst [vmem:[#allocation12_spill] sm:$0xff] %v15475_v10  ;;  %v7951_v29 = vpop.f32.mrf.mxu1  ;;  %v15488_v14 = vadd.f32 %v7949_v1, %v7757_v49  ;;  %v7759_v4 = vadd.f32 %v7758_v60, %v17305_v42  ;;  %v17307_v43 = vld [vmem:[#allocation16_spill] sm:$0xff]  ;;  %v17309_v42 = vld [vmem:[#allocation17_spill] sm:$0xff] }
 0x2f2   : > { %v7760_v10 = vpop.f32.mrf.mxu0  ;;  %8777 = vmatpush2.bf16.msra.mxu0 %v12371_v44  ;;  %v12385_v44 = vld [vmem:[%s17140_s1 + $0xcc4] ss:$8 sps:$4 sm:$0xff]  }
 0x2f3   : > { %17304 = vst [vmem:[#allocation13_spill] sm:$0xff] %v15488_v14  ;;  %v7953_v3 = vpop.f32.mrf.mxu1  ;;  %8970 = vmatpush2.bf16.msra.mxu1 %v12374_v28  ;;  %v15501_v32 = vadd.f32 %v7951_v29, %v7759_v4  ;;  %v7761_v1 = vadd.f32 %v7760_v10, %v17307_v43  ;;  %8778 = vmatprep.subr.bf16.mxu0 %v12379_v31  ;;  %v12388_v28 = vld [vmem:[%s17140_s1 + $0xdc4] ss:$8 sps:$4 sm:$0xff]   ;;  %v15514_v10 = vld [vmem:[%s12769_s10 + $0x750] sm:$0xff]  ;;  %v15523_v14 = vld [vmem:[%s12769_s10 + $0x7d8] sm:$0xff] }
 0x2f4   : > { %8971 = vmatprep.subr.bf16.mxu1 %v12382_v56  ;;  %v7764_v49 = vpop.f32.mrf.mxu0  ;;  %8455 = vmatmul.mubr.bf16.gmra.mxu0 %v10725_v21  ;;  %v15517_v31 = vld [vmem:[%s12769_s10 + $0x7d0] sm:$0xff]  ;;  %v15520_v56 = vld [vmem:[%s12769_s10 + $0x758] sm:$0xff]  ;;  %v12386_v21 = vld [vmem:[%s17140_s1 + $0xdc0] ss:$8 sps:$4 sm:$0xff]  }
 0x2f5   : > { %17306 = vst [vmem:[#allocation14_spill] sm:$0xff] %v15501_v32  ;;  %v7957_v60 = vpop.f32.mrf.mxu1  ;;  %8648 = vmatmul.mubr.bf16.gmra.mxu1 %v10727_v61  ;;  %v15510_v29 = vadd.f32 %v7953_v3, %v7761_v1  ;;  %v7765_v4 = vadd.f32 %v7764_v49, %v17309_v42  ;;  %8464 = vmatprep.mubr.bf16.mxu0 %v10758_v17  ;;  %v12383_v3 = vld [vmem:[%s17140_s1 + $0xcc0] ss:$8 sps:$4 sm:$0xff]   ;;  %v12391_v1 = vld [vmem:[%s17140_s1 + $0xcb4] ss:$8 sps:$4 sm:$0xff]  }
 0x2f6   : > { %8657 = vmatprep.mubr.bf16.mxu1 %v10760_v6  ;;  %v7766_v43 = vpop.f32.mrf.mxu0  ;;  %8779 = vmatpush2.bf16.msra.mxu0 %v12377_v38  ;;  %v17311_v17 = vld [vmem:[#allocation18_spill] sm:$0xff]  ;;  %v12394_v38 = vld [vmem:[%s17140_s1 + $0xdb4] ss:$8 sps:$4 sm:$0xff]   ;;  %v10757_v42 = vcombine.low %v15458_v48, %v15461_v47  ;;  %v12389_v48 = vld [vmem:[%s17140_s1 + $0xcb0] ss:$8 sps:$4 sm:$0xff]  }
 0x2f7   : > { %17308 = vst [vmem:[#allocation15_spill] sm:$0xff] %v15510_v29  ;;  %v7959_v32 = vpop.f32.mrf.mxu1  ;;  %8972 = vmatpush2.bf16.msra.mxu1 %v12380_v62  ;;  %v15531_v61 = vadd.f32 %v7957_v60, %v7765_v4  ;;  %v7767_v6 = vadd.f32 %v7766_v43, %v17311_v17  ;;  %8780 = vmatprep.subr.bf16.mxu0 %v12385_v44  ;;  %v17313_v44 = vld [vmem:[#allocation19_spill] sm:$0xff] }
 0x2f8   : > { %8973 = vmatprep.subr.bf16.mxu1 %v12388_v28  ;;  %v7768_v62 = vpop.f32.mrf.mxu0  ;;  %v10759_v60 = vcombine.low %v15464_v55, %v15467_v23  ;;  %v10790_v43 = vcombine.high %v15514_v10, %v15517_v31  ;;  %v10792_v17 = vcombine.high %v15520_v56, %v15523_v14  ;;  %v12392_v23 = vld [vmem:[%s17140_s1 + $0xdb0] ss:$8 sps:$4 sm:$0xff]  }
 0x2f9   : > { %17310 = vst [vmem:[#allocation16_spill] sm:$0xff] %v15531_v61  ;;  %v7961_v49 = vpop.f32.mrf.mxu1  ;;  %v15544_v4 = vadd.f32 %v7959_v32, %v7767_v6  ;;  %v7769_v28 = vadd.f32 %v7768_v62, %v17313_v44  ;;  %v17315_v55 = vld [vmem:[#allocation20_spill] sm:$0xff]  ;;  %v17316_v44 = vld [vmem:[#allocation21_spill] sm:$0xff] }
 0x2fa   : > { %v7770_v61 = vpop.f32.mrf.mxu0  ;;  %8781 = vmatpush2.bf16.msra.mxu0 %v12383_v3  ;;  %v12397_v3 = vld [vmem:[%s17140_s1 + $0xca4] ss:$8 sps:$4 sm:$0xff]  }
 0x2fb   : > { %17312 = vst [vmem:[#allocation17_spill] sm:$0xff] %v15544_v4  ;;  %v7963_v29 = vpop.f32.mrf.mxu1  ;;  %8974 = vmatpush2.bf16.msra.mxu1 %v12386_v21  ;;  %v15557_v47 = vadd.f32 %v7961_v49, %v7769_v28  ;;  %v7771_v32 = vadd.f32 %v7770_v61, %v17315_v55  ;;  %8782 = vmatprep.subr.bf16.mxu0 %v12391_v1  ;;  %v12400_v21 = vld [vmem:[%s17140_s1 + $0xda4] ss:$8 sps:$4 sm:$0xff]   ;;  %v15570_v61 = vld [vmem:[%s12769_s10 + $0x850] sm:$0xff]  ;;  %v15579_v4 = vld [vmem:[%s12769_s10 + $0x8d8] sm:$0xff] }
 0x2fc   : > { %8975 = vmatprep.subr.bf16.mxu1 %v12394_v38  ;;  %v7774_v6 = vpop.f32.mrf.mxu0  ;;  %8465 = vmatmul.mubr.bf16.gmra.mxu0 %v10757_v42  ;;  %v15573_v1 = vld [vmem:[%s12769_s10 + $0x8d0] sm:$0xff]  ;;  %v15576_v38 = vld [vmem:[%s12769_s10 + $0x858] sm:$0xff]  ;;  %v12398_v42 = vld [vmem:[%s17140_s1 + $0xda0] ss:$8 sps:$4 sm:$0xff]  }
 0x2fd   : > { %17314 = vst [vmem:[#allocation18_spill] sm:$0xff] %v15557_v47  ;;  %v7967_v62 = vpop.f32.mrf.mxu1  ;;  %8658 = vmatmul.mubr.bf16.gmra.mxu1 %v10759_v60  ;;  %v15566_v49 = vadd.f32 %v7963_v29, %v7771_v32  ;;  %v7775_v28 = vadd.f32 %v7774_v6, %v17316_v44  ;;  %8474 = vmatprep.mubr.bf16.mxu0 %v10790_v43  ;;  %v12395_v29 = vld [vmem:[%s17140_s1 + $0xca0] ss:$8 sps:$4 sm:$0xff]  }
 0x2fe   : > { %8667 = vmatprep.mubr.bf16.mxu1 %v10792_v17  ;;  %v7776_v55 = vpop.f32.mrf.mxu0  ;;  %8783 = vmatpush2.bf16.msra.mxu0 %v12389_v48  ;;  %v12403_v17 = vld [vmem:[%s17140_s1 + $0xc94] ss:$8 sps:$4 sm:$0xff]   ;;  %v10789_v6 = vcombine.low %v15514_v10, %v15517_v31  ;;  %v12401_v10 = vld [vmem:[%s17140_s1 + $0xc90] ss:$8 sps:$4 sm:$0xff]  }
 0x2ff   : > { %v7969_v47 = vpop.f32.mrf.mxu1  ;;  %8976 = vmatpush2.bf16.msra.mxu1 %v12392_v23  ;;  %v15587_v60 = vadd.f32 %v7967_v62, %v7775_v28  ;;  %v7777_v43 = vadd.f32 %v7776_v55, %v15024_v52  ;;  %8784 = vmatprep.subr.bf16.mxu0 %v12397_v3  ;;  %v12406_v48 = vld [vmem:[%s17140_s1 + $0xd94] ss:$8 sps:$4 sm:$0xff]   ;;  %v10791_v62 = vcombine.low %v15520_v56, %v15523_v14  ;;  %v17318_v52 = vld [vmem:[#allocation22_spill] sm:$0xff]  ;;  %v12404_v14 = vld [vmem:[%s17140_s1 + $0xd90] ss:$8 sps:$4 sm:$0xff]  }
 0x300   : > { %8977 = vmatprep.subr.bf16.mxu1 %v12400_v21  ;;  %v7778_v23 = vpop.f32.mrf.mxu0  ;;  %v10822_v21 = vcombine.high %v15570_v61, %v15573_v1  ;;  %v10824_v28 = vcombine.high %v15576_v38, %v15579_v4 }
 0x301   : > { %17317 = vst [vmem:[#allocation19_spill] sm:$0xff] %v15587_v60  ;;  %v7971_v32 = vpop.f32.mrf.mxu1  ;;  %v15600_v44 = vadd.f32 %v7969_v47, %v7777_v43  ;;  %v7779_v3 = vadd.f32 %v7778_v23, %v17318_v52  ;;  %v12409_v47 = vld [vmem:[%s17140_s1 + $0xc84] ss:$8 sps:$4 sm:$0xff]  }
 0x302   : > { %v7780_v55 = vpop.f32.mrf.mxu0  ;;  %8785 = vmatpush2.bf16.msra.mxu0 %v12395_v29  ;;  %v12412_v29 = vld [vmem:[%s17140_s1 + $0xd84] ss:$8 sps:$4 sm:$0xff]  }
 0x303   : > { %v7973_v60 = vpop.f32.mrf.mxu1  ;;  %8978 = vmatpush2.bf16.msra.mxu1 %v12398_v42  ;;  %v15613_v31 = vadd.f32 %v7971_v32, %v7779_v3  ;;  %v7781_v56 = vadd.f32 %v7780_v55, %v15046_v11  ;;  %8786 = vmatprep.subr.bf16.mxu0 %v12403_v17  ;;  %v584_v11 = vld [vmem:[%s12769_s10 + $0x950] sm:$0xff]  ;;  %v601_v55 = vld [vmem:[%s12769_s10 + $0x9d8] sm:$0xff] }
 0x304   : > { %8979 = vmatprep.subr.bf16.mxu1 %v12406_v48  ;;  %v7784_v42 = vpop.f32.mrf.mxu0  ;;  %8475 = vmatmul.mubr.bf16.gmra.mxu0 %v10789_v6  ;;  %v600_v17 = vld [vmem:[%s12769_s10 + $0x9d0] sm:$0xff]  ;;  %v585_v48 = vld [vmem:[%s12769_s10 + $0x958] sm:$0xff] }
 0x305   : > { %17319 = vst [vmem:[#allocation20_spill] sm:$0xff] %v15613_v31  ;;  %v7977_v43 = vpop.f32.mrf.mxu1  ;;  %8668 = vmatmul.mubr.bf16.gmra.mxu1 %v10791_v62  ;;  %v15622_v23 = vadd.f32 %v7973_v60, %v7781_v56  ;;  %v7785_v32 = vadd.f32 %v7784_v42, %v15059_v39  ;;  %8484 = vmatprep.mubr.bf16.mxu0 %v10822_v21  ;;  %v12407_v31 = vld [vmem:[%s17140_s1 + $0xc80] ss:$8 sps:$4 sm:$0xff]   ;;  %v12415_v62 = vld [vmem:[%s17140_s1 + $0xe74] ss:$8 sps:$4 sm:$0xff]  }
 0x306   : > { %8677 = vmatprep.mubr.bf16.mxu1 %v10824_v28  ;;  %v7786_v52 = vpop.f32.mrf.mxu0  ;;  %8787 = vmatpush2.bf16.msra.mxu0 %v12401_v10  ;;  %v12410_v60 = vld [vmem:[%s17140_s1 + $0xd80] ss:$8 sps:$4 sm:$0xff]   ;;  %v12418_v21 = vld [vmem:[%s17140_s1 + $0xf74] ss:$8 sps:$4 sm:$0xff]   ;;  %v10823_v56 = vcombine.low %v15576_v38, %v15579_v4 }
 0x307   : > { %v7979_v3 = vpop.f32.mrf.mxu1  ;;  %8980 = vmatpush2.bf16.msra.mxu1 %v12404_v14  ;;  %v15635_v6 = vadd.f32 %v7977_v43, %v7785_v32  ;;  %v7787_v39 = vadd.f32 %v7786_v52, %v15072_v46  ;;  %8788 = vmatprep.subr.bf16.mxu0 %v12409_v47  ;;  %v10821_v14 = vcombine.low %v15570_v61, %v15573_v1 }
 0x308   : > { %8981 = vmatprep.subr.bf16.mxu1 %v12412_v29  ;;  %v7788_v28 = vpop.f32.mrf.mxu0  ;;  %v10854_v47 = vcombine.high %v584_v11, %v600_v17  ;;  %v10856_v29 = vcombine.high %v585_v48, %v601_v55 }
 0x309   : > { %v7981_v10 = vpop.f32.mrf.mxu1  ;;  %v15648_v42 = vadd.f32 %v7979_v3, %v7787_v39  ;;  %v7789_v46 = vadd.f32 %v7788_v28, %v15075_v13  ;;  %v632_v39 = vld [vmem:[%s12769_s10 + $0xad0] sm:$0xff]  ;;  %v617_v28 = vld [vmem:[%s12769_s10 + $0xa58] sm:$0xff] }
 0x30a   : > { %v7790_v43 = vpop.f32.mrf.mxu0  ;;  %8789 = vmatpush2.bf16.msra.mxu0 %v12407_v31  ;;  %v616_v31 = vld [vmem:[%s12769_s10 + $0xa50] sm:$0xff] }
 0x30b   : > { %v7983_v32 = vpop.f32.mrf.mxu1  ;;  %8982 = vmatpush2.bf16.msra.mxu1 %v12410_v60  ;;  %v15651_v52 = vadd.f32 %v7981_v10, %v7789_v46  ;;  %v7791_v61 = vadd.f32 %v7790_v43, %v15078_v36  ;;  %9144 = vmatprep.subr.bf16.mxu0 %v12415_v62  ;;  %v633_v10 = vld [vmem:[%s12769_s10 + $0xad8] sm:$0xff] }
 0x30c   : > { %9337 = vmatprep.subr.bf16.mxu1 %v12418_v21  ;;  %v8020_v4 = vpop.f32.mrf.mxu0  ;;  %8485 = vmatmul.mubr.bf16.gmra.mxu0 %v10821_v14  ;;  %v10853_v14 = vcombine.low %v584_v11, %v600_v17 }
 0x30d   : > { %v8213_v1 = vpop.f32.mrf.mxu1  ;;  %8678 = vmatmul.mubr.bf16.gmra.mxu1 %v10823_v56  ;;  %v15654_v13 = vadd.f32 %v7983_v32, %v7791_v61  ;;  %v8021_v38 = vadd.f32 %v8020_v4, %v15085_v2  ;;  %8494 = vmatprep.mubr.bf16.mxu0 %v10854_v47  ;;  %v10855_v56 = vcombine.low %v585_v48, %v601_v55 }
 0x30e   : > { %8687 = vmatprep.mubr.bf16.mxu1 %v10856_v29  ;;  %v8022_v3 = vpop.f32.mrf.mxu0  ;;  %v10886_v47 = vcombine.high %v616_v31, %v632_v39  ;;  %v10888_v29 = vcombine.high %v617_v28, %v633_v10 }
 0x30f   : > { %v8215_v60 = vpop.f32.mrf.mxu1  ;;  %v15661_v36 = vadd.f32 %v8213_v1, %v8021_v38  ;;  %v8023_v62 = vadd.f32 %v8022_v3, %v15088_v5  ;;  %v664_v3 = vld [vmem:[%s12769_s10 + $0xbd0] sm:$0xff] }
 0x310   : > { %v8024_v21 = vpop.f32.mrf.mxu0 }
 0x311   : > { %v8217_v46 = vpop.f32.mrf.mxu1  ;;  %v15664_v43 = vadd.f32 %v8215_v60, %v8023_v62  ;;  %v8025_v2 = vadd.f32 %v8024_v21, %v15091_v35  ;;  %v648_v35 = vld [vmem:[%s12769_s10 + $0xb50] sm:$0xff]  ;;  %v649_v60 = vld [vmem:[%s12769_s10 + $0xb58] sm:$0xff] }
 0x312   : > { %v8026_v32 = vpop.f32.mrf.mxu0  ;;  %v665_v62 = vld [vmem:[%s12769_s10 + $0xbd8] sm:$0xff] }
 0x313   : > { %v8219_v61 = vpop.f32.mrf.mxu1  ;;  %v15667_v4 = vadd.f32 %v8217_v46, %v8025_v2  ;;  %v8027_v5 = vadd.f32 %v8026_v32, %v15094_v45 }
 0x314   : > { %v8030_v1 = vpop.f32.mrf.mxu0  ;;  %8495 = vmatmul.mubr.bf16.gmra.mxu0 %v10853_v14  ;;  %v10885_v14 = vcombine.low %v616_v31, %v632_v39 }
 0x315   : > { %v8223_v38 = vpop.f32.mrf.mxu1  ;;  %8688 = vmatmul.mubr.bf16.gmra.mxu1 %v10855_v56  ;;  %v15670_v11 = vadd.f32 %v8219_v61, %v8027_v5  ;;  %v8031_v17 = vadd.f32 %v8030_v1, %v15101_v30  ;;  %8504 = vmatprep.mubr.bf16.mxu0 %v10886_v47  ;;  %v10887_v56 = vcombine.low %v617_v28, %v633_v10 }
 0x316   : > { %8697 = vmatprep.mubr.bf16.mxu1 %v10888_v29  ;;  %v8032_v48 = vpop.f32.mrf.mxu0  ;;  %v10918_v47 = vcombine.high %v648_v35, %v664_v3  ;;  %v10920_v29 = vcombine.high %v649_v60, %v665_v62 }
 0x317   : > { %v8225_v55 = vpop.f32.mrf.mxu1  ;;  %v15677_v21 = vadd.f32 %v8223_v38, %v8031_v17  ;;  %v8033_v45 = vadd.f32 %v8032_v48, %v15104_v0  ;;  %v696_v48 = vld [vmem:[%s12769_s10 + $0xcd0] sm:$0xff] }
 0x318   : > { %v8034_v46 = vpop.f32.mrf.mxu0 }
 0x319   : > { %v8227_v2 = vpop.f32.mrf.mxu1  ;;  %v15680_v32 = vadd.f32 %v8225_v55, %v8033_v45  ;;  %v8035_v30 = vadd.f32 %v8034_v46, %v15107_v57  ;;  %v680_v57 = vld [vmem:[%s12769_s10 + $0xc50] sm:$0xff]  ;;  %v681_v55 = vld [vmem:[%s12769_s10 + $0xc58] sm:$0xff] }
 0x31a   : > { %v8036_v61 = vpop.f32.mrf.mxu0  ;;  %v697_v45 = vld [vmem:[%s12769_s10 + $0xcd8] sm:$0xff] }
 0x31b   : > { %v8229_v5 = vpop.f32.mrf.mxu1  ;;  %v15683_v1 = vadd.f32 %v8227_v2, %v8035_v30  ;;  %v8037_v0 = vadd.f32 %v8036_v61, %v15110_v53 }
 0x31c   : > { %v8040_v38 = vpop.f32.mrf.mxu0  ;;  %8505 = vmatmul.mubr.bf16.gmra.mxu0 %v10885_v14  ;;  %v10917_v14 = vcombine.low %v648_v35, %v664_v3 }
 0x31d   : > { %v8233_v17 = vpop.f32.mrf.mxu1  ;;  %8698 = vmatmul.mubr.bf16.gmra.mxu1 %v10887_v56  ;;  %v15686_v31 = vadd.f32 %v8229_v5, %v8037_v0  ;;  %v8041_v39 = vadd.f32 %v8040_v38, %v15117_v50  ;;  %8514 = vmatprep.mubr.bf16.mxu0 %v10918_v47  ;;  %v10919_v56 = vcombine.low %v649_v60, %v665_v62 }
 0x31e   : > { %8707 = vmatprep.mubr.bf16.mxu1 %v10920_v29  ;;  %v8042_v28 = vpop.f32.mrf.mxu0  ;;  %v10950_v47 = vcombine.high %v680_v57, %v696_v48  ;;  %v10952_v29 = vcombine.high %v681_v55, %v697_v45 }
 0x31f   : > { %v8235_v10 = vpop.f32.mrf.mxu1  ;;  %v15693_v46 = vadd.f32 %v8233_v17, %v8041_v39  ;;  %v8043_v53 = vadd.f32 %v8042_v28, %v15120_v34  ;;  %v728_v28 = vld [vmem:[%s12769_s10 + $0xdd0] sm:$0xff] }
 0x320   : > { %v8044_v2 = vpop.f32.mrf.mxu0 }
 0x321   : > { %v8237_v30 = vpop.f32.mrf.mxu1  ;;  %v15696_v61 = vadd.f32 %v8235_v10, %v8043_v53  ;;  %v8045_v50 = vadd.f32 %v8044_v2, %v15123_v12  ;;  %v712_v12 = vld [vmem:[%s12769_s10 + $0xd50] sm:$0xff]  ;;  %v713_v10 = vld [vmem:[%s12769_s10 + $0xd58] sm:$0xff] }
 0x322   : > { %v8046_v5 = vpop.f32.mrf.mxu0  ;;  %v729_v53 = vld [vmem:[%s12769_s10 + $0xdd8] sm:$0xff] }
 0x323   : > { %v8239_v0 = vpop.f32.mrf.mxu1  ;;  %v15699_v38 = vadd.f32 %v8237_v30, %v8045_v50  ;;  %v8047_v34 = vadd.f32 %v8046_v5, %v15126_v51 }
 0x324   : > { %v8050_v17 = vpop.f32.mrf.mxu0  ;;  %8515 = vmatmul.mubr.bf16.gmra.mxu0 %v10917_v14  ;;  %v10949_v14 = vcombine.low %v680_v57, %v696_v48 }
 0x325   : > { %v8243_v39 = vpop.f32.mrf.mxu1  ;;  %8708 = vmatmul.mubr.bf16.gmra.mxu1 %v10919_v56  ;;  %v15702_v35 = vadd.f32 %v8239_v0, %v8047_v34  ;;  %v8051_v3 = vadd.f32 %v8050_v17, %v15133_v19  ;;  %8524 = vmatprep.mubr.bf16.mxu0 %v10950_v47  ;;  %v10951_v56 = vcombine.low %v681_v55, %v697_v45 }
 0x326   : > { %8717 = vmatprep.mubr.bf16.mxu1 %v10952_v29  ;;  %v8052_v60 = vpop.f32.mrf.mxu0  ;;  %v10982_v47 = vcombine.high %v712_v12, %v728_v28  ;;  %v10984_v29 = vcombine.high %v713_v10, %v729_v53 }
 0x327   : > { %v8245_v62 = vpop.f32.mrf.mxu1  ;;  %v15709_v2 = vadd.f32 %v8243_v39, %v8051_v3  ;;  %v8053_v51 = vadd.f32 %v8052_v60, %v15136_v37  ;;  %v760_v60 = vld [vmem:[%s12769_s10 + $0xed0] sm:$0xff] }
 0x328   : > { %v8054_v30 = vpop.f32.mrf.mxu0 }
 0x329   : > { %v8247_v50 = vpop.f32.mrf.mxu1  ;;  %v15712_v5 = vadd.f32 %v8245_v62, %v8053_v51  ;;  %v8055_v19 = vadd.f32 %v8054_v30, %v15139_v27  ;;  %v744_v27 = vld [vmem:[%s12769_s10 + $0xe50] sm:$0xff]  ;;  %v745_v62 = vld [vmem:[%s12769_s10 + $0xe58] sm:$0xff] }
 0x32a   : > { %v8056_v0 = vpop.f32.mrf.mxu0  ;;  %v761_v51 = vld [vmem:[%s12769_s10 + $0xed8] sm:$0xff] }
 0x32b   : > { %v8249_v34 = vpop.f32.mrf.mxu1  ;;  %v15715_v17 = vadd.f32 %v8247_v50, %v8055_v19  ;;  %v8057_v37 = vadd.f32 %v8056_v0, %v15142_v9 }
 0x32c   : > { %v8060_v39 = vpop.f32.mrf.mxu0  ;;  %8525 = vmatmul.mubr.bf16.gmra.mxu0 %v10949_v14  ;;  %v10981_v14 = vcombine.low %v712_v12, %v728_v28 }
 0x32d   : > { %v8253_v3 = vpop.f32.mrf.mxu1  ;;  %8718 = vmatmul.mubr.bf16.gmra.mxu1 %v10951_v56  ;;  %v15718_v57 = vadd.f32 %v8249_v34, %v8057_v37  ;;  %v8061_v48 = vadd.f32 %v8060_v39, %v15149_v7  ;;  %8534 = vmatprep.mubr.bf16.mxu0 %v10982_v47  ;;  %v10983_v56 = vcombine.low %v713_v10, %v729_v53 }
 0x32e   : > { %8727 = vmatprep.mubr.bf16.mxu1 %v10984_v29  ;;  %v8062_v55 = vpop.f32.mrf.mxu0  ;;  %v11014_v47 = vcombine.high %v744_v27, %v760_v60  ;;  %v11016_v29 = vcombine.high %v745_v62, %v761_v51 }
 0x32f   : > { %v8255_v45 = vpop.f32.mrf.mxu1  ;;  %v15725_v30 = vadd.f32 %v8253_v3, %v8061_v48  ;;  %v8063_v9 = vadd.f32 %v8062_v55, %v15152_v16  ;;  %v792_v55 = vld [vmem:[%s12769_s10 + $0xfd0] sm:$0xff] }
 0x330   : > { %v8064_v50 = vpop.f32.mrf.mxu0 }
 0x331   : > { %v8257_v19 = vpop.f32.mrf.mxu1  ;;  %v15728_v0 = vadd.f32 %v8255_v45, %v8063_v9  ;;  %v8065_v7 = vadd.f32 %v8064_v50, %v15155_v8  ;;  %v776_v8 = vld [vmem:[%s12769_s10 + $0xf50] sm:$0xff]  ;;  %v777_v45 = vld [vmem:[%s12769_s10 + $0xf58] sm:$0xff] }
 0x332   : > { %v8066_v34 = vpop.f32.mrf.mxu0  ;;  %v793_v9 = vld [vmem:[%s12769_s10 + $0xfd8] sm:$0xff] }
 0x333   : > { %v8259_v37 = vpop.f32.mrf.mxu1  ;;  %v15731_v39 = vadd.f32 %v8257_v19, %v8065_v7  ;;  %v8067_v16 = vadd.f32 %v8066_v34, %v15158_v41 }
 0x334   : > { %v8070_v3 = vpop.f32.mrf.mxu0  ;;  %8535 = vmatmul.mubr.bf16.gmra.mxu0 %v10981_v14  ;;  %v11013_v14 = vcombine.low %v744_v27, %v760_v60 }
 0x335   : > { %v8263_v48 = vpop.f32.mrf.mxu1  ;;  %8728 = vmatmul.mubr.bf16.gmra.mxu1 %v10983_v56  ;;  %v15734_v12 = vadd.f32 %v8259_v37, %v8067_v16  ;;  %v8071_v28 = vadd.f32 %v8070_v3, %v15165_v54  ;;  %8544 = vmatprep.mubr.bf16.mxu0 %v11014_v47  ;;  %v11015_v56 = vcombine.low %v745_v62, %v761_v51 }
 0x336   : > { %8737 = vmatprep.mubr.bf16.mxu1 %v11016_v29  ;;  %v8072_v10 = vpop.f32.mrf.mxu0  ;;  %v11046_v47 = vcombine.high %v776_v8, %v792_v55  ;;  %v11048_v29 = vcombine.high %v777_v45, %v793_v9 }
 0x337   : > { %v8265_v53 = vpop.f32.mrf.mxu1  ;;  %v15741_v50 = vadd.f32 %v8263_v48, %v8071_v28  ;;  %v8073_v41 = vadd.f32 %v8072_v10, %v15168_v59  ;;  %v314_v10 = vld [vmem:[%s12769_s10 + $0xe0] sm:$0xff] }
 0x338   : > { %v8074_v19 = vpop.f32.mrf.mxu0 }
 0x339   : > { %v8267_v7 = vpop.f32.mrf.mxu1  ;;  %v15744_v34 = vadd.f32 %v8265_v53, %v8073_v41  ;;  %v8075_v54 = vadd.f32 %v8074_v19, %v15171_v40  ;;  %v298_v40 = vld [vmem:[%s12769_s10 + $0x60] sm:$0xff]  ;;  %v299_v53 = vld [vmem:[%s12769_s10 + $0x68] sm:$0xff] }
 0x33a   : > { %v8076_v37 = vpop.f32.mrf.mxu0  ;;  %v315_v41 = vld [vmem:[%s12769_s10 + $0xe8] sm:$0xff] }
 0x33b   : > { %v8269_v16 = vpop.f32.mrf.mxu1  ;;  %v15747_v3 = vadd.f32 %v8267_v7, %v8075_v54  ;;  %v8077_v59 = vadd.f32 %v8076_v37, %v15174_v24 }
 0x33c   : > { %v8080_v48 = vpop.f32.mrf.mxu0  ;;  %8545 = vmatmul.mubr.bf16.gmra.mxu0 %v11013_v14  ;;  %v11045_v14 = vcombine.low %v776_v8, %v792_v55  ;;  %v17321_v55 = vld [vmem:[#allocation23_spill] sm:$0xff] }
 0x33d   : > { %v8273_v28 = vpop.f32.mrf.mxu1  ;;  %8738 = vmatmul.mubr.bf16.gmra.mxu1 %v11015_v56  ;;  %v15750_v27 = vadd.f32 %v8269_v16, %v8077_v59  ;;  %v8081_v60 = vadd.f32 %v8080_v48, %v15181_v22  ;;  %8554 = vmatprep.mubr.bf16.mxu0 %v11046_v47  ;;  %v11047_v56 = vcombine.low %v777_v45, %v793_v9 }
 0x33e   : > { %8747 = vmatprep.mubr.bf16.mxu1 %v11048_v29  ;;  %v8082_v62 = vpop.f32.mrf.mxu0  ;;  %v10570_v47 = vcombine.high %v298_v40, %v314_v10  ;;  %v10572_v29 = vcombine.high %v299_v53, %v315_v41 }
 0x33f   : > { %v8275_v51 = vpop.f32.mrf.mxu1  ;;  %v15757_v19 = vadd.f32 %v8273_v28, %v8081_v60  ;;  %v8083_v24 = vadd.f32 %v8082_v62, %v15184_v63  ;;  %v15770_v62 = vld [vmem:[%s12769_s10 + $0x160] sm:$0xff] }
 0x340   : > { %v8084_v7 = vpop.f32.mrf.mxu0 }
 0x341   : > { %v8277_v54 = vpop.f32.mrf.mxu1  ;;  %v15760_v37 = vadd.f32 %v8275_v51, %v8083_v24  ;;  %v8085_v22 = vadd.f32 %v8084_v7, %v15187_v20  ;;  %v17323_v24 = vld [vmem:[#allocation24_spill] sm:$0xff] }
 0x342   : > { %v8086_v16 = vpop.f32.mrf.mxu0 }
 0x343   : > { %v8279_v59 = vpop.f32.mrf.mxu1  ;;  %v15763_v48 = vadd.f32 %v8277_v54, %v8085_v22  ;;  %v8087_v28 = vadd.f32 %v8086_v16, %v15190_v15  ;;  %v15776_v15 = vld [vmem:[%s12769_s10 + $0x1e0] sm:$0xff]  ;;  %v15779_v54 = vld [vmem:[%s12769_s10 + $0x168] sm:$0xff]  ;;  %v10569_v16 = vcombine.low %v298_v40, %v314_v10 }
 0x344   : > { %v8090_v63 = vpop.f32.mrf.mxu0  ;;  %8555 = vmatmul.mubr.bf16.gmra.mxu0 %v11045_v14  ;;  %v15782_v14 = vld [vmem:[%s12769_s10 + $0x1e8] sm:$0xff] }
 0x345   : > { %v8283_v60 = vpop.f32.mrf.mxu1  ;;  %8748 = vmatmul.mubr.bf16.gmra.mxu1 %v11047_v56  ;;  %v15766_v8 = vadd.f32 %v8279_v59, %v8087_v28  ;;  %v8091_v20 = vadd.f32 %v8090_v63, %v17321_v55  ;;  %8790 = vmatprep.mubr.bf16.mxu0 %v10570_v47  ;;  %v10571_v59 = vcombine.low %v299_v53, %v315_v41  ;;  %v12413_v63 = vld [vmem:[%s17140_s1 + $0xe70] ss:$8 sps:$4 sm:$0xff]   ;;  %v17327_v53 = vld [vmem:[#allocation26_spill] sm:$0xff] }
 0x346   : > { %8983 = vmatprep.mubr.bf16.mxu1 %v10572_v29  ;;  %v8092_v45 = vpop.f32.mrf.mxu0  ;;  %v17325_v29 = vld [vmem:[#allocation25_spill] sm:$0xff]  ;;  %v10604_v40 = vcombine.high %v15779_v54, %v15782_v14 }
 0x347   : > { %17320 = vst [vmem:[#allocation21_spill] sm:$0xff] %v15766_v8  ;;  %v8285_v9 = vpop.f32.mrf.mxu1  ;;  %v15772_v51 = vadd.f32 %v8283_v60, %v8091_v20  ;;  %v8093_v7 = vadd.f32 %v8092_v45, %v17323_v24  ;;  %v12416_v60 = vld [vmem:[%s17140_s1 + $0xf70] ss:$8 sps:$4 sm:$0xff]   ;;  %v10602_v45 = vcombine.high %v15770_v62, %v15776_v15  ;;  %v12424_v24 = vld [vmem:[%s17140_s1 + $0xf64] ss:$8 sps:$4 sm:$0xff]  }
 0x348   : > { %v8094_v56 = vpop.f32.mrf.mxu0 }
 0x349   : > { %17322 = vst [vmem:[#allocation22_spill] sm:$0xff] %v15772_v51  ;;  %v8287_v22 = vpop.f32.mrf.mxu1  ;;  %v15784_v47 = vadd.f32 %v8285_v9, %v8093_v7  ;;  %v8095_v28 = vadd.f32 %v8094_v56, %v17325_v29  ;;  %v12421_v9 = vld [vmem:[%s17140_s1 + $0xe64] ss:$8 sps:$4 sm:$0xff]  }
 0x34a   : > { %v8096_v55 = vpop.f32.mrf.mxu0  ;;  %v15810_v29 = vld [vmem:[%s12769_s10 + $0x260] sm:$0xff]  ;;  %v15825_v51 = vld [vmem:[%s12769_s10 + $0x2e8] sm:$0xff] }
 0x34b   : > { %17324 = vst [vmem:[#allocation23_spill] sm:$0xff] %v15784_v47  ;;  %v8289_v20 = vpop.f32.mrf.mxu1  ;;  %v15797_v10 = vadd.f32 %v8287_v22, %v8095_v28  ;;  %v8097_v41 = vadd.f32 %v8096_v55, %v17327_v53  ;;  %v12419_v22 = vld [vmem:[%s17140_s1 + $0xe60] ss:$8 sps:$4 sm:$0xff]  }
 0x34c   : > { %v8100_v7 = vpop.f32.mrf.mxu0  ;;  %8791 = vmatmul.mubr.bf16.vlgmr.msra.gmra.mxu0 %v10569_v16  ;;  %v12422_v53 = vld [vmem:[%s17140_s1 + $0xf60] ss:$8 sps:$4 sm:$0xff]  }
 0x34d   : > { %17326 = vst [vmem:[#allocation24_spill] sm:$0xff] %v15797_v10  ;;  %v8293_v56 = vpop.f32.mrf.mxu1  ;;  %8984 = vmatmul.mubr.bf16.vlgmr.msra.gmra.mxu1 %v10571_v59  ;;  %v15812_v28 = vadd.f32 %v8289_v20, %v8097_v41  ;;  %v8101_v55 = vadd.f32 %v8100_v7, %v15257_v33  ;;  %9145 = vmatpush1.bf16.msra.mxu0 %v12413_v63  ;;  %v15819_v10 = vld [vmem:[%s12769_s10 + $0x2e0] sm:$0xff]  ;;  %v15822_v16 = vld [vmem:[%s12769_s10 + $0x268] sm:$0xff]  ;;  %v12427_v33 = vld [vmem:[%s17140_s1 + $0xe54] ss:$8 sps:$4 sm:$0xff]  }
 0x34e   : > { %9338 = vmatpush1.bf16.msra.mxu1 %v12416_v60  ;;  %v8102_v59 = vpop.f32.mrf.mxu0  ;;  %8800 = vmatprep.mubr.bf16.mxu0 %v10602_v45  ;;  %v12430_v63 = vld [vmem:[%s17140_s1 + $0xf54] ss:$8 sps:$4 sm:$0xff]   ;;  %v10601_v45 = vcombine.low %v15770_v62, %v15776_v15  ;;  %v12425_v62 = vld [vmem:[%s17140_s1 + $0xe50] ss:$8 sps:$4 sm:$0xff]  }
 0x34f   : > { %17328 = vst [vmem:[#allocation25_spill] sm:$0xff] %v15812_v28  ;;  %v8295_v47 = vpop.f32.mrf.mxu1  ;;  %8993 = vmatprep.mubr.bf16.mxu1 %v10604_v40  ;;  %v15833_v60 = vadd.f32 %v8293_v56, %v8101_v55  ;;  %v8103_v20 = vadd.f32 %v8102_v59, %v15266_v58  ;;  %9146 = vmatprep.subr.bf16.mxu0 %v12421_v9  ;;  %v12428_v15 = vld [vmem:[%s17140_s1 + $0xf50] ss:$8 sps:$4 sm:$0xff]   ;;  %v17329_v59 = vld [vmem:[#allocation27_spill] sm:$0xff] }
 0x350   : > { %9339 = vmatprep.subr.bf16.mxu1 %v12424_v24  ;;  %v8104_v41 = vpop.f32.mrf.mxu0  ;;  %v10603_v40 = vcombine.low %v15779_v54, %v15782_v14  ;;  %v10634_v28 = vcombine.high %v15810_v29, %v15819_v10  ;;  %v10636_v58 = vcombine.high %v15822_v16, %v15825_v51  ;;  %v12433_v14 = vld [vmem:[%s17140_s1 + $0xe44] ss:$8 sps:$4 sm:$0xff]  }
 0x351   : > { %v8297_v7 = vpop.f32.mrf.mxu1  ;;  %v15842_v8 = vadd.f32 %v8295_v47, %v8103_v20  ;;  %v8105_v56 = vadd.f32 %v8104_v41, %v15277_v18  ;;  %9147 = vmatpush1.bf16.msra.mxu0 %v12419_v22  ;;  %v12436_v47 = vld [vmem:[%s17140_s1 + $0xf44] ss:$8 sps:$4 sm:$0xff]  }
 0x352   : > { %9340 = vmatpush1.bf16.msra.mxu1 %v12422_v53  ;;  %v8106_v9 = vpop.f32.mrf.mxu0  ;;  %9148 = vmatprep.subr.bf16.mxu0 %v12427_v33  ;;  %v15872_v20 = vld [vmem:[%s12769_s10 + $0x368] sm:$0xff] }
 0x353   : > { %v8299_v24 = vpop.f32.mrf.mxu1  ;;  %9341 = vmatprep.subr.bf16.mxu1 %v12430_v63  ;;  %v15853_v18 = vadd.f32 %v8297_v7, %v8105_v56  ;;  %v8107_v54 = vadd.f32 %v8106_v9, %v15286_v25  ;;  %v15866_v25 = vld [vmem:[%s12769_s10 + $0x360] sm:$0xff]  ;;  %v15875_v56 = vld [vmem:[%s12769_s10 + $0x3e8] sm:$0xff]  ;;  %v12439_v9 = vld [vmem:[%s17140_s1 + $0xe34] ss:$8 sps:$4 sm:$0xff]  }
 0x354   : > { %v8110_v22 = vpop.f32.mrf.mxu0  ;;  %8801 = vmatmul.mubr.bf16.gmra.mxu0 %v10601_v45  ;;  %v15869_v63 = vld [vmem:[%s12769_s10 + $0x3e0] sm:$0xff] }
 0x355   : > { %v8303_v55 = vpop.f32.mrf.mxu1  ;;  %8994 = vmatmul.mubr.bf16.gmra.mxu1 %v10603_v40  ;;  %v15862_v53 = vadd.f32 %v8299_v24, %v8107_v54  ;;  %v8111_v33 = vadd.f32 %v8110_v22, %v17329_v59  ;;  %8810 = vmatprep.mubr.bf16.mxu0 %v10634_v28  ;;  %v12431_v45 = vld [vmem:[%s17140_s1 + $0xe40] ss:$8 sps:$4 sm:$0xff]   ;;  %v12442_v24 = vld [vmem:[%s17140_s1 + $0xf34] ss:$8 sps:$4 sm:$0xff]   ;;  %v10633_v54 = vcombine.low %v15810_v29, %v15819_v10  ;;  %v12437_v10 = vld [vmem:[%s17140_s1 + $0xe30] ss:$8 sps:$4 sm:$0xff]  }
 0x356   : > { %9003 = vmatprep.mubr.bf16.mxu1 %v10636_v58  ;;  %v8112_v41 = vpop.f32.mrf.mxu0  ;;  %9149 = vmatpush1.bf16.msra.mxu0 %v12425_v62  ;;  %v12434_v28 = vld [vmem:[%s17140_s1 + $0xf40] ss:$8 sps:$4 sm:$0xff]   ;;  %v10635_v22 = vcombine.low %v15822_v16, %v15825_v51  ;;  %v10668_v59 = vcombine.high %v15872_v20, %v15875_v56  ;;  %v12440_v51 = vld [vmem:[%s17140_s1 + $0xf30] ss:$8 sps:$4 sm:$0xff]  }
 0x357   : > { %v8305_v7 = vpop.f32.mrf.mxu1  ;;  %9342 = vmatpush1.bf16.msra.mxu1 %v12428_v15  ;;  %v15883_v40 = vadd.f32 %v8303_v55, %v8111_v33  ;;  %v8113_v58 = vadd.f32 %v8112_v41, %v15320_v26  ;;  %9150 = vmatprep.subr.bf16.mxu0 %v12433_v14  ;;  %v17331_v26 = vld [vmem:[#allocation28_spill] sm:$0xff]  ;;  %v17333_v16 = vld [vmem:[#allocation3_spill] sm:$0xff] }
 0x358   : > { %9343 = vmatprep.subr.bf16.mxu1 %v12436_v47  ;;  %v8114_v62 = vpop.f32.mrf.mxu0  ;;  %v10666_v47 = vcombine.high %v15866_v25, %v15869_v63 }
 0x359   : > { %v8307_v15 = vpop.f32.mrf.mxu1  ;;  %v15896_v55 = vadd.f32 %v8305_v7, %v8113_v58  ;;  %v8115_v14 = vadd.f32 %v8114_v62, %v17331_v26  ;;  %v17335_v26 = vld [vmem:[#allocation4_spill] sm:$0xff] }
 0x35a   : > { %v8116_v33 = vpop.f32.mrf.mxu0  ;;  %9151 = vmatpush1.bf16.msra.mxu0 %v12431_v45  ;;  %v12445_v45 = vld [vmem:[%s17140_s1 + $0xe24] ss:$8 sps:$4 sm:$0xff]  }
 0x35b   : > { %17330 = vst [vmem:[#allocation26_spill] sm:$0xff] %v15896_v55  ;;  %v8309_v41 = vpop.f32.mrf.mxu1  ;;  %9344 = vmatpush1.bf16.msra.mxu1 %v12434_v28  ;;  %v15909_v29 = vadd.f32 %v8307_v15, %v8115_v14  ;;  %v8117_v7 = vadd.f32 %v8116_v33, %v17333_v16  ;;  %9152 = vmatprep.subr.bf16.mxu0 %v12439_v9  ;;  %v12448_v28 = vld [vmem:[%s17140_s1 + $0xf24] ss:$8 sps:$4 sm:$0xff]  }
 0x35c   : > { %9345 = vmatprep.subr.bf16.mxu1 %v12442_v24  ;;  %v8120_v58 = vpop.f32.mrf.mxu0  ;;  %8811 = vmatmul.mubr.bf16.gmra.mxu0 %v10633_v54  ;;  %v15922_v9 = vld [vmem:[%s12769_s10 + $0x460] sm:$0xff]  ;;  %v15928_v33 = vld [vmem:[%s12769_s10 + $0x468] sm:$0xff] }
 0x35d   : > { %17332 = vst [vmem:[#allocation27_spill] sm:$0xff] %v15909_v29  ;;  %v8313_v62 = vpop.f32.mrf.mxu1  ;;  %9004 = vmatmul.mubr.bf16.gmra.mxu1 %v10635_v22  ;;  %v15918_v15 = vadd.f32 %v8309_v41, %v8117_v7  ;;  %v8121_v14 = vadd.f32 %v8120_v58, %v17335_v26  ;;  %8820 = vmatprep.mubr.bf16.mxu0 %v10666_v47  ;;  %v15925_v24 = vld [vmem:[%s12769_s10 + $0x4e0] sm:$0xff]  ;;  %v15931_v55 = vld [vmem:[%s12769_s10 + $0x4e8] sm:$0xff]  ;;  %v12451_v7 = vld [vmem:[%s17140_s1 + $0xe14] ss:$8 sps:$4 sm:$0xff]  }
 0x35e   : > { %9013 = vmatprep.mubr.bf16.mxu1 %v10668_v59  ;;  %v8122_v16 = vpop.f32.mrf.mxu0  ;;  %9153 = vmatpush1.bf16.msra.mxu0 %v12437_v10  ;;  %v12443_v54 = vld [vmem:[%s17140_s1 + $0xe20] ss:$8 sps:$4 sm:$0xff]   ;;  %v17337_v59 = vld [vmem:[#allocation5_spill] sm:$0xff]  ;;  %v10665_v26 = vcombine.low %v15866_v25, %v15869_v63 }
 0x35f   : > { %17334 = vst [vmem:[#allocation28_spill] sm:$0xff] %v15918_v15  ;;  %v8315_v29 = vpop.f32.mrf.mxu1  ;;  %9346 = vmatpush1.bf16.msra.mxu1 %v12440_v51  ;;  %v12446_v22 = vld [vmem:[%s17140_s1 + $0xf20] ss:$8 sps:$4 sm:$0xff]   ;;  %v15939_v47 = vadd.f32 %v8313_v62, %v8121_v14  ;;  %v8123_v41 = vadd.f32 %v8122_v16, %v17337_v59  ;;  %9154 = vmatprep.subr.bf16.mxu0 %v12445_v45  ;;  %v12454_v10 = vld [vmem:[%s17140_s1 + $0xf14] ss:$8 sps:$4 sm:$0xff]  }
 0x360   : > { %9347 = vmatprep.subr.bf16.mxu1 %v12448_v28  ;;  %v8124_v51 = vpop.f32.mrf.mxu0  ;;  %v10667_v62 = vcombine.low %v15872_v20, %v15875_v56  ;;  %v17339_v45 = vld [vmem:[#allocation6_spill] sm:$0xff]  ;;  %v10698_v16 = vcombine.high %v15922_v9, %v15925_v24  ;;  %v10700_v59 = vcombine.high %v15928_v33, %v15931_v55  ;;  %v12449_v25 = vld [vmem:[%s17140_s1 + $0xe10] ss:$8 sps:$4 sm:$0xff]   ;;  %v17341_v56 = vld [vmem:[#allocation7_spill] sm:$0xff] }
 0x361   : > { %17336 = vst [vmem:[#allocation3_spill] sm:$0xff] %v15939_v47  ;;  %v8317_v58 = vpop.f32.mrf.mxu1  ;;  %v15952_v14 = vadd.f32 %v8315_v29, %v8123_v41  ;;  %v8125_v28 = vadd.f32 %v8124_v51, %v17339_v45  ;;  %v12452_v63 = vld [vmem:[%s17140_s1 + $0xf10] ss:$8 sps:$4 sm:$0xff]  }
 0x362   : > { %v8126_v47 = vpop.f32.mrf.mxu0  ;;  %9155 = vmatpush1.bf16.msra.mxu0 %v12443_v54  ;;  %v12457_v54 = vld [vmem:[%s17140_s1 + $0xe04] ss:$8 sps:$4 sm:$0xff]   ;;  %v17343_v45 = vld [vmem:[#allocation8_spill] sm:$0xff] }
 0x363   : > { %17338 = vst [vmem:[#allocation4_spill] sm:$0xff] %v15952_v14  ;;  %v8319_v15 = vpop.f32.mrf.mxu1  ;;  %9348 = vmatpush1.bf16.msra.mxu1 %v12446_v22  ;;  %v15965_v20 = vadd.f32 %v8317_v58, %v8125_v28  ;;  %v8127_v29 = vadd.f32 %v8126_v47, %v17341_v56  ;;  %9156 = vmatprep.subr.bf16.mxu0 %v12451_v7  ;;  %v12460_v22 = vld [vmem:[%s17140_s1 + $0xf04] ss:$8 sps:$4 sm:$0xff]  }
 0x364   : > { %9349 = vmatprep.subr.bf16.mxu1 %v12454_v10  ;;  %v8130_v41 = vpop.f32.mrf.mxu0  ;;  %8821 = vmatmul.mubr.bf16.gmra.mxu0 %v10665_v26  ;;  %v15978_v47 = vld [vmem:[%s12769_s10 + $0x560] sm:$0xff]  ;;  %v15984_v10 = vld [vmem:[%s12769_s10 + $0x568] sm:$0xff] }
 0x365   : > { %17340 = vst [vmem:[#allocation5_spill] sm:$0xff] %v15965_v20  ;;  %v8323_v51 = vpop.f32.mrf.mxu1  ;;  %9014 = vmatmul.mubr.bf16.gmra.mxu1 %v10667_v62  ;;  %v15974_v58 = vadd.f32 %v8319_v15, %v8127_v29  ;;  %v8131_v28 = vadd.f32 %v8130_v41, %v17343_v45  ;;  %8830 = vmatprep.mubr.bf16.mxu0 %v10698_v16  ;;  %v15981_v7 = vld [vmem:[%s12769_s10 + $0x5e0] sm:$0xff]  ;;  %v15987_v14 = vld [vmem:[%s12769_s10 + $0x5e8] sm:$0xff]  ;;  %v17345_v16 = vld [vmem:[#allocation9_spill] sm:$0xff] }
 0x366   : > { %9023 = vmatprep.mubr.bf16.mxu1 %v10700_v59  ;;  %v8132_v56 = vpop.f32.mrf.mxu0  ;;  %9157 = vmatpush1.bf16.msra.mxu0 %v12449_v25  ;;  %v12455_v15 = vld [vmem:[%s17140_s1 + $0xe00] ss:$8 sps:$4 sm:$0xff]   ;;  %v12463_v29 = vld [vmem:[%s17140_s1 + $0xef4] ss:$8 sps:$4 sm:$0xff]   ;;  %v10697_v45 = vcombine.low %v15922_v9, %v15925_v24  ;;  %v12461_v9 = vld [vmem:[%s17140_s1 + $0xef0] ss:$8 sps:$4 sm:$0xff]  }
 0x367   : > { %17342 = vst [vmem:[#allocation6_spill] sm:$0xff] %v15974_v58  ;;  %v8325_v20 = vpop.f32.mrf.mxu1  ;;  %9350 = vmatpush1.bf16.msra.mxu1 %v12452_v63  ;;  %v12458_v26 = vld [vmem:[%s17140_s1 + $0xf00] ss:$8 sps:$4 sm:$0xff]   ;;  %v15995_v62 = vadd.f32 %v8323_v51, %v8131_v28  ;;  %v8133_v59 = vadd.f32 %v8132_v56, %v17345_v16  ;;  %9158 = vmatprep.subr.bf16.mxu0 %v12457_v54  ;;  %v12466_v25 = vld [vmem:[%s17140_s1 + $0xff4] ss:$8 sps:$4 sm:$0xff]  }
 0x368   : > { %9351 = vmatprep.subr.bf16.mxu1 %v12460_v22  ;;  %v8134_v63 = vpop.f32.mrf.mxu0  ;;  %v10699_v51 = vcombine.low %v15928_v33, %v15931_v55  ;;  %v17347_v54 = vld [vmem:[#allocation10_spill] sm:$0xff]  ;;  %v10730_v56 = vcombine.high %v15978_v47, %v15981_v7  ;;  %v10732_v16 = vcombine.high %v15984_v10, %v15987_v14  ;;  %v12464_v55 = vld [vmem:[%s17140_s1 + $0xff0] ss:$8 sps:$4 sm:$0xff]   ;;  %v17349_v33 = vld [vmem:[#allocation11_spill] sm:$0xff] }
 0x369   : > { %17344 = vst [vmem:[#allocation7_spill] sm:$0xff] %v15995_v62  ;;  %v8327_v41 = vpop.f32.mrf.mxu1  ;;  %v16008_v28 = vadd.f32 %v8325_v20, %v8133_v59  ;;  %v8135_v22 = vadd.f32 %v8134_v63, %v17347_v54  ;;  %v17351_v54 = vld [vmem:[#allocation12_spill] sm:$0xff] }
 0x36a   : > { %v8136_v62 = vpop.f32.mrf.mxu0  ;;  %9159 = vmatpush1.bf16.msra.mxu0 %v12455_v15  ;;  %v12469_v15 = vld [vmem:[%s17140_s1 + $0xee4] ss:$8 sps:$4 sm:$0xff]  }
 0x36b   : > { %17346 = vst [vmem:[#allocation8_spill] sm:$0xff] %v16008_v28  ;;  %v8329_v58 = vpop.f32.mrf.mxu1  ;;  %9352 = vmatpush1.bf16.msra.mxu1 %v12458_v26  ;;  %v16021_v24 = vadd.f32 %v8327_v41, %v8135_v22  ;;  %v8137_v20 = vadd.f32 %v8136_v62, %v17349_v33  ;;  %9160 = vmatprep.subr.bf16.mxu0 %v12463_v29  ;;  %v12472_v26 = vld [vmem:[%s17140_s1 + $0xfe4] ss:$8 sps:$4 sm:$0xff]  }
 0x36c   : > { %9353 = vmatprep.subr.bf16.mxu1 %v12466_v25  ;;  %v8140_v59 = vpop.f32.mrf.mxu0  ;;  %8831 = vmatmul.mubr.bf16.gmra.mxu0 %v10697_v45  ;;  %v16034_v62 = vld [vmem:[%s12769_s10 + $0x660] sm:$0xff]  ;;  %v16040_v25 = vld [vmem:[%s12769_s10 + $0x668] sm:$0xff] }
 0x36d   : > { %17348 = vst [vmem:[#allocation9_spill] sm:$0xff] %v16021_v24  ;;  %v8333_v63 = vpop.f32.mrf.mxu1  ;;  %9024 = vmatmul.mubr.bf16.gmra.mxu1 %v10699_v51  ;;  %v16030_v41 = vadd.f32 %v8329_v58, %v8137_v20  ;;  %v8141_v22 = vadd.f32 %v8140_v59, %v17351_v54  ;;  %8840 = vmatprep.mubr.bf16.mxu0 %v10730_v56  ;;  %v16037_v29 = vld [vmem:[%s12769_s10 + $0x6e0] sm:$0xff]  ;;  %v16043_v28 = vld [vmem:[%s12769_s10 + $0x6e8] sm:$0xff]  ;;  %v17353_v56 = vld [vmem:[#allocation13_spill] sm:$0xff] }
 0x36e   : > { %9033 = vmatprep.mubr.bf16.mxu1 %v10732_v16  ;;  %v8142_v33 = vpop.f32.mrf.mxu0  ;;  %9161 = vmatpush2.bf16.msra.mxu0 %v12461_v9  ;;  %v12467_v58 = vld [vmem:[%s17140_s1 + $0xee0] ss:$8 sps:$4 sm:$0xff]   ;;  %v12475_v20 = vld [vmem:[%s17140_s1 + $0xed4] ss:$8 sps:$4 sm:$0xff]   ;;  %v10729_v54 = vcombine.low %v15978_v47, %v15981_v7  ;;  %v12473_v47 = vld [vmem:[%s17140_s1 + $0xed0] ss:$8 sps:$4 sm:$0xff]  }
 0x36f   : > { %17350 = vst [vmem:[#allocation10_spill] sm:$0xff] %v16030_v41  ;;  %v8335_v24 = vpop.f32.mrf.mxu1  ;;  %9354 = vmatpush2.bf16.msra.mxu1 %v12464_v55  ;;  %v12470_v45 = vld [vmem:[%s17140_s1 + $0xfe0] ss:$8 sps:$4 sm:$0xff]   ;;  %v16051_v51 = vadd.f32 %v8333_v63, %v8141_v22  ;;  %v8143_v16 = vadd.f32 %v8142_v33, %v17353_v56  ;;  %9162 = vmatprep.subr.bf16.mxu0 %v12469_v15  ;;  %v12478_v9 = vld [vmem:[%s17140_s1 + $0xfd4] ss:$8 sps:$4 sm:$0xff]  }
 0x370   : > { %9355 = vmatprep.subr.bf16.mxu1 %v12472_v26  ;;  %v8144_v55 = vpop.f32.mrf.mxu0  ;;  %v10731_v63 = vcombine.low %v15984_v10, %v15987_v14  ;;  %v17355_v15 = vld [vmem:[#allocation14_spill] sm:$0xff]  ;;  %v10762_v33 = vcombine.high %v16034_v62, %v16037_v29  ;;  %v10764_v56 = vcombine.high %v16040_v25, %v16043_v28  ;;  %v12476_v14 = vld [vmem:[%s17140_s1 + $0xfd0] ss:$8 sps:$4 sm:$0xff]   ;;  %v17357_v10 = vld [vmem:[#allocation15_spill] sm:$0xff] }
 0x371   : > { %17352 = vst [vmem:[#allocation11_spill] sm:$0xff] %v16051_v51  ;;  %v8337_v59 = vpop.f32.mrf.mxu1  ;;  %v16064_v22 = vadd.f32 %v8335_v24, %v8143_v16  ;;  %v8145_v26 = vadd.f32 %v8144_v55, %v17355_v15  ;;  %v17359_v15 = vld [vmem:[#allocation16_spill] sm:$0xff] }
 0x372   : > { %v8146_v51 = vpop.f32.mrf.mxu0  ;;  %9163 = vmatpush2.bf16.msra.mxu0 %v12467_v58  ;;  %v12481_v58 = vld [vmem:[%s17140_s1 + $0xec4] ss:$8 sps:$4 sm:$0xff]  }
 0x373   : > { %17354 = vst [vmem:[#allocation12_spill] sm:$0xff] %v16064_v22  ;;  %v8339_v41 = vpop.f32.mrf.mxu1  ;;  %9356 = vmatpush2.bf16.msra.mxu1 %v12470_v45  ;;  %v16077_v7 = vadd.f32 %v8337_v59, %v8145_v26  ;;  %v8147_v24 = vadd.f32 %v8146_v51, %v17357_v10  ;;  %9164 = vmatprep.subr.bf16.mxu0 %v12475_v20  ;;  %v12484_v45 = vld [vmem:[%s17140_s1 + $0xfc4] ss:$8 sps:$4 sm:$0xff]  }
 0x374   : > { %9357 = vmatprep.subr.bf16.mxu1 %v12478_v9  ;;  %v8150_v16 = vpop.f32.mrf.mxu0  ;;  %8841 = vmatmul.mubr.bf16.gmra.mxu0 %v10729_v54  ;;  %v16090_v51 = vld [vmem:[%s12769_s10 + $0x760] sm:$0xff]  ;;  %v16096_v9 = vld [vmem:[%s12769_s10 + $0x768] sm:$0xff] }
 0x375   : > { %17356 = vst [vmem:[#allocation13_spill] sm:$0xff] %v16077_v7  ;;  %v8343_v55 = vpop.f32.mrf.mxu1  ;;  %9034 = vmatmul.mubr.bf16.gmra.mxu1 %v10731_v63  ;;  %v16086_v59 = vadd.f32 %v8339_v41, %v8147_v24  ;;  %v8151_v26 = vadd.f32 %v8150_v16, %v17359_v15  ;;  %8850 = vmatprep.mubr.bf16.mxu0 %v10762_v33  ;;  %v16093_v20 = vld [vmem:[%s12769_s10 + $0x7e0] sm:$0xff]  ;;  %v16099_v22 = vld [vmem:[%s12769_s10 + $0x7e8] sm:$0xff]  ;;  %v17361_v33 = vld [vmem:[#allocation17_spill] sm:$0xff] }
 0x376   : > { %9043 = vmatprep.mubr.bf16.mxu1 %v10764_v56  ;;  %v8152_v10 = vpop.f32.mrf.mxu0  ;;  %9165 = vmatpush2.bf16.msra.mxu0 %v12473_v47  ;;  %v12479_v41 = vld [vmem:[%s17140_s1 + $0xec0] ss:$8 sps:$4 sm:$0xff]   ;;  %v12487_v24 = vld [vmem:[%s17140_s1 + $0xeb4] ss:$8 sps:$4 sm:$0xff]   ;;  %v10761_v15 = vcombine.low %v16034_v62, %v16037_v29  ;;  %v12485_v62 = vld [vmem:[%s17140_s1 + $0xeb0] ss:$8 sps:$4 sm:$0xff]  }
 0x377   : > { %17358 = vst [vmem:[#allocation14_spill] sm:$0xff] %v16086_v59  ;;  %v8345_v7 = vpop.f32.mrf.mxu1  ;;  %9358 = vmatpush2.bf16.msra.mxu1 %v12476_v14  ;;  %v12482_v54 = vld [vmem:[%s17140_s1 + $0xfc0] ss:$8 sps:$4 sm:$0xff]   ;;  %v16107_v63 = vadd.f32 %v8343_v55, %v8151_v26  ;;  %v8153_v56 = vadd.f32 %v8152_v10, %v17361_v33  ;;  %9166 = vmatprep.subr.bf16.mxu0 %v12481_v58  ;;  %v12490_v47 = vld [vmem:[%s17140_s1 + $0xfb4] ss:$8 sps:$4 sm:$0xff]  }
 0x378   : > { %9359 = vmatprep.subr.bf16.mxu1 %v12484_v45  ;;  %v8154_v14 = vpop.f32.mrf.mxu0  ;;  %v10763_v55 = vcombine.low %v16040_v25, %v16043_v28  ;;  %v17362_v58 = vld [vmem:[#allocation18_spill] sm:$0xff]  ;;  %v10794_v10 = vcombine.high %v16090_v51, %v16093_v20  ;;  %v10796_v33 = vcombine.high %v16096_v9, %v16099_v22  ;;  %v12488_v28 = vld [vmem:[%s17140_s1 + $0xfb0] ss:$8 sps:$4 sm:$0xff]  }
 0x379   : > { %17360 = vst [vmem:[#allocation15_spill] sm:$0xff] %v16107_v63  ;;  %v8347_v16 = vpop.f32.mrf.mxu1  ;;  %v16120_v26 = vadd.f32 %v8345_v7, %v8153_v56  ;;  %v8155_v45 = vadd.f32 %v8154_v14, %v17362_v58  ;;  %v12493_v7 = vld [vmem:[%s17140_s1 + $0xea4] ss:$8 sps:$4 sm:$0xff]  }
 0x37a   : > { %v8156_v63 = vpop.f32.mrf.mxu0  ;;  %9167 = vmatpush2.bf16.msra.mxu0 %v12479_v41  ;;  %v12496_v41 = vld [vmem:[%s17140_s1 + $0xfa4] ss:$8 sps:$4 sm:$0xff]  }
 0x37b   : > { %v8349_v59 = vpop.f32.mrf.mxu1  ;;  %9360 = vmatpush2.bf16.msra.mxu1 %v12482_v54  ;;  %v16133_v29 = vadd.f32 %v8347_v16, %v8155_v45  ;;  %v8157_v25 = vadd.f32 %v8156_v63, %v15566_v49  ;;  %9168 = vmatprep.subr.bf16.mxu0 %v12487_v24  ;;  %v17364_v16 = vld [vmem:[#allocation19_spill] sm:$0xff]  ;;  %v16146_v49 = vld [vmem:[%s12769_s10 + $0x860] sm:$0xff] }
 0x37c   : > { %9361 = vmatprep.subr.bf16.mxu1 %v12490_v47  ;;  %v8160_v54 = vpop.f32.mrf.mxu0  ;;  %8851 = vmatmul.mubr.bf16.gmra.mxu0 %v10761_v15  ;;  %v16149_v63 = vld [vmem:[%s12769_s10 + $0x8e0] sm:$0xff]  ;;  %v16152_v24 = vld [vmem:[%s12769_s10 + $0x868] sm:$0xff] }
 0x37d   : > { %17363 = vst [vmem:[#allocation16_spill] sm:$0xff] %v16133_v29  ;;  %v8353_v56 = vpop.f32.mrf.mxu1  ;;  %9044 = vmatmul.mubr.bf16.gmra.mxu1 %v10763_v55  ;;  %v16142_v14 = vadd.f32 %v8349_v59, %v8157_v25  ;;  %v8161_v58 = vadd.f32 %v8160_v54, %v17364_v16  ;;  %8860 = vmatprep.mubr.bf16.mxu0 %v10794_v10  ;;  %v16155_v29 = vld [vmem:[%s12769_s10 + $0x8e8] sm:$0xff] }
 0x37e   : > { %9053 = vmatprep.mubr.bf16.mxu1 %v10796_v33  ;;  %v8162_v47 = vpop.f32.mrf.mxu0  ;;  %9169 = vmatpush2.bf16.msra.mxu0 %v12485_v62  ;;  %v12491_v59 = vld [vmem:[%s17140_s1 + $0xea0] ss:$8 sps:$4 sm:$0xff]   ;;  %v12499_v33 = vld [vmem:[%s17140_s1 + $0xe94] ss:$8 sps:$4 sm:$0xff]   ;;  %v10793_v54 = vcombine.low %v16090_v51, %v16093_v20  ;;  %v12497_v51 = vld [vmem:[%s17140_s1 + $0xe90] ss:$8 sps:$4 sm:$0xff]  }
 0x37f   : > { %v8355_v45 = vpop.f32.mrf.mxu1  ;;  %9362 = vmatpush2.bf16.msra.mxu1 %v12488_v28  ;;  %v12494_v15 = vld [vmem:[%s17140_s1 + $0xfa0] ss:$8 sps:$4 sm:$0xff]   ;;  %v16163_v55 = vadd.f32 %v8353_v56, %v8161_v58  ;;  %v8163_v10 = vadd.f32 %v8162_v47, %v15600_v44  ;;  %9170 = vmatprep.subr.bf16.mxu0 %v12493_v7  ;;  %v12502_v62 = vld [vmem:[%s17140_s1 + $0xf94] ss:$8 sps:$4 sm:$0xff]   ;;  %v10795_v56 = vcombine.low %v16096_v9, %v16099_v22  ;;  %v12500_v22 = vld [vmem:[%s17140_s1 + $0xf90] ss:$8 sps:$4 sm:$0xff]  }
 0x380   : > { %9363 = vmatprep.subr.bf16.mxu1 %v12496_v41  ;;  %v8164_v28 = vpop.f32.mrf.mxu0  ;;  %v17366_v44 = vld [vmem:[#allocation20_spill] sm:$0xff]  ;;  %v10826_v41 = vcombine.high %v16146_v49, %v16149_v63  ;;  %v10828_v58 = vcombine.high %v16152_v24, %v16155_v29 }
 0x381   : > { %17365 = vst [vmem:[#allocation17_spill] sm:$0xff] %v16163_v55  ;;  %v8357_v25 = vpop.f32.mrf.mxu1  ;;  %v16176_v16 = vadd.f32 %v8355_v45, %v8163_v10  ;;  %v8165_v7 = vadd.f32 %v8164_v28, %v17366_v44  ;;  %v12505_v45 = vld [vmem:[%s17140_s1 + $0xe84] ss:$8 sps:$4 sm:$0xff]  }
 0x382   : > { %v8166_v47 = vpop.f32.mrf.mxu0  ;;  %9171 = vmatpush2.bf16.msra.mxu0 %v12491_v59  ;;  %v12508_v59 = vld [vmem:[%s17140_s1 + $0xf84] ss:$8 sps:$4 sm:$0xff]  }
 0x383   : > { %v8359_v55 = vpop.f32.mrf.mxu1  ;;  %9364 = vmatpush2.bf16.msra.mxu1 %v12494_v15  ;;  %v16189_v20 = vadd.f32 %v8357_v25, %v8165_v7  ;;  %v8167_v9 = vadd.f32 %v8166_v47, %v15622_v23  ;;  %9172 = vmatprep.subr.bf16.mxu0 %v12499_v33  ;;  %v586_v23 = vld [vmem:[%s12769_s10 + $0x960] sm:$0xff]  ;;  %v603_v47 = vld [vmem:[%s12769_s10 + $0x9e8] sm:$0xff] }
 0x384   : > { %9365 = vmatprep.subr.bf16.mxu1 %v12502_v62  ;;  %v8170_v15 = vpop.f32.mrf.mxu0  ;;  %8861 = vmatmul.mubr.bf16.gmra.mxu0 %v10793_v54  ;;  %v602_v33 = vld [vmem:[%s12769_s10 + $0x9e0] sm:$0xff]  ;;  %v587_v62 = vld [vmem:[%s12769_s10 + $0x968] sm:$0xff] }
 0x385   : > { %17367 = vst [vmem:[#allocation18_spill] sm:$0xff] %v16189_v20  ;;  %v8363_v10 = vpop.f32.mrf.mxu1  ;;  %9054 = vmatmul.mubr.bf16.gmra.mxu1 %v10795_v56  ;;  %v16198_v28 = vadd.f32 %v8359_v55, %v8167_v9  ;;  %v8171_v25 = vadd.f32 %v8170_v15, %v15635_v6  ;;  %8870 = vmatprep.mubr.bf16.mxu0 %v10826_v41  ;;  %v12503_v20 = vld [vmem:[%s17140_s1 + $0xe80] ss:$8 sps:$4 sm:$0xff]  }
 0x386   : > { %9063 = vmatprep.mubr.bf16.mxu1 %v10828_v58  ;;  %v8172_v44 = vpop.f32.mrf.mxu0  ;;  %9173 = vmatpush2.bf16.msra.mxu0 %v12497_v51  ;;  %v12506_v55 = vld [vmem:[%s17140_s1 + $0xf80] ss:$8 sps:$4 sm:$0xff]   ;;  %v10825_v58 = vcombine.low %v16146_v49, %v16149_v63  ;;  %v10827_v51 = vcombine.low %v16152_v24, %v16155_v29  ;;  %v10858_v15 = vcombine.high %v586_v23, %v602_v33 }
 0x387   : > { %v8365_v7 = vpop.f32.mrf.mxu1  ;;  %9366 = vmatpush2.bf16.msra.mxu1 %v12500_v22  ;;  %v16211_v54 = vadd.f32 %v8363_v10, %v8171_v25  ;;  %v8173_v6 = vadd.f32 %v8172_v44, %v15648_v42  ;;  %9174 = vmatprep.subr.bf16.mxu0 %v12505_v45  ;;  %v10860_v10 = vcombine.high %v587_v62, %v603_v47  ;;  %v618_v45 = vld [vmem:[%s12769_s10 + $0xa60] sm:$0xff] }
 0x388   : > { %9367 = vmatprep.subr.bf16.mxu1 %v12508_v59  ;;  %v8174_v56 = vpop.f32.mrf.mxu0  ;;  %v634_v44 = vld [vmem:[%s12769_s10 + $0xae0] sm:$0xff] }
 0x389   : > { %17368 = vst [vmem:[#allocation19_spill] sm:$0xff] %v16211_v54  ;;  %v8367_v41 = vpop.f32.mrf.mxu1  ;;  %v16218_v22 = vadd.f32 %v8365_v7, %v8173_v6  ;;  %v8175_v9 = vadd.f32 %v8174_v56, %v15651_v52  ;;  %v619_v7 = vld [vmem:[%s12769_s10 + $0xa68] sm:$0xff] }
 0x38a   : > { %v8176_v25 = vpop.f32.mrf.mxu0  ;;  %9175 = vmatpush2.bf16.msra.mxu0 %v12503_v20 }
 0x38b   : > { %v8369_v54 = vpop.f32.mrf.mxu1  ;;  %9368 = vmatpush2.bf16.msra.mxu1 %v12506_v55  ;;  %v16221_v42 = vadd.f32 %v8367_v41, %v8175_v9  ;;  %v8177_v49 = vadd.f32 %v8176_v25, %v15654_v13  ;;  %v635_v55 = vld [vmem:[%s12769_s10 + $0xae8] sm:$0xff]  ;;  %v10890_v9 = vcombine.high %v618_v45, %v634_v44 }
 0x38c   : > { %v8406_v63 = vpop.f32.mrf.mxu0  ;;  %8871 = vmatmul.mubr.bf16.gmra.mxu0 %v10825_v58  ;;  %v10857_v58 = vcombine.low %v586_v23, %v602_v33 }
 0x38d   : > { %v8599_v29 = vpop.f32.mrf.mxu1  ;;  %9064 = vmatmul.mubr.bf16.gmra.mxu1 %v10827_v51  ;;  %v16224_v24 = vadd.f32 %v8369_v54, %v8177_v49  ;;  %v8407_v52 = vadd.f32 %v8406_v63, %v15661_v36  ;;  %8880 = vmatprep.mubr.bf16.mxu0 %v10858_v15  ;;  %v10859_v51 = vcombine.low %v587_v62, %v603_v47 }
 0x38e   : > { %9073 = vmatprep.mubr.bf16.mxu1 %v10860_v10  ;;  %v8408_v59 = vpop.f32.mrf.mxu0  ;;  %v10892_v15 = vcombine.high %v619_v7, %v635_v55 }
 0x38f   : > { %v8601_v20 = vpop.f32.mrf.mxu1  ;;  %v16231_v6 = vadd.f32 %v8599_v29, %v8407_v52  ;;  %v8409_v13 = vadd.f32 %v8408_v59, %v15664_v43  ;;  %v666_v52 = vld [vmem:[%s12769_s10 + $0xbe0] sm:$0xff]  ;;  %v651_v59 = vld [vmem:[%s12769_s10 + $0xb68] sm:$0xff] }
 0x390   : > { %v8410_v56 = vpop.f32.mrf.mxu0 }
 0x391   : > { %v8603_v41 = vpop.f32.mrf.mxu1  ;;  %v16234_v54 = vadd.f32 %v8601_v20, %v8409_v13  ;;  %v8411_v36 = vadd.f32 %v8410_v56, %v15667_v4  ;;  %v650_v4 = vld [vmem:[%s12769_s10 + $0xb60] sm:$0xff]  ;;  %v667_v20 = vld [vmem:[%s12769_s10 + $0xbe8] sm:$0xff] }
 0x392   : > { %v8412_v10 = vpop.f32.mrf.mxu0 }
 0x393   : > { %v8605_v25 = vpop.f32.mrf.mxu1  ;;  %v16237_v49 = vadd.f32 %v8603_v41, %v8411_v36  ;;  %v8413_v43 = vadd.f32 %v8412_v10, %v15670_v11 }
 0x394   : > { %v8416_v63 = vpop.f32.mrf.mxu0  ;;  %8881 = vmatmul.mubr.bf16.gmra.mxu0 %v10857_v58  ;;  %v10889_v58 = vcombine.low %v618_v45, %v634_v44 }
 0x395   : > { %v8609_v29 = vpop.f32.mrf.mxu1  ;;  %9074 = vmatmul.mubr.bf16.gmra.mxu1 %v10859_v51  ;;  %v16240_v23 = vadd.f32 %v8605_v25, %v8413_v43  ;;  %v8417_v33 = vadd.f32 %v8416_v63, %v15677_v21  ;;  %8890 = vmatprep.mubr.bf16.mxu0 %v10890_v9  ;;  %v10891_v51 = vcombine.low %v619_v7, %v635_v55 }
 0x396   : > { %9083 = vmatprep.mubr.bf16.mxu1 %v10892_v15  ;;  %v8418_v62 = vpop.f32.mrf.mxu0  ;;  %v10922_v9 = vcombine.high %v650_v4, %v666_v52  ;;  %v10924_v15 = vcombine.high %v651_v59, %v667_v20 }
 0x397   : > { %v8611_v47 = vpop.f32.mrf.mxu1  ;;  %v16247_v13 = vadd.f32 %v8609_v29, %v8417_v33  ;;  %v8419_v11 = vadd.f32 %v8418_v62, %v15680_v32  ;;  %v698_v33 = vld [vmem:[%s12769_s10 + $0xce0] sm:$0xff]  ;;  %v683_v62 = vld [vmem:[%s12769_s10 + $0xc68] sm:$0xff] }
 0x398   : > { %v8420_v56 = vpop.f32.mrf.mxu0 }
 0x399   : > { %v8613_v41 = vpop.f32.mrf.mxu1  ;;  %v16250_v36 = vadd.f32 %v8611_v47, %v8419_v11  ;;  %v8421_v21 = vadd.f32 %v8420_v56, %v15683_v1  ;;  %v682_v1 = vld [vmem:[%s12769_s10 + $0xc60] sm:$0xff]  ;;  %v699_v47 = vld [vmem:[%s12769_s10 + $0xce8] sm:$0xff]  ;;  %v12511_v56 = vld [vmem:[%s17142_s3 + $0x74] ss:$8 sps:$4 sm:$0xff]  }
 0x39a   : > { %v8422_v10 = vpop.f32.mrf.mxu0  ;;  %9830 = vmatprep.subr.bf16.mxu0 %v12511_v56 }
 0x39b   : > { %v8615_v25 = vpop.f32.mrf.mxu1  ;;  %v16253_v43 = vadd.f32 %v8613_v41, %v8421_v21  ;;  %v8423_v32 = vadd.f32 %v8422_v10, %v15686_v31  ;;  %v10956_v10 = vcombine.high %v683_v62, %v699_v47 }
 0x39c   : > { %v8426_v63 = vpop.f32.mrf.mxu0  ;;  %8891 = vmatmul.mubr.bf16.gmra.mxu0 %v10889_v58 }
 0x39d   : > { %v8619_v29 = vpop.f32.mrf.mxu1  ;;  %9084 = vmatmul.mubr.bf16.gmra.mxu1 %v10891_v51  ;;  %v16256_v45 = vadd.f32 %v8615_v25, %v8423_v32  ;;  %v8427_v44 = vadd.f32 %v8426_v63, %v15693_v46  ;;  %8900 = vmatprep.mubr.bf16.mxu0 %v10922_v9  ;;  %v10921_v51 = vcombine.low %v650_v4, %v666_v52 }
 0x39e   : > { %9093 = vmatprep.mubr.bf16.mxu1 %v10924_v15  ;;  %v8428_v7 = vpop.f32.mrf.mxu0  ;;  %v10923_v46 = vcombine.low %v651_v59, %v667_v20  ;;  %v10954_v15 = vcombine.high %v682_v1, %v698_v33  ;;  %v714_v59 = vld [vmem:[%s12769_s10 + $0xd60] sm:$0xff] }
 0x39f   : > { %v8621_v55 = vpop.f32.mrf.mxu1  ;;  %v16263_v11 = vadd.f32 %v8619_v29, %v8427_v44  ;;  %v8429_v31 = vadd.f32 %v8428_v7, %v15696_v61  ;;  %v730_v7 = vld [vmem:[%s12769_s10 + $0xde0] sm:$0xff] }
 0x3a0   : > { %v8430_v41 = vpop.f32.mrf.mxu0 }
 0x3a1   : > { %v8623_v58 = vpop.f32.mrf.mxu1  ;;  %v16269_v21 = vadd.f32 %v8621_v55, %v8429_v31  ;;  %v8431_v9 = vadd.f32 %v8430_v41, %v15699_v38  ;;  %v715_v55 = vld [vmem:[%s12769_s10 + $0xd68] sm:$0xff] }
 0x3a2   : > { %v8432_v25 = vpop.f32.mrf.mxu0  ;;  %v731_v31 = vld [vmem:[%s12769_s10 + $0xde8] sm:$0xff] }
 0x3a3   : > { %v8625_v61 = vpop.f32.mrf.mxu1  ;;  %v16272_v32 = vadd.f32 %v8623_v58, %v8431_v9  ;;  %v8433_v63 = vadd.f32 %v8432_v25, %v15702_v35 }
 0x3a4   : > { %v8436_v29 = vpop.f32.mrf.mxu0  ;;  %8901 = vmatmul.mubr.bf16.gmra.mxu0 %v10921_v51  ;;  %v10953_v51 = vcombine.low %v682_v1, %v698_v33 }
 0x3a5   : > { %v8629_v4 = vpop.f32.mrf.mxu1  ;;  %9094 = vmatmul.mubr.bf16.gmra.mxu1 %v10923_v46  ;;  %v16275_v52 = vadd.f32 %v8625_v61, %v8433_v63  ;;  %v8437_v38 = vadd.f32 %v8436_v29, %v15709_v2  ;;  %8910 = vmatprep.mubr.bf16.mxu0 %v10954_v15  ;;  %v10955_v46 = vcombine.low %v683_v62, %v699_v47 }
 0x3a6   : > { %9103 = vmatprep.mubr.bf16.mxu1 %v10956_v10  ;;  %v8438_v20 = vpop.f32.mrf.mxu0  ;;  %v10986_v15 = vcombine.high %v714_v59, %v730_v7  ;;  %v10988_v10 = vcombine.high %v715_v55, %v731_v31 }
 0x3a7   : > { %v8631_v44 = vpop.f32.mrf.mxu1  ;;  %v16282_v56 = vadd.f32 %v8629_v4, %v8437_v38  ;;  %v8439_v35 = vadd.f32 %v8438_v20, %v15712_v5  ;;  %v762_v38 = vld [vmem:[%s12769_s10 + $0xee0] sm:$0xff]  ;;  %v747_v20 = vld [vmem:[%s12769_s10 + $0xe68] sm:$0xff] }
 0x3a8   : > { %v8440_v41 = vpop.f32.mrf.mxu0 }
 0x3a9   : > { %v8633_v58 = vpop.f32.mrf.mxu1  ;;  %v16285_v9 = vadd.f32 %v8631_v44, %v8439_v35  ;;  %v8441_v2 = vadd.f32 %v8440_v41, %v15715_v17  ;;  %v746_v17 = vld [vmem:[%s12769_s10 + $0xe60] sm:$0xff]  ;;  %v763_v44 = vld [vmem:[%s12769_s10 + $0xee8] sm:$0xff] }
 0x3aa   : > { %v8442_v25 = vpop.f32.mrf.mxu0 }
 0x3ab   : > { %v8635_v61 = vpop.f32.mrf.mxu1  ;;  %v16288_v63 = vadd.f32 %v8633_v58, %v8441_v2  ;;  %v8443_v5 = vadd.f32 %v8442_v25, %v15718_v57 }
 0x3ac   : > { %v8446_v29 = vpop.f32.mrf.mxu0  ;;  %8911 = vmatmul.mubr.bf16.gmra.mxu0 %v10953_v51  ;;  %v10985_v51 = vcombine.low %v714_v59, %v730_v7 }
 0x3ad   : > { %v8639_v4 = vpop.f32.mrf.mxu1  ;;  %9104 = vmatmul.mubr.bf16.gmra.mxu1 %v10955_v46  ;;  %v16291_v1 = vadd.f32 %v8635_v61, %v8443_v5  ;;  %v8447_v33 = vadd.f32 %v8446_v29, %v15725_v30  ;;  %8920 = vmatprep.mubr.bf16.mxu0 %v10986_v15  ;;  %v10987_v46 = vcombine.low %v715_v55, %v731_v31 }
 0x3ae   : > { %9113 = vmatprep.mubr.bf16.mxu1 %v10988_v10  ;;  %v8448_v62 = vpop.f32.mrf.mxu0  ;;  %v11018_v15 = vcombine.high %v746_v17, %v762_v38  ;;  %v11020_v10 = vcombine.high %v747_v20, %v763_v44 }
 0x3af   : > { %v8641_v47 = vpop.f32.mrf.mxu1  ;;  %v16298_v35 = vadd.f32 %v8639_v4, %v8447_v33  ;;  %v8449_v57 = vadd.f32 %v8448_v62, %v15728_v0  ;;  %v794_v33 = vld [vmem:[%s12769_s10 + $0xfe0] sm:$0xff]  ;;  %v779_v62 = vld [vmem:[%s12769_s10 + $0xf68] sm:$0xff] }
 0x3b0   : > { %v8450_v41 = vpop.f32.mrf.mxu0 }
 0x3b1   : > { %v8643_v58 = vpop.f32.mrf.mxu1  ;;  %v16301_v2 = vadd.f32 %v8641_v47, %v8449_v57  ;;  %v8451_v30 = vadd.f32 %v8450_v41, %v15731_v39  ;;  %v778_v39 = vld [vmem:[%s12769_s10 + $0xf60] sm:$0xff]  ;;  %v795_v47 = vld [vmem:[%s12769_s10 + $0xfe8] sm:$0xff] }
 0x3b2   : > { %v8452_v25 = vpop.f32.mrf.mxu0 }
 0x3b3   : > { %v8645_v61 = vpop.f32.mrf.mxu1  ;;  %v16304_v5 = vadd.f32 %v8643_v58, %v8451_v30  ;;  %v8453_v0 = vadd.f32 %v8452_v25, %v15734_v12 }
 0x3b4   : > { %v8456_v29 = vpop.f32.mrf.mxu0  ;;  %8921 = vmatmul.mubr.bf16.gmra.mxu0 %v10985_v51  ;;  %v11017_v51 = vcombine.low %v746_v17, %v762_v38 }
 0x3b5   : > { %v8649_v4 = vpop.f32.mrf.mxu1  ;;  %9114 = vmatmul.mubr.bf16.gmra.mxu1 %v10987_v46  ;;  %v16307_v59 = vadd.f32 %v8645_v61, %v8453_v0  ;;  %v8457_v7 = vadd.f32 %v8456_v29, %v15741_v50  ;;  %8930 = vmatprep.mubr.bf16.mxu0 %v11018_v15  ;;  %v11019_v46 = vcombine.low %v747_v20, %v763_v44 }
 0x3b6   : > { %9123 = vmatprep.mubr.bf16.mxu1 %v11020_v10  ;;  %v8458_v55 = vpop.f32.mrf.mxu0  ;;  %v11050_v15 = vcombine.high %v778_v39, %v794_v33  ;;  %v11052_v10 = vcombine.high %v779_v62, %v795_v47 }
 0x3b7   : > { %17369 = vst [vmem:[#allocation20_spill] sm:$0xff] %v16307_v59  ;;  %v8651_v31 = vpop.f32.mrf.mxu1  ;;  %v16314_v57 = vadd.f32 %v8649_v4, %v8457_v7  ;;  %v8459_v12 = vadd.f32 %v8458_v55, %v15744_v34  ;;  %v316_v7 = vld [vmem:[%s12769_s10 + $0xf0] sm:$0xff]  ;;  %v301_v55 = vld [vmem:[%s12769_s10 + $0x78] sm:$0xff] }
 0x3b8   : > { %v8460_v41 = vpop.f32.mrf.mxu0  ;;  %v445_v59 = vld [vmem:[%s12769_s10 + $0x4f8] sm:$0xff] }
 0x3b9   : > { %v8653_v58 = vpop.f32.mrf.mxu1  ;;  %v16317_v30 = vadd.f32 %v8651_v31, %v8459_v12  ;;  %v8461_v50 = vadd.f32 %v8460_v41, %v15747_v3  ;;  %v300_v3 = vld [vmem:[%s12769_s10 + $0x70] sm:$0xff]  ;;  %v317_v31 = vld [vmem:[%s12769_s10 + $0xf8] sm:$0xff] }
 0x3ba   : > { %v8462_v25 = vpop.f32.mrf.mxu0 }
 0x3bb   : > { %v8655_v61 = vpop.f32.mrf.mxu1  ;;  %v16320_v0 = vadd.f32 %v8653_v58, %v8461_v50  ;;  %v8463_v34 = vadd.f32 %v8462_v25, %v15750_v27 }
 0x3bc   : > { %v8466_v29 = vpop.f32.mrf.mxu0  ;;  %8931 = vmatmul.mubr.bf16.gmra.mxu0 %v11017_v51  ;;  %v11049_v51 = vcombine.low %v778_v39, %v794_v33  ;;  %v17373_v33 = vld [vmem:[#allocation22_spill] sm:$0xff] }
 0x3bd   : > { %v8659_v4 = vpop.f32.mrf.mxu1  ;;  %9124 = vmatmul.mubr.bf16.gmra.mxu1 %v11019_v46  ;;  %v16323_v17 = vadd.f32 %v8655_v61, %v8463_v34  ;;  %v8467_v38 = vadd.f32 %v8466_v29, %v15757_v19  ;;  %8940 = vmatprep.mubr.bf16.mxu0 %v11050_v15  ;;  %v11051_v46 = vcombine.low %v779_v62, %v795_v47  ;;  %v17371_v29 = vld [vmem:[#allocation21_spill] sm:$0xff] }
 0x3be   : > { %9133 = vmatprep.mubr.bf16.mxu1 %v11052_v10  ;;  %v8468_v20 = vpop.f32.mrf.mxu0  ;;  %v10574_v15 = vcombine.high %v300_v3, %v316_v7  ;;  %v10576_v10 = vcombine.high %v301_v55, %v317_v31 }
 0x3bf   : > { %17370 = vst [vmem:[#allocation29_spill] sm:$0xff] %v16323_v17  ;;  %v8661_v44 = vpop.f32.mrf.mxu1  ;;  %v16330_v12 = vadd.f32 %v8659_v4, %v8467_v38  ;;  %v8469_v27 = vadd.f32 %v8468_v20, %v15760_v37 }
 0x3c0   : > { %v8470_v41 = vpop.f32.mrf.mxu0 }
 0x3c1   : > { %v8663_v58 = vpop.f32.mrf.mxu1  ;;  %v16333_v50 = vadd.f32 %v8661_v44, %v8469_v27  ;;  %v8471_v19 = vadd.f32 %v8470_v41, %v15763_v48  ;;  %v332_v48 = vld [vmem:[%s12769_s10 + $0x170] sm:$0xff]  ;;  %v333_v27 = vld [vmem:[%s12769_s10 + $0x178] sm:$0xff] }
 0x3c2   : > { %v8472_v25 = vpop.f32.mrf.mxu0  ;;  %v348_v44 = vld [vmem:[%s12769_s10 + $0x1f0] sm:$0xff]  ;;  %v349_v41 = vld [vmem:[%s12769_s10 + $0x1f8] sm:$0xff] }
 0x3c3   : > { %v8665_v61 = vpop.f32.mrf.mxu1  ;;  %v16336_v34 = vadd.f32 %v8663_v58, %v8471_v19  ;;  %v8473_v37 = vadd.f32 %v8472_v25, %v17371_v29  ;;  %v17374_v19 = vld [vmem:[#allocation23_spill] sm:$0xff] }
 0x3c4   : > { %v8476_v4 = vpop.f32.mrf.mxu0  ;;  %8941 = vmatmul.mubr.bf16.gmra.mxu0 %v11049_v51  ;;  %v10573_v51 = vcombine.low %v300_v3, %v316_v7  ;;  %v12514_v7 = vld [vmem:[%s17142_s3 + $0x64] ss:$8 sps:$4 sm:$0xff]  }
 0x3c5   : > { %v8669_v38 = vpop.f32.mrf.mxu1  ;;  %9134 = vmatmul.mubr.bf16.gmra.mxu1 %v11051_v46  ;;  %v16339_v39 = vadd.f32 %v8665_v61, %v8473_v37  ;;  %v8477_v62 = vadd.f32 %v8476_v4, %v17373_v33  ;;  %9176 = vmatprep.mubr.bf16.mxu0 %v10574_v15  ;;  %v10575_v46 = vcombine.low %v301_v55, %v317_v31  ;;  %v17375_v37 = vld [vmem:[#allocation24_spill] sm:$0xff] }
 0x3c6   : > { %9369 = vmatprep.mubr.bf16.mxu1 %v10576_v10  ;;  %v8478_v47 = vpop.f32.mrf.mxu0  ;;  %v10606_v15 = vcombine.high %v332_v48, %v348_v44  ;;  %v10608_v10 = vcombine.high %v333_v27, %v349_v41 }
 0x3c7   : > { %17372 = vst [vmem:[#allocation21_spill] sm:$0xff] %v16339_v39  ;;  %v8671_v20 = vpop.f32.mrf.mxu1  ;;  %v16346_v58 = vadd.f32 %v8669_v38, %v8477_v62  ;;  %v8479_v25 = vadd.f32 %v8478_v47, %v17374_v19  ;;  %v12509_v38 = vld [vmem:[%s17142_s3 + $0x70] ss:$8 sps:$4 sm:$0xff]  }
 0x3c8   : > { %v8480_v29 = vpop.f32.mrf.mxu0  ;;  %v17376_v47 = vld [vmem:[#allocation25_spill] sm:$0xff] }
 0x3c9   : > { %v8673_v17 = vpop.f32.mrf.mxu1  ;;  %v16349_v61 = vadd.f32 %v8671_v20, %v8479_v25  ;;  %v8481_v4 = vadd.f32 %v8480_v29, %v17375_v37  ;;  %v16365_v25 = vld [vmem:[%s12769_s10 + $0x270] sm:$0xff] }
 0x3ca   : > { %v8482_v33 = vpop.f32.mrf.mxu0 }
 0x3cb   : > { %v8675_v39 = vpop.f32.mrf.mxu1  ;;  %v16355_v62 = vadd.f32 %v8673_v17, %v8481_v4  ;;  %v8483_v3 = vadd.f32 %v8482_v33, %v17376_v47  ;;  %v16368_v17 = vld [vmem:[%s12769_s10 + $0x2f0] sm:$0xff]  ;;  %v16371_v4 = vld [vmem:[%s12769_s10 + $0x278] sm:$0xff]  ;;  %v10605_v47 = vcombine.low %v332_v48, %v348_v44 }
 0x3cc   : > { %v8486_v55 = vpop.f32.mrf.mxu0  ;;  %9177 = vmatmul.mubr.bf16.vlgmr.msra.gmra.mxu0 %v10573_v51  ;;  %v381_v33 = vld [vmem:[%s12769_s10 + $0x2f8] sm:$0xff]  ;;  %v12512_v51 = vld [vmem:[%s17142_s3 + $0x60] ss:$8 sps:$4 sm:$0xff]  }
 0x3cd   : > { %v8679_v31 = vpop.f32.mrf.mxu1  ;;  %9370 = vmatmul.mubr.bf16.vlgmr.msra.gmra.mxu1 %v10575_v46  ;;  %v16361_v20 = vadd.f32 %v8675_v39, %v8483_v3  ;;  %v8487_v19 = vadd.f32 %v8486_v55, %v15833_v60  ;;  %9186 = vmatprep.mubr.bf16.mxu0 %v10606_v15  ;;  %v12517_v46 = vld [vmem:[%s17142_s3 + $0x54] ss:$8 sps:$4 sm:$0xff]   ;;  %v10607_v3 = vcombine.low %v333_v27, %v349_v41 }
 0x3ce   : > { %9379 = vmatprep.mubr.bf16.mxu1 %v10608_v10  ;;  %v8488_v29 = vpop.f32.mrf.mxu0  ;;  %9831 = vmatpush1.bf16.msra.mxu0 %v12509_v38 }
 0x3cf   : > { %17377 = vst [vmem:[#allocation22_spill] sm:$0xff] %v16361_v20  ;;  %v8681_v37 = vpop.f32.mrf.mxu1  ;;  %v16377_v39 = vadd.f32 %v8679_v31, %v8487_v19  ;;  %v8489_v60 = vadd.f32 %v8488_v29, %v15842_v8  ;;  %9832 = vmatprep.subr.bf16.mxu0 %v12514_v7  ;;  %v10638_v20 = vcombine.high %v16365_v25, %v16368_v17  ;;  %v12515_v7 = vld [vmem:[%s17142_s3 + $0x50] ss:$8 sps:$4 sm:$0xff]  }
 0x3d0   : > { %v8490_v15 = vpop.f32.mrf.mxu0  ;;  %v10640_v31 = vcombine.high %v16371_v4, %v381_v33 }
 0x3d1   : > { %v8683_v10 = vpop.f32.mrf.mxu1  ;;  %v16383_v55 = vadd.f32 %v8681_v37, %v8489_v60  ;;  %v8491_v38 = vadd.f32 %v8490_v15, %v15853_v18  ;;  %v12520_v18 = vld [vmem:[%s17142_s3 + $0x44] ss:$8 sps:$4 sm:$0xff]   ;;  %v16405_v60 = vld [vmem:[%s12769_s10 + $0x3f0] sm:$0xff]  ;;  %v16408_v15 = vld [vmem:[%s12769_s10 + $0x378] sm:$0xff] }
 0x3d2   : > { %v8492_v19 = vpop.f32.mrf.mxu0  ;;  %9833 = vmatpush1.bf16.msra.mxu0 %v12512_v51  ;;  %v16402_v51 = vld [vmem:[%s12769_s10 + $0x370] sm:$0xff] }
 0x3d3   : > { %v8685_v8 = vpop.f32.mrf.mxu1  ;;  %v16392_v48 = vadd.f32 %v8683_v10, %v8491_v38  ;;  %v8493_v44 = vadd.f32 %v8492_v19, %v15862_v53  ;;  %9834 = vmatprep.subr.bf16.mxu0 %v12517_v46  ;;  %v413_v10 = vld [vmem:[%s12769_s10 + $0x3f8] sm:$0xff]  ;;  %v17380_v38 = vld [vmem:[#allocation26_spill] sm:$0xff] }
 0x3d4   : > { %v8496_v27 = vpop.f32.mrf.mxu0  ;;  %9187 = vmatmul.mubr.bf16.gmra.mxu0 %v10605_v47  ;;  %v12518_v47 = vld [vmem:[%s17142_s3 + $0x40] ss:$8 sps:$4 sm:$0xff]  }
 0x3d5   : > { %v8689_v41 = vpop.f32.mrf.mxu1  ;;  %9380 = vmatmul.mubr.bf16.gmra.mxu1 %v10607_v3  ;;  %v16398_v29 = vadd.f32 %v8685_v8, %v8493_v44  ;;  %v8497_v37 = vadd.f32 %v8496_v27, %v15883_v40  ;;  %9196 = vmatprep.mubr.bf16.mxu0 %v10638_v20  ;;  %v12523_v20 = vld [vmem:[%s17142_s3 + $0x34] ss:$8 sps:$4 sm:$0xff]   ;;  %v10637_v8 = vcombine.low %v16365_v25, %v16368_v17  ;;  %v17382_v27 = vld [vmem:[#allocation27_spill] sm:$0xff]  ;;  %v12521_v25 = vld [vmem:[%s17142_s3 + $0x30] ss:$8 sps:$4 sm:$0xff]  }
 0x3d6   : > { %9389 = vmatprep.mubr.bf16.mxu1 %v10640_v31  ;;  %v8498_v53 = vpop.f32.mrf.mxu0  ;;  %9835 = vmatpush1.bf16.msra.mxu0 %v12515_v7  ;;  %v10639_v7 = vcombine.low %v16371_v4, %v381_v33  ;;  %v17384_v4 = vld [vmem:[#allocation28_spill] sm:$0xff] }
 0x3d7   : > { %17378 = vst [vmem:[#allocation23_spill] sm:$0xff] %v16398_v29  ;;  %v8691_v46 = vpop.f32.mrf.mxu1  ;;  %v16414_v3 = vadd.f32 %v8689_v41, %v8497_v37  ;;  %v8499_v40 = vadd.f32 %v8498_v53, %v17380_v38  ;;  %9836 = vmatprep.subr.bf16.mxu0 %v12520_v18  ;;  %v10670_v41 = vcombine.high %v16402_v51, %v16405_v60 }
 0x3d8   : > { %v8500_v31 = vpop.f32.mrf.mxu0  ;;  %v10672_v18 = vcombine.high %v16408_v15, %v413_v10 }
 0x3d9   : > { %17379 = vst [vmem:[#allocation24_spill] sm:$0xff] %v16414_v3  ;;  %v8693_v19 = vpop.f32.mrf.mxu1  ;;  %v16423_v44 = vadd.f32 %v8691_v46, %v8499_v40  ;;  %v8501_v29 = vadd.f32 %v8500_v31, %v17382_v27  ;;  %v12526_v46 = vld [vmem:[%s17142_s3 + $0x24] ss:$8 sps:$4 sm:$0xff]  }
 0x3da   : > { %v8502_v37 = vpop.f32.mrf.mxu0  ;;  %9837 = vmatpush1.bf16.msra.mxu0 %v12518_v47  ;;  %v17386_v31 = vld [vmem:[#allocation3_spill] sm:$0xff] }
 0x3db   : > { %17381 = vst [vmem:[#allocation25_spill] sm:$0xff] %v16423_v44  ;;  %v8695_v53 = vpop.f32.mrf.mxu1  ;;  %v16432_v17 = vadd.f32 %v8693_v19, %v8501_v29  ;;  %v8503_v33 = vadd.f32 %v8502_v37, %v17384_v4  ;;  %9838 = vmatprep.subr.bf16.mxu0 %v12523_v20  ;;  %v16442_v29 = vld [vmem:[%s12769_s10 + $0x470] sm:$0xff]  ;;  %v16448_v4 = vld [vmem:[%s12769_s10 + $0x478] sm:$0xff] }
 0x3dc   : > { %v8506_v38 = vpop.f32.mrf.mxu0  ;;  %9197 = vmatmul.mubr.bf16.gmra.mxu0 %v10637_v8  ;;  %v16445_v19 = vld [vmem:[%s12769_s10 + $0x4f0] sm:$0xff]  ;;  %v12524_v8 = vld [vmem:[%s17142_s3 + $0x20] ss:$8 sps:$4 sm:$0xff]  }
 0x3dd   : > { %17383 = vst [vmem:[#allocation26_spill] sm:$0xff] %v16432_v17  ;;  %v8699_v40 = vpop.f32.mrf.mxu1  ;;  %9390 = vmatmul.mubr.bf16.gmra.mxu1 %v10639_v7  ;;  %v16438_v47 = vadd.f32 %v8695_v53, %v8503_v33  ;;  %v8507_v27 = vadd.f32 %v8506_v38, %v17386_v31  ;;  %9206 = vmatprep.mubr.bf16.mxu0 %v10670_v41  ;;  %v17388_v53 = vld [vmem:[#allocation4_spill] sm:$0xff]  ;;  %v17390_v17 = vld [vmem:[#allocation5_spill] sm:$0xff] }
 0x3de   : > { %9399 = vmatprep.mubr.bf16.mxu1 %v10672_v18  ;;  %v8508_v37 = vpop.f32.mrf.mxu0  ;;  %9839 = vmatpush1.bf16.msra.mxu0 %v12521_v25  ;;  %v12529_v41 = vld [vmem:[%s17142_s3 + $0x14] ss:$8 sps:$4 sm:$0xff]   ;;  %v10669_v31 = vcombine.low %v16402_v51, %v16405_v60  ;;  %v10671_v25 = vcombine.low %v16408_v15, %v413_v10  ;;  %v12527_v51 = vld [vmem:[%s17142_s3 + $0x10] ss:$8 sps:$4 sm:$0xff]   ;;  %v17392_v15 = vld [vmem:[#allocation6_spill] sm:$0xff] }
 0x3df   : > { %17385 = vst [vmem:[#allocation27_spill] sm:$0xff] %v16438_v47  ;;  %v8701_v20 = vpop.f32.mrf.mxu1  ;;  %v16454_v7 = vadd.f32 %v8699_v40, %v8507_v27  ;;  %v8509_v33 = vadd.f32 %v8508_v37, %v17388_v53  ;;  %9840 = vmatprep.subr.bf16.mxu0 %v12526_v46  ;;  %v10702_v40 = vcombine.high %v16442_v29, %v16445_v19 }
 0x3e0   : > { %v8510_v18 = vpop.f32.mrf.mxu0  ;;  %v10704_v46 = vcombine.high %v16448_v4, %v445_v59 }
 0x3e1   : > { %17387 = vst [vmem:[#allocation28_spill] sm:$0xff] %v16454_v7  ;;  %v8703_v38 = vpop.f32.mrf.mxu1  ;;  %v16463_v47 = vadd.f32 %v8701_v20, %v8509_v33  ;;  %v8511_v44 = vadd.f32 %v8510_v18, %v17390_v17  ;;  %v12532_v17 = vld [vmem:[%s17142_s3 + $0x4] ss:$8 sps:$4 sm:$0xff]  }
 0x3e2   : > { %v8512_v27 = vpop.f32.mrf.mxu0  ;;  %9841 = vmatpush1.bf16.msra.mxu0 %v12524_v8  ;;  %v17394_v33 = vld [vmem:[#allocation7_spill] sm:$0xff] }
 0x3e3   : > { %17389 = vst [vmem:[#allocation3_spill] sm:$0xff] %v16463_v47  ;;  %v8705_v37 = vpop.f32.mrf.mxu1  ;;  %v16472_v60 = vadd.f32 %v8703_v38, %v8511_v44  ;;  %v8513_v10 = vadd.f32 %v8512_v27, %v17392_v15  ;;  %9842 = vmatprep.subr.bf16.mxu0 %v12529_v41  ;;  %v16482_v44 = vld [vmem:[%s12769_s10 + $0x570] sm:$0xff]  ;;  %v461_v15 = vld [vmem:[%s12769_s10 + $0x578] sm:$0xff] }
 0x3e4   : > { %v8516_v20 = vpop.f32.mrf.mxu0  ;;  %9207 = vmatmul.mubr.bf16.gmra.mxu0 %v10669_v31  ;;  %v16485_v38 = vld [vmem:[%s12769_s10 + $0x5f0] sm:$0xff]  ;;  %v12530_v31 = vld [vmem:[%s17142_s3] ss:$8 sps:$4 sm:$0xff]   ;;  %v17398_v47 = vld [vmem:[#allocation9_spill] sm:$0xff] }
 0x3e5   : > { %17391 = vst [vmem:[#allocation4_spill] sm:$0xff] %v16472_v60  ;;  %v8709_v53 = vpop.f32.mrf.mxu1  ;;  %9400 = vmatmul.mubr.bf16.gmra.mxu1 %v10671_v25  ;;  %v16478_v8 = vadd.f32 %v8705_v37, %v8513_v10  ;;  %v8517_v18 = vadd.f32 %v8516_v20, %v17394_v33  ;;  %9216 = vmatprep.mubr.bf16.mxu0 %v10702_v40  ;;  %v477_v60 = vld [vmem:[%s12769_s10 + $0x5f8] sm:$0xff]  ;;  %v17396_v37 = vld [vmem:[#allocation8_spill] sm:$0xff] }
 0x3e6   : > { %9409 = vmatprep.mubr.bf16.mxu1 %v10704_v46  ;;  %v8518_v27 = vpop.f32.mrf.mxu0  ;;  %9843 = vmatpush1.bf16.msra.mxu0 %v12527_v51  ;;  %v12535_v40 = vld [vmem:[%s17142_s3 + $0xf4] ss:$8 sps:$4 sm:$0xff]   ;;  %v10701_v33 = vcombine.low %v16442_v29, %v16445_v19  ;;  %v10703_v51 = vcombine.low %v16448_v4, %v445_v59  ;;  %v17400_v59 = vld [vmem:[#allocation10_spill] sm:$0xff] }
 0x3e7   : > { %17393 = vst [vmem:[#allocation5_spill] sm:$0xff] %v16478_v8  ;;  %v8711_v41 = vpop.f32.mrf.mxu1  ;;  %v16492_v25 = vadd.f32 %v8709_v53, %v8517_v18  ;;  %v8519_v10 = vadd.f32 %v8518_v27, %v17396_v37  ;;  %9844 = vmatprep.subr.bf16.mxu0 %v12532_v17  ;;  %v10734_v53 = vcombine.high %v16482_v44, %v16485_v38  ;;  %v12533_v37 = vld [vmem:[%s17142_s3 + $0xf0] ss:$8 sps:$4 sm:$0xff]  }
 0x3e8   : > { %v8520_v46 = vpop.f32.mrf.mxu0  ;;  %v10736_v18 = vcombine.high %v461_v15, %v477_v60 }
 0x3e9   : > { %17395 = vst [vmem:[#allocation6_spill] sm:$0xff] %v16492_v25  ;;  %v8713_v20 = vpop.f32.mrf.mxu1  ;;  %v16501_v8 = vadd.f32 %v8711_v41, %v8519_v10  ;;  %v8521_v7 = vadd.f32 %v8520_v46, %v17398_v47  ;;  %v12538_v47 = vld [vmem:[%s17142_s3 + $0xe4] ss:$8 sps:$4 sm:$0xff]  }
 0x3ea   : > { %v8522_v17 = vpop.f32.mrf.mxu0  ;;  %9845 = vmatpush1.bf16.msra.mxu0 %v12530_v31  ;;  %v17402_v10 = vld [vmem:[#allocation11_spill] sm:$0xff] }
 0x3eb   : > { %17397 = vst [vmem:[#allocation7_spill] sm:$0xff] %v16501_v8  ;;  %v8715_v27 = vpop.f32.mrf.mxu1  ;;  %v16509_v29 = vadd.f32 %v8713_v20, %v8521_v7  ;;  %v8523_v19 = vadd.f32 %v8522_v17, %v17400_v59  ;;  %9846 = vmatprep.subr.bf16.mxu0 %v12535_v40  ;;  %v492_v7 = vld [vmem:[%s12769_s10 + $0x670] sm:$0xff]  ;;  %v493_v59 = vld [vmem:[%s12769_s10 + $0x678] sm:$0xff]  ;;  %v12536_v8 = vld [vmem:[%s17142_s3 + $0xe0] ss:$8 sps:$4 sm:$0xff]  }
 0x3ec   : > { %v8526_v4 = vpop.f32.mrf.mxu0  ;;  %9217 = vmatmul.mubr.bf16.gmra.mxu0 %v10701_v33  ;;  %v508_v20 = vld [vmem:[%s12769_s10 + $0x6f0] sm:$0xff]  ;;  %v509_v40 = vld [vmem:[%s12769_s10 + $0x6f8] sm:$0xff] }
 0x3ed   : > { %17399 = vst [vmem:[#allocation8_spill] sm:$0xff] %v16509_v29  ;;  %v8719_v41 = vpop.f32.mrf.mxu1  ;;  %9410 = vmatmul.mubr.bf16.gmra.mxu1 %v10703_v51  ;;  %v16515_v31 = vadd.f32 %v8715_v27, %v8523_v19  ;;  %v8527_v46 = vadd.f32 %v8526_v4, %v17402_v10  ;;  %9226 = vmatprep.mubr.bf16.mxu0 %v10734_v53  ;;  %v17404_v33 = vld [vmem:[#allocation12_spill] sm:$0xff]  ;;  %v17406_v10 = vld [vmem:[#allocation13_spill] sm:$0xff] }
 0x3ee   : > { %9419 = vmatprep.mubr.bf16.mxu1 %v10736_v18  ;;  %v8528_v29 = vpop.f32.mrf.mxu0  ;;  %9847 = vmatpush2.bf16.msra.mxu0 %v12533_v37  ;;  %v12541_v53 = vld [vmem:[%s17142_s3 + $0xd4] ss:$8 sps:$4 sm:$0xff]   ;;  %v10733_v19 = vcombine.low %v16482_v44, %v16485_v38  ;;  %v10735_v4 = vcombine.low %v461_v15, %v477_v60  ;;  %v10766_v3 = vcombine.high %v492_v7, %v508_v20  ;;  %v17408_v44 = vld [vmem:[#allocation14_spill] sm:$0xff] }
 0x3ef   : > { %17401 = vst [vmem:[#allocation9_spill] sm:$0xff] %v16515_v31  ;;  %v8721_v17 = vpop.f32.mrf.mxu1  ;;  %v16525_v25 = vadd.f32 %v8719_v41, %v8527_v46  ;;  %v8529_v51 = vadd.f32 %v8528_v29, %v17404_v33  ;;  %9848 = vmatprep.subr.bf16.mxu0 %v12538_v47  ;;  %v10768_v41 = vcombine.high %v493_v59, %v509_v40  ;;  %v12539_v47 = vld [vmem:[%s17142_s3 + $0xd0] ss:$8 sps:$4 sm:$0xff]  }
 0x3f0   : > { %v8530_v18 = vpop.f32.mrf.mxu0 }
 0x3f1   : > { %17403 = vst [vmem:[#allocation10_spill] sm:$0xff] %v16525_v25  ;;  %v8723_v27 = vpop.f32.mrf.mxu1  ;;  %v16533_v37 = vadd.f32 %v8721_v17, %v8529_v51  ;;  %v8531_v31 = vadd.f32 %v8530_v18, %v17406_v10  ;;  %v17410_v51 = vld [vmem:[#allocation15_spill] sm:$0xff]  ;;  %v524_v18 = vld [vmem:[%s12769_s10 + $0x770] sm:$0xff] }
 0x3f2   : > { %v8532_v46 = vpop.f32.mrf.mxu0  ;;  %9849 = vmatpush2.bf16.msra.mxu0 %v12536_v8  ;;  %v540_v25 = vld [vmem:[%s12769_s10 + $0x7f0] sm:$0xff] }
 0x3f3   : > { %17405 = vst [vmem:[#allocation11_spill] sm:$0xff] %v16533_v37  ;;  %v8725_v29 = vpop.f32.mrf.mxu1  ;;  %v16539_v33 = vadd.f32 %v8723_v27, %v8531_v31  ;;  %v8533_v60 = vadd.f32 %v8532_v46, %v17408_v44  ;;  %9850 = vmatprep.subr.bf16.mxu0 %v12541_v53  ;;  %v525_v31 = vld [vmem:[%s12769_s10 + $0x778] sm:$0xff]  ;;  %v10765_v46 = vcombine.low %v492_v7, %v508_v20 }
 0x3f4   : > { %v8536_v38 = vpop.f32.mrf.mxu0  ;;  %9227 = vmatmul.mubr.bf16.gmra.mxu0 %v10733_v19  ;;  %v541_v27 = vld [vmem:[%s12769_s10 + $0x7f8] sm:$0xff]  ;;  %v12542_v19 = vld [vmem:[%s17142_s3 + $0xc0] ss:$8 sps:$4 sm:$0xff]  }
 0x3f5   : > { %17407 = vst [vmem:[#allocation12_spill] sm:$0xff] %v16539_v33  ;;  %v8729_v15 = vpop.f32.mrf.mxu1  ;;  %9420 = vmatmul.mubr.bf16.gmra.mxu1 %v10735_v4  ;;  %v16542_v17 = vadd.f32 %v8725_v29, %v8533_v60  ;;  %v8537_v8 = vadd.f32 %v8536_v38, %v17410_v51  ;;  %9236 = vmatprep.mubr.bf16.mxu0 %v10766_v3  ;;  %v12544_v3 = vld [vmem:[%s17142_s3 + $0xc4] ss:$8 sps:$4 sm:$0xff]   ;;  %v17411_v60 = vld [vmem:[#allocation16_spill] sm:$0xff] }
 0x3f6   : > { %9429 = vmatprep.mubr.bf16.mxu1 %v10768_v41  ;;  %v8538_v10 = vpop.f32.mrf.mxu0  ;;  %9851 = vmatpush2.bf16.msra.mxu0 %v12539_v47  ;;  %v10767_v29 = vcombine.low %v493_v59, %v509_v40  ;;  %v10798_v38 = vcombine.high %v524_v18, %v540_v25  ;;  %v17413_v40 = vld [vmem:[#allocation17_spill] sm:$0xff] }
 0x3f7   : > { %17409 = vst [vmem:[#allocation13_spill] sm:$0xff] %v16542_v17  ;;  %v8731_v37 = vpop.f32.mrf.mxu1  ;;  %v16549_v33 = vadd.f32 %v8729_v15, %v8537_v8  ;;  %v8539_v53 = vadd.f32 %v8538_v10, %v16120_v26  ;;  %v10800_v15 = vcombine.high %v525_v31, %v541_v27  ;;  %9852 = vmatprep.subr.bf16.mxu0 %v12544_v3  ;;  %v573_v17 = vld [vmem:[%s12769_s10 + $0x8f8] sm:$0xff] }
 0x3f8   : > { %v8540_v4 = vpop.f32.mrf.mxu0 }
 0x3f9   : > { %v8733_v41 = vpop.f32.mrf.mxu1  ;;  %v16558_v44 = vadd.f32 %v8731_v37, %v8539_v53  ;;  %v8541_v47 = vadd.f32 %v8540_v4, %v17411_v60  ;;  %v556_v53 = vld [vmem:[%s12769_s10 + $0x870] sm:$0xff] }
 0x3fa   : > { %v8542_v26 = vpop.f32.mrf.mxu0  ;;  %9853 = vmatpush2.bf16.msra.mxu0 %v12542_v19  ;;  %v572_v60 = vld [vmem:[%s12769_s10 + $0x8f0] sm:$0xff]  ;;  %v557_v19 = vld [vmem:[%s12769_s10 + $0x878] sm:$0xff] }
 0x3fb   : > { %v8735_v51 = vpop.f32.mrf.mxu1  ;;  %v16561_v8 = vadd.f32 %v8733_v41, %v8541_v47  ;;  %v8543_v10 = vadd.f32 %v8542_v26, %v16142_v14  ;;  %v10799_v26 = vcombine.low %v525_v31, %v541_v27  ;;  %v17417_v27 = vld [vmem:[#allocation19_spill] sm:$0xff] }
 0x3fc   : > { %v8546_v7 = vpop.f32.mrf.mxu0  ;;  %9237 = vmatmul.mubr.bf16.gmra.mxu0 %v10765_v46  ;;  %v12545_v46 = vld [vmem:[%s17142_s3 + $0xb0] ss:$8 sps:$4 sm:$0xff]  }
 0x3fd   : > { %v8739_v20 = vpop.f32.mrf.mxu1  ;;  %9430 = vmatmul.mubr.bf16.gmra.mxu1 %v10767_v29  ;;  %v16564_v59 = vadd.f32 %v8735_v51, %v8543_v10  ;;  %v8547_v37 = vadd.f32 %v8546_v7, %v17413_v40  ;;  %9246 = vmatprep.mubr.bf16.mxu0 %v10798_v38  ;;  %v12547_v29 = vld [vmem:[%s17142_s3 + $0xb4] ss:$8 sps:$4 sm:$0xff]   ;;  %v17415_v10 = vld [vmem:[#allocation18_spill] sm:$0xff]  ;;  %v10832_v40 = vcombine.high %v557_v19, %v573_v17 }
 0x3fe   : > { %9439 = vmatprep.mubr.bf16.mxu1 %v10800_v15  ;;  %v8548_v3 = vpop.f32.mrf.mxu0  ;;  %v10797_v15 = vcombine.low %v524_v18, %v540_v25  ;;  %9854 = vmatprep.subr.bf16.mxu0 %v12547_v29 }
 0x3ff   : > { %17412 = vst [vmem:[#allocation14_spill] sm:$0xff] %v16564_v59  ;;  %v8741_v4 = vpop.f32.mrf.mxu1  ;;  %v16571_v41 = vadd.f32 %v8739_v20, %v8547_v37  ;;  %v8549_v14 = vadd.f32 %v8548_v3, %v16176_v16  ;;  %v10830_v20 = vcombine.high %v556_v53, %v572_v60  ;;  %9855 = vmatpush2.bf16.msra.mxu0 %v12545_v46  ;;  %v589_v46 = vld [vmem:[%s12769_s10 + $0x978] sm:$0xff] }
 0x400   : > { %v8550_v47 = vpop.f32.mrf.mxu0 }
 0x401   : > { %v8743_v38 = vpop.f32.mrf.mxu1  ;;  %v16580_v51 = vadd.f32 %v8741_v4, %v8549_v14  ;;  %v8551_v7 = vadd.f32 %v8550_v47, %v17415_v10  ;;  %v588_v14 = vld [vmem:[%s12769_s10 + $0x970] sm:$0xff] }
 0x402   : > { %v8552_v16 = vpop.f32.mrf.mxu0  ;;  %v604_v10 = vld [vmem:[%s12769_s10 + $0x9f0] sm:$0xff] }
 0x403   : > { %17414 = vst [vmem:[#allocation15_spill] sm:$0xff] %v16580_v51  ;;  %v8745_v37 = vpop.f32.mrf.mxu1  ;;  %v16583_v3 = vadd.f32 %v8743_v38, %v8551_v7  ;;  %v8553_v59 = vadd.f32 %v8552_v16, %v16198_v28  ;;  %v605_v51 = vld [vmem:[%s12769_s10 + $0x9f8] sm:$0xff] }
 0x404   : > { %v8556_v25 = vpop.f32.mrf.mxu0  ;;  %9247 = vmatmul.mubr.bf16.gmra.mxu0 %v10797_v15  ;;  %v12548_v15 = vld [vmem:[%s17142_s3 + $0xa0] ss:$8 sps:$4 sm:$0xff]  }
 0x405   : > { %v8749_v18 = vpop.f32.mrf.mxu1  ;;  %9440 = vmatmul.mubr.bf16.gmra.mxu1 %v10799_v26  ;;  %v16586_v31 = vadd.f32 %v8745_v37, %v8553_v59  ;;  %v8557_v4 = vadd.f32 %v8556_v25, %v17417_v27  ;;  %9256 = vmatprep.mubr.bf16.mxu0 %v10830_v20  ;;  %v12550_v59 = vld [vmem:[%s17142_s3 + $0xa4] ss:$8 sps:$4 sm:$0xff]   ;;  %v10829_v20 = vcombine.low %v556_v53, %v572_v60 }
 0x406   : > { %9449 = vmatprep.mubr.bf16.mxu1 %v10832_v40  ;;  %v8558_v29 = vpop.f32.mrf.mxu0  ;;  %v10831_v40 = vcombine.low %v557_v19, %v573_v17  ;;  %v10862_v25 = vcombine.high %v588_v14, %v604_v10  ;;  %9856 = vmatprep.subr.bf16.mxu0 %v12550_v59  ;;  %v620_v19 = vld [vmem:[%s12769_s10 + $0xa70] sm:$0xff] }
 0x407   : > { %17416 = vst [vmem:[#allocation16_spill] sm:$0xff] %v16586_v31  ;;  %v8751_v47 = vpop.f32.mrf.mxu1  ;;  %v16593_v38 = vadd.f32 %v8749_v18, %v8557_v4  ;;  %v8559_v28 = vadd.f32 %v8558_v29, %v16218_v22  ;;  %v10864_v18 = vcombine.high %v589_v46, %v605_v51  ;;  %9857 = vmatpush2.bf16.msra.mxu0 %v12548_v15  ;;  %v636_v59 = vld [vmem:[%s12769_s10 + $0xaf0] sm:$0xff]  ;;  %v621_v15 = vld [vmem:[%s12769_s10 + $0xa78] sm:$0xff] }
 0x408   : > { %v8560_v26 = vpop.f32.mrf.mxu0 }
 0x409   : > { %v8753_v7 = vpop.f32.mrf.mxu1  ;;  %v16602_v16 = vadd.f32 %v8751_v47, %v8559_v28  ;;  %v8561_v37 = vadd.f32 %v8560_v26, %v16221_v42  ;;  %v637_v26 = vld [vmem:[%s12769_s10 + $0xaf8] sm:$0xff] }
 0x40a   : > { %v8562_v22 = vpop.f32.mrf.mxu0 }
 0x40b   : > { %v8755_v27 = vpop.f32.mrf.mxu1  ;;  %v16605_v4 = vadd.f32 %v8753_v7, %v8561_v37  ;;  %v8563_v29 = vadd.f32 %v8562_v22, %v16224_v24 }
 0x40c   : > { %v8792_v53 = vpop.f32.mrf.mxu0  ;;  %9257 = vmatmul.mubr.bf16.gmra.mxu0 %v10829_v20  ;;  %v10861_v20 = vcombine.low %v588_v14, %v604_v10 }
 0x40d   : > { %v8985_v17 = vpop.f32.mrf.mxu1  ;;  %9450 = vmatmul.mubr.bf16.gmra.mxu1 %v10831_v40  ;;  %v16608_v60 = vadd.f32 %v8755_v27, %v8563_v29  ;;  %v8793_v42 = vadd.f32 %v8792_v53, %v16231_v6  ;;  %9266 = vmatprep.mubr.bf16.mxu0 %v10862_v25  ;;  %v10863_v40 = vcombine.low %v589_v46, %v605_v51  ;;  %v12553_v29 = vld [vmem:[%s17142_s3 + $0x94] ss:$8 sps:$4 sm:$0xff]  }
 0x40e   : > { %9459 = vmatprep.mubr.bf16.mxu1 %v10864_v18  ;;  %v8794_v47 = vpop.f32.mrf.mxu0  ;;  %v10894_v25 = vcombine.high %v620_v19, %v636_v59  ;;  %v10896_v18 = vcombine.high %v621_v15, %v637_v26  ;;  %9858 = vmatprep.subr.bf16.mxu0 %v12553_v29 }
 0x40f   : > { %17418 = vst [vmem:[#allocation17_spill] sm:$0xff] %v16608_v60  ;;  %v8987_v28 = vpop.f32.mrf.mxu1  ;;  %v16615_v7 = vadd.f32 %v8985_v17, %v8793_v42  ;;  %v8795_v24 = vadd.f32 %v8794_v47, %v16234_v54  ;;  %v12551_v54 = vld [vmem:[%s17142_s3 + $0x90] ss:$8 sps:$4 sm:$0xff]  }
 0x410   : > { %v8796_v37 = vpop.f32.mrf.mxu0  ;;  %v652_v47 = vld [vmem:[%s12769_s10 + $0xb70] sm:$0xff]  ;;  %9859 = vmatpush2.bf16.msra.mxu0 %v12551_v54 }
 0x411   : > { %v8989_v22 = vpop.f32.mrf.mxu1  ;;  %v16618_v27 = vadd.f32 %v8987_v28, %v8795_v24  ;;  %v8797_v6 = vadd.f32 %v8796_v37, %v16237_v49  ;;  %v668_v28 = vld [vmem:[%s12769_s10 + $0xbf0] sm:$0xff] }
 0x412   : > { %v8798_v53 = vpop.f32.mrf.mxu0 }
 0x413   : > { %v8991_v17 = vpop.f32.mrf.mxu1  ;;  %v16627_v51 = vadd.f32 %v8989_v22, %v8797_v6  ;;  %v8799_v49 = vadd.f32 %v8798_v53, %v16240_v23  ;;  %v653_v22 = vld [vmem:[%s12769_s10 + $0xb78] sm:$0xff]  ;;  %v12556_v23 = vld [vmem:[%s17142_s3 + $0x84] ss:$8 sps:$4 sm:$0xff]   ;;  %v10895_v53 = vcombine.low %v621_v15, %v637_v26  ;;  %v684_v26 = vld [vmem:[%s12769_s10 + $0xc70] sm:$0xff] }
 0x414   : > { %v8802_v14 = vpop.f32.mrf.mxu0  ;;  %9267 = vmatmul.mubr.bf16.gmra.mxu0 %v10861_v20  ;;  %v669_v6 = vld [vmem:[%s12769_s10 + $0xbf8] sm:$0xff]  ;;  %9860 = vmatprep.subr.bf16.mxu0 %v12556_v23 }
 0x415   : > { %v8995_v10 = vpop.f32.mrf.mxu1  ;;  %9460 = vmatmul.mubr.bf16.gmra.mxu1 %v10863_v40  ;;  %v16630_v46 = vadd.f32 %v8991_v17, %v8799_v49  ;;  %v8803_v42 = vadd.f32 %v8802_v14, %v16247_v13  ;;  %9276 = vmatprep.mubr.bf16.mxu0 %v10894_v25  ;;  %v12554_v13 = vld [vmem:[%s17142_s3 + $0x80] ss:$8 sps:$4 sm:$0xff]   ;;  %v10926_v49 = vcombine.high %v652_v47, %v668_v28 }
 0x416   : > { %9469 = vmatprep.mubr.bf16.mxu1 %v10896_v18  ;;  %v8804_v24 = vpop.f32.mrf.mxu0  ;;  %v10893_v18 = vcombine.low %v620_v19, %v636_v59  ;;  %v10928_v14 = vcombine.high %v653_v22, %v669_v6  ;;  %9861 = vmatpush2.bf16.msra.mxu0 %v12554_v13  ;;  %v685_v13 = vld [vmem:[%s12769_s10 + $0xc78] sm:$0xff] }
 0x417   : > { %v8997_v37 = vpop.f32.mrf.mxu1  ;;  %v16640_v29 = vadd.f32 %v8995_v10, %v8803_v42  ;;  %v8805_v20 = vadd.f32 %v8804_v24, %v16250_v36 }
 0x418   : > { %v8806_v40 = vpop.f32.mrf.mxu0 }
 0x419   : > { %v8999_v25 = vpop.f32.mrf.mxu1  ;;  %v16646_v17 = vadd.f32 %v8997_v37, %v8805_v20  ;;  %v8807_v54 = vadd.f32 %v8806_v40, %v16253_v43  ;;  %v700_v20 = vld [vmem:[%s12769_s10 + $0xcf0] sm:$0xff]  ;;  %v701_v40 = vld [vmem:[%s12769_s10 + $0xcf8] sm:$0xff] }
 0x41a   : > { %v8808_v10 = vpop.f32.mrf.mxu0 }
 0x41b   : > { %v9001_v42 = vpop.f32.mrf.mxu1  ;;  %v16649_v36 = vadd.f32 %v8999_v25, %v8807_v54  ;;  %v8809_v24 = vadd.f32 %v8808_v10, %v16256_v45 }
 0x41c   : > { %v8812_v19 = vpop.f32.mrf.mxu0  ;;  %9277 = vmatmul.mubr.bf16.gmra.mxu0 %v10893_v18  ;;  %v10925_v18 = vcombine.low %v652_v47, %v668_v28 }
 0x41d   : > { %v9005_v59 = vpop.f32.mrf.mxu1  ;;  %9470 = vmatmul.mubr.bf16.gmra.mxu1 %v10895_v53  ;;  %v16652_v15 = vadd.f32 %v9001_v42, %v8809_v24  ;;  %v8813_v43 = vadd.f32 %v8812_v19, %v16263_v11  ;;  %9286 = vmatprep.mubr.bf16.mxu0 %v10926_v49  ;;  %v10927_v53 = vcombine.low %v653_v22, %v669_v6 }
 0x41e   : > { %9479 = vmatprep.mubr.bf16.mxu1 %v10928_v14  ;;  %v8814_v37 = vpop.f32.mrf.mxu0  ;;  %v10958_v49 = vcombine.high %v684_v26, %v700_v20  ;;  %v10960_v14 = vcombine.high %v685_v13, %v701_v40 }
 0x41f   : > { %v9007_v23 = vpop.f32.mrf.mxu1  ;;  %v16659_v25 = vadd.f32 %v9005_v59, %v8813_v43  ;;  %v8815_v45 = vadd.f32 %v8814_v37, %v16269_v21 }
 0x420   : > { %v8816_v54 = vpop.f32.mrf.mxu0 }
 0x421   : > { %v9009_v10 = vpop.f32.mrf.mxu1  ;;  %v16662_v42 = vadd.f32 %v9007_v23, %v8815_v45  ;;  %v8817_v11 = vadd.f32 %v8816_v54, %v16272_v32  ;;  %v716_v32 = vld [vmem:[%s12769_s10 + $0xd70] sm:$0xff]  ;;  %v717_v45 = vld [vmem:[%s12769_s10 + $0xd78] sm:$0xff] }
 0x422   : > { %v8818_v24 = vpop.f32.mrf.mxu0  ;;  %v732_v23 = vld [vmem:[%s12769_s10 + $0xdf0] sm:$0xff]  ;;  %v733_v54 = vld [vmem:[%s12769_s10 + $0xdf8] sm:$0xff] }
 0x423   : > { %v9011_v19 = vpop.f32.mrf.mxu1  ;;  %v16665_v59 = vadd.f32 %v9009_v10, %v8817_v11  ;;  %v8819_v21 = vadd.f32 %v8818_v24, %v16275_v52 }
 0x424   : > { %v8822_v43 = vpop.f32.mrf.mxu0  ;;  %9287 = vmatmul.mubr.bf16.gmra.mxu0 %v10925_v18  ;;  %v10957_v18 = vcombine.low %v684_v26, %v700_v20 }
 0x425   : > { %v9015_v37 = vpop.f32.mrf.mxu1  ;;  %9480 = vmatmul.mubr.bf16.gmra.mxu1 %v10927_v53  ;;  %v16668_v47 = vadd.f32 %v9011_v19, %v8819_v21  ;;  %v8823_v28 = vadd.f32 %v8822_v43, %v16282_v56  ;;  %9296 = vmatprep.mubr.bf16.mxu0 %v10958_v49  ;;  %v10959_v53 = vcombine.low %v685_v13, %v701_v40 }
 0x426   : > { %9489 = vmatprep.mubr.bf16.mxu1 %v10960_v14  ;;  %v8824_v22 = vpop.f32.mrf.mxu0  ;;  %v10990_v49 = vcombine.high %v716_v32, %v732_v23  ;;  %v10992_v14 = vcombine.high %v717_v45, %v733_v54 }
 0x427   : > { %v9017_v6 = vpop.f32.mrf.mxu1  ;;  %v16675_v10 = vadd.f32 %v9015_v37, %v8823_v28  ;;  %v8825_v52 = vadd.f32 %v8824_v22, %v16285_v9 }
 0x428   : > { %v8826_v11 = vpop.f32.mrf.mxu0 }
 0x429   : > { %v9019_v24 = vpop.f32.mrf.mxu1  ;;  %v16678_v19 = vadd.f32 %v9017_v6, %v8825_v52  ;;  %v8827_v56 = vadd.f32 %v8826_v11, %v16288_v63  ;;  %v748_v63 = vld [vmem:[%s12769_s10 + $0xe70] sm:$0xff]  ;;  %v749_v52 = vld [vmem:[%s12769_s10 + $0xe78] sm:$0xff] }
 0x42a   : > { %v8828_v21 = vpop.f32.mrf.mxu0  ;;  %v764_v6 = vld [vmem:[%s12769_s10 + $0xef0] sm:$0xff]  ;;  %v765_v11 = vld [vmem:[%s12769_s10 + $0xef8] sm:$0xff] }
 0x42b   : > { %v9021_v43 = vpop.f32.mrf.mxu1  ;;  %v16681_v37 = vadd.f32 %v9019_v24, %v8827_v56  ;;  %v8829_v9 = vadd.f32 %v8828_v21, %v16291_v1  ;;  %v11021_v60 = vcombine.low %v748_v63, %v764_v6  ;;  %v11023_v31 = vcombine.low %v749_v52, %v765_v11 }
 0x42c   : > { %v8832_v28 = vpop.f32.mrf.mxu0  ;;  %9297 = vmatmul.mubr.bf16.gmra.mxu0 %v10957_v18  ;;  %v10989_v18 = vcombine.low %v716_v32, %v732_v23 }
 0x42d   : > { %v9025_v22 = vpop.f32.mrf.mxu1  ;;  %9490 = vmatmul.mubr.bf16.gmra.mxu1 %v10959_v53  ;;  %v16684_v26 = vadd.f32 %v9021_v43, %v8829_v9  ;;  %v8833_v20 = vadd.f32 %v8832_v28, %v16298_v35  ;;  %9306 = vmatprep.mubr.bf16.mxu0 %v10990_v49  ;;  %v10991_v53 = vcombine.low %v717_v45, %v733_v54  ;;  %v796_v54 = vld [vmem:[%s12769_s10 + $0xff0] sm:$0xff] }
 0x42e   : > { %9499 = vmatprep.mubr.bf16.mxu1 %v10992_v14  ;;  %v8834_v13 = vpop.f32.mrf.mxu0  ;;  %v11022_v49 = vcombine.high %v748_v63, %v764_v6  ;;  %v11024_v14 = vcombine.high %v749_v52, %v765_v11 }
 0x42f   : > { %v9027_v40 = vpop.f32.mrf.mxu1  ;;  %v16691_v24 = vadd.f32 %v9025_v22, %v8833_v20  ;;  %v8835_v1 = vadd.f32 %v8834_v13, %v16301_v2  ;;  %v781_v13 = vld [vmem:[%s12769_s10 + $0xf78] sm:$0xff] }
 0x430   : > { %v8836_v56 = vpop.f32.mrf.mxu0 }
 0x431   : > { %v9029_v21 = vpop.f32.mrf.mxu1  ;;  %v16694_v43 = vadd.f32 %v9027_v40, %v8835_v1  ;;  %v8837_v35 = vadd.f32 %v8836_v56, %v16304_v5  ;;  %v780_v5 = vld [vmem:[%s12769_s10 + $0xf70] sm:$0xff]  ;;  %v797_v40 = vld [vmem:[%s12769_s10 + $0xff8] sm:$0xff] }
 0x432   : > { %v16697_v9 = vpop.f32.mrf.mxu0 }
 0x433   : > { %v16699_v28 = vpop.f32.mrf.mxu1  ;;  %v16701_v22 = vadd.f32 %v9029_v21, %v8837_v35 }
 0x434   : > { %v8842_v2 = vpop.f32.mrf.mxu0  ;;  %9307 = vmatmul.mubr.bf16.gmra.mxu0 %v10989_v18 }
 0x435   : > { %17419 = vst [vmem:[#allocation18_spill] sm:$0xff] %v16701_v22  ;;  %v9035_v20 = vpop.f32.mrf.mxu1  ;;  %9500 = vmatmul.mubr.bf16.gmra.mxu1 %v10991_v53  ;;  %v8843_v32 = vadd.f32 %v8842_v2, %v16314_v57  ;;  %9316 = vmatprep.mubr.bf16.mxu0 %v11022_v49  ;;  %v11054_v53 = vcombine.high %v780_v5, %v796_v54 }
 0x436   : > { %9509 = vmatprep.mubr.bf16.mxu1 %v11024_v14  ;;  %v8844_v23 = vpop.f32.mrf.mxu0  ;;  %v11056_v49 = vcombine.high %v781_v13, %v797_v40 }
 0x437   : > { %v9037_v45 = vpop.f32.mrf.mxu1  ;;  %v16708_v1 = vadd.f32 %v9035_v20, %v8843_v32  ;;  %v8845_v56 = vadd.f32 %v8844_v23, %v16317_v30 }
 0x438   : > { %v8846_v21 = vpop.f32.mrf.mxu0 }
 0x439   : > { %v9039_v35 = vpop.f32.mrf.mxu1  ;;  %v16711_v18 = vadd.f32 %v9037_v45, %v8845_v56  ;;  %v8847_v57 = vadd.f32 %v8846_v21, %v16320_v0  ;;  %v11053_v45 = vcombine.low %v780_v5, %v796_v54  ;;  %v11055_v56 = vcombine.low %v781_v13, %v797_v40 }
 0x43a   : > { %v16714_v14 = vpop.f32.mrf.mxu0 }
 0x43b   : > { %v16716_v2 = vpop.f32.mrf.mxu1  ;;  %v16718_v22 = vadd.f32 %v9039_v35, %v8847_v57 }
 0x43c   : > { %v8852_v20 = vpop.f32.mrf.mxu0  ;;  %9317 = vmatmul.mubr.bf16.gmra.mxu0 %v11021_v60 }
 0x43d   : > { %v9045_v32 = vpop.f32.mrf.mxu1  ;;  %9510 = vmatmul.mubr.bf16.gmra.mxu1 %v11023_v31  ;;  %v8853_v30 = vadd.f32 %v8852_v20, %v16330_v12  ;;  %9326 = vmatprep.mubr.bf16.mxu0 %v11054_v53 }
 0x43e   : > { %9519 = vmatprep.mubr.bf16.mxu1 %v11056_v49  ;;  %v8854_v63 = vpop.f32.mrf.mxu0 }
 0x43f   : > { %v9047_v6 = vpop.f32.mrf.mxu1  ;;  %v16721_v52 = vadd.f32 %v9045_v32, %v8853_v30  ;;  %v8855_v0 = vadd.f32 %v8854_v63, %v16333_v50 }
 0x440   : > { %v8856_v11 = vpop.f32.mrf.mxu0 }
 0x441   : > { %v9049_v23 = vpop.f32.mrf.mxu1  ;;  %v16724_v21 = vadd.f32 %v9047_v6, %v8855_v0  ;;  %v8857_v35 = vadd.f32 %v8856_v11, %v16336_v34 }
 0x442   : > { %v16727_v60 = vpop.f32.mrf.mxu0 }
 0x443   : > { %v16729_v31 = vpop.f32.mrf.mxu1  ;;  %v16731_v12 = vadd.f32 %v9049_v23, %v8857_v35 }
 0x444   : > { %v8862_v57 = vpop.f32.mrf.mxu0  ;;  %9327 = vmatmul.mubr.bf16.gmra.mxu0 %v11053_v45 }
 0x445   : > { %v9055_v53 = vpop.f32.mrf.mxu1  ;;  %9520 = vmatmul.mubr.bf16.gmra.mxu1 %v11055_v56  ;;  %v8863_v50 = vadd.f32 %v8862_v57, %v16346_v58 }
 0x446   : > { %v8864_v49 = vpop.f32.mrf.mxu0 }
 0x447   : > { %v9057_v20 = vpop.f32.mrf.mxu1  ;;  %v16734_v5 = vadd.f32 %v9055_v53, %v8863_v50  ;;  %v8865_v54 = vadd.f32 %v8864_v49, %v16349_v61 }
 0x448   : > { %v8866_v13 = vpop.f32.mrf.mxu0 }
 0x449   : > { %v9059_v34 = vpop.f32.mrf.mxu1  ;;  %v16737_v40 = vadd.f32 %v9057_v20, %v8865_v54  ;;  %v8867_v32 = vadd.f32 %v8866_v13, %v16355_v62  ;;  %v17423_v13 = vld [vmem:[#allocation24_spill] sm:$0xff] }
 0x44a   : > { %v16740_v30 = vpop.f32.mrf.mxu0 }
 0x44b   : > { %v16742_v63 = vpop.f32.mrf.mxu1  ;;  %v16744_v6 = vadd.f32 %v9059_v34, %v8867_v32 }
 0x44c   : > { %v8872_v0 = vpop.f32.mrf.mxu0 }
 0x44d   : > { %v9065_v58 = vpop.f32.mrf.mxu1  ;;  %v8873_v11 = vadd.f32 %v8872_v0, %v16377_v39 }
 0x44e   : > { %v8874_v23 = vpop.f32.mrf.mxu0 }
 0x44f   : > { %v9067_v45 = vpop.f32.mrf.mxu1  ;;  %v16747_v56 = vadd.f32 %v9065_v58, %v8873_v11  ;;  %v8875_v61 = vadd.f32 %v8874_v23, %v16383_v55  ;;  %v17425_v55 = vld [vmem:[#allocation25_spill] sm:$0xff] }
 0x450   : > { %v8876_v35 = vpop.f32.mrf.mxu0 }
 0x451   : > { %v9069_v57 = vpop.f32.mrf.mxu1  ;;  %v16750_v53 = vadd.f32 %v9067_v45, %v8875_v61  ;;  %v8877_v62 = vadd.f32 %v8876_v35, %v16392_v48  ;;  %v17427_v48 = vld [vmem:[#allocation26_spill] sm:$0xff] }
 0x452   : > { %v16753_v50 = vpop.f32.mrf.mxu0 }
 0x453   : > { %17420 = vst [vmem:[#allocation19_spill] sm:$0xff] %v16750_v53  ;;  %v16755_v49 = vpop.f32.mrf.mxu1  ;;  %v16757_v20 = vadd.f32 %v9069_v57, %v8877_v62 }
 0x454   : > { %17421 = vst [vmem:[#allocation30_spill] sm:$0xff] %v16755_v49  ;;  %v8882_v54 = vpop.f32.mrf.mxu0 }
 0x455   : > { %17422 = vst [vmem:[#allocation31_spill] sm:$0xff] %v16757_v20  ;;  %v9075_v39 = vpop.f32.mrf.mxu1  ;;  %v8883_v34 = vadd.f32 %v8882_v54, %v17423_v13  ;;  %v17431_v13 = vld [vmem:[#allocation28_spill] sm:$0xff] }
 0x456   : > { %v8884_v32 = vpop.f32.mrf.mxu0 }
 0x457   : > { %v9077_v0 = vpop.f32.mrf.mxu1  ;;  %v16760_v58 = vadd.f32 %v9075_v39, %v8883_v34  ;;  %v8885_v11 = vadd.f32 %v8884_v32, %v17425_v55  ;;  %v17433_v32 = vld [vmem:[#allocation3_spill] sm:$0xff] }
 0x458   : > { %v8886_v23 = vpop.f32.mrf.mxu0 }
 0x459   : > { %17424 = vst [vmem:[#allocation24_spill] sm:$0xff] %v16760_v58  ;;  %v9079_v45 = vpop.f32.mrf.mxu1  ;;  %v16763_v61 = vadd.f32 %v9077_v0, %v8885_v11  ;;  %v8887_v35 = vadd.f32 %v8886_v23, %v17427_v48  ;;  %v17435_v23 = vld [vmem:[#allocation4_spill] sm:$0xff] }
 0x45a   : > { %v16766_v53 = vpop.f32.mrf.mxu0 }
 0x45b   : > { %17426 = vst [vmem:[#allocation25_spill] sm:$0xff] %v16763_v61  ;;  %17428 = vst [vmem:[#allocation26_spill] sm:$0xff] %v16766_v53  ;;  %v16768_v57 = vpop.f32.mrf.mxu1  ;;  %v16770_v62 = vadd.f32 %v9079_v45, %v8887_v35 }
 0x45c   : > { %17429 = vst [vmem:[#allocation32_spill] sm:$0xff] %v16768_v57  ;;  %v8892_v20 = vpop.f32.mrf.mxu0 }
 0x45d   : > { %17430 = vst [vmem:[#allocation33_spill] sm:$0xff] %v16770_v62  ;;  %v9085_v54 = vpop.f32.mrf.mxu1  ;;  %v8893_v49 = vadd.f32 %v8892_v20, %v17431_v13  ;;  %v17439_v13 = vld [vmem:[#allocation6_spill] sm:$0xff] }
 0x45e   : > { %v8894_v39 = vpop.f32.mrf.mxu0 }
 0x45f   : > { %v9087_v34 = vpop.f32.mrf.mxu1  ;;  %v16773_v58 = vadd.f32 %v9085_v54, %v8893_v49  ;;  %v8895_v55 = vadd.f32 %v8894_v39, %v17433_v32  ;;  %v17441_v39 = vld [vmem:[#allocation7_spill] sm:$0xff] }
 0x460   : > { %v8896_v0 = vpop.f32.mrf.mxu0 }
 0x461   : > { %17432 = vst [vmem:[#allocation28_spill] sm:$0xff] %v16773_v58  ;;  %v9089_v11 = vpop.f32.mrf.mxu1  ;;  %v16776_v61 = vadd.f32 %v9087_v34, %v8895_v55  ;;  %v8897_v48 = vadd.f32 %v8896_v0, %v17435_v23  ;;  %v17443_v0 = vld [vmem:[#allocation8_spill] sm:$0xff] }
 0x462   : > { %v16779_v53 = vpop.f32.mrf.mxu0 }
 0x463   : > { %17434 = vst [vmem:[#allocation3_spill] sm:$0xff] %v16776_v61  ;;  %17436 = vst [vmem:[#allocation4_spill] sm:$0xff] %v16779_v53  ;;  %v16781_v45 = vpop.f32.mrf.mxu1  ;;  %v16783_v35 = vadd.f32 %v9089_v11, %v8897_v48 }
 0x464   : > { %17437 = vst [vmem:[#allocation34_spill] sm:$0xff] %v16781_v45  ;;  %v8902_v62 = vpop.f32.mrf.mxu0 }
 0x465   : > { %17438 = vst [vmem:[#allocation35_spill] sm:$0xff] %v16783_v35  ;;  %v9095_v20 = vpop.f32.mrf.mxu1  ;;  %v8903_v57 = vadd.f32 %v8902_v62, %v17439_v13  ;;  %v17445_v13 = vld [vmem:[#allocation10_spill] sm:$0xff] }
 0x466   : > { %v8904_v49 = vpop.f32.mrf.mxu0 }
 0x467   : > { %v9097_v54 = vpop.f32.mrf.mxu1  ;;  %v16786_v58 = vadd.f32 %v9095_v20, %v8903_v57  ;;  %v8905_v32 = vadd.f32 %v8904_v49, %v17441_v39  ;;  %v17447_v49 = vld [vmem:[#allocation11_spill] sm:$0xff] }
 0x468   : > { %v8906_v34 = vpop.f32.mrf.mxu0 }
 0x469   : > { %17440 = vst [vmem:[#allocation6_spill] sm:$0xff] %v16786_v58  ;;  %v9099_v55 = vpop.f32.mrf.mxu1  ;;  %v16789_v61 = vadd.f32 %v9097_v54, %v8905_v32  ;;  %v8907_v23 = vadd.f32 %v8906_v34, %v17443_v0  ;;  %v17449_v34 = vld [vmem:[#allocation12_spill] sm:$0xff] }
 0x46a   : > { %v16792_v53 = vpop.f32.mrf.mxu0 }
 0x46b   : > { %17442 = vst [vmem:[#allocation7_spill] sm:$0xff] %v16789_v61  ;;  %v16794_v11 = vpop.f32.mrf.mxu1  ;;  %v16796_v48 = vadd.f32 %v9099_v55, %v8907_v23  ;;  %v12557_v55 = vld [vmem:[%s17144_s5 + $0x78] sm:$0xff]  }
 0x46c   : > { %v8912_v35 = vpop.f32.mrf.mxu0  ;;  %11621 = vmatprep.subr.bf16.mxu1 %v12557_v55 }
 0x46d   : > { %17444 = vst [vmem:[#allocation8_spill] sm:$0xff] %v16796_v48  ;;  %v9105_v62 = vpop.f32.mrf.mxu1  ;;  %v8913_v45 = vadd.f32 %v8912_v35, %v17445_v13  ;;  %v12558_v35 = vld [vmem:[%s17144_s5 + $0x38] sm:$0xff]  }
 0x46e   : > { %v8914_v57 = vpop.f32.mrf.mxu0  ;;  %11622 = vmatpush3.bf16.msra.mxu1 %v12558_v35 }
 0x46f   : > { %v9107_v20 = vpop.f32.mrf.mxu1  ;;  %v16799_v58 = vadd.f32 %v9105_v62, %v8913_v45  ;;  %v8915_v39 = vadd.f32 %v8914_v57, %v17447_v49 }
 0x470   : > { %v8916_v54 = vpop.f32.mrf.mxu0 }
 0x471   : > { %17446 = vst [vmem:[#allocation10_spill] sm:$0xff] %v16799_v58  ;;  %v9109_v32 = vpop.f32.mrf.mxu1  ;;  %v16802_v61 = vadd.f32 %v9107_v20, %v8915_v39  ;;  %v8917_v0 = vadd.f32 %v8916_v54, %v17449_v34 }
 0x472   : > { %v16811_v23 = vpop.f32.mrf.mxu0 }
 0x473   : > { %17448 = vst [vmem:[#allocation11_spill] sm:$0xff] %v16802_v61  ;;  %v16813_v45 = vpop.f32.mrf.mxu1  ;;  %v16815_v62 = vadd.f32 %v9109_v32, %v8917_v0 }
 0x474   : > { %17450 = vst [vmem:[#allocation12_spill] sm:$0xff] %v16813_v45  ;;  %v8922_v13 = vpop.f32.mrf.mxu0 }
 0x475   : > { %v9115_v57 = vpop.f32.mrf.mxu1  ;;  %v8923_v20 = vadd.f32 %v8922_v13, %v16549_v33 }
 0x476   : > { %v8924_v49 = vpop.f32.mrf.mxu0 }
 0x477   : > { %v9117_v39 = vpop.f32.mrf.mxu1  ;;  %v16818_v54 = vadd.f32 %v9115_v57, %v8923_v20  ;;  %v8925_v34 = vadd.f32 %v8924_v49, %v16558_v44  ;;  %v17454_v44 = vld [vmem:[#allocation15_spill] sm:$0xff] }
 0x478   : > { %v8926_v61 = vpop.f32.mrf.mxu0 }
 0x479   : > { %17451 = vst [vmem:[#allocation36_spill] sm:$0xff] %v16818_v54  ;;  %v9119_v58 = vpop.f32.mrf.mxu1  ;;  %v16821_v48 = vadd.f32 %v9117_v39, %v8925_v34  ;;  %v8927_v45 = vadd.f32 %v8926_v61, %v16561_v8 }
 0x47a   : > { %v16824_v32 = vpop.f32.mrf.mxu0 }
 0x47b   : > { %17452 = vst [vmem:[#allocation37_spill] sm:$0xff] %v16821_v48  ;;  %v16826_v0 = vpop.f32.mrf.mxu1  ;;  %v16828_v55 = vadd.f32 %v9119_v58, %v8927_v45  ;;  %v12559_v58 = vld [vmem:[%s17144_s5 + $0x70] sm:$0xff]  }
 0x47c   : > { %v8932_v35 = vpop.f32.mrf.mxu0  ;;  %11623 = vmatprep.subr.bf16.mxu1 %v12559_v58 }
 0x47d   : > { %v9125_v33 = vpop.f32.mrf.mxu1  ;;  %v8933_v13 = vadd.f32 %v8932_v35, %v16571_v41  ;;  %v12560_v41 = vld [vmem:[%s17144_s5 + $0x30] sm:$0xff]  }
 0x47e   : > { %v8934_v57 = vpop.f32.mrf.mxu0  ;;  %11624 = vmatpush3.bf16.msra.mxu1 %v12560_v41 }
 0x47f   : > { %v9127_v20 = vpop.f32.mrf.mxu1  ;;  %v16831_v54 = vadd.f32 %v9125_v33, %v8933_v13  ;;  %v8935_v49 = vadd.f32 %v8934_v57, %v17454_v44 }
 0x480   : > { %v8936_v39 = vpop.f32.mrf.mxu0 }
 0x481   : > { %17453 = vst [vmem:[#allocation38_spill] sm:$0xff] %v16831_v54  ;;  %v9129_v34 = vpop.f32.mrf.mxu1  ;;  %v16834_v48 = vadd.f32 %v9127_v20, %v8935_v49  ;;  %v8937_v8 = vadd.f32 %v8936_v39, %v16583_v3 }
 0x482   : > { %v16843_v61 = vpop.f32.mrf.mxu0 }
 0x483   : > { %17455 = vst [vmem:[#allocation15_spill] sm:$0xff] %v16834_v48  ;;  %v16845_v45 = vpop.f32.mrf.mxu1  ;;  %v16847_v35 = vadd.f32 %v9129_v34, %v8937_v8 }
 0x484   : > { %17456 = vst [vmem:[#allocation39_spill] sm:$0xff] %v16845_v45  ;;  %v8942_v33 = vpop.f32.mrf.mxu0 }
 0x485   : > { %v9135_v13 = vpop.f32.mrf.mxu1  ;;  %v8943_v3 = vadd.f32 %v8942_v33, %v16593_v38 }
 0x486   : > { %v8944_v57 = vpop.f32.mrf.mxu0 }
 0x487   : > { %v9137_v20 = vpop.f32.mrf.mxu1  ;;  %v16850_v44 = vadd.f32 %v9135_v13, %v8943_v3  ;;  %v8945_v49 = vadd.f32 %v8944_v57, %v16602_v16 }
 0x488   : > { %v8946_v39 = vpop.f32.mrf.mxu0 }
 0x489   : > { %17457 = vst [vmem:[#allocation40_spill] sm:$0xff] %v16850_v44  ;;  %v9139_v48 = vpop.f32.mrf.mxu1  ;;  %v16853_v54 = vadd.f32 %v9137_v20, %v8945_v49  ;;  %v8947_v45 = vadd.f32 %v8946_v39, %v16605_v4  ;;  %v12561_v4 = vld [vmem:[%s17144_s5 + $0x68] sm:$0xff]  }
 0x48a   : > { %v16856_v34 = vpop.f32.mrf.mxu0  ;;  %11625 = vmatprep.subr.bf16.mxu1 %v12561_v4 }
 0x48b   : > { %17458 = vst [vmem:[#allocation41_spill] sm:$0xff] %v16853_v54  ;;  %17459 = vst [vmem:[#allocation42_spill] sm:$0xff] %v16856_v34  ;;  %v16858_v8 = vpop.f32.mrf.mxu1  ;;  %v16860_v58 = vadd.f32 %v9139_v48, %v8947_v45  ;;  %v12562_v48 = vld [vmem:[%s17144_s5 + $0x28] sm:$0xff]  }
 0x48c   : > { %17460 = vst [vmem:[#allocation43_spill] sm:$0xff] %v16858_v8  ;;  %v9178_v41 = vpop.f32.mrf.mxu0  ;;  %11626 = vmatpush3.bf16.msra.mxu1 %v12562_v48 }
 0x48d   : > { %17461 = vst [vmem:[#allocation44_spill] sm:$0xff] %v16860_v58  ;;  %v9371_v38 = vpop.f32.mrf.mxu1  ;;  %v9179_v33 = vadd.f32 %v9178_v41, %v16615_v7 }
 0x48e   : > { %v9180_v13 = vpop.f32.mrf.mxu0 }
 0x48f   : > { %v9373_v3 = vpop.f32.mrf.mxu1  ;;  %v9181_v16 = vadd.f32 %v9180_v13, %v16618_v27  ;;  %v9372_v20 = vadd.f32 %v9371_v38, %v9179_v33  ;;  %v12564_v38 = vld [vmem:[%s17144_s5 + $0x20] sm:$0xff]  }
 0x490   : > { %v9182_v57 = vpop.f32.mrf.mxu0 }
 0x491   : > { %v9375_v44 = vpop.f32.mrf.mxu1  ;;  %v9183_v49 = vadd.f32 %v9182_v57, %v16627_v51  ;;  %v9374_v7 = vadd.f32 %v9373_v3, %v9181_v16  ;;  %v12563_v51 = vld [vmem:[%s17144_s5 + $0x60] sm:$0xff]   ;;  %v9530_v33 = vmax.f32 %v9372_v20, 0.0 }
 0x492   : > { %v9184_v45 = vpop.f32.mrf.mxu0  ;;  %11627 = vmatprep.subr.bf16.mxu1 %v12563_v51 }
 0x493   : > { %v9377_v39 = vpop.f32.mrf.mxu1  ;;  %v9376_v41 = vadd.f32 %v9375_v44, %v9183_v49  ;;  %v9185_v58 = vadd.f32 %v9184_v45, %v16630_v46  ;;  %v12565_v46 = vld [vmem:[%s17144_s5 + $0x58] sm:$0xff]   ;;  %v9531_v49 = vmax.f32 %v9374_v7, 0.0  ;;  %11628 = vmatpush3.bf16.msra.mxu1 %v12564_v38  ;;  %v12567_v7 = vld [vmem:[%s17144_s5 + $0x50] sm:$0xff]  }
 0x494   : > { %v9188_v27 = vpop.f32.mrf.mxu0  ;;  %11629 = vmatprep.subr.bf16.mxu1 %v12565_v46 }
 0x495   : > { %v9381_v13 = vpop.f32.mrf.mxu1  ;;  %v9532_v57 = vmax.f32 %v9376_v41, 0.0  ;;  %v9378_v8 = vadd.f32 %v9377_v39, %v9185_v58  ;;  %v9189_v3 = vadd.f32 %v9188_v27, %v16640_v29  ;;  %v12566_v58 = vld [vmem:[%s17144_s5 + $0x18] sm:$0xff]  }
 0x496   : > { %v9190_v44 = vpop.f32.mrf.mxu0 }
 0x497   : > { %v9383_v16 = vpop.f32.mrf.mxu1  ;;  %v9594_v4 = vpack.c.bf16 %v9532_v57, %v9530_v33  ;;  %v9533_v48 = vmax.f32 %v9378_v8, 0.0  ;;  %v9191_v45 = vadd.f32 %v9190_v44, %v16646_v17  ;;  %v9382_v29 = vadd.f32 %v9381_v13, %v9189_v3  ;;  %11630 = vmatpush3.bf16.msra.mxu1 %v12566_v58  ;;  %v12570_v58 = vld [vmem:[%s17144_s5 + $0x8] sm:$0xff]  }
 0x498   : > { %v9192_v54 = vpop.f32.mrf.mxu0  ;;  %11631 = vmatprep.subr.bf16.mxu1 %v12567_v7 }
 0x499   : > { %v9385_v34 = vpop.f32.mrf.mxu1  ;;  %v9193_v20 = vadd.f32 %v9192_v54, %v16649_v36  ;;  %v9595_v39 = vpack.c.bf16 %v9533_v48, %v9531_v49  ;;  %v9384_v27 = vadd.f32 %v9383_v16, %v9191_v45  ;;  %v12568_v36 = vld [vmem:[%s17144_s5 + $0x10] sm:$0xff]   ;;  %v9534_v54 = vmax.f32 %v9382_v29, 0.0 }
 0x49a   : > { %v9194_v41 = vpop.f32.mrf.mxu0 }
 0x49b   : > { %v9387_v8 = vpop.f32.mrf.mxu1  ;;  %v9386_v17 = vadd.f32 %v9385_v34, %v9193_v20  ;;  %v9195_v51 = vadd.f32 %v9194_v41, %v16652_v15  ;;  %9862 = vmatprep.mubr.bf16.mxu0 %v9595_v39  ;;  %v12569_v34 = vld [vmem:[%s17144_s5 + $0x48] sm:$0xff]   ;;  %v9535_v44 = vmax.f32 %v9384_v27, 0.0  ;;  %11632 = vmatpush3.bf16.msra.mxu1 %v12568_v36  ;;  %v12571_v39 = vld [vmem:[%s17144_s5 + $0x40] sm:$0xff]  }
 0x49c   : > { %v9198_v38 = vpop.f32.mrf.mxu0  ;;  %9863 = vmatmul.mubr.bf16.vlgmr.msra.gmra.mxu0 %v9594_v4  ;;  %11633 = vmatprep.subr.bf16.mxu1 %v12569_v34 }
 0x49d   : > { %v9391_v33 = vpop.f32.mrf.mxu1  ;;  %v9536_v13 = vmax.f32 %v9386_v17, 0.0  ;;  %v9388_v57 = vadd.f32 %v9387_v8, %v9195_v51  ;;  %v9199_v3 = vadd.f32 %v9198_v38, %v16659_v25 }
 0x49e   : > { %v9200_v15 = vpop.f32.mrf.mxu0 }
 0x49f   : > { %v9393_v46 = vpop.f32.mrf.mxu1  ;;  %v9596_v16 = vpack.c.bf16 %v9536_v13, %v9534_v54  ;;  %v9537_v49 = vmax.f32 %v9388_v57, 0.0  ;;  %v9201_v4 = vadd.f32 %v9200_v15, %v16662_v42  ;;  %v9392_v25 = vadd.f32 %v9391_v33, %v9199_v3  ;;  %11634 = vmatpush3.bf16.msra.mxu1 %v12570_v58 }
 0x4a0   : > { %v9202_v48 = vpop.f32.mrf.mxu0  ;;  %11635 = vmatprep.subr.bf16.mxu1 %v12571_v39 }
 0x4a1   : > { %v9395_v45 = vpop.f32.mrf.mxu1  ;;  %v9203_v29 = vadd.f32 %v9202_v48, %v16665_v59  ;;  %v9597_v20 = vpack.c.bf16 %v9537_v49, %v9535_v44  ;;  %v9394_v8 = vadd.f32 %v9393_v46, %v9201_v4  ;;  %v12572_v59 = vld [vmem:[%s17144_s5] sm:$0xff]   ;;  %v9538_v38 = vmax.f32 %v9392_v25, 0.0 }
 0x4a2   : > { %v9204_v7 = vpop.f32.mrf.mxu0 }
 0x4a3   : > { %v9397_v41 = vpop.f32.mrf.mxu1  ;;  %v9396_v42 = vadd.f32 %v9395_v45, %v9203_v29  ;;  %v9205_v27 = vadd.f32 %v9204_v7, %v16668_v47  ;;  %9872 = vmatprep.mubr.bf16.mxu0 %v9597_v20  ;;  %v9539_v3 = vmax.f32 %v9394_v8, 0.0  ;;  %11636 = vmatpush3.bf16.msra.mxu1 %v12572_v59  ;;  %v17462_v29 = vld [vmem:[#allocation20_spill] sm:$0xff] }
 0x4a4   : > { %v9208_v17 = vpop.f32.mrf.mxu0  ;;  %9873 = vmatmul.mubr.bf16.gmra.mxu0 %v9596_v16  ;;  %v8839_v20 = vadd.f32 %v16697_v9, %v17462_v29 }
 0x4a5   : > { %v9401_v51 = vpop.f32.mrf.mxu1  ;;  %v9540_v33 = vmax.f32 %v9396_v42, 0.0  ;;  %v9398_v36 = vadd.f32 %v9397_v41, %v9205_v27  ;;  %v9209_v54 = vadd.f32 %v9208_v17, %v16675_v10 }
 0x4a6   : > { %v9210_v13 = vpop.f32.mrf.mxu0 }
 0x4a7   : > { %v9403_v57 = vpop.f32.mrf.mxu1  ;;  %v9598_v34 = vpack.c.bf16 %v9540_v33, %v9538_v38  ;;  %v9541_v47 = vmax.f32 %v9398_v36, 0.0  ;;  %v9211_v15 = vadd.f32 %v9210_v13, %v16678_v19  ;;  %v9402_v16 = vadd.f32 %v9401_v51, %v9209_v54  ;;  %v17463_v54 = vld [vmem:[#allocation18_spill] sm:$0xff] }
 0x4a8   : > { %v9212_v46 = vpop.f32.mrf.mxu0  ;;  %v9032_v36 = vadd.f32 %v16699_v28, %v8839_v20 }
 0x4a9   : > { %v9405_v44 = vpop.f32.mrf.mxu1  ;;  %v9213_v49 = vadd.f32 %v9212_v46, %v16681_v37  ;;  %v9599_v4 = vpack.c.bf16 %v9541_v47, %v9539_v3  ;;  %v9404_v58 = vadd.f32 %v9403_v57, %v9211_v15  ;;  %v9542_v19 = vmax.f32 %v9402_v16, 0.0  ;;  %v17464_v46 = vld [vmem:[#allocation29_spill] sm:$0xff] }
 0x4aa   : > { %v9214_v48 = vpop.f32.mrf.mxu0 }
 0x4ab   : > { %v9407_v45 = vpop.f32.mrf.mxu1  ;;  %v9406_v25 = vadd.f32 %v9405_v44, %v9213_v49  ;;  %v9215_v10 = vadd.f32 %v9214_v48, %v16684_v26  ;;  %9882 = vmatprep.mubr.bf16.mxu0 %v9599_v4  ;;  %v9543_v17 = vmax.f32 %v9404_v58, 0.0  ;;  %v8849_v44 = vadd.f32 %v16714_v14, %v17464_v46 }
 0x4ac   : > { %v9218_v39 = vpop.f32.mrf.mxu0  ;;  %9883 = vmatmul.mubr.bf16.gmra.mxu0 %v9598_v34 }
 0x4ad   : > { %v9411_v7 = vpop.f32.mrf.mxu1  ;;  %v9544_v41 = vmax.f32 %v9406_v25, 0.0  ;;  %v9408_v8 = vadd.f32 %v9407_v45, %v9215_v10  ;;  %v9219_v42 = vadd.f32 %v9218_v39, %v16691_v24 }
 0x4ae   : > { %v9220_v37 = vpop.f32.mrf.mxu0 }
 0x4af   : > { %v9413_v27 = vpop.f32.mrf.mxu1  ;;  %v9600_v51 = vpack.c.bf16 %v9544_v41, %v9542_v19  ;;  %v9545_v59 = vmax.f32 %v9408_v8, 0.0  ;;  %v9221_v38 = vadd.f32 %v9220_v37, %v16694_v43  ;;  %v9412_v9 = vadd.f32 %v9411_v7, %v9219_v42 }
 0x4b0   : > { %v9222_v26 = vpop.f32.mrf.mxu0  ;;  %v9042_v19 = vadd.f32 %v16716_v2, %v8849_v44 }
 0x4b1   : > { %v9415_v33 = vpop.f32.mrf.mxu1  ;;  %v9223_v13 = vadd.f32 %v9222_v26, %v17463_v54  ;;  %v9601_v57 = vpack.c.bf16 %v9545_v59, %v9543_v17  ;;  %v9414_v47 = vadd.f32 %v9413_v27, %v9221_v38  ;;  %v9546_v43 = vmax.f32 %v9412_v9, 0.0 }
 0x4b2   : > { %v9224_v3 = vpop.f32.mrf.mxu0 }
 0x4b3   : > { %v9417_v34 = vpop.f32.mrf.mxu1  ;;  %v9416_v15 = vadd.f32 %v9415_v33, %v9223_v13  ;;  %v9225_v24 = vadd.f32 %v9224_v3, %v9032_v36  ;;  %9892 = vmatprep.mubr.bf16.mxu0 %v9601_v57  ;;  %v9547_v25 = vmax.f32 %v9414_v47, 0.0 }
 0x4b4   : > { %v9228_v16 = vpop.f32.mrf.mxu0  ;;  %9893 = vmatmul.mubr.bf16.gmra.mxu0 %v9600_v51  ;;  %v17465_v51 = vld [vmem:[#allocation21_spill] sm:$0xff] }
 0x4b5   : > { %v9421_v49 = vpop.f32.mrf.mxu1  ;;  %v9548_v4 = vmax.f32 %v9416_v15, 0.0  ;;  %v9418_v48 = vadd.f32 %v9417_v34, %v9225_v24  ;;  %v9229_v28 = vadd.f32 %v9228_v16, %v16708_v1  ;;  %v8859_v59 = vadd.f32 %v16727_v60, %v17465_v51  ;;  %v17467_v51 = vld [vmem:[#allocation23_spill] sm:$0xff] }
 0x4b6   : > { %v9230_v45 = vpop.f32.mrf.mxu0 }
 0x4b7   : > { %v9423_v58 = vpop.f32.mrf.mxu1  ;;  %v9602_v10 = vpack.c.bf16 %v9548_v4, %v9546_v43  ;;  %v9549_v29 = vmax.f32 %v9418_v48, 0.0  ;;  %v9231_v20 = vadd.f32 %v9230_v45, %v16711_v18  ;;  %v9422_v41 = vadd.f32 %v9421_v49, %v9229_v28  ;;  %v17466_v4 = vld [vmem:[#allocation22_spill] sm:$0xff] }
 0x4b8   : > { %v9232_v39 = vpop.f32.mrf.mxu0  ;;  %v9052_v15 = vadd.f32 %v16729_v31, %v8859_v59  ;;  %v8869_v48 = vadd.f32 %v16740_v30, %v17466_v4  ;;  %v8879_v59 = vadd.f32 %v16753_v50, %v17467_v51 }
 0x4b9   : > { %v9425_v7 = vpop.f32.mrf.mxu1  ;;  %v9603_v14 = vpack.c.bf16 %v9549_v29, %v9547_v25  ;;  %v9233_v8 = vadd.f32 %v9232_v39, %v16718_v22  ;;  %v9424_v27 = vadd.f32 %v9423_v58, %v9231_v20  ;;  %v9550_v18 = vmax.f32 %v9422_v41, 0.0 }
 0x4ba   : > { %v9234_v42 = vpop.f32.mrf.mxu0  ;;  %v9062_v41 = vadd.f32 %v16742_v63, %v8869_v48 }
 0x4bb   : > { %v9427_v37 = vpop.f32.mrf.mxu1  ;;  %v9426_v17 = vadd.f32 %v9425_v7, %v9233_v8  ;;  %v9235_v1 = vadd.f32 %v9234_v42, %v9042_v19  ;;  %9902 = vmatprep.mubr.bf16.mxu0 %v9603_v14  ;;  %v9551_v22 = vmax.f32 %v9424_v27, 0.0 }
 0x4bc   : > { %v9238_v38 = vpop.f32.mrf.mxu0  ;;  %9903 = vmatmul.mubr.bf16.gmra.mxu0 %v9602_v10 }
 0x4bd   : > { %v9431_v26 = vpop.f32.mrf.mxu1  ;;  %v9552_v33 = vmax.f32 %v9426_v17, 0.0  ;;  %v9428_v36 = vadd.f32 %v9427_v37, %v9235_v1  ;;  %v9239_v2 = vadd.f32 %v9238_v38, %v16721_v52 }
 0x4be   : > { %v9240_v9 = vpop.f32.mrf.mxu0 }
 0x4bf   : > { %v9433_v54 = vpop.f32.mrf.mxu1  ;;  %v9604_v13 = vpack.c.bf16 %v9552_v33, %v9550_v18  ;;  %v9553_v57 = vmax.f32 %v9428_v36, 0.0  ;;  %v9241_v3 = vadd.f32 %v9240_v9, %v16724_v21  ;;  %v9432_v24 = vadd.f32 %v9431_v26, %v9239_v2 }
 0x4c0   : > { %v9242_v34 = vpop.f32.mrf.mxu0 }
 0x4c1   : > { %v9435_v47 = vpop.f32.mrf.mxu1  ;;  %v9605_v60 = vpack.c.bf16 %v9553_v57, %v9551_v22  ;;  %v9243_v46 = vadd.f32 %v9242_v34, %v16731_v12  ;;  %v9434_v49 = vadd.f32 %v9433_v54, %v9241_v3  ;;  %v9554_v21 = vmax.f32 %v9432_v24, 0.0  ;;  %v17468_v22 = vld [vmem:[#allocation19_spill] sm:$0xff]  ;;  %v17469_v34 = vld [vmem:[#allocation30_spill] sm:$0xff] }
 0x4c2   : > { %v9244_v44 = vpop.f32.mrf.mxu0 }
 0x4c3   : > { %v9437_v16 = vpop.f32.mrf.mxu1  ;;  %v9436_v43 = vadd.f32 %v9435_v47, %v9243_v46  ;;  %v9245_v52 = vadd.f32 %v9244_v44, %v9052_v15  ;;  %9912 = vmatprep.mubr.bf16.mxu0 %v9605_v60  ;;  %v9555_v12 = vmax.f32 %v9434_v49, 0.0  ;;  %v9072_v47 = vadd.f32 %v17469_v34, %v8879_v59  ;;  %v17470_v60 = vld [vmem:[#allocation31_spill] sm:$0xff] }
 0x4c4   : > { %v9248_v28 = vpop.f32.mrf.mxu0  ;;  %9913 = vmatmul.mubr.bf16.gmra.mxu0 %v9604_v13 }
 0x4c5   : > { %v9441_v45 = vpop.f32.mrf.mxu1  ;;  %v9556_v58 = vmax.f32 %v9436_v43, 0.0  ;;  %v9438_v25 = vadd.f32 %v9437_v16, %v9245_v52  ;;  %v9249_v31 = vadd.f32 %v9248_v28, %v16734_v5  ;;  %v17471_v43 = vld [vmem:[#allocation27_spill] sm:$0xff]  ;;  %v17472_v52 = vld [vmem:[#allocation26_spill] sm:$0xff] }
 0x4c6   : > { %v9250_v10 = vpop.f32.mrf.mxu0  ;;  %v8889_v4 = vadd.f32 %v17472_v52, %v17471_v43 }
 0x4c7   : > { %v9443_v29 = vpop.f32.mrf.mxu1  ;;  %v9606_v20 = vpack.c.bf16 %v9556_v58, %v9554_v21  ;;  %v9557_v39 = vmax.f32 %v9438_v25, 0.0  ;;  %v9251_v7 = vadd.f32 %v9250_v10, %v16737_v40  ;;  %v9442_v8 = vadd.f32 %v9441_v45, %v9249_v31  ;;  %v17473_v25 = vld [vmem:[#allocation24_spill] sm:$0xff] }
 0x4c8   : > { %v9252_v19 = vpop.f32.mrf.mxu0 }
 0x4c9   : > { %v9445_v14 = vpop.f32.mrf.mxu1  ;;  %v9607_v30 = vpack.c.bf16 %v9557_v39, %v9555_v12  ;;  %v9253_v42 = vadd.f32 %v9252_v19, %v16744_v6  ;;  %v9444_v17 = vadd.f32 %v9443_v29, %v9251_v7  ;;  %v9558_v40 = vmax.f32 %v9442_v8, 0.0  ;;  %v17474_v7 = vld [vmem:[#allocation25_spill] sm:$0xff] }
 0x4ca   : > { %v9254_v37 = vpop.f32.mrf.mxu0 }
 0x4cb   : > { %v9447_v27 = vpop.f32.mrf.mxu1  ;;  %v9446_v1 = vadd.f32 %v9445_v14, %v9253_v42  ;;  %v9255_v5 = vadd.f32 %v9254_v37, %v9062_v41  ;;  %9922 = vmatprep.mubr.bf16.mxu0 %v9607_v30  ;;  %v9559_v6 = vmax.f32 %v9444_v17, 0.0  ;;  %v17475_v30 = vld [vmem:[#allocation32_spill] sm:$0xff] }
 0x4cc   : > { %v9258_v38 = vpop.f32.mrf.mxu0  ;;  %9923 = vmatmul.mubr.bf16.gmra.mxu0 %v9606_v20  ;;  %v9082_v8 = vadd.f32 %v17475_v30, %v8889_v4  ;;  %v17485_v30 = vld [vmem:[#allocation7_spill] sm:$0xff] }
 0x4cd   : > { %v9451_v26 = vpop.f32.mrf.mxu1  ;;  %v9560_v18 = vmax.f32 %v9446_v1, 0.0  ;;  %v9448_v33 = vadd.f32 %v9447_v27, %v9255_v5  ;;  %v9259_v63 = vadd.f32 %v9258_v38, %v16747_v56  ;;  %v17476_v27 = vld [vmem:[#allocation33_spill] sm:$0xff] }
 0x4ce   : > { %v9260_v36 = vpop.f32.mrf.mxu0 }
 0x4cf   : > { %v9453_v2 = vpop.f32.mrf.mxu1  ;;  %v9608_v9 = vpack.c.bf16 %v9560_v18, %v9558_v40  ;;  %v9561_v54 = vmax.f32 %v9448_v33, 0.0  ;;  %v9261_v13 = vadd.f32 %v9260_v36, %v17468_v22  ;;  %v9452_v15 = vadd.f32 %v9451_v26, %v9259_v63  ;;  %v17477_v26 = vld [vmem:[#allocation5_spill] sm:$0xff]  ;;  %v17478_v40 = vld [vmem:[#allocation4_spill] sm:$0xff] }
 0x4d0   : > { %v9262_v57 = vpop.f32.mrf.mxu0  ;;  %v8899_v18 = vadd.f32 %v17478_v40, %v17477_v26 }
 0x4d1   : > { %v9455_v3 = vpop.f32.mrf.mxu1  ;;  %v9609_v50 = vpack.c.bf16 %v9561_v54, %v9559_v6  ;;  %v9263_v24 = vadd.f32 %v9262_v57, %v17470_v60  ;;  %v9454_v16 = vadd.f32 %v9453_v2, %v9261_v13  ;;  %v9562_v45 = vmax.f32 %v9452_v15, 0.0 }
 0x4d2   : > { %v9264_v46 = vpop.f32.mrf.mxu0 }
 0x4d3   : > { %v9457_v44 = vpop.f32.mrf.mxu1  ;;  %v9456_v49 = vadd.f32 %v9455_v3, %v9263_v24  ;;  %v9265_v56 = vadd.f32 %v9264_v46, %v9072_v47  ;;  %9932 = vmatprep.mubr.bf16.mxu0 %v9609_v50  ;;  %v9563_v12 = vmax.f32 %v9454_v16, 0.0  ;;  %v17480_v47 = vld [vmem:[#allocation3_spill] sm:$0xff]  ;;  %v17481_v24 = vld [vmem:[#allocation34_spill] sm:$0xff] }
 0x4d4   : > { %v9268_v48 = vpop.f32.mrf.mxu0  ;;  %9933 = vmatmul.mubr.bf16.gmra.mxu0 %v9608_v9  ;;  %v17479_v9 = vld [vmem:[#allocation28_spill] sm:$0xff]  ;;  %v9092_v46 = vadd.f32 %v17481_v24, %v8899_v18  ;;  %v17487_v18 = vld [vmem:[#allocation13_spill] sm:$0xff] }
 0x4d5   : > { %v9461_v28 = vpop.f32.mrf.mxu1  ;;  %v9564_v21 = vmax.f32 %v9456_v49, 0.0  ;;  %v9458_v58 = vadd.f32 %v9457_v44, %v9265_v56  ;;  %v9269_v31 = vadd.f32 %v9268_v48, %v17473_v25  ;;  %v17482_v49 = vld [vmem:[#allocation35_spill] sm:$0xff]  ;;  %v17490_v24 = vld [vmem:[#allocation12_spill] sm:$0xff] }
 0x4d6   : > { %v9270_v10 = vpop.f32.mrf.mxu0 }
 0x4d7   : > { %v9463_v29 = vpop.f32.mrf.mxu1  ;;  %v9610_v20 = vpack.c.bf16 %v9564_v21, %v9562_v45  ;;  %v9565_v39 = vmax.f32 %v9458_v58, 0.0  ;;  %v9271_v19 = vadd.f32 %v9270_v10, %v17474_v7  ;;  %v9462_v37 = vadd.f32 %v9461_v28, %v9269_v31  ;;  %v17483_v45 = vld [vmem:[#allocation9_spill] sm:$0xff] }
 0x4d8   : > { %v9272_v14 = vpop.f32.mrf.mxu0  ;;  %v8909_v21 = vadd.f32 %v16792_v53, %v17483_v45 }
 0x4d9   : > { %v9465_v41 = vpop.f32.mrf.mxu1  ;;  %v9611_v42 = vpack.c.bf16 %v9565_v39, %v9563_v12  ;;  %v9273_v17 = vadd.f32 %v9272_v14, %v17476_v27  ;;  %v9464_v51 = vadd.f32 %v9463_v29, %v9271_v19  ;;  %v9566_v36 = vmax.f32 %v9462_v37, 0.0  ;;  %v17484_v12 = vld [vmem:[#allocation6_spill] sm:$0xff] }
 0x4da   : > { %v9274_v1 = vpop.f32.mrf.mxu0  ;;  %v9102_v27 = vadd.f32 %v16794_v11, %v8909_v21  ;;  %v17488_v11 = vld [vmem:[#allocation10_spill] sm:$0xff] }
 0x4db   : > { %v9467_v5 = vpop.f32.mrf.mxu1  ;;  %v9466_v59 = vadd.f32 %v9465_v41, %v9273_v17  ;;  %v9275_v38 = vadd.f32 %v9274_v1, %v9082_v8  ;;  %9942 = vmatprep.mubr.bf16.mxu0 %v9611_v42  ;;  %v9567_v57 = vmax.f32 %v9464_v51, 0.0  ;;  %v17486_v1 = vld [vmem:[#allocation8_spill] sm:$0xff] }
 0x4dc   : > { %v9278_v33 = vpop.f32.mrf.mxu0  ;;  %9943 = vmatmul.mubr.bf16.gmra.mxu0 %v9610_v20 }
 0x4dd   : > { %v9471_v63 = vpop.f32.mrf.mxu1  ;;  %v9568_v2 = vmax.f32 %v9466_v59, 0.0  ;;  %v9468_v6 = vadd.f32 %v9467_v5, %v9275_v38  ;;  %v9279_v54 = vadd.f32 %v9278_v33, %v17479_v9  ;;  %v8919_v33 = vadd.f32 %v16811_v23, %v17487_v18 }
 0x4de   : > { %v9280_v22 = vpop.f32.mrf.mxu0 }
 0x4df   : > { %v9473_v13 = vpop.f32.mrf.mxu1  ;;  %v9612_v3 = vpack.c.bf16 %v9568_v2, %v9566_v36  ;;  %v9569_v34 = vmax.f32 %v9468_v6, 0.0  ;;  %v9281_v50 = vadd.f32 %v9280_v22, %v17480_v47  ;;  %v9472_v16 = vadd.f32 %v9471_v63, %v9279_v54  ;;  %v17489_v47 = vld [vmem:[#allocation11_spill] sm:$0xff] }
 0x4e0   : > { %v9282_v15 = vpop.f32.mrf.mxu0 }
 0x4e1   : > { %v9475_v60 = vpop.f32.mrf.mxu1  ;;  %v9613_v44 = vpack.c.bf16 %v9569_v34, %v9567_v57  ;;  %v9283_v56 = vadd.f32 %v9282_v15, %v17482_v49  ;;  %v9474_v4 = vadd.f32 %v9473_v13, %v9281_v50  ;;  %v9570_v31 = vmax.f32 %v9472_v16, 0.0 }
 0x4e2   : > { %v9284_v43 = vpop.f32.mrf.mxu0 }
 0x4e3   : > { %v9477_v52 = vpop.f32.mrf.mxu1  ;;  %v9476_v48 = vadd.f32 %v9475_v60, %v9283_v56  ;;  %v9285_v28 = vadd.f32 %v9284_v43, %v9092_v46  ;;  %9952 = vmatprep.mubr.bf16.mxu0 %v9613_v44  ;;  %v9571_v19 = vmax.f32 %v9474_v4, 0.0  ;;  %v9112_v46 = vadd.f32 %v17490_v24, %v8919_v33 }
 0x4e4   : > { %v9288_v58 = vpop.f32.mrf.mxu0  ;;  %9953 = vmatmul.mubr.bf16.gmra.mxu0 %v9612_v3 }
 0x4e5   : > { %v9481_v25 = vpop.f32.mrf.mxu1  ;;  %v9572_v10 = vmax.f32 %v9476_v48, 0.0  ;;  %v9478_v29 = vadd.f32 %v9477_v52, %v9285_v28  ;;  %v9289_v20 = vadd.f32 %v9288_v58, %v17484_v12  ;;  %v17491_v48 = vld [vmem:[#allocation14_spill] sm:$0xff] }
 0x4e6   : > { %v9290_v39 = vpop.f32.mrf.mxu0  ;;  %v8929_v28 = vadd.f32 %v16824_v32, %v17491_v48  ;;  %v17500_v48 = vld [vmem:[#allocation40_spill] sm:$0xff] }
 0x4e7   : > { %v9483_v7 = vpop.f32.mrf.mxu1  ;;  %v9614_v14 = vpack.c.bf16 %v9572_v10, %v9570_v31  ;;  %v9573_v41 = vmax.f32 %v9478_v29, 0.0  ;;  %v9291_v8 = vadd.f32 %v9290_v39, %v17485_v30  ;;  %v9482_v17 = vadd.f32 %v9481_v25, %v9289_v20  ;;  %v17492_v10 = vld [vmem:[#allocation36_spill] sm:$0xff] }
 0x4e8   : > { %v9292_v42 = vpop.f32.mrf.mxu0 }
 0x4e9   : > { %v9485_v37 = vpop.f32.mrf.mxu1  ;;  %v9615_v53 = vpack.c.bf16 %v9573_v41, %v9571_v19  ;;  %v9293_v5 = vadd.f32 %v9292_v42, %v17486_v1  ;;  %v9484_v38 = vadd.f32 %v9483_v7, %v9291_v8  ;;  %v9574_v2 = vmax.f32 %v9482_v17, 0.0  ;;  %v17493_v19 = vld [vmem:[#allocation37_spill] sm:$0xff] }
 0x4ea   : > { %v9294_v51 = vpop.f32.mrf.mxu0  ;;  %v9122_v8 = vadd.f32 %v16826_v0, %v8929_v28  ;;  %v17495_v0 = vld [vmem:[#allocation38_spill] sm:$0xff] }
 0x4eb   : > { %v9487_v59 = vpop.f32.mrf.mxu1  ;;  %v9486_v26 = vadd.f32 %v9485_v37, %v9293_v5  ;;  %v9295_v40 = vadd.f32 %v9294_v51, %v9102_v27  ;;  %9962 = vmatprep.mubr.bf16.mxu0 %v9615_v53  ;;  %v9575_v57 = vmax.f32 %v9484_v38, 0.0  ;;  %v17494_v51 = vld [vmem:[#allocation16_spill] sm:$0xff] }
 0x4ec   : > { %v9298_v63 = vpop.f32.mrf.mxu0  ;;  %9963 = vmatmul.mubr.bf16.gmra.mxu0 %v9614_v14 }
 0x4ed   : > { %v9491_v36 = vpop.f32.mrf.mxu1  ;;  %v9576_v6 = vmax.f32 %v9486_v26, 0.0  ;;  %v9488_v9 = vadd.f32 %v9487_v59, %v9295_v40  ;;  %v9299_v54 = vadd.f32 %v9298_v63, %v17488_v11  ;;  %v8939_v59 = vadd.f32 %v16843_v61, %v17494_v51  ;;  %v17496_v11 = vld [vmem:[#allocation15_spill] sm:$0xff] }
 0x4ee   : > { %v9300_v22 = vpop.f32.mrf.mxu0 }
 0x4ef   : > { %v9493_v13 = vpop.f32.mrf.mxu1  ;;  %v9616_v3 = vpack.c.bf16 %v9576_v6, %v9574_v2  ;;  %v9577_v34 = vmax.f32 %v9488_v9, 0.0  ;;  %v9301_v50 = vadd.f32 %v9300_v22, %v17489_v47  ;;  %v9492_v44 = vadd.f32 %v9491_v36, %v9299_v54 }
 0x4f0   : > { %v9302_v15 = vpop.f32.mrf.mxu0 }
 0x4f1   : > { %v9495_v60 = vpop.f32.mrf.mxu1  ;;  %v9617_v23 = vpack.c.bf16 %v9577_v34, %v9575_v57  ;;  %v9303_v16 = vadd.f32 %v9302_v15, %v16815_v62  ;;  %v9494_v43 = vadd.f32 %v9493_v13, %v9301_v50  ;;  %v9578_v58 = vmax.f32 %v9492_v44, 0.0  ;;  %v17497_v57 = vld [vmem:[#allocation39_spill] sm:$0xff]  ;;  %v17499_v44 = vld [vmem:[#allocation42_spill] sm:$0xff] }
 0x4f2   : > { %v9304_v49 = vpop.f32.mrf.mxu0 }
 0x4f3   : > { %v9497_v56 = vpop.f32.mrf.mxu1  ;;  %v9496_v52 = vadd.f32 %v9495_v60, %v9303_v16  ;;  %v9305_v4 = vadd.f32 %v9304_v49, %v9112_v46  ;;  %9972 = vmatprep.mubr.bf16.mxu0 %v9617_v23  ;;  %v9579_v62 = vmax.f32 %v9494_v43, 0.0  ;;  %v17498_v23 = vld [vmem:[#allocation17_spill] sm:$0xff] }
 0x4f4   : > { %v9308_v45 = vpop.f32.mrf.mxu0  ;;  %9973 = vmatmul.mubr.bf16.gmra.mxu0 %v9616_v3  ;;  %v9132_v3 = vadd.f32 %v17497_v57, %v8939_v59  ;;  %v8949_v16 = vadd.f32 %v17499_v44, %v17498_v23  ;;  %v9658_v59 = vld [vmem:[%s17143_s4] sm:$0x3] }
 0x4f5   : > { %v9501_v21 = vpop.f32.mrf.mxu1  ;;  %v9580_v25 = vmax.f32 %v9496_v52, 0.0  ;;  %v9498_v31 = vadd.f32 %v9497_v56, %v9305_v4  ;;  %v9309_v29 = vadd.f32 %v9308_v45, %v17492_v10 }
 0x4f6   : > { %v9310_v12 = vpop.f32.mrf.mxu0 }
 0x4f7   : > { %v9503_v20 = vpop.f32.mrf.mxu1  ;;  %v9618_v39 = vpack.c.bf16 %v9580_v25, %v9578_v58  ;;  %v9581_v7 = vmax.f32 %v9498_v31, 0.0  ;;  %v9311_v14 = vadd.f32 %v9310_v12, %v17493_v19  ;;  %v9502_v42 = vadd.f32 %v9501_v21, %v9309_v29  ;;  %v17501_v31 = vld [vmem:[#allocation41_spill] sm:$0xff]  ;;  %v17503_v19 = vld [vmem:[#allocation44_spill] sm:$0xff] }
 0x4f8   : > { %v9312_v41 = vpop.f32.mrf.mxu0 }
 0x4f9   : > { %v9505_v30 = vpop.f32.mrf.mxu1  ;;  %v9619_v32 = vpack.c.bf16 %v9581_v7, %v9579_v62  ;;  %v9313_v37 = vadd.f32 %v9312_v41, %v16828_v55  ;;  %v9504_v17 = vadd.f32 %v9503_v20, %v9311_v14  ;;  %v9582_v40 = vmax.f32 %v9502_v42, 0.0  ;;  %v17502_v20 = vld [vmem:[#allocation43_spill] sm:$0xff] }
 0x4fa   : > { %v9314_v27 = vpop.f32.mrf.mxu0  ;;  %v9142_v62 = vadd.f32 %v17502_v20, %v8949_v16 }
 0x4fb   : > { %v9507_v53 = vpop.f32.mrf.mxu1  ;;  %v9506_v1 = vadd.f32 %v9505_v30, %v9313_v37  ;;  %v9315_v5 = vadd.f32 %v9314_v27, %v9122_v8  ;;  %9982 = vmatprep.mubr.bf16.mxu0 %v9619_v32  ;;  %v9583_v55 = vmax.f32 %v9504_v17, 0.0 }
 0x4fc   : > { %v9318_v38 = vpop.f32.mrf.mxu0  ;;  %9983 = vmatmul.mubr.bf16.gmra.mxu0 %v9618_v39 }
 0x4fd   : > { %v9511_v26 = vpop.f32.mrf.mxu1  ;;  %v9584_v18 = vmax.f32 %v9506_v1, 0.0  ;;  %v9508_v33 = vadd.f32 %v9507_v53, %v9315_v5  ;;  %v9319_v63 = vadd.f32 %v9318_v38, %v17495_v0 }
 0x4fe   : > { %v9320_v36 = vpop.f32.mrf.mxu0 }
 0x4ff   : > { %v9513_v2 = vpop.f32.mrf.mxu1  ;;  %v9620_v6 = vpack.c.bf16 %v9584_v18, %v9582_v40  ;;  %v9585_v9 = vmax.f32 %v9508_v33, 0.0  ;;  %v9321_v54 = vadd.f32 %v9320_v36, %v17496_v11  ;;  %v9512_v34 = vadd.f32 %v9511_v26, %v9319_v63  ;;  %v17504_v26 = vld [vmem:[#allocation2_spill] sm:$0xff] }
 0x500   : > { %v9322_v22 = vpop.f32.mrf.mxu0  ;;  %v17505_v40 = vsub.s32 1, %v17504_v26  ;;  %v17506_v33 = vsub.s32 0, %v17504_v26 }
 0x501   : > { %v9515_v13 = vpop.f32.mrf.mxu1  ;;  %v9621_v61 = vpack.c.bf16 %v9585_v9, %v9583_v55  ;;  %v9323_v47 = vadd.f32 %v9322_v22, %v16847_v35  ;;  %v9514_v60 = vadd.f32 %v9513_v2, %v9321_v54  ;;  %v9586_v43 = vmax.f32 %v9512_v34, 0.0 }
 0x502   : > { %v9324_v50 = vpop.f32.mrf.mxu0  ;;  %v16991_v18 = vrot.slane %v9658_v59, %v17505_v40  ;;  %v16995_v0 = vrot.slane %v9658_v59, %v17506_v33 }
 0x503   : > { %v9517_v15 = vpop.f32.mrf.mxu1  ;;  %v9516_v24 = vadd.f32 %v9515_v13, %v9323_v47  ;;  %v9325_v46 = vadd.f32 %v9324_v50, %v9132_v3  ;;  %9992 = vmatprep.mubr.bf16.mxu0 %v9621_v61  ;;  %v9587_v35 = vmax.f32 %v9514_v60, 0.0 }
 0x504   : > { %v9328_v49 = vpop.f32.mrf.mxu0  ;;  %9993 = vmatmul.mubr.bf16.gmra.mxu0 %v9620_v6 }
 0x505   : > { %v9521_v56 = vpop.f32.mrf.mxu1  ;;  %v9588_v52 = vmax.f32 %v9516_v24, 0.0  ;;  %v9518_v4 = vadd.f32 %v9517_v15, %v9325_v46  ;;  %v9329_v28 = vadd.f32 %v9328_v49, %v17500_v48 }
 0x506   : > { %v9330_v45 = vpop.f32.mrf.mxu0 }
 0x507   : > { %v9523_v21 = vpop.f32.mrf.mxu1  ;;  %v9622_v58 = vpack.c.bf16 %v9588_v52, %v9586_v43  ;;  %v9589_v25 = vmax.f32 %v9518_v4, 0.0  ;;  %v9331_v10 = vadd.f32 %v9330_v45, %v17501_v31  ;;  %v9522_v7 = vadd.f32 %v9521_v56, %v9329_v28 }
 0x508   : > { %v9332_v29 = vpop.f32.mrf.mxu0 }
 0x509   : > { %v9525_v12 = vpop.f32.mrf.mxu1  ;;  %v9623_v39 = vpack.c.bf16 %v9589_v25, %v9587_v35  ;;  %v9333_v14 = vadd.f32 %v9332_v29, %v17503_v19  ;;  %v9524_v30 = vadd.f32 %v9523_v21, %v9331_v10  ;;  %v9590_v37 = vmax.f32 %v9522_v7, 0.0 }
 0x50a   : > { %v9334_v41 = vpop.f32.mrf.mxu0 }
 0x50b   : > { %v9526_v8 = vadd.f32 %v9525_v12, %v9333_v14  ;;  %v9335_v32 = vadd.f32 %v9334_v41, %v9142_v62  ;;  %10002 = vmatprep.mubr.bf16.mxu0 %v9623_v39  ;;  %v9527_v42 = vpop.f32.mrf.mxu1  ;;  %v9591_v17 = vmax.f32 %v9524_v30, 0.0 }
 0x50c   : > { %10003 = vmatmul.mubr.bf16.gmra.mxu0 %v9622_v58 }
 0x50d   : > { %v9592_v27 = vmax.f32 %v9526_v8, 0.0  ;;  %v9528_v53 = vadd.f32 %v9527_v42, %v9335_v32 }
 0x50f   : > { %v9624_v1 = vpack.c.bf16 %v9592_v27, %v9590_v37  ;;  %v9593_v5 = vmax.f32 %v9528_v53, 0.0 }
 0x511   : > { %v9625_v51 = vpack.c.bf16 %v9593_v5, %v9591_v17 }
 0x513   : > { %10012 = vmatprep.mubr.bf16.mxu0 %v9625_v51 }
 0x514   : > { %10013 = vmatmul.mubr.bf16.gmra.mxu0 %v9624_v1 }
 0x55c   : > { %v9864_v38 = vpop.f32.mrf.mxu0 }
 0x55d   : > { %v9865_v6 = vadd.f32 %v9864_v38, %v16995_v0 }
 0x55e   : > { %v9866_v63 = vpop.f32.mrf.mxu0 }
 0x55f   : > { %v9867_v2 = vadd.f32 %v9866_v63, %v16991_v18  ;;  %v10023_v3 = vmax.f32 %v9865_v6, 0.0 }
 0x560   : > { %v9868_v36 = vpop.f32.mrf.mxu0 }
 0x561   : > { %v9869_v55 = vadd.f32 %v9868_v36, %v16995_v0  ;;  %v10024_v13 = vmax.f32 %v9867_v2, 0.0 }
 0x562   : > { %v9870_v9 = vpop.f32.mrf.mxu0 }
 0x563   : > { %v9871_v11 = vadd.f32 %v9870_v9, %v16991_v18  ;;  %v10025_v54 = vmax.f32 %v9869_v55, 0.0 }
 0x564   : > { %v9874_v22 = vpop.f32.mrf.mxu0 }
 0x565   : > { %v10026_v57 = vmax.f32 %v9871_v11, 0.0  ;;  %v10087_v47 = vpack.c.bf16 %v10025_v54, %v10023_v3  ;;  %v9875_v24 = vadd.f32 %v9874_v22, %v16995_v0 }
 0x566   : > { %v9876_v61 = vpop.f32.mrf.mxu0 }
 0x567   : > { %v10088_v34 = vpack.c.bf16 %v10026_v57, %v10024_v13  ;;  %v9877_v15 = vadd.f32 %v9876_v61, %v16991_v18  ;;  %v10027_v43 = vmax.f32 %v9875_v24, 0.0 }
 0x568   : > { %v9878_v50 = vpop.f32.mrf.mxu0 }
 0x569   : > { %v9879_v60 = vadd.f32 %v9878_v50, %v16995_v0  ;;  %10286 = vmatprep.mubr.bf16.mxu1 %v10088_v34  ;;  %v10028_v49 = vmax.f32 %v9877_v15, 0.0 }
 0x56a   : > { %v9880_v46 = vpop.f32.mrf.mxu0  ;;  %10287 = vmatmul.mubr.bf16.vlgmr.msra.gmra.mxu1 %v10087_v47 }
 0x56b   : > { %v9881_v23 = vadd.f32 %v9880_v46, %v16991_v18  ;;  %v10029_v44 = vmax.f32 %v9879_v60, 0.0 }
 0x56c   : > { %v9884_v16 = vpop.f32.mrf.mxu0 }
 0x56d   : > { %v10030_v56 = vmax.f32 %v9881_v23, 0.0  ;;  %v10089_v48 = vpack.c.bf16 %v10029_v44, %v10027_v43  ;;  %v9885_v35 = vadd.f32 %v9884_v16, %v16995_v0 }
 0x56e   : > { %v9886_v52 = vpop.f32.mrf.mxu0 }
 0x56f   : > { %v10090_v4 = vpack.c.bf16 %v10030_v56, %v10028_v49  ;;  %v9887_v45 = vadd.f32 %v9886_v52, %v16991_v18  ;;  %v10031_v20 = vmax.f32 %v9885_v35, 0.0 }
 0x570   : > { %v9888_v28 = vpop.f32.mrf.mxu0 }
 0x571   : > { %v9889_v21 = vadd.f32 %v9888_v28, %v16995_v0  ;;  %10294 = vmatprep.mubr.bf16.mxu1 %v10090_v4  ;;  %v10032_v29 = vmax.f32 %v9887_v45, 0.0 }
 0x572   : > { %v9890_v58 = vpop.f32.mrf.mxu0  ;;  %10295 = vmatmul.mubr.bf16.gmra.mxu1 %v10089_v48 }
 0x573   : > { %v9891_v25 = vadd.f32 %v9890_v58, %v16991_v18  ;;  %v10033_v31 = vmax.f32 %v9889_v21, 0.0 }
 0x574   : > { %v9894_v10 = vpop.f32.mrf.mxu0 }
 0x575   : > { %v10034_v12 = vmax.f32 %v9891_v25, 0.0  ;;  %v10091_v7 = vpack.c.bf16 %v10033_v31, %v10031_v20  ;;  %v9895_v30 = vadd.f32 %v9894_v10, %v16995_v0 }
 0x576   : > { %v9896_v62 = vpop.f32.mrf.mxu0 }
 0x577   : > { %v10092_v39 = vpack.c.bf16 %v10034_v12, %v10032_v29  ;;  %v9897_v14 = vadd.f32 %v9896_v62, %v16991_v18  ;;  %v10035_v17 = vmax.f32 %v9895_v30, 0.0 }
 0x578   : > { %v9898_v19 = vpop.f32.mrf.mxu0 }
 0x579   : > { %v9899_v41 = vadd.f32 %v9898_v19, %v16995_v0  ;;  %10302 = vmatprep.mubr.bf16.mxu1 %v10092_v39  ;;  %v10036_v27 = vmax.f32 %v9897_v14, 0.0 }
 0x57a   : > { %v9900_v8 = vpop.f32.mrf.mxu0  ;;  %10303 = vmatmul.mubr.bf16.gmra.mxu1 %v10091_v7 }
 0x57b   : > { %v9901_v32 = vadd.f32 %v9900_v8, %v16991_v18  ;;  %v10037_v42 = vmax.f32 %v9899_v41, 0.0 }
 0x57c   : > { %v9904_v37 = vpop.f32.mrf.mxu0 }
 0x57d   : > { %v10038_v53 = vmax.f32 %v9901_v32, 0.0  ;;  %v10093_v51 = vpack.c.bf16 %v10037_v42, %v10035_v17  ;;  %v9905_v40 = vadd.f32 %v9904_v37, %v16995_v0 }
 0x57e   : > { %v9906_v1 = vpop.f32.mrf.mxu0 }
 0x57f   : > { %v10094_v5 = vpack.c.bf16 %v10038_v53, %v10036_v27  ;;  %v9907_v38 = vadd.f32 %v9906_v1, %v16991_v18  ;;  %v10039_v9 = vmax.f32 %v9905_v40, 0.0 }
 0x580   : > { %v9908_v59 = vpop.f32.mrf.mxu0 }
 0x581   : > { %v9909_v26 = vadd.f32 %v9908_v59, %v16995_v0  ;;  %10310 = vmatprep.mubr.bf16.mxu1 %v10094_v5  ;;  %v10040_v55 = vmax.f32 %v9907_v38, 0.0 }
 0x582   : > { %v9910_v33 = vpop.f32.mrf.mxu0  ;;  %10311 = vmatmul.mubr.bf16.gmra.mxu1 %v10093_v51 }
 0x583   : > { %v9911_v63 = vadd.f32 %v9910_v33, %v16991_v18  ;;  %v10041_v36 = vmax.f32 %v9909_v26, 0.0 }
 0x584   : > { %v9914_v2 = vpop.f32.mrf.mxu0 }
 0x585   : > { %v10042_v6 = vmax.f32 %v9911_v63, 0.0  ;;  %v10095_v22 = vpack.c.bf16 %v10041_v36, %v10039_v9  ;;  %v9915_v61 = vadd.f32 %v9914_v2, %v16995_v0 }
 0x586   : > { %v9916_v11 = vpop.f32.mrf.mxu0 }
 0x587   : > { %v10096_v54 = vpack.c.bf16 %v10042_v6, %v10040_v55  ;;  %v9917_v57 = vadd.f32 %v9916_v11, %v16991_v18  ;;  %v10043_v46 = vmax.f32 %v9915_v61, 0.0 }
 0x588   : > { %v9918_v13 = vpop.f32.mrf.mxu0 }
 0x589   : > { %v9919_v3 = vadd.f32 %v9918_v13, %v16995_v0  ;;  %10318 = vmatprep.mubr.bf16.mxu1 %v10096_v54  ;;  %v10044_v60 = vmax.f32 %v9917_v57, 0.0 }
 0x58a   : > { %v9920_v34 = vpop.f32.mrf.mxu0  ;;  %10319 = vmatmul.mubr.bf16.gmra.mxu1 %v10095_v22 }
 0x58b   : > { %v9921_v47 = vadd.f32 %v9920_v34, %v16991_v18  ;;  %v10045_v50 = vmax.f32 %v9919_v3, 0.0 }
 0x58c   : > { %v9924_v15 = vpop.f32.mrf.mxu0 }
 0x58d   : > { %v10046_v24 = vmax.f32 %v9921_v47, 0.0  ;;  %v10097_v16 = vpack.c.bf16 %v10045_v50, %v10043_v46  ;;  %v9925_v52 = vadd.f32 %v9924_v15, %v16995_v0 }
 0x58e   : > { %v9926_v23 = vpop.f32.mrf.mxu0 }
 0x58f   : > { %v10098_v44 = vpack.c.bf16 %v10046_v24, %v10044_v60  ;;  %v9927_v56 = vadd.f32 %v9926_v23, %v16991_v18  ;;  %v10047_v58 = vmax.f32 %v9925_v52, 0.0 }
 0x590   : > { %v9928_v49 = vpop.f32.mrf.mxu0 }
 0x591   : > { %v9929_v43 = vadd.f32 %v9928_v49, %v16995_v0  ;;  %10326 = vmatprep.mubr.bf16.mxu1 %v10098_v44  ;;  %v10048_v21 = vmax.f32 %v9927_v56, 0.0 }
 0x592   : > { %v9930_v4 = vpop.f32.mrf.mxu0  ;;  %10327 = vmatmul.mubr.bf16.gmra.mxu1 %v10097_v16 }
 0x593   : > { %v9931_v48 = vadd.f32 %v9930_v4, %v16991_v18  ;;  %v10049_v28 = vmax.f32 %v9929_v43, 0.0 }
 0x594   : > { %v9934_v45 = vpop.f32.mrf.mxu0 }
 0x595   : > { %v10050_v35 = vmax.f32 %v9931_v48, 0.0  ;;  %v10099_v10 = vpack.c.bf16 %v10049_v28, %v10047_v58  ;;  %v9935_v62 = vadd.f32 %v9934_v45, %v16995_v0 }
 0x596   : > { %v9936_v25 = vpop.f32.mrf.mxu0 }
 0x597   : > { %v10100_v31 = vpack.c.bf16 %v10050_v35, %v10048_v21  ;;  %v9937_v12 = vadd.f32 %v9936_v25, %v16991_v18  ;;  %v10051_v8 = vmax.f32 %v9935_v62, 0.0 }
 0x598   : > { %v9938_v29 = vpop.f32.mrf.mxu0 }
 0x599   : > { %v9939_v20 = vadd.f32 %v9938_v29, %v16995_v0  ;;  %10334 = vmatprep.mubr.bf16.mxu1 %v10100_v31  ;;  %v10052_v41 = vmax.f32 %v9937_v12, 0.0 }
 0x59a   : > { %v9940_v39 = vpop.f32.mrf.mxu0  ;;  %10335 = vmatmul.mubr.bf16.gmra.mxu1 %v10099_v10 }
 0x59b   : > { %v9941_v7 = vadd.f32 %v9940_v39, %v16991_v18  ;;  %v10053_v19 = vmax.f32 %v9939_v20, 0.0 }
 0x59c   : > { %v9944_v14 = vpop.f32.mrf.mxu0 }
 0x59d   : > { %v10054_v30 = vmax.f32 %v9941_v7, 0.0  ;;  %v10101_v37 = vpack.c.bf16 %v10053_v19, %v10051_v8  ;;  %v9945_v1 = vadd.f32 %v9944_v14, %v16995_v0 }
 0x59e   : > { %v9946_v32 = vpop.f32.mrf.mxu0 }
 0x59f   : > { %v10102_v42 = vpack.c.bf16 %v10054_v30, %v10052_v41  ;;  %v9947_v53 = vadd.f32 %v9946_v32, %v16991_v18  ;;  %v10055_v33 = vmax.f32 %v9945_v1, 0.0 }
 0x5a0   : > { %v9948_v27 = vpop.f32.mrf.mxu0 }
 0x5a1   : > { %v9949_v17 = vadd.f32 %v9948_v27, %v16995_v0  ;;  %10342 = vmatprep.mubr.bf16.mxu1 %v10102_v42  ;;  %v10056_v26 = vmax.f32 %v9947_v53, 0.0 }
 0x5a2   : > { %v9950_v5 = vpop.f32.mrf.mxu0  ;;  %10343 = vmatmul.mubr.bf16.gmra.mxu1 %v10101_v37 }
 0x5a3   : > { %v9951_v51 = vadd.f32 %v9950_v5, %v16991_v18  ;;  %v10057_v59 = vmax.f32 %v9949_v17, 0.0 }
 0x5a4   : > { %v9954_v38 = vpop.f32.mrf.mxu0 }
 0x5a5   : > { %v10058_v40 = vmax.f32 %v9951_v51, 0.0  ;;  %v10103_v2 = vpack.c.bf16 %v10057_v59, %v10055_v33  ;;  %v9955_v11 = vadd.f32 %v9954_v38, %v16995_v0 }
 0x5a6   : > { %v9956_v63 = vpop.f32.mrf.mxu0 }
 0x5a7   : > { %v10104_v36 = vpack.c.bf16 %v10058_v40, %v10056_v26  ;;  %v9957_v6 = vadd.f32 %v9956_v63, %v16991_v18  ;;  %v10059_v34 = vmax.f32 %v9955_v11, 0.0 }
 0x5a8   : > { %v9958_v55 = vpop.f32.mrf.mxu0 }
 0x5a9   : > { %v9959_v9 = vadd.f32 %v9958_v55, %v16995_v0  ;;  %10350 = vmatprep.mubr.bf16.mxu1 %v10104_v36  ;;  %v10060_v3 = vmax.f32 %v9957_v6, 0.0 }
 0x5aa   : > { %v9960_v54 = vpop.f32.mrf.mxu0  ;;  %10351 = vmatmul.mubr.bf16.gmra.mxu1 %v10103_v2 }
 0x5ab   : > { %v9961_v22 = vadd.f32 %v9960_v54, %v16991_v18  ;;  %v10061_v13 = vmax.f32 %v9959_v9, 0.0 }
 0x5ac   : > { %v9964_v57 = vpop.f32.mrf.mxu0 }
 0x5ad   : > { %v10062_v61 = vmax.f32 %v9961_v22, 0.0  ;;  %v10105_v15 = vpack.c.bf16 %v10061_v13, %v10059_v34  ;;  %v9965_v23 = vadd.f32 %v9964_v57, %v16995_v0 }
 0x5ae   : > { %v9966_v47 = vpop.f32.mrf.mxu0 }
 0x5af   : > { %v10106_v50 = vpack.c.bf16 %v10062_v61, %v10060_v3  ;;  %v9967_v24 = vadd.f32 %v9966_v47, %v16991_v18  ;;  %v10063_v4 = vmax.f32 %v9965_v23, 0.0 }
 0x5b0   : > { %v9968_v60 = vpop.f32.mrf.mxu0 }
 0x5b1   : > { %v9969_v46 = vadd.f32 %v9968_v60, %v16995_v0  ;;  %10358 = vmatprep.mubr.bf16.mxu1 %v10106_v50  ;;  %v10064_v43 = vmax.f32 %v9967_v24, 0.0 }
 0x5b2   : > { %v9970_v44 = vpop.f32.mrf.mxu0  ;;  %10359 = vmatmul.mubr.bf16.gmra.mxu1 %v10105_v15 }
 0x5b3   : > { %v9971_v16 = vadd.f32 %v9970_v44, %v16991_v18  ;;  %v10065_v49 = vmax.f32 %v9969_v46, 0.0 }
 0x5b4   : > { %v9974_v56 = vpop.f32.mrf.mxu0 }
 0x5b5   : > { %v10066_v52 = vmax.f32 %v9971_v16, 0.0  ;;  %v10107_v45 = vpack.c.bf16 %v10065_v49, %v10063_v4  ;;  %v9975_v25 = vadd.f32 %v9974_v56, %v16995_v0 }
 0x5b6   : > { %v9976_v48 = vpop.f32.mrf.mxu0 }
 0x5b7   : > { %v10108_v28 = vpack.c.bf16 %v10066_v52, %v10064_v43  ;;  %v9977_v35 = vadd.f32 %v9976_v48, %v16991_v18  ;;  %v10067_v39 = vmax.f32 %v9975_v25, 0.0 }
 0x5b8   : > { %v9978_v21 = vpop.f32.mrf.mxu0 }
 0x5b9   : > { %v9979_v58 = vadd.f32 %v9978_v21, %v16995_v0  ;;  %10366 = vmatprep.mubr.bf16.mxu1 %v10108_v28  ;;  %v10068_v20 = vmax.f32 %v9977_v35, 0.0 }
 0x5ba   : > { %v9980_v31 = vpop.f32.mrf.mxu0  ;;  %10367 = vmatmul.mubr.bf16.gmra.mxu1 %v10107_v45 }
 0x5bb   : > { %v9981_v10 = vadd.f32 %v9980_v31, %v16991_v18  ;;  %v10069_v29 = vmax.f32 %v9979_v58, 0.0 }
 0x5bc   : > { %v9984_v12 = vpop.f32.mrf.mxu0 }
 0x5bd   : > { %v10070_v62 = vmax.f32 %v9981_v10, 0.0  ;;  %v10109_v14 = vpack.c.bf16 %v10069_v29, %v10067_v39  ;;  %v9985_v32 = vadd.f32 %v9984_v12, %v16995_v0  ;;  %v17064_v12 = vld [vmem:[%s17145_s6] ss:$0 sm:$0xff] }
 0x5be   : > { %v9986_v7 = vpop.f32.mrf.mxu0 }
 0x5bf   : > { %v10110_v19 = vpack.c.bf16 %v10070_v62, %v10068_v20  ;;  %v9987_v30 = vadd.f32 %v9986_v7, %v16991_v18  ;;  %v10071_v5 = vmax.f32 %v9985_v32, 0.0 }
 0x5c0   : > { %v9988_v41 = vpop.f32.mrf.mxu0 }
 0x5c1   : > { %v9989_v8 = vadd.f32 %v9988_v41, %v16995_v0  ;;  %10374 = vmatprep.mubr.bf16.mxu1 %v10110_v19  ;;  %v10072_v17 = vmax.f32 %v9987_v30, 0.0 }
 0x5c2   : > { %v9990_v42 = vpop.f32.mrf.mxu0  ;;  %10375 = vmatmul.mubr.bf16.gmra.mxu1 %v10109_v14 }
 0x5c3   : > { %v9991_v37 = vadd.f32 %v9990_v42, %v16991_v18  ;;  %v10073_v27 = vmax.f32 %v9989_v8, 0.0 }
 0x5c4   : > { %v9994_v53 = vpop.f32.mrf.mxu0 }
 0x5c5   : > { %v10074_v1 = vmax.f32 %v9991_v37, 0.0  ;;  %v10111_v38 = vpack.c.bf16 %v10073_v27, %v10071_v5  ;;  %v9995_v63 = vadd.f32 %v9994_v53, %v16995_v0 }
 0x5c6   : > { %v9996_v51 = vpop.f32.mrf.mxu0 }
 0x5c7   : > { %v10112_v59 = vpack.c.bf16 %v10074_v1, %v10072_v17  ;;  %v9997_v40 = vadd.f32 %v9996_v51, %v16991_v18  ;;  %v10075_v54 = vmax.f32 %v9995_v63, 0.0 }
 0x5c8   : > { %v9998_v26 = vpop.f32.mrf.mxu0 }
 0x5c9   : > { %v9999_v33 = vadd.f32 %v9998_v26, %v16995_v0  ;;  %10382 = vmatprep.mubr.bf16.mxu1 %v10112_v59  ;;  %v10076_v9 = vmax.f32 %v9997_v40, 0.0 }
 0x5ca   : > { %v10000_v36 = vpop.f32.mrf.mxu0  ;;  %10383 = vmatmul.mubr.bf16.gmra.mxu1 %v10111_v38 }
 0x5cb   : > { %v10001_v2 = vadd.f32 %v10000_v36, %v16991_v18  ;;  %v10077_v55 = vmax.f32 %v9999_v33, 0.0 }
 0x5cc   : > { %v10004_v6 = vpop.f32.mrf.mxu0 }
 0x5cd   : > { %v10078_v11 = vmax.f32 %v10001_v2, 0.0  ;;  %v10113_v57 = vpack.c.bf16 %v10077_v55, %v10075_v54  ;;  %v10005_v47 = vadd.f32 %v10004_v6, %v16995_v0 }
 0x5ce   : > { %v10006_v22 = vpop.f32.mrf.mxu0 }
 0x5cf   : > { %v10114_v13 = vpack.c.bf16 %v10078_v11, %v10076_v9  ;;  %v10007_v61 = vadd.f32 %v10006_v22, %v16991_v18  ;;  %v10079_v44 = vmax.f32 %v10005_v47, 0.0 }
 0x5d0   : > { %v10008_v3 = vpop.f32.mrf.mxu0 }
 0x5d1   : > { %v10009_v34 = vadd.f32 %v10008_v3, %v16995_v0  ;;  %10390 = vmatprep.mubr.bf16.mxu1 %v10114_v13  ;;  %v10080_v46 = vmax.f32 %v10007_v61, 0.0 }
 0x5d2   : > { %v10010_v50 = vpop.f32.mrf.mxu0  ;;  %10391 = vmatmul.mubr.bf16.gmra.mxu1 %v10113_v57 }
 0x5d3   : > { %v10011_v15 = vadd.f32 %v10010_v50, %v16991_v18  ;;  %v10081_v60 = vmax.f32 %v10009_v34, 0.0 }
 0x5d4   : > { %v10014_v24 = vpop.f32.mrf.mxu0 }
 0x5d5   : > { %v10082_v23 = vmax.f32 %v10011_v15, 0.0  ;;  %v10115_v56 = vpack.c.bf16 %v10081_v60, %v10079_v44  ;;  %v10015_v48 = vadd.f32 %v10014_v24, %v16995_v0 }
 0x5d6   : > { %v10016_v16 = vpop.f32.mrf.mxu0 }
 0x5d7   : > { %v10116_v49 = vpack.c.bf16 %v10082_v23, %v10080_v46  ;;  %v10017_v52 = vadd.f32 %v10016_v16, %v16991_v18  ;;  %v10083_v25 = vmax.f32 %v10015_v48, 0.0 }
 0x5d8   : > { %v10018_v43 = vpop.f32.mrf.mxu0 }
 0x5d9   : > { %v10019_v4 = vadd.f32 %v10018_v43, %v16995_v0  ;;  %10398 = vmatprep.mubr.bf16.mxu1 %v10116_v49  ;;  %v10084_v35 = vmax.f32 %v10017_v52, 0.0 }
 0x5da   : > { %v10020_v28 = vpop.f32.mrf.mxu0  ;;  %10399 = vmatmul.mubr.bf16.gmra.mxu1 %v10115_v56 }
 0x5db   : > { %v10021_v45 = vadd.f32 %v10020_v28, %v16991_v18  ;;  %v10085_v21 = vmax.f32 %v10019_v4, 0.0 }
 0x5dd   : > { %v10086_v58 = vmax.f32 %v10021_v45, 0.0  ;;  %v10117_v10 = vpack.c.bf16 %v10085_v21, %v10083_v25 }
 0x5df   : > { %v10118_v31 = vpack.c.bf16 %v10086_v58, %v10084_v35 }
 0x5e1   : > { %10406 = vmatprep.mubr.bf16.mxu1 %v10118_v31 }
 0x5e2   : > { %10407 = vmatmul.mubr.bf16.gmra.mxu1 %v10117_v10 }
 0x62a   : > { %v11637_v29 = vpop.f32.mrf.mxu1 }
 0x62c   : > { %v11638_v20 = vpop.f32.mrf.mxu1 }
 0x62d   : > { %v11639_v0 = vadd.f32 %v11638_v20, %v11637_v29 }
 0x62e   : > { %v11640_v62 = vpop.f32.mrf.mxu1 }
 0x62f   : > { %v10289_v18 = vadd.f32 %v11639_v0, %v17064_v12 }
 0x630   : > { %v11641_v39 = vpop.f32.mrf.mxu1 }
 0x631   : > { %v10415_v7 = vmax.f32 %v10289_v18, 0.0  ;;  %v11642_v19 = vadd.f32 %v11641_v39, %v11640_v62 }
 0x632   : > { %v11643_v14 = vpop.f32.mrf.mxu1 }
 0x633   : > { %10447 = vst [vmem:[%s17071_s9] sm:$0xff] %v10415_v7  ;;  %v10292_v41 = vadd.f32 %v11642_v19, %v17064_v12 }
 0x634   : > { %v11644_v30 = vpop.f32.mrf.mxu1 }
 0x635   : > { %v10416_v8 = vmax.f32 %v10292_v41, 0.0  ;;  %v11645_v32 = vadd.f32 %v11644_v30, %v11643_v14 }
 0x636   : > { %v11646_v42 = vpop.f32.mrf.mxu1 }
 0x637   : > { %10448 = vst [vmem:[%s17071_s9 + $0x8] sm:$0xff] %v10416_v8  ;;  %v10297_v37 = vadd.f32 %v11645_v32, %v17064_v12 }
 0x638   : > { %v11647_v27 = vpop.f32.mrf.mxu1 }
 0x639   : > { %v10417_v53 = vmax.f32 %v10297_v37, 0.0  ;;  %v11648_v17 = vadd.f32 %v11647_v27, %v11646_v42 }
 0x63a   : > { %v11649_v1 = vpop.f32.mrf.mxu1 }
 0x63b   : > { %10449 = vst [vmem:[%s17071_s9 + $0x10] sm:$0xff] %v10417_v53  ;;  %v10300_v5 = vadd.f32 %v11648_v17, %v17064_v12 }
 0x63c   : > { %v11650_v51 = vpop.f32.mrf.mxu1 }
 0x63d   : > { %v10418_v59 = vmax.f32 %v10300_v5, 0.0  ;;  %v11651_v38 = vadd.f32 %v11650_v51, %v11649_v1 }
 0x63e   : > { %v11652_v26 = vpop.f32.mrf.mxu1 }
 0x63f   : > { %10450 = vst [vmem:[%s17071_s9 + $0x18] sm:$0xff] %v10418_v59  ;;  %v10305_v40 = vadd.f32 %v11651_v38, %v17064_v12 }
 0x640   : > { %v11653_v33 = vpop.f32.mrf.mxu1 }
 0x641   : > { %v10419_v63 = vmax.f32 %v10305_v40, 0.0  ;;  %v11654_v36 = vadd.f32 %v11653_v33, %v11652_v26 }
 0x642   : > { %v11655_v2 = vpop.f32.mrf.mxu1 }
 0x643   : > { %10451 = vst [vmem:[%s17071_s9 + $0x20] sm:$0xff] %v10419_v63  ;;  %v10308_v55 = vadd.f32 %v11654_v36, %v17064_v12 }
 0x644   : > { %v11656_v6 = vpop.f32.mrf.mxu1 }
 0x645   : > { %v10420_v9 = vmax.f32 %v10308_v55, 0.0  ;;  %v11657_v11 = vadd.f32 %v11656_v6, %v11655_v2 }
 0x646   : > { %v11658_v54 = vpop.f32.mrf.mxu1 }
 0x647   : > { %10452 = vst [vmem:[%s17071_s9 + $0x28] sm:$0xff] %v10420_v9  ;;  %v10313_v22 = vadd.f32 %v11657_v11, %v17064_v12 }
 0x648   : > { %v11659_v13 = vpop.f32.mrf.mxu1 }
 0x649   : > { %v10421_v57 = vmax.f32 %v10313_v22, 0.0  ;;  %v11660_v3 = vadd.f32 %v11659_v13, %v11658_v54 }
 0x64a   : > { %v11661_v61 = vpop.f32.mrf.mxu1 }
 0x64b   : > { %10453 = vst [vmem:[%s17071_s9 + $0x30] sm:$0xff] %v10421_v57  ;;  %v10316_v34 = vadd.f32 %v11660_v3, %v17064_v12 }
 0x64c   : > { %v11662_v47 = vpop.f32.mrf.mxu1 }
 0x64d   : > { %v10422_v50 = vmax.f32 %v10316_v34, 0.0  ;;  %v11663_v15 = vadd.f32 %v11662_v47, %v11661_v61 }
 0x64e   : > { %v11664_v60 = vpop.f32.mrf.mxu1 }
 0x64f   : > { %10454 = vst [vmem:[%s17071_s9 + $0x38] sm:$0xff] %v10422_v50  ;;  %v10321_v24 = vadd.f32 %v11663_v15, %v17064_v12 }
 0x650   : > { %v11665_v46 = vpop.f32.mrf.mxu1 }
 0x651   : > { %v10423_v23 = vmax.f32 %v10321_v24, 0.0  ;;  %v11666_v44 = vadd.f32 %v11665_v46, %v11664_v60 }
 0x652   : > { %v11667_v16 = vpop.f32.mrf.mxu1 }
 0x653   : > { %10455 = vst [vmem:[%s17071_s9 + $0x40] sm:$0xff] %v10423_v23  ;;  %v10324_v49 = vadd.f32 %v11666_v44, %v17064_v12 }
 0x654   : > { %v11668_v56 = vpop.f32.mrf.mxu1 }
 0x655   : > { %v10424_v43 = vmax.f32 %v10324_v49, 0.0  ;;  %v11669_v52 = vadd.f32 %v11668_v56, %v11667_v16 }
 0x656   : > { %v11670_v4 = vpop.f32.mrf.mxu1 }
 0x657   : > { %10456 = vst [vmem:[%s17071_s9 + $0x48] sm:$0xff] %v10424_v43  ;;  %v10329_v48 = vadd.f32 %v11669_v52, %v17064_v12 }
 0x658   : > { %v11671_v28 = vpop.f32.mrf.mxu1 }
 0x659   : > { %v10425_v45 = vmax.f32 %v10329_v48, 0.0  ;;  %v11672_v21 = vadd.f32 %v11671_v28, %v11670_v4 }
 0x65a   : > { %v11673_v35 = vpop.f32.mrf.mxu1 }
 0x65b   : > { %10457 = vst [vmem:[%s17071_s9 + $0x50] sm:$0xff] %v10425_v45  ;;  %v10332_v58 = vadd.f32 %v11672_v21, %v17064_v12 }
 0x65c   : > { %v11674_v25 = vpop.f32.mrf.mxu1 }
 0x65d   : > { %v10426_v31 = vmax.f32 %v10332_v58, 0.0  ;;  %v11675_v10 = vadd.f32 %v11674_v25, %v11673_v35 }
 0x65e   : > { %v11676_v29 = vpop.f32.mrf.mxu1 }
 0x65f   : > { %10458 = vst [vmem:[%s17071_s9 + $0x58] sm:$0xff] %v10426_v31  ;;  %v10337_v20 = vadd.f32 %v11675_v10, %v17064_v12 }
 0x660   : > { %v11677_v0 = vpop.f32.mrf.mxu1 }
 0x661   : > { %v10427_v62 = vmax.f32 %v10337_v20, 0.0  ;;  %v11678_v18 = vadd.f32 %v11677_v0, %v11676_v29 }
 0x662   : > { %v11679_v39 = vpop.f32.mrf.mxu1 }
 0x663   : > { %10459 = vst [vmem:[%s17071_s9 + $0x60] sm:$0xff] %v10427_v62  ;;  %v10340_v7 = vadd.f32 %v11678_v18, %v17064_v12 }
 0x664   : > { %v11680_v19 = vpop.f32.mrf.mxu1 }
 0x665   : > { %v10428_v14 = vmax.f32 %v10340_v7, 0.0  ;;  %v11681_v41 = vadd.f32 %v11680_v19, %v11679_v39 }
 0x666   : > { %v11682_v30 = vpop.f32.mrf.mxu1 }
 0x667   : > { %10460 = vst [vmem:[%s17071_s9 + $0x68] sm:$0xff] %v10428_v14  ;;  %v10345_v8 = vadd.f32 %v11681_v41, %v17064_v12 }
 0x668   : > { %v11683_v32 = vpop.f32.mrf.mxu1 }
 0x669   : > { %v10429_v42 = vmax.f32 %v10345_v8, 0.0  ;;  %v11684_v37 = vadd.f32 %v11683_v32, %v11682_v30 }
 0x66a   : > { %v11685_v27 = vpop.f32.mrf.mxu1 }
 0x66b   : > { %10461 = vst [vmem:[%s17071_s9 + $0x70] sm:$0xff] %v10429_v42  ;;  %v10348_v53 = vadd.f32 %v11684_v37, %v17064_v12 }
 0x66c   : > { %v11686_v17 = vpop.f32.mrf.mxu1 }
 0x66d   : > { %v10430_v1 = vmax.f32 %v10348_v53, 0.0  ;;  %v11687_v5 = vadd.f32 %v11686_v17, %v11685_v27 }
 0x66e   : > { %v11688_v51 = vpop.f32.mrf.mxu1 }
 0x66f   : > { %10462 = vst [vmem:[%s17071_s9 + $0x78] sm:$0xff] %v10430_v1  ;;  %v10353_v59 = vadd.f32 %v11687_v5, %v17064_v12 }
 0x670   : > { %v11689_v38 = vpop.f32.mrf.mxu1 }
 0x671   : > { %v10431_v26 = vmax.f32 %v10353_v59, 0.0  ;;  %v11690_v40 = vadd.f32 %v11689_v38, %v11688_v51 }
 0x672   : > { %v11691_v33 = vpop.f32.mrf.mxu1 }
 0x673   : > { %10463 = vst [vmem:[%s17071_s9 + $0x80] sm:$0xff] %v10431_v26  ;;  %v10356_v63 = vadd.f32 %v11690_v40, %v17064_v12 }
 0x674   : > { %v11692_v36 = vpop.f32.mrf.mxu1 }
 0x675   : > { %v10432_v2 = vmax.f32 %v10356_v63, 0.0  ;;  %v11693_v55 = vadd.f32 %v11692_v36, %v11691_v33 }
 0x676   : > { %v11694_v6 = vpop.f32.mrf.mxu1 }
 0x677   : > { %10464 = vst [vmem:[%s17071_s9 + $0x88] sm:$0xff] %v10432_v2  ;;  %v10361_v9 = vadd.f32 %v11693_v55, %v17064_v12 }
 0x678   : > { %v11695_v11 = vpop.f32.mrf.mxu1 }
 0x679   : > { %v10433_v54 = vmax.f32 %v10361_v9, 0.0  ;;  %v11696_v22 = vadd.f32 %v11695_v11, %v11694_v6 }
 0x67a   : > { %v11697_v13 = vpop.f32.mrf.mxu1 }
 0x67b   : > { %10465 = vst [vmem:[%s17071_s9 + $0x90] sm:$0xff] %v10433_v54  ;;  %v10364_v57 = vadd.f32 %v11696_v22, %v17064_v12 }
 0x67c   : > { %v11698_v3 = vpop.f32.mrf.mxu1 }
 0x67d   : > { %v10434_v61 = vmax.f32 %v10364_v57, 0.0  ;;  %v11699_v34 = vadd.f32 %v11698_v3, %v11697_v13 }
 0x67e   : > { %v11700_v47 = vpop.f32.mrf.mxu1 }
 0x67f   : > { %10466 = vst [vmem:[%s17071_s9 + $0x98] sm:$0xff] %v10434_v61  ;;  %v10369_v50 = vadd.f32 %v11699_v34, %v17064_v12 }
 0x680   : > { %v11701_v15 = vpop.f32.mrf.mxu1 }
 0x681   : > { %v10435_v60 = vmax.f32 %v10369_v50, 0.0  ;;  %v11702_v24 = vadd.f32 %v11701_v15, %v11700_v47 }
 0x682   : > { %v11703_v46 = vpop.f32.mrf.mxu1 }
 0x683   : > { %10467 = vst [vmem:[%s17071_s9 + $0xa0] sm:$0xff] %v10435_v60  ;;  %v10372_v23 = vadd.f32 %v11702_v24, %v17064_v12 }
 0x684   : > { %v11704_v44 = vpop.f32.mrf.mxu1 }
 0x685   : > { %v10436_v16 = vmax.f32 %v10372_v23, 0.0  ;;  %v11705_v49 = vadd.f32 %v11704_v44, %v11703_v46 }
 0x686   : > { %v11706_v56 = vpop.f32.mrf.mxu1 }
 0x687   : > { %10468 = vst [vmem:[%s17071_s9 + $0xa8] sm:$0xff] %v10436_v16  ;;  %v10377_v43 = vadd.f32 %v11705_v49, %v17064_v12 }
 0x688   : > { %v11707_v52 = vpop.f32.mrf.mxu1 }
 0x689   : > { %v10437_v4 = vmax.f32 %v10377_v43, 0.0  ;;  %v11708_v48 = vadd.f32 %v11707_v52, %v11706_v56 }
 0x68a   : > { %v11709_v28 = vpop.f32.mrf.mxu1 }
 0x68b   : > { %10469 = vst [vmem:[%s17071_s9 + $0xb0] sm:$0xff] %v10437_v4  ;;  %v10380_v45 = vadd.f32 %v11708_v48, %v17064_v12 }
 0x68c   : > { %v11710_v21 = vpop.f32.mrf.mxu1 }
 0x68d   : > { %v10438_v35 = vmax.f32 %v10380_v45, 0.0  ;;  %v11711_v58 = vadd.f32 %v11710_v21, %v11709_v28 }
 0x68e   : > { %v11712_v25 = vpop.f32.mrf.mxu1 }
 0x68f   : > { %10470 = vst [vmem:[%s17071_s9 + $0xb8] sm:$0xff] %v10438_v35  ;;  %v10385_v31 = vadd.f32 %v11711_v58, %v17064_v12 }
 0x690   : > { %v11713_v10 = vpop.f32.mrf.mxu1 }
 0x691   : > { %v10439_v29 = vmax.f32 %v10385_v31, 0.0  ;;  %v11714_v20 = vadd.f32 %v11713_v10, %v11712_v25 }
 0x692   : > { %v11715_v0 = vpop.f32.mrf.mxu1 }
 0x693   : > { %10471 = vst [vmem:[%s17071_s9 + $0xc0] sm:$0xff] %v10439_v29  ;;  %v10388_v62 = vadd.f32 %v11714_v20, %v17064_v12 }
 0x694   : > { %v11716_v18 = vpop.f32.mrf.mxu1 }
 0x695   : > { %v10440_v39 = vmax.f32 %v10388_v62, 0.0  ;;  %v11717_v7 = vadd.f32 %v11716_v18, %v11715_v0 }
 0x696   : > { %v11718_v19 = vpop.f32.mrf.mxu1 }
 0x697   : > { %10472 = vst [vmem:[%s17071_s9 + $0xc8] sm:$0xff] %v10440_v39  ;;  %v10393_v14 = vadd.f32 %v11717_v7, %v17064_v12 }
 0x698   : > { %v11719_v41 = vpop.f32.mrf.mxu1 }
 0x699   : > { %v10441_v30 = vmax.f32 %v10393_v14, 0.0  ;;  %v11720_v8 = vadd.f32 %v11719_v41, %v11718_v19 }
 0x69a   : > { %v11721_v32 = vpop.f32.mrf.mxu1 }
 0x69b   : > { %10473 = vst [vmem:[%s17071_s9 + $0xd0] sm:$0xff] %v10441_v30  ;;  %v10396_v42 = vadd.f32 %v11720_v8, %v17064_v12 }
 0x69c   : > { %v11722_v37 = vpop.f32.mrf.mxu1 }
 0x69d   : > { %v10442_v27 = vmax.f32 %v10396_v42, 0.0  ;;  %v11723_v53 = vadd.f32 %v11722_v37, %v11721_v32 }
 0x69e   : > { %v11724_v17 = vpop.f32.mrf.mxu1 }
 0x69f   : > { %10474 = vst [vmem:[%s17071_s9 + $0xd8] sm:$0xff] %v10442_v27  ;;  %v10401_v1 = vadd.f32 %v11723_v53, %v17064_v12 }
 0x6a0   : > { %v11725_v5 = vpop.f32.mrf.mxu1 }
 0x6a1   : > { %v10443_v51 = vmax.f32 %v10401_v1, 0.0  ;;  %v11726_v59 = vadd.f32 %v11725_v5, %v11724_v17 }
 0x6a2   : > { %v11727_v38 = vpop.f32.mrf.mxu1 }
 0x6a3   : > { %10475 = vst [vmem:[%s17071_s9 + $0xe0] sm:$0xff] %v10443_v51  ;;  %v10404_v26 = vadd.f32 %v11726_v59, %v17064_v12 }
 0x6a4   : > { %v11728_v40 = vpop.f32.mrf.mxu1 }
 0x6a5   : > { %v10444_v33 = vmax.f32 %v10404_v26, 0.0  ;;  %v11729_v63 = vadd.f32 %v11728_v40, %v11727_v38 }
 0x6a6   : > { %v11730_v36 = vpop.f32.mrf.mxu1 }
 0x6a7   : > { %10476 = vst [vmem:[%s17071_s9 + $0xe8] sm:$0xff] %v10444_v33  ;;  %v10409_v2 = vadd.f32 %v11729_v63, %v17064_v12 }
 0x6a8   : > { %v11731_v55 = vpop.f32.mrf.mxu1 }
 0x6a9   : > { %v10445_v6 = vmax.f32 %v10409_v2, 0.0  ;;  %v11732_v9 = vadd.f32 %v11731_v55, %v11730_v36 }
 0x6ab   : > { %10477 = vst [vmem:[%s17071_s9 + $0xf0] sm:$0xff] %v10445_v6  ;;  %v10412_v11 = vadd.f32 %v11732_v9, %v17064_v12 }
 0x6ad   : > { %v10446_v54 = vmax.f32 %v10412_v11, 0.0 }
 0x6af   : > { %10478 = vst [vmem:[%s17071_s9 + $0xf8] sm:$0xff] %v10446_v54 }
 0x6b0 PF: > { %s17_s24 = sadd.s32 1, %s12579_s24  }
 0x6b1   : > { %p14_p4 = scmp.ge.s32.totalorder %s17_s24, 4  }
 0x6b3   :  { %16 = sbr.rel (!%p14_p4) target bundleno = 1 (0x1), region = 78 }

</bundles_post_ra>
